<compile_context>
chip_gen: v6e
topology: v6e:2x2x1
jax: 0.10.0
libtpu: 0.0.40
codegen_flags: <defaults>
</compile_context>

<pallas_src>
import math
import jax
import jax.numpy as jnp
from jax import lax
from jax.experimental import pallas as pl
from jax.experimental.pallas import tpu as pltpu


C_PAD = 128                                  # all channel dims padded to 128
GRID_H = 11                                  # 11x11 board (forced by 16*3*3 flatten)
GRID_W = 11
N_SP = GRID_H * GRID_W                       # rows per batch element (121)
TAP_OFFS = tuple(di * GRID_W + dj for di in range(3) for dj in range(3))
SHRINK = TAP_OFFS[-1]                        # rows lost per conv layer (2*11+2 = 24)


# ---------------------------------------------------------------------------
# Single fused Pallas kernel: whole forward pass on VMEM-resident data
# ---------------------------------------------------------------------------
def _fused_forward_kernel(x_ref, w1, b1, w2, b2, w3, b3, w4, b4,
                          wf1, bf1, wf2, bf2, o_ref):

    def conv3x3_relu(a, w_ref, b_ref):
        # a: (R, 128) activation (row = b*121 + h*11 + w, channel-last).
        # w_ref: (9, 128, 128) per-tap weights; b_ref: (1, 128).
        r_out = a.shape[0] - SHRINK
        acc = None
        for t, off in enumerate(TAP_OFFS):
            part = jnp.dot(a[off:off + r_out, :], w_ref[t],
                           preferred_element_type=jnp.float32)
            acc = part if acc is None else acc + part
        return jnp.maximum(acc + b_ref[...], 0.0)

    a = x_ref[...]                      # (B*121, 128)
    a = conv3x3_relu(a, w1, b1)         # conv1: 5->128
    a = conv3x3_relu(a, w2, b2)         # conv2: 128->64 (padded to 128)
    a = conv3x3_relu(a, w3, b3)         # conv3: 64->32  (padded)
    a = conv3x3_relu(a, w4, b4)         # conv4: 32->16  (padded)
    # valid rows of `a`: b*121 + h*11 + w with h, w in {0,1,2}

    batch = o_ref.shape[0]

    # fc1 == 9 accumulated (B,128)@(128,128) matmuls over the 3x3 valid spots
    # (fc1 weight columns were permuted/padded at prep time to match this).
    acc = None
    for h in range(3):
        for w in range(3):
            off = h * GRID_W + w
            rows = jnp.concatenate(
                [a[b * N_SP + off:b * N_SP + off + 1, :] for b in range(batch)],
                axis=0)                                       # (B, 128)
            part = jnp.dot(rows, wf1[h * 3 + w],
                           preferred_element_type=jnp.float32)
            acc = part if acc is None else acc + part
    hid = jnp.maximum(acc + bf1[...], 0.0)                    # fc1 + ReLU
    out = jnp.dot(hid, wf2[...],
                  preferred_element_type=jnp.float32) + bf2[...]   # fc2
    o_ref[...] = out.astype(o_ref.dtype)


# ---------------------------------------------------------------------------
# One-time parameter preparation (all layout transforms + padding here)
# ---------------------------------------------------------------------------
def prepare_params(params):
    def conv_taps(w, b):
        cout, cin = int(w.shape[0]), int(w.shape[1])
        # torch (cout, cin, kh, kw) -> (9, cin, cout), then pad to (9,128,128)
        wt = jnp.transpose(w, (2, 3, 1, 0)).reshape(9, cin, cout)
        taps = jnp.zeros((9, C_PAD, C_PAD), jnp.float32).at[:, :cin, :cout].set(wt)
        bias = jnp.zeros((1, C_PAD), jnp.float32).at[0, :cout].set(b)
        return taps, bias

    prep = {name: conv_taps(*params[name])
            for name in ("conv1", "conv2", "conv3", "conv4")}

    # fc1: torch weight (64, 144) with flatten index k = c*9 + h*3 + w.
    # Re-pack as 9 spatial taps of (cin=16 -> 128, cout=64 -> 128).
    w1, b1 = params["fc1"]
    wr = w1.reshape(64, 16, 3, 3)                      # [o, c, h, w]
    wt = jnp.transpose(wr, (2, 3, 1, 0)).reshape(9, 16, 64)   # [h*3+w, c, o]
    wf1 = jnp.zeros((9, C_PAD, C_PAD), jnp.float32).at[:, :16, :64].set(wt)
    bf1 = jnp.zeros((1, C_PAD), jnp.float32).at[0, :64].set(b1)
    prep["fc1"] = (wf1, bf1)

    # fc2: (64, 64) -> transposed + padded to (128, 128)
    w2, b2 = params["fc2"]
    wf2 = jnp.zeros((C_PAD, C_PAD), jnp.float32).at[:64, :64].set(w2.T)
    bf2 = jnp.zeros((1, C_PAD), jnp.float32).at[0, :64].set(b2)
    prep["fc2"] = (wf2, bf2)
    return prep


# ---------------------------------------------------------------------------
# Wrapper: input prep (tiny, data-movement only) + single pallas_call
# ---------------------------------------------------------------------------
def forward_pallas(x_nchw, prep):
    B, cin = x_nchw.shape[0], x_nchw.shape[1]
    # NCHW -> channel-last rows [B*121, 128] (zero-padded channels).
    x = jnp.transpose(x_nchw, (0, 2, 3, 1)).reshape(B * N_SP, cin)
    x = jnp.pad(x, ((0, 0), (0, C_PAD - cin)))

    args = [x]
    for name in ("conv1", "conv2", "conv3", "conv4", "fc1", "fc2"):
        args.extend(prep[name])

    # Advisory cost estimate (padded FLOP count) so XLA schedules this tiny
    # custom call sensibly.
    rows, flops = B * N_SP, 0
    for _ in range(4):
        rows -= SHRINK
        flops += 2 * 9 * rows * C_PAD * C_PAD
    flops += 2 * 9 * B * C_PAD * C_PAD + 2 * B * C_PAD * C_PAD
    bytes_accessed = sum(int(a.size) * 4 for a in args) + B * C_PAD * 4

    out = pl.pallas_call(
        _fused_forward_kernel,
        out_shape=jax.ShapeDtypeStruct((B, C_PAD), jnp.float32),
        in_specs=[pl.BlockSpec(memory_space=pltpu.MemorySpace.VMEM)
                  for _ in args],
        out_specs=pl.BlockSpec(memory_space=pltpu.MemorySpace.VMEM),
        cost_estimate=pl.CostEstimate(flops=flops, transcendentals=0,
                                      bytes_accessed=bytes_accessed),
    )(*args)
    return out[:, :64]


# ---------------------------------------------------------------------------
# Parameter init (deterministic, PyTorch-default-style uniform bounds)
# ---------------------------------------------------------------------------
def init_params(key):
    def uconv(key, cout, cin, k=3):
        fan_in = cin * k * k
        bound = 1.0 / math.sqrt(fan_in)
        kw, kb = jax.random.split(key)
        w = jax.random.uniform(kw, (cout, cin, k, k), jnp.float32, -bound, bound)
        b = jax.random.uniform(kb, (cout,), jnp.float32, -bound, bound)
        return w, b

    def ulinear(key, fout, fin):
        bound = 1.0 / math.sqrt(fin)
        kw, kb = jax.random.split(key)
        w = jax.random.uniform(kw, (fout, fin), jnp.float32, -bound, bound)
        b = jax.random.uniform(kb, (fout,), jnp.float32, -bound, bound)
        return w, b

    keys = jax.random.split(key, 6)
    return {
        "conv1": uconv(keys[0], 128, 5),
        "conv2": uconv(keys[1], 64, 128),
        "conv3": uconv(keys[2], 32, 64),
        "conv4": uconv(keys[3], 16, 32),
        "fc1": ulinear(keys[4], 64, 16 * 3 * 3),
        "fc2": ulinear(keys[5], 64, 64),
    }


# ---------------------------------------------------------------------------
# Pure-JAX reference (semantically identical to the PyTorch module)
# ---------------------------------------------------------------------------
def forward_ref(x_nchw, params):
    def conv(x, w, b):
        y = lax.conv_general_dilated(
            x, w, window_strides=(1, 1), padding="VALID",
            dimension_numbers=("NCHW", "OIHW", "NCHW"))
        return y + b.reshape(1, -1, 1, 1)

    x = x_nchw
    for name in ("conv1", "conv2", "conv3", "conv4"):
        w, b = params[name]
        x = jax.nn.relu(conv(x, w, b))
    x = x.reshape(x.shape[0], 16 * 3 * 3)     # torch NCHW flatten order
    w1, b1 = params["fc1"]
    w2, b2 = params["fc2"]
    x = jax.nn.relu(x @ w1.T + b1)
    x = x @ w2.T + b2
    return x


if __name__ == "__main__":
    key = jax.random.PRNGKey(0)
    kx, kp = jax.random.split(key)

    # Input: batch=2, 5 channels, 11x11 board (11 - 4*2 = 3 -> matches 16*3*3)
    x = jax.random.normal(kx, (2, 5, 11, 11), jnp.float32)
    params = init_params(kp)
    prep = prepare_params(params)             # one-time weight repack/padding

    fwd = jax.jit(forward_pallas)
    out = jax.block_until_ready(fwd(x, prep))

    ref = forward_ref(x, params)
    assert out.shape == (2, 64), out.shape
    assert jnp.allclose(out, ref, rtol=2e-4, atol=2e-4), "mismatch vs reference"

    print("KERNEL_OK")
</pallas_src>

<mosaic_0001>
module attributes {stable_mosaic.version = 11 : i64} {
  func.func @_fused_forward_kernel(%arg0: memref<242x128xf32, #tpu.memory_space<vmem>>, %arg1: memref<9x128x128xf32, #tpu.memory_space<vmem>>, %arg2: memref<1x128xf32, #tpu.memory_space<vmem>>, %arg3: memref<9x128x128xf32, #tpu.memory_space<vmem>>, %arg4: memref<1x128xf32, #tpu.memory_space<vmem>>, %arg5: memref<9x128x128xf32, #tpu.memory_space<vmem>>, %arg6: memref<1x128xf32, #tpu.memory_space<vmem>>, %arg7: memref<9x128x128xf32, #tpu.memory_space<vmem>>, %arg8: memref<1x128xf32, #tpu.memory_space<vmem>>, %arg9: memref<9x128x128xf32, #tpu.memory_space<vmem>>, %arg10: memref<1x128xf32, #tpu.memory_space<vmem>>, %arg11: memref<128x128xf32, #tpu.memory_space<vmem>>, %arg12: memref<1x128xf32, #tpu.memory_space<vmem>>, %arg13: memref<2x128xf32, #tpu.memory_space<vmem>>) attributes {dimension_semantics = [], scalar_prefetch = 0 : i64, scratch_operands = 0 : i64, tpu.core_type = #tpu.core_type<tc>} {
    %c0 = arith.constant 0 : index
    %c0_0 = arith.constant 0 : index
    %0 = vector.load %arg0[%c0, %c0_0] : memref<242x128xf32, #tpu.memory_space<vmem>>, vector<242x128xf32>
    %1 = vector.extract_strided_slice %0 {offsets = [0, 0], sizes = [218, 128], strides = [1, 1]} : vector<242x128xf32> to vector<218x128xf32>
    %c0_1 = arith.constant 0 : index
    %c0_2 = arith.constant 0 : index
    %c0_3 = arith.constant 0 : index
    %2 = vector.load %arg1[%c0_1, %c0_2, %c0_3] : memref<9x128x128xf32, #tpu.memory_space<vmem>>, vector<1x128x128xf32>
    %3 = vector.shape_cast %2 : vector<1x128x128xf32> to vector<128x128xf32>
    %cst = arith.constant dense<0.000000e+00> : vector<218x128xf32>
    %4 = tpu.matmul %1, %3, %cst {dimension_numbers = #tpu.dot_dimension_numbers<[1], [0], [0], [1], [0, 0, 1, 1], [], []>} : vector<218x128xf32>, vector<128x128xf32>, vector<218x128xf32> -> vector<218x128xf32>
    %5 = vector.extract_strided_slice %0 {offsets = [1, 0], sizes = [218, 128], strides = [1, 1]} : vector<242x128xf32> to vector<218x128xf32>
    %c1 = arith.constant 1 : index
    %c0_4 = arith.constant 0 : index
    %c0_5 = arith.constant 0 : index
    %6 = vector.load %arg1[%c1, %c0_4, %c0_5] : memref<9x128x128xf32, #tpu.memory_space<vmem>>, vector<1x128x128xf32>
    %7 = vector.shape_cast %6 : vector<1x128x128xf32> to vector<128x128xf32>
    %cst_6 = arith.constant dense<0.000000e+00> : vector<218x128xf32>
    %8 = tpu.matmul %5, %7, %cst_6 {dimension_numbers = #tpu.dot_dimension_numbers<[1], [0], [0], [1], [0, 0, 1, 1], [], []>} : vector<218x128xf32>, vector<128x128xf32>, vector<218x128xf32> -> vector<218x128xf32>
    %9 = arith.addf %4, %8 : vector<218x128xf32>
    %10 = vector.extract_strided_slice %0 {offsets = [2, 0], sizes = [218, 128], strides = [1, 1]} : vector<242x128xf32> to vector<218x128xf32>
    %c2 = arith.constant 2 : index
    %c0_7 = arith.constant 0 : index
    %c0_8 = arith.constant 0 : index
    %11 = vector.load %arg1[%c2, %c0_7, %c0_8] : memref<9x128x128xf32, #tpu.memory_space<vmem>>, vector<1x128x128xf32>
    %12 = vector.shape_cast %11 : vector<1x128x128xf32> to vector<128x128xf32>
    %cst_9 = arith.constant dense<0.000000e+00> : vector<218x128xf32>
    %13 = tpu.matmul %10, %12, %cst_9 {dimension_numbers = #tpu.dot_dimension_numbers<[1], [0], [0], [1], [0, 0, 1, 1], [], []>} : vector<218x128xf32>, vector<128x128xf32>, vector<218x128xf32> -> vector<218x128xf32>
    %14 = arith.addf %9, %13 : vector<218x128xf32>
    %15 = vector.extract_strided_slice %0 {offsets = [11, 0], sizes = [218, 128], strides = [1, 1]} : vector<242x128xf32> to vector<218x128xf32>
    %c3 = arith.constant 3 : index
    %c0_10 = arith.constant 0 : index
    %c0_11 = arith.constant 0 : index
    %16 = vector.load %arg1[%c3, %c0_10, %c0_11] : memref<9x128x128xf32, #tpu.memory_space<vmem>>, vector<1x128x128xf32>
    %17 = vector.shape_cast %16 : vector<1x128x128xf32> to vector<128x128xf32>
    %cst_12 = arith.constant dense<0.000000e+00> : vector<218x128xf32>
    %18 = tpu.matmul %15, %17, %cst_12 {dimension_numbers = #tpu.dot_dimension_numbers<[1], [0], [0], [1], [0, 0, 1, 1], [], []>} : vector<218x128xf32>, vector<128x128xf32>, vector<218x128xf32> -> vector<218x128xf32>
    %19 = arith.addf %14, %18 : vector<218x128xf32>
    %20 = vector.extract_strided_slice %0 {offsets = [12, 0], sizes = [218, 128], strides = [1, 1]} : vector<242x128xf32> to vector<218x128xf32>
    %c4 = arith.constant 4 : index
    %c0_13 = arith.constant 0 : index
    %c0_14 = arith.constant 0 : index
    %21 = vector.load %arg1[%c4, %c0_13, %c0_14] : memref<9x128x128xf32, #tpu.memory_space<vmem>>, vector<1x128x128xf32>
    %22 = vector.shape_cast %21 : vector<1x128x128xf32> to vector<128x128xf32>
    %cst_15 = arith.constant dense<0.000000e+00> : vector<218x128xf32>
    %23 = tpu.matmul %20, %22, %cst_15 {dimension_numbers = #tpu.dot_dimension_numbers<[1], [0], [0], [1], [0, 0, 1, 1], [], []>} : vector<218x128xf32>, vector<128x128xf32>, vector<218x128xf32> -> vector<218x128xf32>
    %24 = arith.addf %19, %23 : vector<218x128xf32>
    %25 = vector.extract_strided_slice %0 {offsets = [13, 0], sizes = [218, 128], strides = [1, 1]} : vector<242x128xf32> to vector<218x128xf32>
    %c5 = arith.constant 5 : index
    %c0_16 = arith.constant 0 : index
    %c0_17 = arith.constant 0 : index
    %26 = vector.load %arg1[%c5, %c0_16, %c0_17] : memref<9x128x128xf32, #tpu.memory_space<vmem>>, vector<1x128x128xf32>
    %27 = vector.shape_cast %26 : vector<1x128x128xf32> to vector<128x128xf32>
    %cst_18 = arith.constant dense<0.000000e+00> : vector<218x128xf32>
    %28 = tpu.matmul %25, %27, %cst_18 {dimension_numbers = #tpu.dot_dimension_numbers<[1], [0], [0], [1], [0, 0, 1, 1], [], []>} : vector<218x128xf32>, vector<128x128xf32>, vector<218x128xf32> -> vector<218x128xf32>
    %29 = arith.addf %24, %28 : vector<218x128xf32>
    %30 = vector.extract_strided_slice %0 {offsets = [22, 0], sizes = [218, 128], strides = [1, 1]} : vector<242x128xf32> to vector<218x128xf32>
    %c6 = arith.constant 6 : index
    %c0_19 = arith.constant 0 : index
    %c0_20 = arith.constant 0 : index
    %31 = vector.load %arg1[%c6, %c0_19, %c0_20] : memref<9x128x128xf32, #tpu.memory_space<vmem>>, vector<1x128x128xf32>
    %32 = vector.shape_cast %31 : vector<1x128x128xf32> to vector<128x128xf32>
    %cst_21 = arith.constant dense<0.000000e+00> : vector<218x128xf32>
    %33 = tpu.matmul %30, %32, %cst_21 {dimension_numbers = #tpu.dot_dimension_numbers<[1], [0], [0], [1], [0, 0, 1, 1], [], []>} : vector<218x128xf32>, vector<128x128xf32>, vector<218x128xf32> -> vector<218x128xf32>
    %34 = arith.addf %29, %33 : vector<218x128xf32>
    %35 = vector.extract_strided_slice %0 {offsets = [23, 0], sizes = [218, 128], strides = [1, 1]} : vector<242x128xf32> to vector<218x128xf32>
    %c7 = arith.constant 7 : index
    %c0_22 = arith.constant 0 : index
    %c0_23 = arith.constant 0 : index
    %36 = vector.load %arg1[%c7, %c0_22, %c0_23] : memref<9x128x128xf32, #tpu.memory_space<vmem>>, vector<1x128x128xf32>
    %37 = vector.shape_cast %36 : vector<1x128x128xf32> to vector<128x128xf32>
    %cst_24 = arith.constant dense<0.000000e+00> : vector<218x128xf32>
    %38 = tpu.matmul %35, %37, %cst_24 {dimension_numbers = #tpu.dot_dimension_numbers<[1], [0], [0], [1], [0, 0, 1, 1], [], []>} : vector<218x128xf32>, vector<128x128xf32>, vector<218x128xf32> -> vector<218x128xf32>
    %39 = arith.addf %34, %38 : vector<218x128xf32>
    %40 = vector.extract_strided_slice %0 {offsets = [24, 0], sizes = [218, 128], strides = [1, 1]} : vector<242x128xf32> to vector<218x128xf32>
    %c8 = arith.constant 8 : index
    %c0_25 = arith.constant 0 : index
    %c0_26 = arith.constant 0 : index
    %41 = vector.load %arg1[%c8, %c0_25, %c0_26] : memref<9x128x128xf32, #tpu.memory_space<vmem>>, vector<1x128x128xf32>
    %42 = vector.shape_cast %41 : vector<1x128x128xf32> to vector<128x128xf32>
    %cst_27 = arith.constant dense<0.000000e+00> : vector<218x128xf32>
    %43 = tpu.matmul %40, %42, %cst_27 {dimension_numbers = #tpu.dot_dimension_numbers<[1], [0], [0], [1], [0, 0, 1, 1], [], []>} : vector<218x128xf32>, vector<128x128xf32>, vector<218x128xf32> -> vector<218x128xf32>
    %44 = arith.addf %39, %43 : vector<218x128xf32>
    %c0_28 = arith.constant 0 : index
    %c0_29 = arith.constant 0 : index
    %45 = vector.load %arg2[%c0_28, %c0_29] : memref<1x128xf32, #tpu.memory_space<vmem>>, vector<1x128xf32>
    %46 = vector.broadcast %45 : vector<1x128xf32> to vector<218x128xf32>
    %47 = arith.addf %44, %46 : vector<218x128xf32>
    %cst_30 = arith.constant 0.000000e+00 : f32
    %48 = vector.broadcast %cst_30 : f32 to vector<218x128xf32>
    %49 = arith.maximumf %47, %48 : vector<218x128xf32>
    %50 = vector.extract_strided_slice %49 {offsets = [0, 0], sizes = [194, 128], strides = [1, 1]} : vector<218x128xf32> to vector<194x128xf32>
    %c0_31 = arith.constant 0 : index
    %c0_32 = arith.constant 0 : index
    %c0_33 = arith.constant 0 : index
    %51 = vector.load %arg3[%c0_31, %c0_32, %c0_33] : memref<9x128x128xf32, #tpu.memory_space<vmem>>, vector<1x128x128xf32>
    %52 = vector.shape_cast %51 : vector<1x128x128xf32> to vector<128x128xf32>
    %cst_34 = arith.constant dense<0.000000e+00> : vector<194x128xf32>
    %53 = tpu.matmul %50, %52, %cst_34 {dimension_numbers = #tpu.dot_dimension_numbers<[1], [0], [0], [1], [0, 0, 1, 1], [], []>} : vector<194x128xf32>, vector<128x128xf32>, vector<194x128xf32> -> vector<194x128xf32>
    %54 = vector.extract_strided_slice %49 {offsets = [1, 0], sizes = [194, 128], strides = [1, 1]} : vector<218x128xf32> to vector<194x128xf32>
    %c1_35 = arith.constant 1 : index
    %c0_36 = arith.constant 0 : index
    %c0_37 = arith.constant 0 : index
    %55 = vector.load %arg3[%c1_35, %c0_36, %c0_37] : memref<9x128x128xf32, #tpu.memory_space<vmem>>, vector<1x128x128xf32>
    %56 = vector.shape_cast %55 : vector<1x128x128xf32> to vector<128x128xf32>
    %cst_38 = arith.constant dense<0.000000e+00> : vector<194x128xf32>
    %57 = tpu.matmul %54, %56, %cst_38 {dimension_numbers = #tpu.dot_dimension_numbers<[1], [0], [0], [1], [0, 0, 1, 1], [], []>} : vector<194x128xf32>, vector<128x128xf32>, vector<194x128xf32> -> vector<194x128xf32>
    %58 = arith.addf %53, %57 : vector<194x128xf32>
    %59 = vector.extract_strided_slice %49 {offsets = [2, 0], sizes = [194, 128], strides = [1, 1]} : vector<218x128xf32> to vector<194x128xf32>
    %c2_39 = arith.constant 2 : index
    %c0_40 = arith.constant 0 : index
    %c0_41 = arith.constant 0 : index
    %60 = vector.load %arg3[%c2_39, %c0_40, %c0_41] : memref<9x128x128xf32, #tpu.memory_space<vmem>>, vector<1x128x128xf32>
    %61 = vector.shape_cast %60 : vector<1x128x128xf32> to vector<128x128xf32>
    %cst_42 = arith.constant dense<0.000000e+00> : vector<194x128xf32>
    %62 = tpu.matmul %59, %61, %cst_42 {dimension_numbers = #tpu.dot_dimension_numbers<[1], [0], [0], [1], [0, 0, 1, 1], [], []>} : vector<194x128xf32>, vector<128x128xf32>, vector<194x128xf32> -> vector<194x128xf32>
    %63 = arith.addf %58, %62 : vector<194x128xf32>
    %64 = vector.extract_strided_slice %49 {offsets = [11, 0], sizes = [194, 128], strides = [1, 1]} : vector<218x128xf32> to vector<194x128xf32>
    %c3_43 = arith.constant 3 : index
    %c0_44 = arith.constant 0 : index
    %c0_45 = arith.constant 0 : index
    %65 = vector.load %arg3[%c3_43, %c0_44, %c0_45] : memref<9x128x128xf32, #tpu.memory_space<vmem>>, vector<1x128x128xf32>
    %66 = vector.shape_cast %65 : vector<1x128x128xf32> to vector<128x128xf32>
    %cst_46 = arith.constant dense<0.000000e+00> : vector<194x128xf32>
    %67 = tpu.matmul %64, %66, %cst_46 {dimension_numbers = #tpu.dot_dimension_numbers<[1], [0], [0], [1], [0, 0, 1, 1], [], []>} : vector<194x128xf32>, vector<128x128xf32>, vector<194x128xf32> -> vector<194x128xf32>
    %68 = arith.addf %63, %67 : vector<194x128xf32>
    %69 = vector.extract_strided_slice %49 {offsets = [12, 0], sizes = [194, 128], strides = [1, 1]} : vector<218x128xf32> to vector<194x128xf32>
    %c4_47 = arith.constant 4 : index
    %c0_48 = arith.constant 0 : index
    %c0_49 = arith.constant 0 : index
    %70 = vector.load %arg3[%c4_47, %c0_48, %c0_49] : memref<9x128x128xf32, #tpu.memory_space<vmem>>, vector<1x128x128xf32>
    %71 = vector.shape_cast %70 : vector<1x128x128xf32> to vector<128x128xf32>
    %cst_50 = arith.constant dense<0.000000e+00> : vector<194x128xf32>
    %72 = tpu.matmul %69, %71, %cst_50 {dimension_numbers = #tpu.dot_dimension_numbers<[1], [0], [0], [1], [0, 0, 1, 1], [], []>} : vector<194x128xf32>, vector<128x128xf32>, vector<194x128xf32> -> vector<194x128xf32>
    %73 = arith.addf %68, %72 : vector<194x128xf32>
    %74 = vector.extract_strided_slice %49 {offsets = [13, 0], sizes = [194, 128], strides = [1, 1]} : vector<218x128xf32> to vector<194x128xf32>
    %c5_51 = arith.constant 5 : index
    %c0_52 = arith.constant 0 : index
    %c0_53 = arith.constant 0 : index
    %75 = vector.load %arg3[%c5_51, %c0_52, %c0_53] : memref<9x128x128xf32, #tpu.memory_space<vmem>>, vector<1x128x128xf32>
    %76 = vector.shape_cast %75 : vector<1x128x128xf32> to vector<128x128xf32>
    %cst_54 = arith.constant dense<0.000000e+00> : vector<194x128xf32>
    %77 = tpu.matmul %74, %76, %cst_54 {dimension_numbers = #tpu.dot_dimension_numbers<[1], [0], [0], [1], [0, 0, 1, 1], [], []>} : vector<194x128xf32>, vector<128x128xf32>, vector<194x128xf32> -> vector<194x128xf32>
    %78 = arith.addf %73, %77 : vector<194x128xf32>
    %79 = vector.extract_strided_slice %49 {offsets = [22, 0], sizes = [194, 128], strides = [1, 1]} : vector<218x128xf32> to vector<194x128xf32>
    %c6_55 = arith.constant 6 : index
    %c0_56 = arith.constant 0 : index
    %c0_57 = arith.constant 0 : index
    %80 = vector.load %arg3[%c6_55, %c0_56, %c0_57] : memref<9x128x128xf32, #tpu.memory_space<vmem>>, vector<1x128x128xf32>
    %81 = vector.shape_cast %80 : vector<1x128x128xf32> to vector<128x128xf32>
    %cst_58 = arith.constant dense<0.000000e+00> : vector<194x128xf32>
    %82 = tpu.matmul %79, %81, %cst_58 {dimension_numbers = #tpu.dot_dimension_numbers<[1], [0], [0], [1], [0, 0, 1, 1], [], []>} : vector<194x128xf32>, vector<128x128xf32>, vector<194x128xf32> -> vector<194x128xf32>
    %83 = arith.addf %78, %82 : vector<194x128xf32>
    %84 = vector.extract_strided_slice %49 {offsets = [23, 0], sizes = [194, 128], strides = [1, 1]} : vector<218x128xf32> to vector<194x128xf32>
    %c7_59 = arith.constant 7 : index
    %c0_60 = arith.constant 0 : index
    %c0_61 = arith.constant 0 : index
    %85 = vector.load %arg3[%c7_59, %c0_60, %c0_61] : memref<9x128x128xf32, #tpu.memory_space<vmem>>, vector<1x128x128xf32>
    %86 = vector.shape_cast %85 : vector<1x128x128xf32> to vector<128x128xf32>
    %cst_62 = arith.constant dense<0.000000e+00> : vector<194x128xf32>
    %87 = tpu.matmul %84, %86, %cst_62 {dimension_numbers = #tpu.dot_dimension_numbers<[1], [0], [0], [1], [0, 0, 1, 1], [], []>} : vector<194x128xf32>, vector<128x128xf32>, vector<194x128xf32> -> vector<194x128xf32>
    %88 = arith.addf %83, %87 : vector<194x128xf32>
    %89 = vector.extract_strided_slice %49 {offsets = [24, 0], sizes = [194, 128], strides = [1, 1]} : vector<218x128xf32> to vector<194x128xf32>
    %c8_63 = arith.constant 8 : index
    %c0_64 = arith.constant 0 : index
    %c0_65 = arith.constant 0 : index
    %90 = vector.load %arg3[%c8_63, %c0_64, %c0_65] : memref<9x128x128xf32, #tpu.memory_space<vmem>>, vector<1x128x128xf32>
    %91 = vector.shape_cast %90 : vector<1x128x128xf32> to vector<128x128xf32>
    %cst_66 = arith.constant dense<0.000000e+00> : vector<194x128xf32>
    %92 = tpu.matmul %89, %91, %cst_66 {dimension_numbers = #tpu.dot_dimension_numbers<[1], [0], [0], [1], [0, 0, 1, 1], [], []>} : vector<194x128xf32>, vector<128x128xf32>, vector<194x128xf32> -> vector<194x128xf32>
    %93 = arith.addf %88, %92 : vector<194x128xf32>
    %c0_67 = arith.constant 0 : index
    %c0_68 = arith.constant 0 : index
    %94 = vector.load %arg4[%c0_67, %c0_68] : memref<1x128xf32, #tpu.memory_space<vmem>>, vector<1x128xf32>
    %95 = vector.broadcast %94 : vector<1x128xf32> to vector<194x128xf32>
    %96 = arith.addf %93, %95 : vector<194x128xf32>
    %cst_69 = arith.constant 0.000000e+00 : f32
    %97 = vector.broadcast %cst_69 : f32 to vector<194x128xf32>
    %98 = arith.maximumf %96, %97 : vector<194x128xf32>
    %99 = vector.extract_strided_slice %98 {offsets = [0, 0], sizes = [170, 128], strides = [1, 1]} : vector<194x128xf32> to vector<170x128xf32>
    %c0_70 = arith.constant 0 : index
    %c0_71 = arith.constant 0 : index
    %c0_72 = arith.constant 0 : index
    %100 = vector.load %arg5[%c0_70, %c0_71, %c0_72] : memref<9x128x128xf32, #tpu.memory_space<vmem>>, vector<1x128x128xf32>
    %101 = vector.shape_cast %100 : vector<1x128x128xf32> to vector<128x128xf32>
    %cst_73 = arith.constant dense<0.000000e+00> : vector<170x128xf32>
    %102 = tpu.matmul %99, %101, %cst_73 {dimension_numbers = #tpu.dot_dimension_numbers<[1], [0], [0], [1], [0, 0, 1, 1], [], []>} : vector<170x128xf32>, vector<128x128xf32>, vector<170x128xf32> -> vector<170x128xf32>
    %103 = vector.extract_strided_slice %98 {offsets = [1, 0], sizes = [170, 128], strides = [1, 1]} : vector<194x128xf32> to vector<170x128xf32>
    %c1_74 = arith.constant 1 : index
    %c0_75 = arith.constant 0 : index
    %c0_76 = arith.constant 0 : index
    %104 = vector.load %arg5[%c1_74, %c0_75, %c0_76] : memref<9x128x128xf32, #tpu.memory_space<vmem>>, vector<1x128x128xf32>
    %105 = vector.shape_cast %104 : vector<1x128x128xf32> to vector<128x128xf32>
    %cst_77 = arith.constant dense<0.000000e+00> : vector<170x128xf32>
    %106 = tpu.matmul %103, %105, %cst_77 {dimension_numbers = #tpu.dot_dimension_numbers<[1], [0], [0], [1], [0, 0, 1, 1], [], []>} : vector<170x128xf32>, vector<128x128xf32>, vector<170x128xf32> -> vector<170x128xf32>
    %107 = arith.addf %102, %106 : vector<170x128xf32>
    %108 = vector.extract_strided_slice %98 {offsets = [2, 0], sizes = [170, 128], strides = [1, 1]} : vector<194x128xf32> to vector<170x128xf32>
    %c2_78 = arith.constant 2 : index
    %c0_79 = arith.constant 0 : index
    %c0_80 = arith.constant 0 : index
    %109 = vector.load %arg5[%c2_78, %c0_79, %c0_80] : memref<9x128x128xf32, #tpu.memory_space<vmem>>, vector<1x128x128xf32>
    %110 = vector.shape_cast %109 : vector<1x128x128xf32> to vector<128x128xf32>
    %cst_81 = arith.constant dense<0.000000e+00> : vector<170x128xf32>
    %111 = tpu.matmul %108, %110, %cst_81 {dimension_numbers = #tpu.dot_dimension_numbers<[1], [0], [0], [1], [0, 0, 1, 1], [], []>} : vector<170x128xf32>, vector<128x128xf32>, vector<170x128xf32> -> vector<170x128xf32>
    %112 = arith.addf %107, %111 : vector<170x128xf32>
    %113 = vector.extract_strided_slice %98 {offsets = [11, 0], sizes = [170, 128], strides = [1, 1]} : vector<194x128xf32> to vector<170x128xf32>
    %c3_82 = arith.constant 3 : index
    %c0_83 = arith.constant 0 : index
    %c0_84 = arith.constant 0 : index
    %114 = vector.load %arg5[%c3_82, %c0_83, %c0_84] : memref<9x128x128xf32, #tpu.memory_space<vmem>>, vector<1x128x128xf32>
    %115 = vector.shape_cast %114 : vector<1x128x128xf32> to vector<128x128xf32>
    %cst_85 = arith.constant dense<0.000000e+00> : vector<170x128xf32>
    %116 = tpu.matmul %113, %115, %cst_85 {dimension_numbers = #tpu.dot_dimension_numbers<[1], [0], [0], [1], [0, 0, 1, 1], [], []>} : vector<170x128xf32>, vector<128x128xf32>, vector<170x128xf32> -> vector<170x128xf32>
    %117 = arith.addf %112, %116 : vector<170x128xf32>
    %118 = vector.extract_strided_slice %98 {offsets = [12, 0], sizes = [170, 128], strides = [1, 1]} : vector<194x128xf32> to vector<170x128xf32>
    %c4_86 = arith.constant 4 : index
    %c0_87 = arith.constant 0 : index
    %c0_88 = arith.constant 0 : index
    %119 = vector.load %arg5[%c4_86, %c0_87, %c0_88] : memref<9x128x128xf32, #tpu.memory_space<vmem>>, vector<1x128x128xf32>
    %120 = vector.shape_cast %119 : vector<1x128x128xf32> to vector<128x128xf32>
    %cst_89 = arith.constant dense<0.000000e+00> : vector<170x128xf32>
    %121 = tpu.matmul %118, %120, %cst_89 {dimension_numbers = #tpu.dot_dimension_numbers<[1], [0], [0], [1], [0, 0, 1, 1], [], []>} : vector<170x128xf32>, vector<128x128xf32>, vector<170x128xf32> -> vector<170x128xf32>
    %122 = arith.addf %117, %121 : vector<170x128xf32>
    %123 = vector.extract_strided_slice %98 {offsets = [13, 0], sizes = [170, 128], strides = [1, 1]} : vector<194x128xf32> to vector<170x128xf32>
    %c5_90 = arith.constant 5 : index
    %c0_91 = arith.constant 0 : index
    %c0_92 = arith.constant 0 : index
    %124 = vector.load %arg5[%c5_90, %c0_91, %c0_92] : memref<9x128x128xf32, #tpu.memory_space<vmem>>, vector<1x128x128xf32>
    %125 = vector.shape_cast %124 : vector<1x128x128xf32> to vector<128x128xf32>
    %cst_93 = arith.constant dense<0.000000e+00> : vector<170x128xf32>
    %126 = tpu.matmul %123, %125, %cst_93 {dimension_numbers = #tpu.dot_dimension_numbers<[1], [0], [0], [1], [0, 0, 1, 1], [], []>} : vector<170x128xf32>, vector<128x128xf32>, vector<170x128xf32> -> vector<170x128xf32>
    %127 = arith.addf %122, %126 : vector<170x128xf32>
    %128 = vector.extract_strided_slice %98 {offsets = [22, 0], sizes = [170, 128], strides = [1, 1]} : vector<194x128xf32> to vector<170x128xf32>
    %c6_94 = arith.constant 6 : index
    %c0_95 = arith.constant 0 : index
    %c0_96 = arith.constant 0 : index
    %129 = vector.load %arg5[%c6_94, %c0_95, %c0_96] : memref<9x128x128xf32, #tpu.memory_space<vmem>>, vector<1x128x128xf32>
    %130 = vector.shape_cast %129 : vector<1x128x128xf32> to vector<128x128xf32>
    %cst_97 = arith.constant dense<0.000000e+00> : vector<170x128xf32>
    %131 = tpu.matmul %128, %130, %cst_97 {dimension_numbers = #tpu.dot_dimension_numbers<[1], [0], [0], [1], [0, 0, 1, 1], [], []>} : vector<170x128xf32>, vector<128x128xf32>, vector<170x128xf32> -> vector<170x128xf32>
    %132 = arith.addf %127, %131 : vector<170x128xf32>
    %133 = vector.extract_strided_slice %98 {offsets = [23, 0], sizes = [170, 128], strides = [1, 1]} : vector<194x128xf32> to vector<170x128xf32>
    %c7_98 = arith.constant 7 : index
    %c0_99 = arith.constant 0 : index
    %c0_100 = arith.constant 0 : index
    %134 = vector.load %arg5[%c7_98, %c0_99, %c0_100] : memref<9x128x128xf32, #tpu.memory_space<vmem>>, vector<1x128x128xf32>
    %135 = vector.shape_cast %134 : vector<1x128x128xf32> to vector<128x128xf32>
    %cst_101 = arith.constant dense<0.000000e+00> : vector<170x128xf32>
    %136 = tpu.matmul %133, %135, %cst_101 {dimension_numbers = #tpu.dot_dimension_numbers<[1], [0], [0], [1], [0, 0, 1, 1], [], []>} : vector<170x128xf32>, vector<128x128xf32>, vector<170x128xf32> -> vector<170x128xf32>
    %137 = arith.addf %132, %136 : vector<170x128xf32>
    %138 = vector.extract_strided_slice %98 {offsets = [24, 0], sizes = [170, 128], strides = [1, 1]} : vector<194x128xf32> to vector<170x128xf32>
    %c8_102 = arith.constant 8 : index
    %c0_103 = arith.constant 0 : index
    %c0_104 = arith.constant 0 : index
    %139 = vector.load %arg5[%c8_102, %c0_103, %c0_104] : memref<9x128x128xf32, #tpu.memory_space<vmem>>, vector<1x128x128xf32>
    %140 = vector.shape_cast %139 : vector<1x128x128xf32> to vector<128x128xf32>
    %cst_105 = arith.constant dense<0.000000e+00> : vector<170x128xf32>
    %141 = tpu.matmul %138, %140, %cst_105 {dimension_numbers = #tpu.dot_dimension_numbers<[1], [0], [0], [1], [0, 0, 1, 1], [], []>} : vector<170x128xf32>, vector<128x128xf32>, vector<170x128xf32> -> vector<170x128xf32>
    %142 = arith.addf %137, %141 : vector<170x128xf32>
    %c0_106 = arith.constant 0 : index
    %c0_107 = arith.constant 0 : index
    %143 = vector.load %arg6[%c0_106, %c0_107] : memref<1x128xf32, #tpu.memory_space<vmem>>, vector<1x128xf32>
    %144 = vector.broadcast %143 : vector<1x128xf32> to vector<170x128xf32>
    %145 = arith.addf %142, %144 : vector<170x128xf32>
    %cst_108 = arith.constant 0.000000e+00 : f32
    %146 = vector.broadcast %cst_108 : f32 to vector<170x128xf32>
    %147 = arith.maximumf %145, %146 : vector<170x128xf32>
    %148 = vector.extract_strided_slice %147 {offsets = [0, 0], sizes = [146, 128], strides = [1, 1]} : vector<170x128xf32> to vector<146x128xf32>
    %c0_109 = arith.constant 0 : index
    %c0_110 = arith.constant 0 : index
    %c0_111 = arith.constant 0 : index
    %149 = vector.load %arg7[%c0_109, %c0_110, %c0_111] : memref<9x128x128xf32, #tpu.memory_space<vmem>>, vector<1x128x128xf32>
    %150 = vector.shape_cast %149 : vector<1x128x128xf32> to vector<128x128xf32>
    %cst_112 = arith.constant dense<0.000000e+00> : vector<146x128xf32>
    %151 = tpu.matmul %148, %150, %cst_112 {dimension_numbers = #tpu.dot_dimension_numbers<[1], [0], [0], [1], [0, 0, 1, 1], [], []>} : vector<146x128xf32>, vector<128x128xf32>, vector<146x128xf32> -> vector<146x128xf32>
    %152 = vector.extract_strided_slice %147 {offsets = [1, 0], sizes = [146, 128], strides = [1, 1]} : vector<170x128xf32> to vector<146x128xf32>
    %c1_113 = arith.constant 1 : index
    %c0_114 = arith.constant 0 : index
    %c0_115 = arith.constant 0 : index
    %153 = vector.load %arg7[%c1_113, %c0_114, %c0_115] : memref<9x128x128xf32, #tpu.memory_space<vmem>>, vector<1x128x128xf32>
    %154 = vector.shape_cast %153 : vector<1x128x128xf32> to vector<128x128xf32>
    %cst_116 = arith.constant dense<0.000000e+00> : vector<146x128xf32>
    %155 = tpu.matmul %152, %154, %cst_116 {dimension_numbers = #tpu.dot_dimension_numbers<[1], [0], [0], [1], [0, 0, 1, 1], [], []>} : vector<146x128xf32>, vector<128x128xf32>, vector<146x128xf32> -> vector<146x128xf32>
    %156 = arith.addf %151, %155 : vector<146x128xf32>
    %157 = vector.extract_strided_slice %147 {offsets = [2, 0], sizes = [146, 128], strides = [1, 1]} : vector<170x128xf32> to vector<146x128xf32>
    %c2_117 = arith.constant 2 : index
    %c0_118 = arith.constant 0 : index
    %c0_119 = arith.constant 0 : index
    %158 = vector.load %arg7[%c2_117, %c0_118, %c0_119] : memref<9x128x128xf32, #tpu.memory_space<vmem>>, vector<1x128x128xf32>
    %159 = vector.shape_cast %158 : vector<1x128x128xf32> to vector<128x128xf32>
    %cst_120 = arith.constant dense<0.000000e+00> : vector<146x128xf32>
    %160 = tpu.matmul %157, %159, %cst_120 {dimension_numbers = #tpu.dot_dimension_numbers<[1], [0], [0], [1], [0, 0, 1, 1], [], []>} : vector<146x128xf32>, vector<128x128xf32>, vector<146x128xf32> -> vector<146x128xf32>
    %161 = arith.addf %156, %160 : vector<146x128xf32>
    %162 = vector.extract_strided_slice %147 {offsets = [11, 0], sizes = [146, 128], strides = [1, 1]} : vector<170x128xf32> to vector<146x128xf32>
    %c3_121 = arith.constant 3 : index
    %c0_122 = arith.constant 0 : index
    %c0_123 = arith.constant 0 : index
    %163 = vector.load %arg7[%c3_121, %c0_122, %c0_123] : memref<9x128x128xf32, #tpu.memory_space<vmem>>, vector<1x128x128xf32>
    %164 = vector.shape_cast %163 : vector<1x128x128xf32> to vector<128x128xf32>
    %cst_124 = arith.constant dense<0.000000e+00> : vector<146x128xf32>
    %165 = tpu.matmul %162, %164, %cst_124 {dimension_numbers = #tpu.dot_dimension_numbers<[1], [0], [0], [1], [0, 0, 1, 1], [], []>} : vector<146x128xf32>, vector<128x128xf32>, vector<146x128xf32> -> vector<146x128xf32>
    %166 = arith.addf %161, %165 : vector<146x128xf32>
    %167 = vector.extract_strided_slice %147 {offsets = [12, 0], sizes = [146, 128], strides = [1, 1]} : vector<170x128xf32> to vector<146x128xf32>
    %c4_125 = arith.constant 4 : index
    %c0_126 = arith.constant 0 : index
    %c0_127 = arith.constant 0 : index
    %168 = vector.load %arg7[%c4_125, %c0_126, %c0_127] : memref<9x128x128xf32, #tpu.memory_space<vmem>>, vector<1x128x128xf32>
    %169 = vector.shape_cast %168 : vector<1x128x128xf32> to vector<128x128xf32>
    %cst_128 = arith.constant dense<0.000000e+00> : vector<146x128xf32>
    %170 = tpu.matmul %167, %169, %cst_128 {dimension_numbers = #tpu.dot_dimension_numbers<[1], [0], [0], [1], [0, 0, 1, 1], [], []>} : vector<146x128xf32>, vector<128x128xf32>, vector<146x128xf32> -> vector<146x128xf32>
    %171 = arith.addf %166, %170 : vector<146x128xf32>
    %172 = vector.extract_strided_slice %147 {offsets = [13, 0], sizes = [146, 128], strides = [1, 1]} : vector<170x128xf32> to vector<146x128xf32>
    %c5_129 = arith.constant 5 : index
    %c0_130 = arith.constant 0 : index
    %c0_131 = arith.constant 0 : index
    %173 = vector.load %arg7[%c5_129, %c0_130, %c0_131] : memref<9x128x128xf32, #tpu.memory_space<vmem>>, vector<1x128x128xf32>
    %174 = vector.shape_cast %173 : vector<1x128x128xf32> to vector<128x128xf32>
    %cst_132 = arith.constant dense<0.000000e+00> : vector<146x128xf32>
    %175 = tpu.matmul %172, %174, %cst_132 {dimension_numbers = #tpu.dot_dimension_numbers<[1], [0], [0], [1], [0, 0, 1, 1], [], []>} : vector<146x128xf32>, vector<128x128xf32>, vector<146x128xf32> -> vector<146x128xf32>
    %176 = arith.addf %171, %175 : vector<146x128xf32>
    %177 = vector.extract_strided_slice %147 {offsets = [22, 0], sizes = [146, 128], strides = [1, 1]} : vector<170x128xf32> to vector<146x128xf32>
    %c6_133 = arith.constant 6 : index
    %c0_134 = arith.constant 0 : index
    %c0_135 = arith.constant 0 : index
    %178 = vector.load %arg7[%c6_133, %c0_134, %c0_135] : memref<9x128x128xf32, #tpu.memory_space<vmem>>, vector<1x128x128xf32>
    %179 = vector.shape_cast %178 : vector<1x128x128xf32> to vector<128x128xf32>
    %cst_136 = arith.constant dense<0.000000e+00> : vector<146x128xf32>
    %180 = tpu.matmul %177, %179, %cst_136 {dimension_numbers = #tpu.dot_dimension_numbers<[1], [0], [0], [1], [0, 0, 1, 1], [], []>} : vector<146x128xf32>, vector<128x128xf32>, vector<146x128xf32> -> vector<146x128xf32>
    %181 = arith.addf %176, %180 : vector<146x128xf32>
    %182 = vector.extract_strided_slice %147 {offsets = [23, 0], sizes = [146, 128], strides = [1, 1]} : vector<170x128xf32> to vector<146x128xf32>
    %c7_137 = arith.constant 7 : index
    %c0_138 = arith.constant 0 : index
    %c0_139 = arith.constant 0 : index
    %183 = vector.load %arg7[%c7_137, %c0_138, %c0_139] : memref<9x128x128xf32, #tpu.memory_space<vmem>>, vector<1x128x128xf32>
    %184 = vector.shape_cast %183 : vector<1x128x128xf32> to vector<128x128xf32>
    %cst_140 = arith.constant dense<0.000000e+00> : vector<146x128xf32>
    %185 = tpu.matmul %182, %184, %cst_140 {dimension_numbers = #tpu.dot_dimension_numbers<[1], [0], [0], [1], [0, 0, 1, 1], [], []>} : vector<146x128xf32>, vector<128x128xf32>, vector<146x128xf32> -> vector<146x128xf32>
    %186 = arith.addf %181, %185 : vector<146x128xf32>
    %187 = vector.extract_strided_slice %147 {offsets = [24, 0], sizes = [146, 128], strides = [1, 1]} : vector<170x128xf32> to vector<146x128xf32>
    %c8_141 = arith.constant 8 : index
    %c0_142 = arith.constant 0 : index
    %c0_143 = arith.constant 0 : index
    %188 = vector.load %arg7[%c8_141, %c0_142, %c0_143] : memref<9x128x128xf32, #tpu.memory_space<vmem>>, vector<1x128x128xf32>
    %189 = vector.shape_cast %188 : vector<1x128x128xf32> to vector<128x128xf32>
    %cst_144 = arith.constant dense<0.000000e+00> : vector<146x128xf32>
    %190 = tpu.matmul %187, %189, %cst_144 {dimension_numbers = #tpu.dot_dimension_numbers<[1], [0], [0], [1], [0, 0, 1, 1], [], []>} : vector<146x128xf32>, vector<128x128xf32>, vector<146x128xf32> -> vector<146x128xf32>
    %191 = arith.addf %186, %190 : vector<146x128xf32>
    %c0_145 = arith.constant 0 : index
    %c0_146 = arith.constant 0 : index
    %192 = vector.load %arg8[%c0_145, %c0_146] : memref<1x128xf32, #tpu.memory_space<vmem>>, vector<1x128xf32>
    %193 = vector.broadcast %192 : vector<1x128xf32> to vector<146x128xf32>
    %194 = arith.addf %191, %193 : vector<146x128xf32>
    %cst_147 = arith.constant 0.000000e+00 : f32
    %195 = vector.broadcast %cst_147 : f32 to vector<146x128xf32>
    %196 = arith.maximumf %194, %195 : vector<146x128xf32>
    %197 = vector.extract_strided_slice %196 {offsets = [0, 0], sizes = [1, 128], strides = [1, 1]} : vector<146x128xf32> to vector<1x128xf32>
    %198 = vector.extract_strided_slice %196 {offsets = [121, 0], sizes = [1, 128], strides = [1, 1]} : vector<146x128xf32> to vector<1x128xf32>
    %199 = tpu.concatenate %197, %198 in 0 : vector<1x128xf32>, vector<1x128xf32> -> vector<2x128xf32>
    %c0_148 = arith.constant 0 : index
    %c0_149 = arith.constant 0 : index
    %c0_150 = arith.constant 0 : index
    %200 = vector.load %arg9[%c0_148, %c0_149, %c0_150] : memref<9x128x128xf32, #tpu.memory_space<vmem>>, vector<1x128x128xf32>
    %201 = vector.shape_cast %200 : vector<1x128x128xf32> to vector<128x128xf32>
    %cst_151 = arith.constant dense<0.000000e+00> : vector<2x128xf32>
    %202 = tpu.matmul %199, %201, %cst_151 {dimension_numbers = #tpu.dot_dimension_numbers<[1], [0], [0], [1], [0, 0, 1, 1], [], []>} : vector<2x128xf32>, vector<128x128xf32>, vector<2x128xf32> -> vector<2x128xf32>
    %203 = vector.extract_strided_slice %196 {offsets = [1, 0], sizes = [1, 128], strides = [1, 1]} : vector<146x128xf32> to vector<1x128xf32>
    %204 = vector.extract_strided_slice %196 {offsets = [122, 0], sizes = [1, 128], strides = [1, 1]} : vector<146x128xf32> to vector<1x128xf32>
    %205 = tpu.concatenate %203, %204 in 0 : vector<1x128xf32>, vector<1x128xf32> -> vector<2x128xf32>
    %c1_152 = arith.constant 1 : index
    %c0_153 = arith.constant 0 : index
    %c0_154 = arith.constant 0 : index
    %206 = vector.load %arg9[%c1_152, %c0_153, %c0_154] : memref<9x128x128xf32, #tpu.memory_space<vmem>>, vector<1x128x128xf32>
    %207 = vector.shape_cast %206 : vector<1x128x128xf32> to vector<128x128xf32>
    %cst_155 = arith.constant dense<0.000000e+00> : vector<2x128xf32>
    %208 = tpu.matmul %205, %207, %cst_155 {dimension_numbers = #tpu.dot_dimension_numbers<[1], [0], [0], [1], [0, 0, 1, 1], [], []>} : vector<2x128xf32>, vector<128x128xf32>, vector<2x128xf32> -> vector<2x128xf32>
    %209 = arith.addf %202, %208 : vector<2x128xf32>
    %210 = vector.extract_strided_slice %196 {offsets = [2, 0], sizes = [1, 128], strides = [1, 1]} : vector<146x128xf32> to vector<1x128xf32>
    %211 = vector.extract_strided_slice %196 {offsets = [123, 0], sizes = [1, 128], strides = [1, 1]} : vector<146x128xf32> to vector<1x128xf32>
    %212 = tpu.concatenate %210, %211 in 0 : vector<1x128xf32>, vector<1x128xf32> -> vector<2x128xf32>
    %c2_156 = arith.constant 2 : index
    %c0_157 = arith.constant 0 : index
    %c0_158 = arith.constant 0 : index
    %213 = vector.load %arg9[%c2_156, %c0_157, %c0_158] : memref<9x128x128xf32, #tpu.memory_space<vmem>>, vector<1x128x128xf32>
    %214 = vector.shape_cast %213 : vector<1x128x128xf32> to vector<128x128xf32>
    %cst_159 = arith.constant dense<0.000000e+00> : vector<2x128xf32>
    %215 = tpu.matmul %212, %214, %cst_159 {dimension_numbers = #tpu.dot_dimension_numbers<[1], [0], [0], [1], [0, 0, 1, 1], [], []>} : vector<2x128xf32>, vector<128x128xf32>, vector<2x128xf32> -> vector<2x128xf32>
    %216 = arith.addf %209, %215 : vector<2x128xf32>
    %217 = vector.extract_strided_slice %196 {offsets = [11, 0], sizes = [1, 128], strides = [1, 1]} : vector<146x128xf32> to vector<1x128xf32>
    %218 = vector.extract_strided_slice %196 {offsets = [132, 0], sizes = [1, 128], strides = [1, 1]} : vector<146x128xf32> to vector<1x128xf32>
    %219 = tpu.concatenate %217, %218 in 0 : vector<1x128xf32>, vector<1x128xf32> -> vector<2x128xf32>
    %c3_160 = arith.constant 3 : index
    %c0_161 = arith.constant 0 : index
    %c0_162 = arith.constant 0 : index
    %220 = vector.load %arg9[%c3_160, %c0_161, %c0_162] : memref<9x128x128xf32, #tpu.memory_space<vmem>>, vector<1x128x128xf32>
    %221 = vector.shape_cast %220 : vector<1x128x128xf32> to vector<128x128xf32>
    %cst_163 = arith.constant dense<0.000000e+00> : vector<2x128xf32>
    %222 = tpu.matmul %219, %221, %cst_163 {dimension_numbers = #tpu.dot_dimension_numbers<[1], [0], [0], [1], [0, 0, 1, 1], [], []>} : vector<2x128xf32>, vector<128x128xf32>, vector<2x128xf32> -> vector<2x128xf32>
    %223 = arith.addf %216, %222 : vector<2x128xf32>
    %224 = vector.extract_strided_slice %196 {offsets = [12, 0], sizes = [1, 128], strides = [1, 1]} : vector<146x128xf32> to vector<1x128xf32>
    %225 = vector.extract_strided_slice %196 {offsets = [133, 0], sizes = [1, 128], strides = [1, 1]} : vector<146x128xf32> to vector<1x128xf32>
    %226 = tpu.concatenate %224, %225 in 0 : vector<1x128xf32>, vector<1x128xf32> -> vector<2x128xf32>
    %c4_164 = arith.constant 4 : index
    %c0_165 = arith.constant 0 : index
    %c0_166 = arith.constant 0 : index
    %227 = vector.load %arg9[%c4_164, %c0_165, %c0_166] : memref<9x128x128xf32, #tpu.memory_space<vmem>>, vector<1x128x128xf32>
    %228 = vector.shape_cast %227 : vector<1x128x128xf32> to vector<128x128xf32>
    %cst_167 = arith.constant dense<0.000000e+00> : vector<2x128xf32>
    %229 = tpu.matmul %226, %228, %cst_167 {dimension_numbers = #tpu.dot_dimension_numbers<[1], [0], [0], [1], [0, 0, 1, 1], [], []>} : vector<2x128xf32>, vector<128x128xf32>, vector<2x128xf32> -> vector<2x128xf32>
    %230 = arith.addf %223, %229 : vector<2x128xf32>
    %231 = vector.extract_strided_slice %196 {offsets = [13, 0], sizes = [1, 128], strides = [1, 1]} : vector<146x128xf32> to vector<1x128xf32>
    %232 = vector.extract_strided_slice %196 {offsets = [134, 0], sizes = [1, 128], strides = [1, 1]} : vector<146x128xf32> to vector<1x128xf32>
    %233 = tpu.concatenate %231, %232 in 0 : vector<1x128xf32>, vector<1x128xf32> -> vector<2x128xf32>
    %c5_168 = arith.constant 5 : index
    %c0_169 = arith.constant 0 : index
    %c0_170 = arith.constant 0 : index
    %234 = vector.load %arg9[%c5_168, %c0_169, %c0_170] : memref<9x128x128xf32, #tpu.memory_space<vmem>>, vector<1x128x128xf32>
    %235 = vector.shape_cast %234 : vector<1x128x128xf32> to vector<128x128xf32>
    %cst_171 = arith.constant dense<0.000000e+00> : vector<2x128xf32>
    %236 = tpu.matmul %233, %235, %cst_171 {dimension_numbers = #tpu.dot_dimension_numbers<[1], [0], [0], [1], [0, 0, 1, 1], [], []>} : vector<2x128xf32>, vector<128x128xf32>, vector<2x128xf32> -> vector<2x128xf32>
    %237 = arith.addf %230, %236 : vector<2x128xf32>
    %238 = vector.extract_strided_slice %196 {offsets = [22, 0], sizes = [1, 128], strides = [1, 1]} : vector<146x128xf32> to vector<1x128xf32>
    %239 = vector.extract_strided_slice %196 {offsets = [143, 0], sizes = [1, 128], strides = [1, 1]} : vector<146x128xf32> to vector<1x128xf32>
    %240 = tpu.concatenate %238, %239 in 0 : vector<1x128xf32>, vector<1x128xf32> -> vector<2x128xf32>
    %c6_172 = arith.constant 6 : index
    %c0_173 = arith.constant 0 : index
    %c0_174 = arith.constant 0 : index
    %241 = vector.load %arg9[%c6_172, %c0_173, %c0_174] : memref<9x128x128xf32, #tpu.memory_space<vmem>>, vector<1x128x128xf32>
    %242 = vector.shape_cast %241 : vector<1x128x128xf32> to vector<128x128xf32>
    %cst_175 = arith.constant dense<0.000000e+00> : vector<2x128xf32>
    %243 = tpu.matmul %240, %242, %cst_175 {dimension_numbers = #tpu.dot_dimension_numbers<[1], [0], [0], [1], [0, 0, 1, 1], [], []>} : vector<2x128xf32>, vector<128x128xf32>, vector<2x128xf32> -> vector<2x128xf32>
    %244 = arith.addf %237, %243 : vector<2x128xf32>
    %245 = vector.extract_strided_slice %196 {offsets = [23, 0], sizes = [1, 128], strides = [1, 1]} : vector<146x128xf32> to vector<1x128xf32>
    %246 = vector.extract_strided_slice %196 {offsets = [144, 0], sizes = [1, 128], strides = [1, 1]} : vector<146x128xf32> to vector<1x128xf32>
    %247 = tpu.concatenate %245, %246 in 0 : vector<1x128xf32>, vector<1x128xf32> -> vector<2x128xf32>
    %c7_176 = arith.constant 7 : index
    %c0_177 = arith.constant 0 : index
    %c0_178 = arith.constant 0 : index
    %248 = vector.load %arg9[%c7_176, %c0_177, %c0_178] : memref<9x128x128xf32, #tpu.memory_space<vmem>>, vector<1x128x128xf32>
    %249 = vector.shape_cast %248 : vector<1x128x128xf32> to vector<128x128xf32>
    %cst_179 = arith.constant dense<0.000000e+00> : vector<2x128xf32>
    %250 = tpu.matmul %247, %249, %cst_179 {dimension_numbers = #tpu.dot_dimension_numbers<[1], [0], [0], [1], [0, 0, 1, 1], [], []>} : vector<2x128xf32>, vector<128x128xf32>, vector<2x128xf32> -> vector<2x128xf32>
    %251 = arith.addf %244, %250 : vector<2x128xf32>
    %252 = vector.extract_strided_slice %196 {offsets = [24, 0], sizes = [1, 128], strides = [1, 1]} : vector<146x128xf32> to vector<1x128xf32>
    %253 = vector.extract_strided_slice %196 {offsets = [145, 0], sizes = [1, 128], strides = [1, 1]} : vector<146x128xf32> to vector<1x128xf32>
    %254 = tpu.concatenate %252, %253 in 0 : vector<1x128xf32>, vector<1x128xf32> -> vector<2x128xf32>
    %c8_180 = arith.constant 8 : index
    %c0_181 = arith.constant 0 : index
    %c0_182 = arith.constant 0 : index
    %255 = vector.load %arg9[%c8_180, %c0_181, %c0_182] : memref<9x128x128xf32, #tpu.memory_space<vmem>>, vector<1x128x128xf32>
    %256 = vector.shape_cast %255 : vector<1x128x128xf32> to vector<128x128xf32>
    %cst_183 = arith.constant dense<0.000000e+00> : vector<2x128xf32>
    %257 = tpu.matmul %254, %256, %cst_183 {dimension_numbers = #tpu.dot_dimension_numbers<[1], [0], [0], [1], [0, 0, 1, 1], [], []>} : vector<2x128xf32>, vector<128x128xf32>, vector<2x128xf32> -> vector<2x128xf32>
    %258 = arith.addf %251, %257 : vector<2x128xf32>
    %c0_184 = arith.constant 0 : index
    %c0_185 = arith.constant 0 : index
    %259 = vector.load %arg10[%c0_184, %c0_185] : memref<1x128xf32, #tpu.memory_space<vmem>>, vector<1x128xf32>
    %260 = vector.broadcast %259 : vector<1x128xf32> to vector<2x128xf32>
    %261 = arith.addf %258, %260 : vector<2x128xf32>
    %cst_186 = arith.constant 0.000000e+00 : f32
    %262 = vector.broadcast %cst_186 : f32 to vector<2x128xf32>
    %263 = arith.maximumf %261, %262 : vector<2x128xf32>
    %c0_187 = arith.constant 0 : index
    %c0_188 = arith.constant 0 : index
    %264 = vector.load %arg11[%c0_187, %c0_188] : memref<128x128xf32, #tpu.memory_space<vmem>>, vector<128x128xf32>
    %cst_189 = arith.constant dense<0.000000e+00> : vector<2x128xf32>
    %265 = tpu.matmul %263, %264, %cst_189 {dimension_numbers = #tpu.dot_dimension_numbers<[1], [0], [0], [1], [0, 0, 1, 1], [], []>} : vector<2x128xf32>, vector<128x128xf32>, vector<2x128xf32> -> vector<2x128xf32>
    %c0_190 = arith.constant 0 : index
    %c0_191 = arith.constant 0 : index
    %266 = vector.load %arg12[%c0_190, %c0_191] : memref<1x128xf32, #tpu.memory_space<vmem>>, vector<1x128xf32>
    %267 = vector.broadcast %266 : vector<1x128xf32> to vector<2x128xf32>
    %268 = arith.addf %265, %267 : vector<2x128xf32>
    %c0_192 = arith.constant 0 : index
    %c0_193 = arith.constant 0 : index
    %269 = vector.load %arg13[%c0_192, %c0_193] : memref<2x128xf32, #tpu.memory_space<vmem>>, vector<2x128xf32>
    tpu.vector_store %arg13[%c0_192, %c0_193], %268 {strides = array<i32>} : memref<2x128xf32, #tpu.memory_space<vmem>>, vector<2x128xf32>,
    return
  }
}

</mosaic_0001>

<bundles_post_ra>
// kernel: forward_pallas.1
= control target key start
LH: loop header
LB: loop body
LE: loop exit
PB: predicated region body
PF: predicated region fallthrough
CT: control target
= control target key end

     0   :  { %18 = vsyncpa [#allocation3], 0  ;;  %s21715_s0 = inlined_call_operand.vmem [shape: f32[242,128], index: 0, kind: input, shape index: {}]   ;;  %s21716_s1 = inlined_call_operand.vmem [shape: f32[9,128,128], index: 1, kind: input, shape index: {}]   ;;  %s21717_s2 = inlined_call_operand.vmem [shape: f32[1,128], index: 2, kind: input, shape index: {}]   ;;  %s21718_s3 = inlined_call_operand.hbm [shape: f32[9,128,128], index: 3, kind: input, shape index: {}]   ;;  %s21719_s4 = inlined_call_operand.vmem [shape: f32[1,128], index: 4, kind: input, shape index: {}]   ;;  %s21720_s5 = inlined_call_operand.hbm [shape: f32[9,128,128], index: 5, kind: input, shape index: {}]   ;;  %s21721_s6 = inlined_call_operand.vmem [shape: f32[1,128], index: 6, kind: input, shape index: {}]   ;;  %s21722_s7 = inlined_call_operand.hbm [shape: f32[9,128,128], index: 7, kind: input, shape index: {}]   ;;  %s21723_s8 = inlined_call_operand.vmem [shape: f32[1,128], index: 8, kind: input, shape index: {}]   ;;  %s21724_s9 = inlined_call_operand.hbm [shape: f32[9,128,128], index: 9, kind: input, shape index: {}]   ;;  %s21725_s10 = inlined_call_operand.vmem [shape: f32[1,128], index: 10, kind: input, shape index: {}]   ;;  %s21726_s11 = inlined_call_operand.hbm [shape: f32[128,128], index: 11, kind: input, shape index: {}]   ;;  %s21727_s12 = inlined_call_operand.vmem [shape: f32[1,128], index: 12, kind: input, shape index: {}]   ;;  %s21728_s13 = inlined_call_operand.hbm [shape: f32[2,128], index: 13, kind: output, shape index: {}]  }
   0x1   :  { %19 = vsyncpa [#allocation6], 0 }
   0x2   :  { %20 = vsyncpa [#allocation9], 0 }
   0x3   :  { %21 = vsyncpa [#allocation4], 0  ;;  %s16280_s25 = smov [#allocation5]   ;;  %s16281_s27 = smov [#allocation8]  }
   0x4   :  { %s47_s26 = sshll.u32 %s16280_s25, 4  ;;  %s75_s28 = sshll.u32 %s16281_s27, 4  ;;  %s48_s26 = int_to_ptr.vmem [resolvable:$true] %s47_s26  ;;  %s76_s28 = int_to_ptr.vmem [resolvable:$true] %s75_s28 }
   0x5   :  { %s16160_s29 = scalar_lea.vmem %s48_s26, 18432  ;;  %p16165_p1 = scmp.lt.s32.totalorder %s48_s26, %s48_s26 }
   0x6   :  { %p16161_p0 = scmp.ne.s32.totalorder %s48_s26, %s16160_s29  ;;  %p16166_p2 = scmp.lt.s32.totalorder %s16160_s29, %s16160_s29 }
   0x8   :  { %p16167_p3 = por %p16166_p2, %p16165_p1 }
   0xa   :  { %p16168_p4 = pnand %p16167_p3, %p16161_p0 }
   0xc   :  { %16171 = shalt.err (!%p16168_p4)
}
   0xd   :  { %s16282_s30 = smov 128   ;;  %s16283_s14 = smov 8  }
   0xe   :  { %53 = dma.hbm_to_vmem [thread:$0]  %s21720_s5, 18432, %s48_s26, [#allocation6], %s16282_s30, %s16282_s30, %s16283_s14  }
   0xf   :  { %s16180_s17 = scalar_lea.vmem %s76_s28, 18432  ;;  %p16185_p6 = scmp.lt.s32.totalorder %s76_s28, %s76_s28 }
  0x10   :  { %p16181_p5 = scmp.ne.s32.totalorder %s76_s28, %s16180_s17  ;;  %p16186_p7 = scmp.lt.s32.totalorder %s16180_s17, %s16180_s17 }
  0x12   :  { %p16187_p8 = por %p16186_p7, %p16185_p6 }
  0x14   :  { %p16188_p9 = pnand %p16187_p8, %p16181_p5 }
  0x16   :  { %16191 = shalt.err (!%p16188_p9)
}
  0x17   :  { %81 = dma.hbm_to_vmem [thread:$0]  %s21724_s9, 18432, %s76_s28, [#allocation9], %s16282_s30, %s16282_s30, %s16283_s14  }
  0x18   :  { %s16284_s20 = smov [#allocation2]   ;;  %s16285_s22 = smov [#allocation7]  }
  0x19   :  { %s33_s21 = sshll.u32 %s16284_s20, 4  ;;  %s61_s23 = sshll.u32 %s16285_s22, 4  ;;  %s34_s21 = int_to_ptr.vmem [resolvable:$true] %s33_s21  ;;  %s62_s23 = int_to_ptr.vmem [resolvable:$true] %s61_s23 }
  0x1a   :  { %s16200_s5 = scalar_lea.vmem %s34_s21, 18432  ;;  %p16205_p11 = scmp.lt.s32.totalorder %s34_s21, %s34_s21 }
  0x1b   :  { %p16201_p10 = scmp.ne.s32.totalorder %s34_s21, %s16200_s5  ;;  %p16206_p12 = scmp.lt.s32.totalorder %s16200_s5, %s16200_s5 }
  0x1d   :  { %p16207_p13 = por %p16206_p12, %p16205_p11 }
  0x1f   :  { %p16208_p0 = pnand %p16207_p13, %p16201_p10 }
  0x21   :  { %16211 = shalt.err (!%p16208_p0)
}
  0x22   :  { %39 = dma.hbm_to_vmem [thread:$0]  %s21718_s3, 18432, %s34_s21, [#allocation3], %s16282_s30, %s16282_s30, %s16283_s14  }
  0x23   :  { %s16220_s9 = scalar_lea.vmem %s62_s23, 18432  ;;  %p16225_p2 = scmp.lt.s32.totalorder %s62_s23, %s62_s23 }
  0x24   :  { %p16221_p1 = scmp.ne.s32.totalorder %s62_s23, %s16220_s9  ;;  %p16226_p3 = scmp.lt.s32.totalorder %s16220_s9, %s16220_s9 }
  0x26   :  { %p16227_p4 = por %p16226_p3, %p16225_p2 }
  0x28   :  { %p16228_p5 = pnand %p16227_p4, %p16221_p1 }
  0x2a   :  { %16231 = shalt.err (!%p16228_p5)
}
  0x2b   :  { %67 = dma.hbm_to_vmem [thread:$0]  %s21722_s7, 18432, %s62_s23, [#allocation6], %s16282_s30, %s16282_s30, %s16283_s14  }
  0x2c   :  { %s16286_s28 = smov [#allocation10]  }
  0x2d   :  { %s89_s29 = sshll.u32 %s16286_s28, 4  ;;  %s90_s29 = int_to_ptr.vmem [resolvable:$true] %s89_s29 }
  0x2e   :  { %s16240_s15 = scalar_lea.vmem %s90_s29, 2048  ;;  %p16245_p7 = scmp.lt.s32.totalorder %s90_s29, %s90_s29 }
  0x2f   :  { %p16241_p6 = scmp.ne.s32.totalorder %s90_s29, %s16240_s15  ;;  %p16246_p8 = scmp.lt.s32.totalorder %s16240_s15, %s16240_s15 }
  0x31   :  { %p16247_p9 = por %p16246_p8, %p16245_p7 }
  0x33   :  { %p16248_p10 = pnand %p16247_p9, %p16241_p6 }
  0x35   :  { %16251 = shalt.err (!%p16248_p10)
}
  0x36   :  { %95 = dma.hbm_to_vmem [thread:$0]  %s21726_s11, 2048, %s90_s29, [#allocation9], %s16282_s30, %s16282_s30, %s16283_s14  }
  0x37   :  { %16272 = dma.done.wait [#allocation3], 18432  }
  0x38   :  { %16273 = vsyncadd [#allocation3], 4294948864 }
  0x39   :  { %16274 = dma.done.wait [#allocation6], 36864  }
  0x3a   :  { %16275 = vsyncadd [#allocation6], 4294930432 }
  0x3b   :  { %16276 = dma.done.wait [#allocation9], 20480  }
  0x3c   :  { %16277 = vsyncadd [#allocation9], 4294946816  ;;  %v11033_v0 = vld [vmem:[%s21716_s1 + $0xf8] sm:$0xff]  ;;  %v11032_v2 = vld [vmem:[%s21716_s1 + $0xf0] sm:$0xff]  ;;  %vm205_vm0 = vcmask 1046528   ;;  %vm716_vm1 = vcmask 1045504  }
  0x3d   :  { %v159_v1 = vld [vmem:[%s21716_s1 + $0x78] sm:$0xff]  ;;  %12744 = vmatprep.subr.mxu0 %v11033_v0  ;;  %v158_v3 = vld [vmem:[%s21716_s1 + $0x70] sm:$0xff]  ;;  %v11031_v4 = vld [vmem:[%s21716_s1 + $0xe8] sm:$0xff]  ;;  %vm1051_vm2 = vcmask 1044480   ;;  %vm1385_vm3 = vcmask 1043456   ;;  %vm1719_vm4 = vcmask 1042432  }
  0x3e   :  { %12818 = vmatprep.subr.mxu1 %v159_v1  ;;  %12745 = vmatpush3.msra.mxu0 %v11033_v0  ;;  %v157_v5 = vld [vmem:[%s21716_s1 + $0x68] sm:$0xff]  ;;  %v11030_v6 = vld [vmem:[%s21716_s1 + $0xe0] sm:$0xff]  ;;  %v11029_v8 = vld [vmem:[%s21716_s1 + $0xd8] sm:$0xff]  ;;  %vm2054_vm5 = vcmask 1041408   ;;  %vm2389_vm6 = vcmask 1040384   ;;  %vm16288_vm7 = vmmov 0  }
  0x3f   :  { %12819 = vmatpush3.msra.mxu1 %v159_v1  ;;  %12746 = vmatprep.subr.mxu0 %v11032_v2  ;;  %v156_v7 = vld [vmem:[%s21716_s1 + $0x60] sm:$0xff]  ;;  %v155_v9 = vld [vmem:[%s21716_s1 + $0x58] sm:$0xff]  ;;  %v11028_v10 = vld [vmem:[%s21716_s1 + $0xd0] sm:$0xff] }
  0x40   :  { %12820 = vmatprep.subr.mxu1 %v158_v3  ;;  %12747 = vmatpush3.msra.mxu0 %v11032_v2  ;;  %v154_v11 = vld [vmem:[%s21716_s1 + $0x50] sm:$0xff]  ;;  %v11027_v12 = vld [vmem:[%s21716_s1 + $0xc8] sm:$0xff]  ;;  %v11026_v14 = vld [vmem:[%s21716_s1 + $0xc0] sm:$0xff] }
  0x41   :  { %12821 = vmatpush3.msra.mxu1 %v158_v3  ;;  %12748 = vmatprep.subr.mxu0 %v11031_v4  ;;  %v153_v13 = vld [vmem:[%s21716_s1 + $0x48] sm:$0xff]  ;;  %v152_v15 = vld [vmem:[%s21716_s1 + $0x40] sm:$0xff]  ;;  %v11025_v16 = vld [vmem:[%s21716_s1 + $0xb8] sm:$0xff] }
  0x42   :  { %12822 = vmatprep.subr.mxu1 %v157_v5  ;;  %12749 = vmatpush3.msra.mxu0 %v11031_v4  ;;  %v151_v17 = vld [vmem:[%s21716_s1 + $0x38] sm:$0xff]  ;;  %v11024_v18 = vld [vmem:[%s21716_s1 + $0xb0] sm:$0xff]  ;;  %v11023_v20 = vld [vmem:[%s21716_s1 + $0xa8] sm:$0xff] }
  0x43   :  { %12823 = vmatpush3.msra.mxu1 %v157_v5  ;;  %12750 = vmatprep.subr.mxu0 %v11030_v6  ;;  %v150_v19 = vld [vmem:[%s21716_s1 + $0x30] sm:$0xff]  ;;  %v149_v21 = vld [vmem:[%s21716_s1 + $0x28] sm:$0xff]  ;;  %v11022_v22 = vld [vmem:[%s21716_s1 + $0xa0] sm:$0xff] }
  0x44   :  { %12824 = vmatprep.subr.mxu1 %v156_v7  ;;  %12751 = vmatpush3.msra.mxu0 %v11030_v6  ;;  %v148_v23 = vld [vmem:[%s21716_s1 + $0x20] sm:$0xff]  ;;  %v11021_v24 = vld [vmem:[%s21716_s1 + $0x98] sm:$0xff]  ;;  %v16476_v27 = vld [vmem:[%s21715_s0 + $0x8] sm:$0xff] }
  0x45   :  { %12825 = vmatpush3.msra.mxu1 %v156_v7  ;;  %12752 = vmatprep.subr.mxu0 %v11029_v8  ;;  %v147_v25 = vld [vmem:[%s21716_s1 + $0x18] sm:$0xff]  ;;  %v16471_v26 = vld [vmem:[%s21715_s0] sm:$0xff]  ;;  %v11020_v28 = vld [vmem:[%s21716_s1 + $0x90] sm:$0xff]  ;;  %v207_v32 = vrot.slane %v16476_v27, 1 }
  0x46   :  { %12826 = vmatprep.subr.mxu1 %v155_v9  ;;  %12753 = vmatpush3.msra.mxu0 %v11029_v8  ;;  %v146_v29 = vld [vmem:[%s21716_s1 + $0x10] sm:$0xff]  ;;  %v206_v31 = vrot.slane %v16471_v26, 1  ;;  %v16494_v33 = vld [vmem:[%s21715_s0 + $0x18] sm:$0xff]  ;;  %v11019_v34 = vld [vmem:[%s21716_s1 + $0x88] sm:$0xff] }
  0x47   :  { %12827 = vmatpush3.msra.mxu1 %v155_v9  ;;  %12754 = vmatprep.subr.mxu0 %v11028_v10  ;;  %v16487_v30 = vld [vmem:[%s21715_s0 + $0x10] sm:$0xff]  ;;  %v145_v35 = vld [vmem:[%s21716_s1 + $0x8] sm:$0xff]  ;;  %v11018_v37 = vld [vmem:[%s21716_s1 + $0x80] sm:$0xff]  ;;  %v211_v39 = vrot.slane %v16494_v33, 1 }
  0x48   :  { %12828 = vmatprep.subr.mxu1 %v154_v11  ;;  %12755 = vmatpush3.msra.mxu0 %v11028_v10  ;;  %v209_v36 = vrot.slane %v16487_v30, 1  ;;  %v144_v38 = vld [vmem:[%s21716_s1] sm:$0xff]  ;;  %v208_v41 = vsel %vm205_vm0, %v206_v31, %v207_v32  ;;  %v16519_v42 = vld [vmem:[%s21715_s0 + $0x28] sm:$0xff]  ;;  %v11049_v45 = vld [vmem:[%s21716_s1 + $0x178] sm:$0xff] }
  0x49   :  { %12829 = vmatpush3.msra.mxu1 %v154_v11  ;;  %12756 = vmatprep.subr.mxu0 %v11027_v12  ;;  %v16513_v40 = vld [vmem:[%s21715_s0 + $0x20] sm:$0xff]  ;;  %v215_v47 = vrot.slane %v16519_v42, 1  ;;  %v16531_v48 = vld [vmem:[%s21715_s0 + $0x30] sm:$0xff]  ;;  %v16537_v49 = vld [vmem:[%s21715_s0 + $0x38] sm:$0xff] }
  0x4a   :  { %12830 = vmatprep.subr.mxu1 %v153_v13  ;;  %12757 = vmatpush3.msra.mxu0 %v11027_v12  ;;  %v210_v43 = vsel %vm205_vm0, %v207_v32, %v209_v36  ;;  %v213_v44 = vrot.slane %v16513_v40, 1  ;;  %v212_v46 = vsel %vm205_vm0, %v209_v36, %v211_v39  ;;  %v11048_v50 = vld [vmem:[%s21716_s1 + $0x170] sm:$0xff]  ;;  %v11065_v51 = vld [vmem:[%s21716_s1 + $0x1f8] sm:$0xff]  ;;  %v217_v53 = vrot.slane %v16531_v48, 1  ;;  %v16554_v56 = vld [vmem:[%s21715_s0 + $0x40] sm:$0xff] }
  0x4b   :  { %12831 = vmatpush3.msra.mxu1 %v153_v13  ;;  %12758 = vmatprep.subr.mxu0 %v11026_v14  ;;  %v219_v55 = vrot.slane %v16537_v49, 1  ;;  %v11047_v57 = vld [vmem:[%s21716_s1 + $0x168] sm:$0xff]  ;;  %v221_v60 = vrot.slane %v16554_v56, 1  ;;  %v16573_v63 = vld [vmem:[%s21715_s0 + $0x50] sm:$0xff]  ;;  %v11046_v0 = vld [vmem:[%s21716_s1 + $0x160] sm:$0xff] }
  0x4c   :  { %12832 = vmatprep.subr.mxu1 %v152_v15  ;;  %12759 = vmatpush3.msra.mxu0 %v11026_v14  ;;  %v214_v52 = vsel %vm205_vm0, %v211_v39, %v213_v44  ;;  %v216_v54 = vsel %vm205_vm0, %v213_v44, %v215_v47  ;;  %v16562_v58 = vld [vmem:[%s21715_s0 + $0x48] sm:$0xff]  ;;  %v218_v59 = vsel %vm205_vm0, %v215_v47, %v217_v53  ;;  %v16581_v1 = vld [vmem:[%s21715_s0 + $0x58] sm:$0xff]  ;;  %v11064_v2 = vld [vmem:[%s21716_s1 + $0x1f0] sm:$0xff]  ;;  %v225_v4 = vrot.slane %v16573_v63, 1 }
  0x4d   :  { %12833 = vmatpush3.msra.mxu1 %v152_v15  ;;  %12760 = vmatprep.subr.mxu0 %v11025_v16  ;;  %v220_v61 = vsel %vm205_vm0, %v217_v53, %v219_v55  ;;  %v223_v62 = vrot.slane %v16562_v58, 1  ;;  %v222_v3 = vsel %vm205_vm0, %v219_v55, %v221_v60  ;;  %v11045_v5 = vld [vmem:[%s21716_s1 + $0x158] sm:$0xff]  ;;  %v227_v7 = vrot.slane %v16581_v1, 1  ;;  %v16598_v8 = vld [vmem:[%s21715_s0 + $0x60] sm:$0xff]  ;;  %v16603_v9 = vld [vmem:[%s21715_s0 + $0x68] sm:$0xff] }
  0x4e   :  { %12834 = vmatprep.subr.mxu1 %v151_v17  ;;  %12761 = vmatpush3.msra.mxu0 %v11025_v16  ;;  %v11044_v10 = vld [vmem:[%s21716_s1 + $0x150] sm:$0xff]  ;;  %v11063_v11 = vld [vmem:[%s21716_s1 + $0x1e8] sm:$0xff]  ;;  %v229_v13 = vrot.slane %v16598_v8, 1  ;;  %v231_v15 = vrot.slane %v16603_v9, 1  ;;  %v11041_v36 = vld [vmem:[%s21716_s1 + $0x138] sm:$0xff] }
  0x4f   :  { %12835 = vmatpush3.msra.mxu1 %v151_v17  ;;  %12762 = vmatprep.subr.mxu0 %v11024_v18  ;;  %v224_v6 = vsel %vm205_vm0, %v221_v60, %v223_v62  ;;  %v226_v12 = vsel %vm205_vm0, %v223_v62, %v225_v4  ;;  %v228_v14 = vsel %vm205_vm0, %v225_v4, %v227_v7  ;;  %v16620_v16 = vld [vmem:[%s21715_s0 + $0x70] sm:$0xff]  ;;  %v16625_v17 = vld [vmem:[%s21715_s0 + $0x78] sm:$0xff]  ;;  %v11058_v4 = vld [vmem:[%s21716_s1 + $0x1c0] sm:$0xff] }
  0x50   :  { %12836 = vmatprep.subr.mxu1 %v150_v19  ;;  %12763 = vmatpush3.msra.mxu0 %v11024_v18  ;;  %v11043_v18 = vld [vmem:[%s21716_s1 + $0x148] sm:$0xff]  ;;  %v11060_v47 = vld [vmem:[%s21716_s1 + $0x1d0] sm:$0xff]  ;;  %v16717_v60 = vld [vmem:[%s21715_s0 + $0xb8] sm:$0xff] }
  0x51   :  { %12837 = vmatpush3.msra.mxu1 %v150_v19  ;;  %12764 = vmatprep.subr.mxu0 %v11023_v20  ;;  %v11062_v19 = vld [vmem:[%s21716_s1 + $0x1e0] sm:$0xff]  ;;  %v16705_v55 = vld [vmem:[%s21715_s0 + $0xb0] sm:$0xff] }
  0x52   :  { %12838 = vmatprep.subr.mxu1 %v149_v21  ;;  %12765 = vmatpush3.msra.mxu0 %v11023_v20  ;;  %v230_v20 = vsel %vm205_vm0, %v227_v7, %v229_v13  ;;  %v249_v62 = vrot.slane %v16705_v55, 1 }
  0x53   :  { %12839 = vmatpush3.msra.mxu1 %v149_v21  ;;  %12766 = vmatprep.subr.mxu0 %v11022_v22  ;;  %v233_v21 = vrot.slane %v16620_v16, 1 }
  0x54   :  { %12840 = vmatprep.subr.mxu1 %v148_v23  ;;  %12767 = vmatpush3.msra.mxu0 %v11022_v22  ;;  %v232_v22 = vsel %vm205_vm0, %v229_v13, %v231_v15 }
  0x55   :  { %12841 = vmatpush3.msra.mxu1 %v148_v23  ;;  %12768 = vmatprep.subr.mxu0 %v11021_v24  ;;  %v235_v23 = vrot.slane %v16625_v17, 1 }
  0x56   :  { %12842 = vmatprep.subr.mxu1 %v147_v25  ;;  %12769 = vmatpush3.msra.mxu0 %v11021_v24  ;;  %v16642_v24 = vld [vmem:[%s21715_s0 + $0x80] sm:$0xff] }
  0x57   :  { %12843 = vmatpush3.msra.mxu1 %v147_v25  ;;  %12770 = vmatprep.subr.mxu0 %v11020_v28  ;;  %v11042_v25 = vld [vmem:[%s21716_s1 + $0x140] sm:$0xff]  ;;  %v237_v31 = vrot.slane %v16642_v24, 1  ;;  %v236_v32 = vsel %vm205_vm0, %v233_v21, %v235_v23 }
  0x58   :  { %12844 = vmatprep.subr.mxu1 %v146_v29  ;;  %12771 = vmatpush3.msra.mxu0 %v11020_v28  ;;  %v16650_v28 = vld [vmem:[%s21715_s0 + $0x88] sm:$0xff] }
  0x59   :  { %12845 = vmatpush3.msra.mxu1 %v146_v29  ;;  %12772 = vmatprep.subr.mxu0 %v11019_v34  ;;  %v234_v29 = vsel %vm205_vm0, %v231_v15, %v233_v21  ;;  %v238_v39 = vsel %vm205_vm0, %v235_v23, %v237_v31  ;;  %v16755_v15 = vld [vmem:[%s21715_s0 + $0xd0] sm:$0xff] }
  0x5a   :  { %12846 = vmatprep.subr.mxu1 %v145_v35  ;;  %12773 = vmatpush3.msra.mxu0 %v11019_v34  ;;  %v239_v34 = vrot.slane %v16650_v28, 1  ;;  %v257_v21 = vrot.slane %v16755_v15, 1 }
  0x5b   :  { %12847 = vmatpush3.msra.mxu1 %v145_v35  ;;  %12774 = vmatprep.subr.mxu0 %v11018_v37  ;;  %v16661_v35 = vld [vmem:[%s21715_s0 + $0x90] sm:$0xff] }
  0x5c   :  { %12848 = vmatprep.subr.mxu1 %v144_v38  ;;  %12775 = vmatpush3.msra.mxu0 %v11018_v37  ;;  %v11061_v37 = vld [vmem:[%s21716_s1 + $0x1d8] sm:$0xff] }
  0x5d   :  { %12776 = vmatprep.mubr.f32.mxu0 %v208_v41  ;;  %12849 = vmatpush3.msra.mxu1 %v144_v38  ;;  %v16672_v38 = vld [vmem:[%s21715_s0 + $0x98] sm:$0xff]  ;;  %v241_v41 = vrot.slane %v16661_v35, 1 }
  0x5e   :  { %12850 = vmatprep.mubr.f32.mxu1 %v16471_v26  ;;  %12777 = vmatmul.mubr.f32.vlgmr.msra.gmra.mxu0 %v210_v43  ;;  %v240_v43 = vsel %vm205_vm0, %v237_v31, %v239_v34  ;;  %v243_v44 = vrot.slane %v16672_v38, 1 }
  0x5f   :  { %12851 = vmatmul.mubr.f32.vlgmr.msra.gmra.mxu1 %v16476_v27  ;;  %12892 = vmatprep.subr.mxu0 %v11049_v45 }
  0x60   :  { %12779 = vmatprep.mubr.f32.mxu0 %v212_v46  ;;  %12893 = vmatpush3.msra.mxu0 %v11049_v45  ;;  %v16683_v45 = vld [vmem:[%s21715_s0 + $0xa0] sm:$0xff]  ;;  %v11040_v46 = vld [vmem:[%s21716_s1 + $0x130] sm:$0xff]  ;;  %v244_v53 = vsel %vm205_vm0, %v241_v41, %v243_v44 }
  0x61   :  { %12853 = vmatprep.mubr.f32.mxu1 %v16487_v30  ;;  %12894 = vmatprep.subr.mxu0 %v11048_v50 }
  0x62   :  { %12966 = vmatprep.subr.mxu1 %v11065_v51  ;;  %12780 = vmatmul.mubr.f32.gmra.mxu0 %v214_v52  ;;  %v245_v52 = vrot.slane %v16683_v45, 1 }
  0x63   :  { %12854 = vmatmul.mubr.f32.gmra.mxu1 %v16494_v33  ;;  %12895 = vmatpush3.msra.mxu0 %v11048_v50  ;;  %v16694_v50 = vld [vmem:[%s21715_s0 + $0xa8] sm:$0xff] }
  0x64   :  { %12782 = vmatprep.mubr.f32.mxu0 %v216_v54  ;;  %12856 = vmatprep.mubr.f32.mxu1 %v16513_v40  ;;  %v247_v54 = vrot.slane %v16694_v50, 1 }
  0x65   :  { %12896 = vmatprep.subr.mxu0 %v11047_v57  ;;  %12967 = vmatpush3.msra.mxu1 %v11065_v51  ;;  %v242_v51 = vsel %vm205_vm0, %v239_v34, %v241_v41  ;;  %v11035_v34 = vld [vmem:[%s21716_s1 + $0x108] sm:$0xff]  ;;  %v718_v41 = vrot.slane %v16476_v27, 2 }
  0x66   :  { %12897 = vmatpush3.msra.mxu0 %v11047_v57  ;;  %12968 = vmatprep.subr.mxu1 %v11064_v2  ;;  %v11039_v57 = vld [vmem:[%s21716_s1 + $0x128] sm:$0xff]  ;;  %v250_v7 = vsel %vm205_vm0, %v247_v54, %v249_v62 }
  0x67   :  { %12783 = vmatmul.mubr.f32.gmra.mxu0 %v218_v59  ;;  %12857 = vmatmul.mubr.f32.gmra.mxu1 %v16519_v42  ;;  %v11059_v59 = vld [vmem:[%s21716_s1 + $0x1c8] sm:$0xff] }
  0x68   :  { %12785 = vmatprep.mubr.f32.mxu0 %v220_v61  ;;  %12859 = vmatprep.mubr.f32.mxu1 %v16531_v48  ;;  %v246_v61 = vsel %vm205_vm0, %v243_v44, %v245_v52  ;;  %v11052_v44 = vld [vmem:[%s21716_s1 + $0x190] sm:$0xff] }
  0x69   :  { %12898 = vmatprep.subr.mxu0 %v11046_v0  ;;  %12969 = vmatpush3.msra.mxu1 %v11064_v2  ;;  %v16726_v2 = vld [vmem:[%s21715_s0 + $0xc0] sm:$0xff] }
  0x6a   :  { %12899 = vmatpush3.msra.mxu0 %v11046_v0  ;;  %12970 = vmatprep.subr.mxu1 %v11063_v11  ;;  %v248_v0 = vsel %vm205_vm0, %v245_v52, %v247_v54 }
  0x6b   :  { %12786 = vmatmul.mubr.f32.gmra.mxu0 %v222_v3  ;;  %12860 = vmatmul.mubr.f32.gmra.mxu1 %v16537_v49  ;;  %v11038_v3 = vld [vmem:[%s21716_s1 + $0x120] sm:$0xff] }
  0x6c   :  { %12900 = vmatprep.subr.mxu0 %v11045_v5  ;;  %12788 = vmatprep.mubr.f32.mxu0 %v224_v6  ;;  %v16739_v6 = vld [vmem:[%s21715_s0 + $0xc8] sm:$0xff] }
  0x6d   :  { %12862 = vmatprep.mubr.f32.mxu1 %v16554_v56  ;;  %12901 = vmatpush3.msra.mxu0 %v11045_v5  ;;  %v251_v5 = vrot.slane %v16717_v60, 1 }
  0x6e   :  { %12902 = vmatprep.subr.mxu0 %v11044_v10  ;;  %12971 = vmatpush3.msra.mxu1 %v11063_v11  ;;  %v11037_v11 = vld [vmem:[%s21716_s1 + $0x118] sm:$0xff] }
  0x6f   :  { %12789 = vmatmul.mubr.f32.gmra.mxu0 %v226_v12  ;;  %12863 = vmatmul.mubr.f32.gmra.mxu1 %v16562_v58  ;;  %v11057_v12 = vld [vmem:[%s21716_s1 + $0x1b8] sm:$0xff]  ;;  %v252_v13 = vsel %vm205_vm0, %v249_v62, %v251_v5  ;;  %v724_v62 = vrot.slane %v16513_v40, 2 }
  0x70   :  { %12791 = vmatprep.mubr.f32.mxu0 %v228_v14  ;;  %12865 = vmatprep.mubr.f32.mxu1 %v16573_v63  ;;  %v255_v14 = vrot.slane %v16739_v6, 1 }
  0x71   :  { %12903 = vmatpush3.msra.mxu0 %v11044_v10  ;;  %12972 = vmatprep.subr.mxu1 %v11062_v19  ;;  %v253_v10 = vrot.slane %v16726_v2, 1 }
  0x72   :  { %12904 = vmatprep.subr.mxu0 %v11043_v18  ;;  %12973 = vmatpush3.msra.mxu1 %v11062_v19  ;;  %v11056_v19 = vld [vmem:[%s21716_s1 + $0x1b0] sm:$0xff]  ;;  %v258_v31 = vsel %vm205_vm0, %v255_v14, %v257_v21 }
  0x73   :  { %12792 = vmatmul.mubr.f32.gmra.mxu0 %v230_v20  ;;  %12866 = vmatmul.mubr.f32.gmra.mxu1 %v16581_v1  ;;  %v11036_v20 = vld [vmem:[%s21716_s1 + $0x110] sm:$0xff]  ;;  %v256_v23 = vsel %vm205_vm0, %v253_v10, %v255_v14 }
  0x74   :  { %12905 = vmatpush3.msra.mxu0 %v11043_v18  ;;  %12794 = vmatprep.mubr.f32.mxu0 %v232_v22  ;;  %v254_v18 = vsel %vm205_vm0, %v251_v5, %v253_v10  ;;  %v16770_v22 = vld [vmem:[%s21715_s0 + $0xd8] sm:$0xff] }
  0x75   :  { %12868 = vmatprep.mubr.f32.mxu1 %v16598_v8  ;;  %12906 = vmatprep.subr.mxu0 %v11042_v25 }
  0x76   :  { %12907 = vmatpush3.msra.mxu0 %v11042_v25  ;;  %12974 = vmatprep.subr.mxu1 %v11061_v37  ;;  %v11055_v25 = vld [vmem:[%s21716_s1 + $0x1a8] sm:$0xff] }
  0x77   :  { %12795 = vmatmul.mubr.f32.gmra.mxu0 %v234_v29  ;;  %12869 = vmatmul.mubr.f32.gmra.mxu1 %v16603_v9  ;;  %v259_v29 = vrot.slane %v16770_v22, 1 }
  0x78   :  { %12797 = vmatprep.mubr.f32.mxu0 %v236_v32  ;;  %12871 = vmatprep.mubr.f32.mxu1 %v16620_v16  ;;  %v11054_v32 = vld [vmem:[%s21716_s1 + $0x1a0] sm:$0xff] }
  0x79   :  { %12908 = vmatprep.subr.mxu0 %v11041_v36  ;;  %12975 = vmatpush3.msra.mxu1 %v11061_v37  ;;  %v260_v37 = vsel %vm205_vm0, %v257_v21, %v259_v29 }
  0x7a   :  { %12909 = vmatpush3.msra.mxu0 %v11041_v36  ;;  %12976 = vmatprep.subr.mxu1 %v11060_v47  ;;  %v11053_v36 = vld [vmem:[%s21716_s1 + $0x198] sm:$0xff] }
  0x7b   :  { %12798 = vmatmul.mubr.f32.gmra.mxu0 %v238_v39  ;;  %12872 = vmatmul.mubr.f32.gmra.mxu1 %v16625_v17  ;;  %v717_v39 = vrot.slane %v16471_v26, 2  ;;  %v1052_v26 = vrot.slane %v16476_v27, 3 }
  0x7c   :  { %12800 = vmatprep.mubr.f32.mxu0 %v240_v43  ;;  %12874 = vmatprep.mubr.f32.mxu1 %v16642_v24  ;;  %v720_v43 = vrot.slane %v16487_v30, 2 }
  0x7d   :  { %12910 = vmatprep.subr.mxu0 %v11040_v46  ;;  %12977 = vmatpush3.msra.mxu1 %v11060_v47  ;;  %v1053_v47 = vrot.slane %v16487_v30, 3  ;;  %v719_v52 = vsel %vm716_vm1, %v717_v39, %v718_v41  ;;  %v734_v39 = vrot.slane %v16562_v58, 2 }
  0x7e   :  { %12911 = vmatpush3.msra.mxu0 %v11040_v46  ;;  %12978 = vmatprep.subr.mxu1 %v11059_v59  ;;  %v11034_v46 = vld [vmem:[%s21716_s1 + $0x100] sm:$0xff]  ;;  %v721_v54 = vsel %vm716_vm1, %v718_v41, %v720_v43 }
  0x7f   :  { %12801 = vmatmul.mubr.f32.gmra.mxu0 %v242_v51  ;;  %12875 = vmatmul.mubr.f32.gmra.mxu1 %v16650_v28  ;;  %v11051_v51 = vld [vmem:[%s21716_s1 + $0x188] sm:$0xff] }
  0x80   :  { %12803 = vmatprep.mubr.f32.mxu0 %v244_v53  ;;  %12877 = vmatprep.mubr.f32.mxu1 %v16661_v35  ;;  %v1055_v53 = vrot.slane %v16494_v33, 3 }
  0x81   :  { %12912 = vmatprep.subr.mxu0 %v11039_v57  ;;  %12979 = vmatpush3.msra.mxu1 %v11059_v59  ;;  %v11050_v59 = vld [vmem:[%s21716_s1 + $0x180] sm:$0xff] }
  0x82   :  { %12913 = vmatpush3.msra.mxu0 %v11039_v57  ;;  %12980 = vmatprep.subr.mxu1 %v11058_v4  ;;  %v722_v57 = vrot.slane %v16494_v33, 2  ;;  %v1056_v5 = vsel %vm1051_vm2, %v1053_v47, %v1055_v53 }
  0x83   :  { %12804 = vmatmul.mubr.f32.gmra.mxu0 %v246_v61  ;;  %12878 = vmatmul.mubr.f32.gmra.mxu1 %v16672_v38  ;;  %v11081_v61 = vld [vmem:[%s21716_s1 + $0x278] sm:$0xff] }
  0x84   :  { %12806 = vmatprep.mubr.f32.mxu0 %v248_v0  ;;  %12880 = vmatprep.mubr.f32.mxu1 %v16683_v45  ;;  %v1057_v0 = vrot.slane %v16513_v40, 3  ;;  %v723_v10 = vsel %vm716_vm1, %v720_v43, %v722_v57  ;;  %v1067_v43 = vrot.slane %v16562_v58, 3 }
  0x85   :  { %12914 = vmatprep.subr.mxu0 %v11038_v3  ;;  %12981 = vmatpush3.msra.mxu1 %v11058_v4  ;;  %v726_v4 = vrot.slane %v16519_v42, 2 }
  0x86   :  { %12915 = vmatpush3.msra.mxu0 %v11038_v3  ;;  %12982 = vmatprep.subr.mxu1 %v11057_v12  ;;  %v1054_v3 = vsel %vm1051_vm2, %v1052_v26, %v1053_v47  ;;  %v1058_v14 = vsel %vm1051_vm2, %v1055_v53, %v1057_v0  ;;  %v1069_v26 = vrot.slane %v16573_v63, 3 }
  0x87   :  { %12807 = vmatmul.mubr.f32.gmra.mxu0 %v250_v7  ;;  %12881 = vmatmul.mubr.f32.gmra.mxu1 %v16694_v50  ;;  %v1059_v7 = vrot.slane %v16519_v42, 3 }
  0x88   :  { %12916 = vmatprep.subr.mxu0 %v11037_v11  ;;  %12809 = vmatprep.mubr.f32.mxu0 %v252_v13  ;;  %v725_v13 = vsel %vm716_vm1, %v722_v57, %v724_v62 }
  0x89   :  { %12883 = vmatprep.mubr.f32.mxu1 %v16705_v55  ;;  %12917 = vmatpush3.msra.mxu0 %v11037_v11  ;;  %v11080_v11 = vld [vmem:[%s21716_s1 + $0x270] sm:$0xff]  ;;  %v1060_v21 = vsel %vm1051_vm2, %v1057_v0, %v1059_v7  ;;  %v1073_v0 = vrot.slane %v16598_v8, 3 }
  0x8a   :  { %12983 = vmatpush3.msra.mxu1 %v11057_v12  ;;  %12918 = vmatprep.subr.mxu0 %v11036_v20  ;;  %v1061_v12 = vrot.slane %v16531_v48, 3 }
  0x8b   :  { %12810 = vmatmul.mubr.f32.gmra.mxu0 %v254_v18  ;;  %12884 = vmatmul.mubr.f32.gmra.mxu1 %v16717_v60  ;;  %v728_v18 = vrot.slane %v16531_v48, 2 }
  0x8c   :  { %12984 = vmatprep.subr.mxu1 %v11056_v19  ;;  %12812 = vmatprep.mubr.f32.mxu0 %v256_v23  ;;  %v11079_v23 = vld [vmem:[%s21716_s1 + $0x268] sm:$0xff] }
  0x8d   :  { %12985 = vmatpush3.msra.mxu1 %v11056_v19  ;;  %12886 = vmatprep.mubr.f32.mxu1 %v16726_v2  ;;  %v727_v19 = vsel %vm716_vm1, %v724_v62, %v726_v4  ;;  %v1070_v62 = vsel %vm1051_vm2, %v1067_v43, %v1069_v26 }
  0x8e   :  { %12986 = vmatprep.subr.mxu1 %v11055_v25  ;;  %12919 = vmatpush3.msra.mxu0 %v11036_v20  ;;  %v730_v20 = vrot.slane %v16537_v49, 2 }
  0x8f   :  { %12987 = vmatpush3.msra.mxu1 %v11055_v25  ;;  %12813 = vmatmul.mubr.f32.gmra.mxu0 %v258_v31  ;;  %v1063_v25 = vrot.slane %v16537_v49, 3  ;;  %v1065_v31 = vrot.slane %v16554_v56, 3 }
  0x90   :  { %12887 = vmatmul.mubr.f32.gmra.mxu1 %v16739_v6  ;;  %12988 = vmatprep.subr.mxu1 %v11054_v32 }
  0x91   :  { %12920 = vmatprep.subr.mxu0 %v11035_v34  ;;  %12989 = vmatpush3.msra.mxu1 %v11054_v32  ;;  %v729_v32 = vsel %vm716_vm1, %v726_v4, %v728_v18  ;;  %v1064_v41 = vsel %vm1051_vm2, %v1061_v12, %v1063_v25  ;;  %v1068_v57 = vsel %vm1051_vm2, %v1065_v31, %v1067_v43  ;;  %v740_v4 = vrot.slane %v16598_v8, 2 }
  0x92   :  { %12921 = vmatpush3.msra.mxu0 %v11035_v34  ;;  %12990 = vmatprep.subr.mxu1 %v11053_v36  ;;  %v11078_v34 = vld [vmem:[%s21716_s1 + $0x260] sm:$0xff]  ;;  %v1083_v43 = vrot.slane %v16650_v28, 3 }
  0x93   :  { %12815 = vmatprep.mubr.f32.mxu0 %v260_v37  ;;  %12889 = vmatprep.mubr.f32.mxu1 %v16755_v15  ;;  %v731_v37 = vsel %vm716_vm1, %v728_v18, %v730_v20 }
  0x94   :  { %12991 = vmatpush3.msra.mxu1 %v11053_v36  ;;  %12816 = vmatmul.mubr.f32.gmra.mxu0 %v259_v29  ;;  %v1062_v29 = vsel %vm1051_vm2, %v1059_v7, %v1061_v12  ;;  %v732_v36 = vrot.slane %v16554_v56, 2  ;;  %v742_v7 = vrot.slane %v16603_v9, 2  ;;  %v11097_v12 = vld [vmem:[%s21716_s1 + $0x2f8] sm:$0xff] }
  0x95   :  { %12890 = vmatmul.mubr.f32.gmra.mxu1 %v16770_v22  ;;  %12992 = vmatprep.subr.mxu1 %v11052_v44 }
  0x96   :  { %12922 = vmatprep.subr.mxu0 %v11034_v46  ;;  %12993 = vmatpush3.msra.mxu1 %v11052_v44  ;;  %v11077_v44 = vld [vmem:[%s21716_s1 + $0x258] sm:$0xff]  ;;  %v733_v47 = vsel %vm716_vm1, %v730_v20, %v732_v36  ;;  %v735_v53 = vsel %vm716_vm1, %v732_v36, %v734_v39  ;;  %v743_v20 = vsel %vm716_vm1, %v740_v4, %v742_v7  ;;  %v748_v36 = vrot.slane %v16642_v24, 2 }
  0x97   :  { %12923 = vmatpush3.msra.mxu0 %v11034_v46  ;;  %12994 = vmatprep.subr.mxu1 %v11051_v51  ;;  %v1066_v46 = vsel %vm1051_vm2, %v1063_v25, %v1065_v31 }
  0x98   :  { %12924 = vmatprep.mubr.f32.mxu0 %v719_v52  ;;  %12995 = vmatpush3.msra.mxu1 %v11051_v51  ;;  %v736_v51 = vrot.slane %v16573_v63, 2  ;;  %v11076_v52 = vld [vmem:[%s21716_s1 + $0x250] sm:$0xff] }
  0x99   :  { %12925 = vmatmul.mubr.f32.vlgmr.msra.gmra.mxu0 %v721_v54  ;;  %12996 = vmatprep.subr.mxu1 %v11050_v59  ;;  %v738_v54 = vrot.slane %v16581_v1, 2 }
  0x9a   :  { %13040 = vmatprep.subr.mxu0 %v11081_v61  ;;  %12997 = vmatpush3.msra.mxu1 %v11050_v59  ;;  %v1071_v59 = vrot.slane %v16581_v1, 3  ;;  %v11074_v1 = vld [vmem:[%s21716_s1 + $0x240] sm:$0xff] }
  0x9b   :  { %12998 = vmatprep.mubr.f32.mxu1 %v1054_v3  ;;  %13041 = vmatpush3.msra.mxu0 %v11081_v61  ;;  %v11075_v61 = vld [vmem:[%s21716_s1 + $0x248] sm:$0xff]  ;;  %v737_v3 = vsel %vm716_vm1, %v734_v39, %v736_v51  ;;  %v741_v18 = vsel %vm716_vm1, %v738_v54, %v740_v4  ;;  %v750_v39 = vrot.slane %v16650_v28, 2  ;;  %v752_v28 = vrot.slane %v16661_v35, 2 }
  0x9c   :  { %12999 = vmatmul.mubr.f32.vlgmr.msra.gmra.mxu1 %v1056_v5  ;;  %12927 = vmatprep.mubr.f32.mxu0 %v723_v10  ;;  %v739_v5 = vsel %vm716_vm1, %v736_v51, %v738_v54  ;;  %v1072_v10 = vsel %vm1051_vm2, %v1069_v26, %v1071_v59  ;;  %v11094_v26 = vld [vmem:[%s21716_s1 + $0x2e0] sm:$0xff] }
  0x9d   :  { %13042 = vmatprep.subr.mxu0 %v11080_v11  ;;  %12928 = vmatmul.mubr.f32.gmra.mxu0 %v725_v13  ;;  %v1074_v13 = vsel %vm1051_vm2, %v1071_v59, %v1073_v0  ;;  %v11093_v59 = vld [vmem:[%s21716_s1 + $0x2d8] sm:$0xff] }
  0x9e   :  { %13001 = vmatprep.mubr.f32.mxu1 %v1058_v14  ;;  %13043 = vmatpush3.msra.mxu0 %v11080_v11  ;;  %v1075_v11 = vrot.slane %v16603_v9, 3  ;;  %v1077_v14 = vrot.slane %v16620_v16, 3  ;;  %v11073_v9 = vld [vmem:[%s21716_s1 + $0x238] sm:$0xff] }
  0x9f   :  { %12930 = vmatprep.mubr.f32.mxu0 %v727_v19  ;;  %13044 = vmatprep.subr.mxu0 %v11079_v23  ;;  %v744_v19 = vrot.slane %v16620_v16, 2 }
  0xa0   :  { %13002 = vmatmul.mubr.f32.gmra.mxu1 %v1060_v21  ;;  %13045 = vmatpush3.msra.mxu0 %v11079_v23  ;;  %v746_v21 = vrot.slane %v16625_v17, 2  ;;  %v11096_v23 = vld [vmem:[%s21716_s1 + $0x2f0] sm:$0xff]  ;;  %v1076_v25 = vsel %vm1051_vm2, %v1073_v0, %v1075_v11  ;;  %v1078_v31 = vsel %vm1051_vm2, %v1075_v11, %v1077_v14  ;;  %v1089_v0 = vrot.slane %v16683_v45, 3 }
  0xa1   :  { %13004 = vmatprep.mubr.f32.mxu1 %v1062_v29  ;;  %12931 = vmatmul.mubr.f32.gmra.mxu0 %v729_v32  ;;  %v1079_v29 = vrot.slane %v16625_v17, 3  ;;  %v1081_v32 = vrot.slane %v16642_v24, 3  ;;  %v1093_v11 = vrot.slane %v16705_v55, 3 }
  0xa2   :  { %13046 = vmatprep.subr.mxu0 %v11078_v34  ;;  %12933 = vmatprep.mubr.f32.mxu0 %v731_v37  ;;  %v11095_v37 = vld [vmem:[%s21716_s1 + $0x2e8] sm:$0xff]  ;;  %v747_v17 = vsel %vm716_vm1, %v744_v19, %v746_v21  ;;  %v749_v51 = vsel %vm716_vm1, %v746_v21, %v748_v36 }
  0xa3   :  { %13047 = vmatpush3.msra.mxu0 %v11078_v34  ;;  %13114 = vmatprep.subr.mxu1 %v11097_v12  ;;  %v745_v34 = vsel %vm716_vm1, %v742_v7, %v744_v19  ;;  %v1084_v54 = vsel %vm1051_vm2, %v1081_v32, %v1083_v43  ;;  %v11092_v7 = vld [vmem:[%s21716_s1 + $0x2d0] sm:$0xff] }
  0xa4   :  { %13005 = vmatmul.mubr.f32.gmra.mxu1 %v1064_v41  ;;  %13048 = vmatprep.subr.mxu0 %v11077_v44  ;;  %v1080_v41 = vsel %vm1051_vm2, %v1077_v14, %v1079_v29  ;;  %v760_v14 = vrot.slane %v16705_v55, 2  ;;  %v762_v55 = vrot.slane %v16717_v60, 2 }
  0xa5   :  { %13007 = vmatprep.mubr.f32.mxu1 %v1066_v46  ;;  %13049 = vmatpush3.msra.mxu0 %v11077_v44  ;;  %v11072_v44 = vld [vmem:[%s21716_s1 + $0x230] sm:$0xff]  ;;  %v1082_v46 = vsel %vm1051_vm2, %v1079_v29, %v1081_v32  ;;  %v11069_v29 = vld [vmem:[%s21716_s1 + $0x218] sm:$0xff] }
  0xa6   :  { %12934 = vmatmul.mubr.f32.gmra.mxu0 %v733_v47  ;;  %13050 = vmatprep.subr.mxu0 %v11076_v52  ;;  %v1085_v47 = vrot.slane %v16661_v35, 3  ;;  %v11089_v32 = vld [vmem:[%s21716_s1 + $0x2b8] sm:$0xff] }
  0xa7   :  { %12936 = vmatprep.mubr.f32.mxu0 %v735_v53  ;;  %13051 = vmatpush3.msra.mxu0 %v11076_v52  ;;  %v751_v52 = vsel %vm716_vm1, %v748_v36, %v750_v39  ;;  %v754_v53 = vrot.slane %v16672_v38, 2  ;;  %v1099_v36 = vrot.slane %v16739_v6, 3 }
  0xa8   :  { %13008 = vmatmul.mubr.f32.gmra.mxu1 %v1068_v57  ;;  %13052 = vmatprep.subr.mxu0 %v11075_v61  ;;  %v1087_v57 = vrot.slane %v16672_v38, 3  ;;  %v756_v38 = vrot.slane %v16683_v45, 2 }
  0xa9   :  { %13010 = vmatprep.mubr.f32.mxu1 %v1070_v62  ;;  %13053 = vmatpush3.msra.mxu0 %v11075_v61  ;;  %v1086_v61 = vsel %vm1051_vm2, %v1083_v43, %v1085_v47  ;;  %v11071_v62 = vld [vmem:[%s21716_s1 + $0x228] sm:$0xff]  ;;  %v755_v4 = vsel %vm716_vm1, %v752_v28, %v754_v53  ;;  %v11068_v43 = vld [vmem:[%s21716_s1 + $0x210] sm:$0xff] }
  0xaa   :  { %12937 = vmatmul.mubr.f32.gmra.mxu0 %v737_v3  ;;  %13054 = vmatprep.subr.mxu0 %v11074_v1  ;;  %v753_v3 = vsel %vm716_vm1, %v750_v39, %v752_v28  ;;  %v1090_v45 = vsel %vm1051_vm2, %v1087_v57, %v1089_v0  ;;  %v770_v28 = vrot.slane %v16770_v22, 2 }
  0xab   :  { %12939 = vmatprep.mubr.f32.mxu0 %v739_v5  ;;  %13055 = vmatpush3.msra.mxu0 %v11074_v1  ;;  %v758_v1 = vrot.slane %v16694_v50, 2  ;;  %v1088_v5 = vsel %vm1051_vm2, %v1085_v47, %v1087_v57  ;;  %v1103_v47 = vrot.slane %v16770_v22, 3 }
  0xac   :  { %13011 = vmatmul.mubr.f32.gmra.mxu1 %v1072_v10  ;;  %13056 = vmatprep.subr.mxu0 %v11073_v9  ;;  %v1091_v10 = vrot.slane %v16694_v50, 3 }
  0xad   :  { %13013 = vmatprep.mubr.f32.mxu1 %v1074_v13  ;;  %13115 = vmatpush3.msra.mxu1 %v11097_v12  ;;  %v757_v12 = vsel %vm716_vm1, %v754_v53, %v756_v38  ;;  %v11091_v13 = vld [vmem:[%s21716_s1 + $0x2c8] sm:$0xff]  ;;  %v759_v50 = vsel %vm716_vm1, %v756_v38, %v758_v1  ;;  %v761_v21 = vsel %vm716_vm1, %v758_v1, %v760_v14  ;;  %v11066_v1 = vld [vmem:[%s21716_s1 + $0x200] sm:$0xff] }
  0xae   :  { %12940 = vmatmul.mubr.f32.gmra.mxu0 %v741_v18  ;;  %13116 = vmatprep.subr.mxu1 %v11096_v23  ;;  %v11070_v18 = vld [vmem:[%s21716_s1 + $0x220] sm:$0xff]  ;;  %v1092_v19 = vsel %vm1051_vm2, %v1089_v0, %v1091_v10  ;;  %v1387_v0 = vrot.slane %v16487_v30, 4 }
  0xaf   :  { %12942 = vmatprep.mubr.f32.mxu0 %v743_v20  ;;  %13057 = vmatpush3.msra.mxu0 %v11073_v9  ;;  %v1095_v9 = vrot.slane %v16717_v60, 3  ;;  %v1094_v20 = vsel %vm1051_vm2, %v1091_v10, %v1093_v11 }
  0xb0   :  { %13014 = vmatmul.mubr.f32.gmra.mxu1 %v1076_v25  ;;  %13058 = vmatprep.subr.mxu0 %v11072_v44  ;;  %v764_v25 = vrot.slane %v16726_v2, 2 }
  0xb1   :  { %13016 = vmatprep.mubr.f32.mxu1 %v1078_v31  ;;  %13117 = vmatpush3.msra.mxu1 %v11096_v23  ;;  %v11090_v23 = vld [vmem:[%s21716_s1 + $0x2c0] sm:$0xff]  ;;  %v1097_v31 = vrot.slane %v16726_v2, 3  ;;  %v1096_v60 = vsel %vm1051_vm2, %v1093_v11, %v1095_v9  ;;  %v766_v2 = vrot.slane %v16739_v6, 2 }
  0xb2   :  { %12943 = vmatmul.mubr.f32.gmra.mxu0 %v745_v34  ;;  %13118 = vmatprep.subr.mxu1 %v11095_v37  ;;  %v763_v34 = vsel %vm716_vm1, %v760_v14, %v762_v55  ;;  %v11082_v14 = vld [vmem:[%s21716_s1 + $0x280] sm:$0xff] }
  0xb3   :  { %12945 = vmatprep.mubr.f32.mxu0 %v747_v17  ;;  %13119 = vmatpush3.msra.mxu1 %v11095_v37  ;;  %v765_v37 = vsel %vm716_vm1, %v762_v55, %v764_v25  ;;  %v11088_v17 = vld [vmem:[%s21716_s1 + $0x2b0] sm:$0xff]  ;;  %v1098_v39 = vsel %vm1051_vm2, %v1095_v9, %v1097_v31  ;;  %v1100_v6 = vsel %vm1051_vm2, %v1097_v31, %v1099_v36 }
  0xb4   :  { %13017 = vmatmul.mubr.f32.gmra.mxu1 %v1080_v41  ;;  %13120 = vmatprep.subr.mxu1 %v11094_v26  ;;  %v768_v41 = vrot.slane %v16755_v15, 2 }
  0xb5   :  { %13019 = vmatprep.mubr.f32.mxu1 %v1082_v46  ;;  %13121 = vmatpush3.msra.mxu1 %v11094_v26  ;;  %v11087_v46 = vld [vmem:[%s21716_s1 + $0x2a8] sm:$0xff]  ;;  %v767_v26 = vsel %vm716_vm1, %v764_v25, %v766_v2  ;;  %v1729_v25 = vrot.slane %v16531_v48, 5 }
  0xb6   :  { %12946 = vmatmul.mubr.f32.gmra.mxu0 %v749_v51  ;;  %13122 = vmatprep.subr.mxu1 %v11093_v59  ;;  %v16986_v51 = vld [vmem:[%s21715_s0 + $0xe0] sm:$0xff] }
  0xb7   :  { %12948 = vmatprep.mubr.f32.mxu0 %v751_v52  ;;  %13059 = vmatpush3.msra.mxu0 %v11072_v44  ;;  %v1101_v44 = vrot.slane %v16755_v15, 3  ;;  %v769_v15 = vsel %vm716_vm1, %v766_v2, %v768_v41  ;;  %v11086_v52 = vld [vmem:[%s21716_s1 + $0x2a0] sm:$0xff]  ;;  %v1105_v57 = vrot.slane %v16986_v51, 3 }
  0xb8   :  { %13020 = vmatmul.mubr.f32.gmra.mxu1 %v1084_v54  ;;  %13060 = vmatprep.subr.mxu0 %v11071_v62  ;;  %v11067_v54 = vld [vmem:[%s21716_s1 + $0x208] sm:$0xff] }
  0xb9   :  { %13022 = vmatprep.mubr.f32.mxu1 %v1086_v61  ;;  %13123 = vmatpush3.msra.mxu1 %v11093_v59  ;;  %v1102_v53 = vsel %vm1051_vm2, %v1099_v36, %v1101_v44  ;;  %v1104_v22 = vsel %vm1051_vm2, %v1101_v44, %v1103_v47  ;;  %v11085_v59 = vld [vmem:[%s21716_s1 + $0x298] sm:$0xff]  ;;  %v771_v61 = vsel %vm716_vm1, %v768_v41, %v770_v28  ;;  %v11110_v41 = vld [vmem:[%s21716_s1 + $0x360] sm:$0xff] }
  0xba   :  { %12949 = vmatmul.mubr.f32.gmra.mxu0 %v753_v3  ;;  %13124 = vmatprep.subr.mxu1 %v11092_v7  ;;  %v11084_v3 = vld [vmem:[%s21716_s1 + $0x290] sm:$0xff]  ;;  %v1106_v38 = vsel %vm1051_vm2, %v1103_v47, %v1105_v57 }
  0xbb   :  { %12951 = vmatprep.mubr.f32.mxu0 %v755_v4  ;;  %13061 = vmatpush3.msra.mxu0 %v11071_v62  ;;  %v1386_v62 = vrot.slane %v16476_v27, 4  ;;  %v1389_v4 = vrot.slane %v16494_v33, 4  ;;  %v16119_v27 = vld [vmem:[%s21715_s0 + $0x8] sm:$0xff] }
  0xbc   :  { %13023 = vmatmul.mubr.f32.gmra.mxu1 %v1088_v5  ;;  %13062 = vmatprep.subr.mxu0 %v11070_v18  ;;  %v1720_v30 = vrot.slane %v16119_v27, 5  ;;  %v17019_v5 = vld [vmem:[%s21715_s0 + $0x10] sm:$0xff] }
  0xbd   :  { %13025 = vmatprep.mubr.f32.mxu1 %v1090_v45  ;;  %13125 = vmatpush3.msra.mxu1 %v11092_v7  ;;  %v1721_v33 = vrot.slane %v17019_v5, 5  ;;  %v11083_v7 = vld [vmem:[%s21716_s1 + $0x288] sm:$0xff]  ;;  %v1388_v10 = vsel %vm1385_vm3, %v1386_v62, %v1387_v0  ;;  %v17029_v45 = vld [vmem:[%s21715_s0 + $0x18] sm:$0xff] }
  0xbe   :  { %12952 = vmatmul.mubr.f32.gmra.mxu0 %v757_v12  ;;  %13126 = vmatprep.subr.mxu1 %v11091_v13  ;;  %v1723_v11 = vrot.slane %v17029_v45, 5  ;;  %v1390_v12 = vsel %vm1385_vm3, %v1387_v0, %v1389_v4  ;;  %v17113_v0 = vld [vmem:[%s21715_s0 + $0x60] sm:$0xff] }
  0xbf   :  { %12954 = vmatprep.mubr.f32.mxu0 %v759_v50  ;;  %13063 = vmatpush3.msra.mxu0 %v11070_v18  ;;  %v11113_v50 = vld [vmem:[%s21716_s1 + $0x378] sm:$0xff]  ;;  %v1393_v18 = vrot.slane %v16519_v42, 4  ;;  %v1722_v9 = vsel %vm1719_vm4, %v1720_v30, %v1721_v33  ;;  %v11112_v42 = vld [vmem:[%s21716_s1 + $0x370] sm:$0xff]  ;;  %v1411_v30 = vrot.slane %v16620_v16, 4 }
  0xc0   :  { %13026 = vmatmul.mubr.f32.gmra.mxu1 %v1092_v19  ;;  %13064 = vmatprep.subr.mxu0 %v11069_v29  ;;  %v1725_v19 = vrot.slane %v16513_v40, 5  ;;  %v1724_v55 = vsel %vm1719_vm4, %v1721_v33, %v1723_v11 }
  0xc1   :  { %13127 = vmatpush3.msra.mxu1 %v11091_v13  ;;  %13028 = vmatprep.mubr.f32.mxu1 %v1094_v20  ;;  %v1391_v13 = vrot.slane %v16513_v40, 4  ;;  %v1395_v20 = vrot.slane %v16531_v48, 4  ;;  %v11111_v48 = vld [vmem:[%s21716_s1 + $0x368] sm:$0xff] }
  0xc2   :  { %12955 = vmatmul.mubr.f32.gmra.mxu0 %v761_v21  ;;  %13128 = vmatprep.subr.mxu1 %v11090_v23  ;;  %v17048_v21 = vld [vmem:[%s21715_s0 + $0x28] sm:$0xff]  ;;  %v1726_v31 = vsel %vm1719_vm4, %v1723_v11, %v1725_v19 }
  0xc3   :  { %13129 = vmatpush3.msra.mxu1 %v11090_v23  ;;  %12957 = vmatprep.mubr.f32.mxu0 %v763_v34  ;;  %v1727_v23 = vrot.slane %v17048_v21, 5  ;;  %v1392_v40 = vsel %vm1385_vm3, %v1389_v4, %v1391_v13  ;;  %v1399_v34 = vrot.slane %v16554_v56, 4 }
  0xc4   :  { %13029 = vmatmul.mubr.f32.gmra.mxu1 %v1096_v60  ;;  %13130 = vmatprep.subr.mxu1 %v11089_v32  ;;  %v1397_v60 = vrot.slane %v16537_v49, 4 }
  0xc5   :  { %13065 = vmatpush3.msra.mxu0 %v11069_v29  ;;  %13131 = vmatpush3.msra.mxu1 %v11089_v32  ;;  %v1394_v29 = vsel %vm1385_vm3, %v1391_v13, %v1393_v18  ;;  %v1396_v32 = vsel %vm1385_vm3, %v1393_v18, %v1395_v20  ;;  %v1728_v36 = vsel %vm1719_vm4, %v1725_v19, %v1727_v23  ;;  %v11105_v18 = vld [vmem:[%s21716_s1 + $0x338] sm:$0xff] }
  0xc6   :  { %12958 = vmatmul.mubr.f32.gmra.mxu0 %v765_v37  ;;  %13132 = vmatprep.subr.mxu1 %v11088_v17  ;;  %v17068_v37 = vld [vmem:[%s21715_s0 + $0x38] sm:$0xff]  ;;  %v1730_v2 = vsel %vm1719_vm4, %v1727_v23, %v1729_v25  ;;  %v1400_v44 = vsel %vm1385_vm3, %v1397_v60, %v1399_v34 }
  0xc7   :  { %13031 = vmatprep.mubr.f32.mxu1 %v1098_v39  ;;  %13133 = vmatpush3.msra.mxu1 %v11088_v17  ;;  %v1731_v49 = vrot.slane %v17068_v37, 5  ;;  %v1733_v17 = vrot.slane %v16554_v56, 5  ;;  %v1398_v39 = vsel %vm1385_vm3, %v1395_v20, %v1397_v60  ;;  %v11128_v20 = vld [vmem:[%s21716_s1 + $0x3f0] sm:$0xff]  ;;  %v11127_v60 = vld [vmem:[%s21716_s1 + $0x3e8] sm:$0xff] }
  0xc8   :  { %13066 = vmatprep.subr.mxu0 %v11068_v43  ;;  %13032 = vmatmul.mubr.f32.gmra.mxu1 %v1100_v6  ;;  %v1403_v6 = vrot.slane %v16573_v63, 4 }
  0xc9   :  { %13134 = vmatprep.subr.mxu1 %v11087_v46  ;;  %12960 = vmatprep.mubr.f32.mxu0 %v767_v26  ;;  %v1732_v56 = vsel %vm1719_vm4, %v1729_v25, %v1731_v49  ;;  %v1734_v47 = vsel %vm1719_vm4, %v1731_v49, %v1733_v17  ;;  %v11104_v49 = vld [vmem:[%s21716_s1 + $0x330] sm:$0xff] }
  0xca   :  { %13067 = vmatpush3.msra.mxu0 %v11068_v43  ;;  %13135 = vmatpush3.msra.mxu1 %v11087_v46  ;;  %v1401_v43 = vrot.slane %v16562_v58, 4  ;;  %v17084_v46 = vld [vmem:[%s21715_s0 + $0x48] sm:$0xff]  ;;  %v11109_v58 = vld [vmem:[%s21716_s1 + $0x358] sm:$0xff] }
  0xcb   :  { %12961 = vmatmul.mubr.f32.gmra.mxu0 %v769_v15  ;;  %13136 = vmatprep.subr.mxu1 %v11086_v52  ;;  %v1735_v26 = vrot.slane %v17084_v46, 5  ;;  %v1737_v15 = vrot.slane %v16573_v63, 5  ;;  %v1407_v63 = vrot.slane %v16598_v8, 4  ;;  %v1741_v8 = vrot.slane %v17113_v0, 5 }
  0xcc   :  { %13034 = vmatprep.mubr.f32.mxu1 %v1102_v53  ;;  %13068 = vmatprep.subr.mxu0 %v11067_v54 }
  0xcd   :  { %13137 = vmatpush3.msra.mxu1 %v11086_v52  ;;  %13069 = vmatpush3.msra.mxu0 %v11067_v54  ;;  %v17096_v52 = vld [vmem:[%s21715_s0 + $0x58] sm:$0xff]  ;;  %v11108_v54 = vld [vmem:[%s21716_s1 + $0x350] sm:$0xff]  ;;  %v1738_v62 = vsel %vm1719_vm4, %v1735_v26, %v1737_v15 }
  0xce   :  { %13035 = vmatmul.mubr.f32.gmra.mxu1 %v1104_v22  ;;  %13138 = vmatprep.subr.mxu1 %v11085_v59  ;;  %v1405_v53 = vrot.slane %v17096_v52, 4  ;;  %v1736_v22 = vsel %vm1719_vm4, %v1733_v17, %v1735_v26  ;;  %v11126_v17 = vld [vmem:[%s21716_s1 + $0x3e0] sm:$0xff] }
  0xcf   :  { %12963 = vmatprep.mubr.f32.mxu0 %v771_v61  ;;  %13139 = vmatpush3.msra.mxu1 %v11085_v59  ;;  %v1739_v59 = vrot.slane %v17096_v52, 5  ;;  %v11107_v61 = vld [vmem:[%s21716_s1 + $0x348] sm:$0xff] }
  0xd0   :  { %12964 = vmatmul.mubr.f32.gmra.mxu0 %v770_v28  ;;  %13140 = vmatprep.subr.mxu1 %v11084_v3  ;;  %v1402_v28 = vsel %vm1385_vm3, %v1399_v34, %v1401_v43  ;;  %v1408_v27 = vsel %vm1385_vm3, %v1405_v53, %v1407_v63  ;;  %v1419_v34 = vrot.slane %v16661_v35, 4  ;;  %v17188_v35 = vld [vmem:[%s21715_s0 + $0x90] sm:$0xff] }
  0xd1   :  { %13037 = vmatprep.mubr.f32.mxu1 %v1106_v38  ;;  %13070 = vmatprep.subr.mxu0 %v11066_v1  ;;  %v17120_v38 = vld [vmem:[%s21715_s0 + $0x68] sm:$0xff]  ;;  %v1740_v33 = vsel %vm1719_vm4, %v1737_v15, %v1739_v59  ;;  %v1742_v11 = vsel %vm1719_vm4, %v1739_v59, %v1741_v8  ;;  %v11125_v15 = vld [vmem:[%s21716_s1 + $0x3d8] sm:$0xff] }
  0xd2   :  { %13141 = vmatpush3.msra.mxu1 %v11084_v3  ;;  %13071 = vmatpush3.msra.mxu0 %v11066_v1  ;;  %v1406_v3 = vsel %vm1385_vm3, %v1403_v6, %v1405_v53  ;;  %v1409_v4 = vrot.slane %v17120_v38, 4  ;;  %v11106_v1 = vld [vmem:[%s21716_s1 + $0x340] sm:$0xff]  ;;  %v11103_v53 = vld [vmem:[%s21716_s1 + $0x328] sm:$0xff] }
  0xd3   :  { %13038 = vmatmul.mubr.f32.gmra.mxu1 %v1105_v57  ;;  %13142 = vmatprep.subr.mxu1 %v11083_v7  ;;  %v1404_v57 = vsel %vm1385_vm3, %v1401_v43, %v1403_v6  ;;  %v17195_v43 = vld [vmem:[%s21715_s0 + $0x98] sm:$0xff] }
  0xd4   :  { %13072 = vmatprep.mubr.f32.mxu0 %v1388_v10  ;;  %13143 = vmatpush3.msra.mxu1 %v11083_v7  ;;  %v1743_v7 = vrot.slane %v17120_v38, 5  ;;  %v11129_v10 = vld [vmem:[%s21716_s1 + $0x3f8] sm:$0xff]  ;;  %v1410_v13 = vsel %vm1385_vm3, %v1407_v63, %v1409_v4  ;;  %v1412_v19 = vsel %vm1385_vm3, %v1409_v4, %v1411_v30  ;;  %v17219_v63 = vld [vmem:[%s21715_s0 + $0xa8] sm:$0xff] }
  0xd5   :  { %13073 = vmatmul.mubr.f32.vlgmr.msra.gmra.mxu0 %v1390_v12  ;;  %13144 = vmatprep.subr.mxu1 %v11082_v14  ;;  %v17137_v12 = vld [vmem:[%s21715_s0 + $0x70] sm:$0xff]  ;;  %v1759_v4 = vrot.slane %v17219_v63, 5 }
  0xd6   :  { %13188 = vmatprep.subr.mxu0 %v11113_v50  ;;  %13145 = vmatpush3.msra.mxu1 %v11082_v14  ;;  %v1745_v16 = vrot.slane %v17137_v12, 5  ;;  %v17144_v14 = vld [vmem:[%s21715_s0 + $0x78] sm:$0xff] }
  0xd7   :  { %13146 = vmatprep.mubr.f32.mxu1 %v1722_v9  ;;  %13189 = vmatpush3.msra.mxu0 %v11113_v50  ;;  %v1413_v50 = vrot.slane %v17144_v14, 4  ;;  %v1415_v9 = vrot.slane %v16642_v24, 4  ;;  %v1747_v23 = vrot.slane %v17144_v14, 5 }
  0xd8   :  { %13147 = vmatmul.mubr.f32.vlgmr.msra.gmra.mxu1 %v1724_v55  ;;  %13075 = vmatprep.mubr.f32.mxu0 %v1392_v40  ;;  %v1744_v55 = vsel %vm1719_vm4, %v1741_v8, %v1743_v7  ;;  %v1746_v40 = vsel %vm1719_vm4, %v1743_v7, %v1745_v16  ;;  %v17243_v7 = vld [vmem:[%s21715_s0 + $0xb8] sm:$0xff] }
  0xd9   :  { %13190 = vmatprep.subr.mxu0 %v11112_v42  ;;  %13076 = vmatmul.mubr.f32.gmra.mxu0 %v1394_v29  ;;  %v1414_v25 = vsel %vm1385_vm3, %v1411_v30, %v1413_v50  ;;  %v17168_v29 = vld [vmem:[%s21715_s0 + $0x88] sm:$0xff] }
  0xda   :  { %13149 = vmatprep.mubr.f32.mxu1 %v1726_v31  ;;  %13191 = vmatpush3.msra.mxu0 %v11112_v42  ;;  %v17161_v42 = vld [vmem:[%s21715_s0 + $0x80] sm:$0xff]  ;;  %v1417_v31 = vrot.slane %v17168_v29, 4 }
  0xdb   :  { %13078 = vmatprep.mubr.f32.mxu0 %v1396_v32  ;;  %13192 = vmatprep.subr.mxu0 %v11111_v48  ;;  %v1749_v24 = vrot.slane %v17161_v42, 5  ;;  %v1416_v32 = vsel %vm1385_vm3, %v1413_v50, %v1415_v9  ;;  %v1763_v50 = vrot.slane %v17243_v7, 5 }
  0xdc   :  { %13150 = vmatmul.mubr.f32.gmra.mxu1 %v1728_v36  ;;  %13193 = vmatpush3.msra.mxu0 %v11111_v48  ;;  %v1748_v36 = vsel %vm1719_vm4, %v1745_v16, %v1747_v23  ;;  %v1751_v48 = vrot.slane %v17168_v29, 5  ;;  %v1420_v6 = vsel %vm1385_vm3, %v1417_v31, %v1419_v34  ;;  %v11102_v16 = vld [vmem:[%s21716_s1 + $0x320] sm:$0xff] }
  0xdd   :  { %13152 = vmatprep.mubr.f32.mxu1 %v1730_v2  ;;  %13079 = vmatmul.mubr.f32.gmra.mxu0 %v1398_v39  ;;  %v1750_v2 = vsel %vm1719_vm4, %v1747_v23, %v1749_v24  ;;  %v1753_v39 = vrot.slane %v17188_v35, 5  ;;  %v17266_v23 = vld [vmem:[%s21715_s0 + $0xc8] sm:$0xff] }
  0xde   :  { %13194 = vmatprep.subr.mxu0 %v11110_v41  ;;  %13081 = vmatprep.mubr.f32.mxu0 %v1400_v44  ;;  %v1421_v44 = vrot.slane %v17195_v43, 4 }
  0xdf   :  { %13195 = vmatpush3.msra.mxu0 %v11110_v41  ;;  %13262 = vmatprep.subr.mxu1 %v11129_v10  ;;  %v1418_v41 = vsel %vm1385_vm3, %v1415_v9, %v1417_v31 }
  0xe0   :  { %13153 = vmatmul.mubr.f32.gmra.mxu1 %v1732_v56  ;;  %13196 = vmatprep.subr.mxu0 %v11109_v58  ;;  %v17202_v56 = vld [vmem:[%s21715_s0 + $0xa0] sm:$0xff] }
  0xe1   :  { %13155 = vmatprep.mubr.f32.mxu1 %v1734_v47  ;;  %13197 = vmatpush3.msra.mxu0 %v11109_v58  ;;  %v1423_v26 = vrot.slane %v17202_v56, 4  ;;  %v1752_v58 = vsel %vm1719_vm4, %v1749_v24, %v1751_v48  ;;  %v1755_v47 = vrot.slane %v17195_v43, 5  ;;  %v11101_v24 = vld [vmem:[%s21716_s1 + $0x318] sm:$0xff] }
  0xe2   :  { %13082 = vmatmul.mubr.f32.gmra.mxu0 %v1402_v28  ;;  %13198 = vmatprep.subr.mxu0 %v11108_v54  ;;  %v1754_v28 = vsel %vm1719_vm4, %v1751_v48, %v1753_v39  ;;  %v17283_v48 = vld [vmem:[%s21715_s0 + $0xd0] sm:$0xff] }
  0xe3   :  { %13084 = vmatprep.mubr.f32.mxu0 %v1404_v57  ;;  %13199 = vmatpush3.msra.mxu0 %v11108_v54  ;;  %v1757_v54 = vrot.slane %v17202_v56, 5  ;;  %v1422_v57 = vsel %vm1385_vm3, %v1419_v34, %v1421_v44  ;;  %v1424_v59 = vsel %vm1385_vm3, %v1421_v44, %v1423_v26  ;;  %v1756_v8 = vsel %vm1719_vm4, %v1753_v39, %v1755_v47  ;;  %v17293_v39 = vld [vmem:[%s21715_s0 + $0xd8] sm:$0xff]  ;;  %v11100_v44 = vld [vmem:[%s21716_s1 + $0x310] sm:$0xff] }
  0xe4   :  { %13156 = vmatmul.mubr.f32.gmra.mxu1 %v1736_v22  ;;  %13200 = vmatprep.subr.mxu0 %v11107_v61  ;;  %v1425_v22 = vrot.slane %v17219_v63, 4  ;;  %v1767_v34 = vrot.slane %v17266_v23, 5 }
  0xe5   :  { %13158 = vmatprep.mubr.f32.mxu1 %v1738_v62  ;;  %13201 = vmatpush3.msra.mxu0 %v11107_v61  ;;  %v17226_v61 = vld [vmem:[%s21715_s0 + $0xb0] sm:$0xff] }
  0xe6   :  { %13085 = vmatmul.mubr.f32.gmra.mxu0 %v1406_v3  ;;  %13202 = vmatprep.subr.mxu0 %v11106_v1  ;;  %v1427_v62 = vrot.slane %v17226_v61, 4  ;;  %v11124_v3 = vld [vmem:[%s21716_s1 + $0x3d0] sm:$0xff]  ;;  %v1426_v30 = vsel %vm1385_vm3, %v1423_v26, %v1425_v22 }
  0xe7   :  { %13087 = vmatprep.mubr.f32.mxu0 %v1408_v27  ;;  %13203 = vmatpush3.msra.mxu0 %v11106_v1  ;;  %v1758_v1 = vsel %vm1719_vm4, %v1755_v47, %v1757_v54  ;;  %v1761_v27 = vrot.slane %v17226_v61, 5 }
  0xe8   :  { %13159 = vmatmul.mubr.f32.gmra.mxu1 %v1740_v33  ;;  %13204 = vmatprep.subr.mxu0 %v11105_v18  ;;  %v11123_v33 = vld [vmem:[%s21716_s1 + $0x3c8] sm:$0xff] }
  0xe9   :  { %13161 = vmatprep.mubr.f32.mxu1 %v1742_v11  ;;  %13263 = vmatpush3.msra.mxu1 %v11129_v10  ;;  %v1429_v10 = vrot.slane %v17243_v7, 4  ;;  %v1428_v11 = vsel %vm1385_vm3, %v1425_v22, %v1427_v62  ;;  %v1764_v31 = vsel %vm1719_vm4, %v1761_v27, %v1763_v50  ;;  %v11099_v22 = vld [vmem:[%s21716_s1 + $0x308] sm:$0xff] }
  0xea   :  { %13088 = vmatmul.mubr.f32.gmra.mxu0 %v1410_v13  ;;  %13264 = vmatprep.subr.mxu1 %v11128_v20  ;;  %v1760_v13 = vsel %vm1719_vm4, %v1757_v54, %v1759_v4  ;;  %v11118_v54 = vld [vmem:[%s21716_s1 + $0x3a0] sm:$0xff] }
  0xeb   :  { %13090 = vmatprep.mubr.f32.mxu0 %v1412_v19  ;;  %13205 = vmatpush3.msra.mxu0 %v11105_v18  ;;  %v1762_v18 = vsel %vm1719_vm4, %v1759_v4, %v1761_v27  ;;  %v17256_v19 = vld [vmem:[%s21715_s0 + $0xc0] sm:$0xff]  ;;  %v2055_v4 = vrot.slane %v17019_v5, 6 }
  0xec   :  { %13162 = vmatmul.mubr.f32.gmra.mxu1 %v1744_v55  ;;  %13206 = vmatprep.subr.mxu0 %v11104_v49  ;;  %v1431_v9 = vrot.slane %v17256_v19, 4  ;;  %v11122_v55 = vld [vmem:[%s21716_s1 + $0x3c0] sm:$0xff] }
  0xed   :  { %13164 = vmatprep.mubr.f32.mxu1 %v1746_v40  ;;  %13265 = vmatpush3.msra.mxu1 %v11128_v20  ;;  %v1430_v20 = vsel %vm1385_vm3, %v1427_v62, %v1429_v10  ;;  %v1433_v40 = vrot.slane %v17266_v23, 4 }
  0xee   :  { %13091 = vmatmul.mubr.f32.gmra.mxu0 %v1414_v25  ;;  %13266 = vmatprep.subr.mxu1 %v11127_v60  ;;  %v1765_v25 = vrot.slane %v17256_v19, 5 }
  0xef   :  { %13093 = vmatprep.mubr.f32.mxu0 %v1416_v32  ;;  %13267 = vmatpush3.msra.mxu1 %v11127_v60  ;;  %v11121_v60 = vld [vmem:[%s21716_s1 + $0x3b8] sm:$0xff]  ;;  %v1432_v32 = vsel %vm1385_vm3, %v1429_v10, %v1431_v9  ;;  %v11098_v10 = vld [vmem:[%s21716_s1 + $0x300] sm:$0xff] }
  0xf0   :  { %13165 = vmatmul.mubr.f32.gmra.mxu1 %v1748_v36  ;;  %13268 = vmatprep.subr.mxu1 %v11126_v17  ;;  %v1434_v36 = vsel %vm1385_vm3, %v1431_v9, %v1433_v40  ;;  %v1768_v26 = vsel %vm1719_vm4, %v1765_v25, %v1767_v34 }
  0xf1   :  { %13167 = vmatprep.mubr.f32.mxu1 %v1750_v2  ;;  %13269 = vmatpush3.msra.mxu1 %v11126_v17  ;;  %v11120_v2 = vld [vmem:[%s21716_s1 + $0x3b0] sm:$0xff]  ;;  %v1766_v17 = vsel %vm1719_vm4, %v1763_v50, %v1765_v25 }
  0xf2   :  { %13094 = vmatmul.mubr.f32.gmra.mxu0 %v1418_v41  ;;  %13270 = vmatprep.subr.mxu1 %v11125_v15  ;;  %v1437_v41 = vrot.slane %v17293_v39, 4 }
  0xf3   :  { %13096 = vmatprep.mubr.f32.mxu0 %v1420_v6  ;;  %13207 = vmatpush3.msra.mxu0 %v11104_v49  ;;  %v1435_v49 = vrot.slane %v17283_v48, 4  ;;  %v1769_v6 = vrot.slane %v17283_v48, 5 }
  0xf4   :  { %13168 = vmatmul.mubr.f32.gmra.mxu1 %v1752_v58  ;;  %13208 = vmatprep.subr.mxu0 %v11103_v53  ;;  %v11119_v58 = vld [vmem:[%s21716_s1 + $0x3a8] sm:$0xff] }
  0xf5   :  { %13170 = vmatprep.mubr.f32.mxu1 %v1754_v28  ;;  %13271 = vmatpush3.msra.mxu1 %v11125_v15  ;;  %v1436_v47 = vsel %vm1385_vm3, %v1433_v40, %v1435_v49  ;;  %v1771_v15 = vrot.slane %v17293_v39, 5  ;;  %v1438_v28 = vsel %vm1385_vm3, %v1435_v49, %v1437_v41 }
  0xf6   :  { %13097 = vmatmul.mubr.f32.gmra.mxu0 %v1422_v57  ;;  %13272 = vmatprep.subr.mxu1 %v11124_v3  ;;  %v1770_v57 = vsel %vm1719_vm4, %v1767_v34, %v1769_v6 }
  0xf7   :  { %13099 = vmatprep.mubr.f32.mxu0 %v1424_v59  ;;  %13209 = vmatpush3.msra.mxu0 %v11103_v53  ;;  %v1439_v53 = vrot.slane %v16986_v51, 4  ;;  %v1773_v59 = vrot.slane %v16986_v51, 5  ;;  %v1772_v62 = vsel %vm1719_vm4, %v1769_v6, %v1771_v15  ;;  %v11116_v51 = vld [vmem:[%s21716_s1 + $0x390] sm:$0xff]  ;;  %v2068_v6 = vrot.slane %v17084_v46, 6 }
  0xf8   :  { %13171 = vmatmul.mubr.f32.gmra.mxu1 %v1756_v8  ;;  %13210 = vmatprep.subr.mxu0 %v11102_v16  ;;  %v11117_v8 = vld [vmem:[%s21716_s1 + $0x398] sm:$0xff] }
  0xf9   :  { %13173 = vmatprep.mubr.f32.mxu1 %v1758_v1  ;;  %13273 = vmatpush3.msra.mxu1 %v11124_v3  ;;  %v1440_v3 = vsel %vm1385_vm3, %v1437_v41, %v1439_v53  ;;  %v2056_v1 = vrot.slane %v17029_v45, 6  ;;  %v1774_v27 = vsel %vm1719_vm4, %v1771_v15, %v1773_v59  ;;  %v2403_v15 = vrot.slane %v17084_v46, 7 }
  0xfa   :  { %13100 = vmatmul.mubr.f32.gmra.mxu0 %v1426_v30  ;;  %13274 = vmatprep.subr.mxu1 %v11123_v33  ;;  %v17330_v30 = vld [vmem:[%s21715_s0 + $0x20] sm:$0xff] }
  0xfb   :  { %13102 = vmatprep.mubr.f32.mxu0 %v1428_v11  ;;  %13211 = vmatpush3.msra.mxu0 %v11102_v16  ;;  %v2390_v11 = vrot.slane %v17019_v5, 7  ;;  %v2391_v16 = vrot.slane %v17029_v45, 7  ;;  %v2057_v50 = vsel %vm2054_vm5, %v2055_v4, %v2056_v1  ;;  %v11114_v5 = vld [vmem:[%s21716_s1 + $0x380] sm:$0xff]  ;;  %v11145_v45 = vld [vmem:[%s21716_s1 + $0x478] sm:$0xff] }
  0xfc   :  { %13174 = vmatmul.mubr.f32.gmra.mxu1 %v1760_v13  ;;  %13212 = vmatprep.subr.mxu0 %v11101_v24  ;;  %v11115_v13 = vld [vmem:[%s21716_s1 + $0x388] sm:$0xff] }
  0xfd   :  { %13275 = vmatpush3.msra.mxu1 %v11123_v33  ;;  %13176 = vmatprep.mubr.f32.mxu1 %v1762_v18  ;;  %v2058_v33 = vrot.slane %v17330_v30, 6  ;;  %v2393_v18 = vrot.slane %v17330_v30, 7  ;;  %v2392_v25 = vsel %vm2389_vm6, %v2390_v11, %v2391_v16  ;;  %v2076_v11 = vrot.slane %v17120_v38, 6 }
  0xfe   :  { %13103 = vmatmul.mubr.f32.gmra.mxu0 %v1430_v20  ;;  %13276 = vmatprep.subr.mxu1 %v11122_v55  ;;  %v2060_v20 = vrot.slane %v17048_v21, 6 }
  0xff   :  { %13277 = vmatpush3.msra.mxu1 %v11122_v55  ;;  %13105 = vmatprep.mubr.f32.mxu0 %v1432_v32  ;;  %v2059_v9 = vsel %vm2054_vm5, %v2056_v1, %v2058_v33  ;;  %v17354_v55 = vld [vmem:[%s21715_s0 + $0x30] sm:$0xff]  ;;  %v2407_v1 = vrot.slane %v17096_v52, 7 }
 0x100   :  { %13177 = vmatmul.mubr.f32.gmra.mxu1 %v1764_v31  ;;  %13278 = vmatprep.subr.mxu1 %v11121_v60  ;;  %v2062_v40 = vrot.slane %v17354_v55, 6  ;;  %v2064_v31 = vrot.slane %v17068_v37, 6  ;;  %v2397_v32 = vrot.slane %v17354_v55, 7  ;;  %v2061_v34 = vsel %vm2054_vm5, %v2058_v33, %v2060_v20  ;;  %v11140_v33 = vld [vmem:[%s21716_s1 + $0x450] sm:$0xff] }
 0x101   :  { %13213 = vmatpush3.msra.mxu0 %v11101_v24  ;;  %13279 = vmatpush3.msra.mxu1 %v11121_v60  ;;  %v2395_v24 = vrot.slane %v17048_v21, 7  ;;  %v2394_v60 = vsel %vm2389_vm6, %v2391_v16, %v2393_v18  ;;  %v11144_v21 = vld [vmem:[%s21716_s1 + $0x470] sm:$0xff] }
 0x102   :  { %13106 = vmatmul.mubr.f32.gmra.mxu0 %v1434_v36  ;;  %13280 = vmatprep.subr.mxu1 %v11120_v2  ;;  %v2399_v36 = vrot.slane %v17068_v37, 7  ;;  %v2063_v49 = vsel %vm2054_vm5, %v2060_v20, %v2062_v40 }
 0x103   :  { %13179 = vmatprep.mubr.f32.mxu1 %v1766_v17  ;;  %13281 = vmatpush3.msra.mxu1 %v11120_v2  ;;  %v2396_v2 = vsel %vm2389_vm6, %v2393_v18, %v2395_v24  ;;  %v17372_v17 = vld [vmem:[%s21715_s0 + $0x40] sm:$0xff]  ;;  %v2398_v37 = vsel %vm2389_vm6, %v2395_v24, %v2397_v32 }
 0x104   :  { %13214 = vmatprep.subr.mxu0 %v11100_v44  ;;  %13180 = vmatmul.mubr.f32.gmra.mxu1 %v1768_v26  ;;  %v2066_v41 = vrot.slane %v17372_v17, 6  ;;  %v11143_v26 = vld [vmem:[%s21716_s1 + $0x468] sm:$0xff]  ;;  %v11138_v24 = vld [vmem:[%s21716_s1 + $0x440] sm:$0xff] }
 0x105   :  { %13282 = vmatprep.subr.mxu1 %v11119_v58  ;;  %13108 = vmatprep.mubr.f32.mxu0 %v1436_v47  ;;  %v2400_v47 = vsel %vm2389_vm6, %v2397_v32, %v2399_v36 }
 0x106   :  { %13215 = vmatpush3.msra.mxu0 %v11100_v44  ;;  %13283 = vmatpush3.msra.mxu1 %v11119_v58  ;;  %v2065_v44 = vsel %vm2054_vm5, %v2062_v40, %v2064_v31  ;;  %v2401_v58 = vrot.slane %v17372_v17, 7 }
 0x107   :  { %13109 = vmatmul.mubr.f32.gmra.mxu0 %v1438_v28  ;;  %13284 = vmatprep.subr.mxu1 %v11118_v54  ;;  %v2067_v28 = vsel %vm2054_vm5, %v2064_v31, %v2066_v41  ;;  %v2080_v31 = vrot.slane %v17144_v14, 6 }
 0x108   :  { %13182 = vmatprep.mubr.f32.mxu1 %v1770_v57  ;;  %13216 = vmatprep.subr.mxu0 %v11099_v22  ;;  %v2404_v4 = vsel %vm2389_vm6, %v2401_v58, %v2403_v15 }
 0x109   :  { %13285 = vmatpush3.msra.mxu1 %v11118_v54  ;;  %13217 = vmatpush3.msra.mxu0 %v11099_v22  ;;  %v17391_v54 = vld [vmem:[%s21715_s0 + $0x50] sm:$0xff]  ;;  %v2069_v22 = vsel %vm2054_vm5, %v2066_v41, %v2068_v6  ;;  %v2415_v41 = vrot.slane %v17144_v14, 7 }
 0x10a   :  { %13183 = vmatmul.mubr.f32.gmra.mxu1 %v1772_v62  ;;  %13286 = vmatprep.subr.mxu1 %v11117_v8  ;;  %v2070_v57 = vrot.slane %v17391_v54, 6  ;;  %v2402_v62 = vsel %vm2389_vm6, %v2399_v36, %v2401_v58  ;;  %v11136_v58 = vld [vmem:[%s21716_s1 + $0x430] sm:$0xff] }
 0x10b   :  { %13111 = vmatprep.mubr.f32.mxu0 %v1440_v3  ;;  %13287 = vmatpush3.msra.mxu1 %v11117_v8  ;;  %v2405_v8 = vrot.slane %v17391_v54, 7  ;;  %v11141_v3 = vld [vmem:[%s21716_s1 + $0x458] sm:$0xff] }
 0x10c   :  { %13112 = vmatmul.mubr.f32.gmra.mxu0 %v1439_v53  ;;  %13288 = vmatprep.subr.mxu1 %v11116_v51  ;;  %v11142_v53 = vld [vmem:[%s21716_s1 + $0x460] sm:$0xff] }
 0x10d   :  { %13185 = vmatprep.mubr.f32.mxu1 %v1774_v27  ;;  %13218 = vmatprep.subr.mxu0 %v11098_v10  ;;  %v2074_v27 = vrot.slane %v17113_v0, 6  ;;  %v2406_v16 = vsel %vm2389_vm6, %v2403_v15, %v2405_v8  ;;  %v2408_v18 = vsel %vm2389_vm6, %v2405_v8, %v2407_v1  ;;  %v2084_v15 = vrot.slane %v17168_v29, 6 }
 0x10e   :  { %13289 = vmatpush3.msra.mxu1 %v11116_v51  ;;  %13219 = vmatpush3.msra.mxu0 %v11098_v10  ;;  %v2071_v51 = vsel %vm2054_vm5, %v2068_v6, %v2070_v57  ;;  %v2082_v6 = vrot.slane %v17161_v42, 6 }
 0x10f   :  { %13186 = vmatmul.mubr.f32.gmra.mxu1 %v1773_v59  ;;  %13290 = vmatprep.subr.mxu1 %v11115_v13  ;;  %v2072_v59 = vrot.slane %v17096_v52, 6 }
 0x110   :  { %13220 = vmatprep.mubr.f32.mxu0 %v2057_v50  ;;  %13291 = vmatpush3.msra.mxu1 %v11115_v13  ;;  %v2409_v13 = vrot.slane %v17113_v0, 7  ;;  %v11139_v50 = vld [vmem:[%s21716_s1 + $0x448] sm:$0xff] }
 0x111   :  { %13221 = vmatmul.mubr.f32.vlgmr.msra.gmra.mxu0 %v2059_v9  ;;  %13292 = vmatprep.subr.mxu1 %v11114_v5  ;;  %v2073_v10 = vsel %vm2054_vm5, %v2070_v57, %v2072_v59  ;;  %v2411_v9 = vrot.slane %v17120_v38, 7  ;;  %v2075_v20 = vsel %vm2054_vm5, %v2072_v59, %v2074_v27  ;;  %v2417_v57 = vrot.slane %v17161_v42, 7 }
 0x112   :  { %13336 = vmatprep.subr.mxu0 %v11145_v45  ;;  %13293 = vmatpush3.msra.mxu1 %v11114_v5  ;;  %v2078_v5 = vrot.slane %v17137_v12, 6  ;;  %v2410_v32 = vsel %vm2389_vm6, %v2407_v1, %v2409_v13  ;;  %v2086_v1 = vrot.slane %v17188_v35, 6 }
 0x113   :  { %13294 = vmatprep.mubr.f32.mxu1 %v2392_v25  ;;  %13337 = vmatpush3.msra.mxu0 %v11145_v45  ;;  %v2077_v25 = vsel %vm2054_vm5, %v2074_v27, %v2076_v11 }
 0x114   :  { %13295 = vmatmul.mubr.f32.vlgmr.msra.gmra.mxu1 %v2394_v60  ;;  %13223 = vmatprep.mubr.f32.mxu0 %v2061_v34  ;;  %v2413_v34 = vrot.slane %v17137_v12, 7 }
 0x115   :  { %13338 = vmatprep.subr.mxu0 %v11144_v21  ;;  %13224 = vmatmul.mubr.f32.gmra.mxu0 %v2063_v49  ;;  %v11137_v49 = vld [vmem:[%s21716_s1 + $0x438] sm:$0xff] }
 0x116   :  { %13297 = vmatprep.mubr.f32.mxu1 %v2396_v2  ;;  %13339 = vmatpush3.msra.mxu0 %v11144_v21  ;;  %v2412_v2 = vsel %vm2389_vm6, %v2409_v13, %v2411_v9  ;;  %v2416_v8 = vsel %vm2389_vm6, %v2413_v34, %v2415_v41  ;;  %v2418_v13 = vsel %vm2389_vm6, %v2415_v41, %v2417_v57 }
 0x117   :  { %13226 = vmatprep.mubr.f32.mxu0 %v2065_v44  ;;  %13340 = vmatprep.subr.mxu0 %v11143_v26  ;;  %v2079_v44 = vsel %vm2054_vm5, %v2076_v11, %v2078_v5  ;;  %v2088_v11 = vrot.slane %v17195_v43, 6 }
 0x118   :  { %13298 = vmatmul.mubr.f32.gmra.mxu1 %v2398_v37  ;;  %13341 = vmatpush3.msra.mxu0 %v11143_v26 }
 0x119   :  { %13300 = vmatprep.mubr.f32.mxu1 %v2400_v47  ;;  %13227 = vmatmul.mubr.f32.gmra.mxu0 %v2067_v28  ;;  %v2081_v47 = vsel %vm2054_vm5, %v2078_v5, %v2080_v31 }
 0x11a   :  { %13342 = vmatprep.subr.mxu0 %v11142_v53  ;;  %13229 = vmatprep.mubr.f32.mxu0 %v2069_v22 }
 0x11b   :  { %13343 = vmatpush3.msra.mxu0 %v11142_v53  ;;  %v2414_v53 = vsel %vm2389_vm6, %v2411_v9, %v2413_v34  ;;  %v2089_v34 = vsel %vm2054_vm5, %v2086_v1, %v2088_v11 }
 0x11c   :  { %13301 = vmatmul.mubr.f32.gmra.mxu1 %v2402_v62  ;;  %13344 = vmatprep.subr.mxu0 %v11141_v3  ;;  %v11135_v62 = vld [vmem:[%s21716_s1 + $0x428] sm:$0xff] }
 0x11d   :  { %13303 = vmatprep.mubr.f32.mxu1 %v2404_v4  ;;  %13345 = vmatpush3.msra.mxu0 %v11141_v3  ;;  %v2419_v3 = vrot.slane %v17168_v29, 7  ;;  %v2083_v4 = vsel %vm2054_vm5, %v2080_v31, %v2082_v6 }
 0x11e   :  { %13230 = vmatmul.mubr.f32.gmra.mxu0 %v2071_v51  ;;  %13346 = vmatprep.subr.mxu0 %v11140_v33  ;;  %v12778_v45 = vpop.f32.mrf.mxu0 }
 0x11f   :  { %13232 = vmatprep.mubr.f32.mxu0 %v2073_v10  ;;  %13347 = vmatpush3.msra.mxu0 %v11140_v33  ;;  %v12852_v40 = vpop.f32.mrf.mxu1  ;;  %v11134_v33 = vld [vmem:[%s21716_s1 + $0x420] sm:$0xff]  ;;  %v2085_v10 = vsel %vm2054_vm5, %v2082_v6, %v2084_v15  ;;  %v2420_v5 = vsel %vm2389_vm6, %v2417_v57, %v2419_v3 }
 0x120   :  { %13304 = vmatmul.mubr.f32.gmra.mxu1 %v2406_v16  ;;  %13348 = vmatprep.subr.mxu0 %v11139_v50  ;;  %v17424_v60 = vadd.f32 %v12852_v40, %v12778_v45  ;;  %v17428_v21 = vpop.f32.mrf.mxu0  ;;  %v2423_v45 = vrot.slane %v17195_v43, 7  ;;  %v2087_v40 = vsel %vm2054_vm5, %v2084_v15, %v2086_v1 }
 0x121   :  { %13306 = vmatprep.mubr.f32.mxu1 %v2408_v18  ;;  %13349 = vmatpush3.msra.mxu0 %v11139_v50  ;;  %v17430_v36 = vpop.f32.mrf.mxu1  ;;  %v2421_v50 = vrot.slane %v17188_v35, 7 }
 0x122   :  { %13233 = vmatmul.mubr.f32.gmra.mxu0 %v2075_v20  ;;  %13350 = vmatprep.subr.mxu0 %v11138_v24  ;;  %v12781_v37 = vpop.f32.mrf.mxu0  ;;  %v11133_v20 = vld [vmem:[%s21716_s1 + $0x418] sm:$0xff] }
 0x123   :  { %13235 = vmatprep.mubr.f32.mxu0 %v2077_v25  ;;  %13351 = vmatpush3.msra.mxu0 %v11138_v24  ;;  %v12855_v26 = vpop.f32.mrf.mxu1  ;;  %v2090_v24 = vrot.slane %v17202_v56, 6  ;;  %v2422_v41 = vsel %vm2389_vm6, %v2419_v3, %v2421_v50 }
 0x124   :  { %13307 = vmatmul.mubr.f32.gmra.mxu1 %v2410_v32  ;;  %v17444_v28 = vadd.f32 %v12855_v26, %v12781_v37  ;;  %13352 = vmatprep.subr.mxu0 %v11137_v49  ;;  %v17448_v22 = vpop.f32.mrf.mxu0  ;;  %v11132_v32 = vld [vmem:[%s21716_s1 + $0x410] sm:$0xff]  ;;  %v11131_v26 = vld [vmem:[%s21716_s1 + $0x408] sm:$0xff] }
 0x125   :  { %13309 = vmatprep.mubr.f32.mxu1 %v2412_v2  ;;  %13353 = vmatpush3.msra.mxu0 %v11137_v49  ;;  %v17450_v59 = vpop.f32.mrf.mxu1  ;;  %v2092_v49 = vrot.slane %v17219_v63, 6  ;;  %v2091_v15 = vsel %vm2054_vm5, %v2088_v11, %v2090_v24 }
 0x126   :  { %13236 = vmatmul.mubr.f32.gmra.mxu0 %v2079_v44  ;;  %13354 = vmatprep.subr.mxu0 %v11136_v58  ;;  %v2425_v44 = vrot.slane %v17202_v56, 7 }
 0x127   :  { %13238 = vmatprep.mubr.f32.mxu0 %v2081_v47  ;;  %v12784_v51 = vpop.f32.mrf.mxu0  ;;  %v12858_v27 = vpop.f32.mrf.mxu1  ;;  %13355 = vmatpush3.msra.mxu0 %v11136_v58  ;;  %v2424_v58 = vsel %vm2389_vm6, %v2421_v50, %v2423_v45  ;;  %v2427_v47 = vrot.slane %v17219_v63, 7  ;;  %v2093_v3 = vsel %vm2054_vm5, %v2090_v24, %v2092_v49  ;;  %v2100_v24 = vrot.slane %v17266_v23, 6 }
 0x128   :  { %13310 = vmatmul.mubr.f32.gmra.mxu1 %v2414_v53  ;;  %v17464_v16 = vadd.f32 %v12858_v27, %v12784_v51  ;;  %13356 = vmatprep.subr.mxu0 %v11135_v62  ;;  %v2094_v53 = vrot.slane %v17226_v61, 6  ;;  %v2426_v51 = vsel %vm2389_vm6, %v2423_v45, %v2425_v44  ;;  %v2429_v27 = vrot.slane %v17226_v61, 7 }
 0x129   :  { %13312 = vmatprep.mubr.f32.mxu1 %v2416_v8  ;;  %v17468_v18 = vpop.f32.mrf.mxu0  ;;  %v17470_v9 = vpop.f32.mrf.mxu1  ;;  %13357 = vmatpush3.msra.mxu0 %v11135_v62  ;;  %v11130_v8 = vld [vmem:[%s21716_s1 + $0x400] sm:$0xff]  ;;  %v2428_v11 = vsel %vm2389_vm6, %v2425_v44, %v2427_v47  ;;  %v2435_v44 = vrot.slane %v17266_v23, 7  ;;  %s16289_s1 = smov [#allocation11]  }
 0x12a   :  { %13239 = vmatmul.mubr.f32.gmra.mxu0 %v2083_v4  ;;  %13358 = vmatprep.subr.mxu0 %v11134_v33  ;;  %v2096_v4 = vrot.slane %v17243_v7, 6  ;;  %v2095_v50 = vsel %vm2054_vm5, %v2092_v49, %v2094_v53  ;;  %s11007_s20 = sshll.u32 %s16289_s1, 4  ;;  %s11008_s20 = int_to_ptr.vmem [resolvable:$true] %s11007_s20 }
 0x12b   :  { %13241 = vmatprep.mubr.f32.mxu0 %v2085_v10  ;;  %v12787_v25 = vpop.f32.mrf.mxu0  ;;  %v12861_v31 = vpop.f32.mrf.mxu1  ;;  %13359 = vmatpush3.msra.mxu0 %v11134_v33  ;;  %s16252_s21 = scalar_lea.vmem %s11008_s20, 32  ;;  %p16257_p12 = scmp.lt.s32.totalorder %s11008_s20, %s11008_s20 }
 0x12c   :  { %13313 = vmatmul.mubr.f32.gmra.mxu1 %v2418_v13  ;;  %v17484_v2 = vadd.f32 %v12861_v31, %v12787_v25  ;;  %13360 = vmatprep.subr.mxu0 %v11133_v20  ;;  %v2431_v13 = vrot.slane %v17243_v7, 7  ;;  %v2430_v31 = vsel %vm2389_vm6, %v2427_v47, %v2429_v27  ;;  %p16253_p11 = scmp.ne.s32.totalorder %s11008_s20, %s16252_s21  ;;  %p16258_p13 = scmp.lt.s32.totalorder %s16252_s21, %s16252_s21 }
 0x12d   :  { %13315 = vmatprep.mubr.f32.mxu1 %v2420_v5  ;;  %v17488_v6 = vpop.f32.mrf.mxu0  ;;  %v17490_v37 = vpop.f32.mrf.mxu1  ;;  %13361 = vmatpush3.msra.mxu0 %v11133_v20  ;;  %v2098_v20 = vrot.slane %v17256_v19, 6 }
 0x12e   :  { %13242 = vmatmul.mubr.f32.gmra.mxu0 %v2087_v40  ;;  %13362 = vmatprep.subr.mxu0 %v11132_v32  ;;  %v2097_v40 = vsel %vm2054_vm5, %v2094_v53, %v2096_v4  ;;  %p16259_p0 = por %p16258_p13, %p16257_p12 }
 0x12f   :  { %13244 = vmatprep.mubr.f32.mxu0 %v2089_v34  ;;  %v12790_v57 = vpop.f32.mrf.mxu0  ;;  %v12864_v62 = vpop.f32.mrf.mxu1  ;;  %13363 = vmatpush3.msra.mxu0 %v11132_v32  ;;  %v2433_v32 = vrot.slane %v17256_v19, 7  ;;  %v2101_v47 = vsel %vm2054_vm5, %v2098_v20, %v2100_v24 }
 0x130   :  { %13316 = vmatmul.mubr.f32.gmra.mxu1 %v2422_v41  ;;  %v17504_v1 = vadd.f32 %v12864_v62, %v12790_v57  ;;  %13364 = vmatprep.subr.mxu0 %v11131_v26  ;;  %v2432_v41 = vsel %vm2389_vm6, %v2429_v27, %v2431_v13  ;;  %v2104_v57 = vrot.slane %v17293_v39, 6  ;;  %p16260_p1 = pnand %p16259_p0, %p16253_p11 }
 0x131   :  { %13318 = vmatprep.mubr.f32.mxu1 %v2424_v58  ;;  %v17508_v33 = vpop.f32.mrf.mxu0  ;;  %v17510_v10 = vpop.f32.mrf.mxu1  ;;  %13365 = vmatpush3.msra.mxu0 %v11131_v26  ;;  %v2099_v26 = vsel %vm2054_vm5, %v2096_v4, %v2098_v20  ;;  %v2102_v58 = vrot.slane %v17283_v48, 6  ;;  %v17543_v4 = vld [vmem:[%s21715_s0 + $0xe8] sm:$0xff] }
 0x132   :  { %13245 = vmatmul.mubr.f32.gmra.mxu0 %v2091_v15  ;;  %13366 = vmatprep.subr.mxu0 %v11130_v8 }
 0x133   :  { %13247 = vmatprep.mubr.f32.mxu0 %v2093_v3  ;;  %v12793_v5 = vpop.f32.mrf.mxu0  ;;  %v12867_v45 = vpop.f32.mrf.mxu1  ;;  %13367 = vmatpush3.msra.mxu0 %v11130_v8  ;;  %v2434_v8 = vsel %vm2389_vm6, %v2431_v13, %v2433_v32  ;;  %v2437_v3 = vrot.slane %v17283_v48, 7  ;;  %v2103_v20 = vsel %vm2054_vm5, %v2100_v24, %v2102_v58  ;;  %v17551_v13 = vld [vmem:[%s21715_s0 + $0xe0] sm:$0xff] }
 0x134   :  { %13319 = vmatmul.mubr.f32.gmra.mxu1 %v2426_v51  ;;  %v17518_v25 = vadd.f32 %v12867_v45, %v12793_v5  ;;  %v2106_v5 = vrot.slane %v17551_v13, 6  ;;  %v2441_v24 = vrot.slane %v17551_v13, 7 }
 0x135   :  { %13321 = vmatprep.mubr.f32.mxu1 %v2428_v11  ;;  %v17522_v34 = vpop.f32.mrf.mxu0  ;;  %v17524_v49 = vpop.f32.mrf.mxu1  ;;  %v2436_v11 = vsel %vm2389_vm6, %v2433_v32, %v2435_v44 }
 0x136   :  { %21737 = vst [vmem:[#allocation16_spill] sm:$0xff] %v17522_v34  ;;  %21738 = vst [vmem:[#allocation17_spill] sm:$0xff] %v17524_v49  ;;  %13248 = vmatmul.mubr.f32.gmra.mxu0 %v2095_v50  ;;  %v2439_v50 = vrot.slane %v17293_v39, 7 }
 0x137   :  { %13250 = vmatprep.mubr.f32.mxu0 %v2097_v40  ;;  %v12796_v15 = vpop.f32.mrf.mxu0  ;;  %v12870_v53 = vpop.f32.mrf.mxu1 }
 0x138   :  { %13322 = vmatmul.mubr.f32.gmra.mxu1 %v2430_v31  ;;  %v17532_v62 = vadd.f32 %v12870_v53, %v12796_v15  ;;  %v2105_v31 = vsel %vm2054_vm5, %v2102_v58, %v2104_v57  ;;  %v17569_v58 = vld [vmem:[%s21715_s0 + $0xf0] sm:$0x3] }
 0x139   :  { %13324 = vmatprep.mubr.f32.mxu1 %v2432_v41  ;;  %v17536_v51 = vpop.f32.mrf.mxu0  ;;  %v17538_v27 = vpop.f32.mrf.mxu1  ;;  %v2108_v41 = vrot.slane %v17543_v4, 6 }
 0x13a   :  { %21739 = vst [vmem:[#allocation18_spill] sm:$0xff] %v17536_v51  ;;  %21740 = vst [vmem:[#allocation19_spill] sm:$0xff] %v17538_v27  ;;  %13251 = vmatmul.mubr.f32.gmra.mxu0 %v2099_v26  ;;  %v2438_v26 = vsel %vm2389_vm6, %v2435_v44, %v2437_v3 }
 0x13b   :  { %13253 = vmatprep.mubr.f32.mxu0 %v2101_v47  ;;  %v12799_v45 = vpop.f32.mrf.mxu0  ;;  %v12873_v40 = vpop.f32.mrf.mxu1  ;;  %v2440_v47 = vsel %vm2389_vm6, %v2437_v3, %v2439_v50  ;;  %v2442_v3 = vsel %vm2389_vm6, %v2439_v50, %v2441_v24 }
 0x13c   :  { %13325 = vmatmul.mubr.f32.gmra.mxu1 %v2434_v8  ;;  %v17556_v32 = vadd.f32 %v12873_v40, %v12799_v45  ;;  %v2443_v8 = vrot.slane %v17543_v4, 7  ;;  %v2109_v40 = vsel %vm2054_vm5, %v2106_v5, %v2108_v41 }
 0x13d   :  { %13327 = vmatprep.mubr.f32.mxu1 %v2436_v11  ;;  %v17560_v15 = vpop.f32.mrf.mxu0  ;;  %v17562_v53 = vpop.f32.mrf.mxu1  ;;  %v2107_v11 = vsel %vm2054_vm5, %v2104_v57, %v2106_v5 }
 0x13e   :  { %21741 = vst [vmem:[#allocation20_spill] sm:$0xff] %v17560_v15  ;;  %21742 = vst [vmem:[#allocation21_spill] sm:$0xff] %v17562_v53  ;;  %13254 = vmatmul.mubr.f32.gmra.mxu0 %v2103_v20  ;;  %v2445_v20 = vrot.slane %v17569_v58, 7 }
 0x13f   :  { %13256 = vmatprep.mubr.f32.mxu0 %v2105_v31  ;;  %v12802_v44 = vpop.f32.mrf.mxu0  ;;  %v12876_v45 = vpop.f32.mrf.mxu1  ;;  %v2444_v31 = vsel %vm2389_vm6, %v2441_v24, %v2443_v8 }
 0x140   :  { %13328 = vmatmul.mubr.f32.gmra.mxu1 %v2438_v26  ;;  %v17573_v15 = vadd.f32 %v12876_v45, %v12802_v44  ;;  %v2446_v5 = vsel %vm2389_vm6, %v2443_v8, %v2445_v20 }
 0x141   :  { %13330 = vmatprep.mubr.f32.mxu1 %v2440_v47  ;;  %v17577_v53 = vpop.f32.mrf.mxu0  ;;  %v17579_v27 = vpop.f32.mrf.mxu1 }
 0x142   :  { %21743 = vst [vmem:[#allocation22_spill] sm:$0xff] %v17577_v53  ;;  %21744 = vst [vmem:[#allocation23_spill] sm:$0xff] %v17579_v27  ;;  %13257 = vmatmul.mubr.f32.gmra.mxu0 %v2107_v11  ;;  %v16147_v11 = vld [vmem:[%s21715_s0 + $0x18] sm:$0xff] }
 0x143   :  { %13259 = vmatprep.mubr.f32.mxu0 %v2109_v40  ;;  %v12805_v57 = vpop.f32.mrf.mxu0  ;;  %v12879_v51 = vpop.f32.mrf.mxu1 }
 0x144   :  { %13331 = vmatmul.mubr.f32.gmra.mxu1 %v2442_v3  ;;  %v17582_v26 = vadd.f32 %v12879_v51, %v12805_v57 }
 0x145   :  { %13333 = vmatprep.mubr.f32.mxu1 %v2444_v31  ;;  %v17585_v47 = vpop.f32.mrf.mxu0  ;;  %v17587_v50 = vpop.f32.mrf.mxu1 }
 0x146   :  { %21745 = vst [vmem:[#allocation24_spill] sm:$0xff] %v17585_v47  ;;  %21746 = vst [vmem:[#allocation25_spill] sm:$0xff] %v17587_v50  ;;  %13260 = vmatmul.mubr.f32.gmra.mxu0 %v2108_v41  ;;  %v16148_v41 = vld [vmem:[%s21715_s0 + $0x28] sm:$0xff] }
 0x147   :  { %13368 = vmatprep.mubr.f32.mxu0 %v16147_v11  ;;  %v12808_v24 = vpop.f32.mrf.mxu0  ;;  %v12882_v44 = vpop.f32.mrf.mxu1 }
 0x148   :  { %13334 = vmatmul.mubr.f32.gmra.mxu1 %v2446_v5  ;;  %v17592_v45 = vadd.f32 %v12882_v44, %v12808_v24  ;;  %v16149_v5 = vld [vmem:[%s21715_s0 + $0x38] sm:$0xff] }
 0x149   :  { %v17594_v51 = vpop.f32.mrf.mxu0  ;;  %v17596_v40 = vpop.f32.mrf.mxu1 }
 0x14a   :  { %21747 = vst [vmem:[#allocation26_spill] sm:$0xff] %v17594_v51  ;;  %21748 = vst [vmem:[#allocation27_spill] sm:$0xff] %v17596_v40  ;;  %13369 = vmatmul.mubr.f32.vlgmr.msra.gmra.mxu0 %v17330_v30 }
 0x14b   :  { %13371 = vmatprep.mubr.f32.mxu0 %v16148_v41  ;;  %v12811_v8 = vpop.f32.mrf.mxu0  ;;  %v12885_v3 = vpop.f32.mrf.mxu1 }
 0x14c   :  { %v17602_v20 = vadd.f32 %v12885_v3, %v12811_v8 }
 0x14d   :  { %v17604_v31 = vpop.f32.mrf.mxu0  ;;  %v17606_v57 = vpop.f32.mrf.mxu1 }
 0x14e   :  { %21749 = vst [vmem:[#allocation28_spill] sm:$0xff] %v17604_v31  ;;  %21750 = vst [vmem:[#allocation29_spill] sm:$0xff] %v17606_v57  ;;  %13372 = vmatmul.mubr.f32.gmra.mxu0 %v17354_v55 }
 0x14f   :  { %13374 = vmatprep.mubr.f32.mxu0 %v16149_v5  ;;  %v12814_v30 = vpop.f32.mrf.mxu0 }
 0x150   :  { %v12888_v11 = vpop.f32.mrf.mxu1 }
 0x151   :  { %v17612_v24 = vadd.f32 %v12888_v11, %v12814_v30  ;;  %v17615_v44 = vpop.f32.mrf.mxu0 }
 0x152   :  { %13375 = vmatmul.mubr.f32.gmra.mxu0 %v17372_v17  ;;  %21751 = vst [vmem:[#allocation30_spill] sm:$0xff] %v17615_v44  ;;  %v17617_v41 = vpop.f32.mrf.mxu1 }
 0x153   :  { %21752 = vst [vmem:[#allocation31_spill] sm:$0xff] %v17617_v41  ;;  %13377 = vmatprep.mubr.f32.mxu0 %v17084_v46 }
 0x154   :  { %v12817_v8 = vpop.f32.mrf.mxu0 }
 0x155   :  { %v12891_v3 = vpop.f32.mrf.mxu1 }
 0x156   :  { %13378 = vmatmul.mubr.f32.gmra.mxu0 %v17391_v54  ;;  %v17621_v55 = vadd.f32 %v12891_v3, %v12817_v8  ;;  %v17624_v5 = vpop.f32.mrf.mxu0  ;;  %v3053_v8 = vld [vmem:[#allocation2 + $0xf8] sm:$0xff] }
 0x157   :  { %13380 = vmatprep.mubr.f32.mxu0 %v17096_v52  ;;  %21753 = vst [vmem:[#allocation32_spill] sm:$0xff] %v17624_v5  ;;  %v17627_v17 = vpop.f32.mrf.mxu1 }
 0x158   :  { %21754 = vst [vmem:[#allocation33_spill] sm:$0xff] %v17627_v17 }
 0x159   :  { %v12926_v30 = vpop.f32.mrf.mxu0 }
 0x15a   :  { %13381 = vmatmul.mubr.f32.gmra.mxu0 %v17113_v0  ;;  %v1006_v11 = vadd.f32 %v12926_v30, %v17424_v60  ;;  %v21729_v30 = vmov 0.0  }
 0x15b   :  { %13383 = vmatprep.mubr.f32.mxu0 %v17120_v38  ;;  %v17631_v46 = vpop.f32.mrf.mxu0  ;;  %13410 = vmatprep.subr.mxu1 %v21729_v30 }
 0x15c   :  { %v13000_v41 = vpop.f32.mrf.mxu1  ;;  %13517 = vmatprep.subr.mxu0 %v21729_v30  ;;  %13411 = vmatpush3.msra.mxu1 %v3053_v8  ;;  %v3051_v8 = vld [vmem:[#allocation2 + $0xe8] sm:$0xff] }
 0x15d   :  { %v17633_v44 = vadd.f32 %v13000_v41, %v1006_v11  ;;  %v12929_v54 = vpop.f32.mrf.mxu0  ;;  %13412 = vmatprep.subr.mxu1 %v21729_v30  ;;  %13442 = vmatprep.mubr.msk.f32.mxu1 %vm16288_vm7, %v21729_v30 }
 0x15e   :  { %13384 = vmatmul.mubr.f32.gmra.mxu0 %v17137_v12  ;;  %v17636_v52 = vpop.f32.mrf.mxu1  ;;  %v1008_v0 = vadd.f32 %v12929_v54, %v17444_v28  ;;  %v3052_v28 = vld [vmem:[#allocation2 + $0xf0] sm:$0xff] }
 0x15f   :  { %13386 = vmatprep.mubr.f32.mxu0 %v17144_v14  ;;  %v17640_v3 = vpop.f32.mrf.mxu0  ;;  %13413 = vmatpush3.msra.mxu1 %v3052_v28  ;;  %v3050_v28 = vld [vmem:[#allocation2 + $0xe0] sm:$0xff] }
 0x160   :  { %v13003_v60 = vpop.f32.mrf.mxu1  ;;  %13414 = vmatprep.subr.mxu1 %v21729_v30 }
 0x161   :  { %v17644_v38 = vadd.f32 %v13003_v60, %v1008_v0  ;;  %v12932_v12 = vpop.f32.mrf.mxu0  ;;  %13415 = vmatpush3.msra.mxu1 %v3051_v8 }
 0x162   :  { %13387 = vmatmul.mubr.f32.gmra.mxu0 %v17161_v42  ;;  %v17647_v41 = vpop.f32.mrf.mxu1  ;;  %v1010_v14 = vadd.f32 %v12932_v12, %v17464_v16  ;;  %13416 = vmatprep.subr.mxu1 %v21729_v30 }
 0x163   :  { %13389 = vmatprep.mubr.f32.mxu0 %v17168_v29  ;;  %v17652_v11 = vpop.f32.mrf.mxu0  ;;  %13417 = vmatpush3.msra.mxu1 %v3050_v28 }
 0x164   :  { %v13006_v54 = vpop.f32.mrf.mxu1  ;;  %13418 = vmatprep.subr.mxu1 %v21729_v30 }
 0x165   :  { %v17654_v17 = vadd.f32 %v13006_v54, %v1010_v14 }
 0x166   :  { %13390 = vmatmul.mubr.f32.gmra.mxu0 %v17188_v35  ;;  %v12935_v42 = vpop.f32.mrf.mxu0  ;;  %v17658_v0 = vpop.f32.mrf.mxu1 }
 0x167   :  { %13392 = vmatprep.mubr.f32.mxu0 %v17195_v43  ;;  %v1012_v29 = vadd.f32 %v12935_v42, %v17484_v2 }
 0x168   :  { %v17662_v16 = vpop.f32.mrf.mxu0  ;;  %v13009_v60 = vpop.f32.mrf.mxu1 }
 0x169   :  { %v17664_v12 = vadd.f32 %v13009_v60, %v1012_v29  ;;  %v3049_v29 = vld [vmem:[#allocation2 + $0xd8] sm:$0xff] }
 0x16a   :  { %13393 = vmatmul.mubr.f32.gmra.mxu0 %v17202_v56  ;;  %v12938_v14 = vpop.f32.mrf.mxu0  ;;  %v17668_v35 = vpop.f32.mrf.mxu1  ;;  %13419 = vmatpush3.msra.mxu1 %v3049_v29 }
 0x16b   :  { %13395 = vmatprep.mubr.f32.mxu0 %v17219_v63  ;;  %v1014_v43 = vadd.f32 %v12938_v14, %v17504_v1  ;;  %13420 = vmatprep.subr.mxu1 %v21729_v30 }
 0x16c   :  { %v17672_v2 = vpop.f32.mrf.mxu0  ;;  %v13012_v54 = vpop.f32.mrf.mxu1 }
 0x16d   :  { %v17674_v42 = vadd.f32 %v13012_v54, %v1014_v43  ;;  %v3048_v43 = vld [vmem:[#allocation2 + $0xd0] sm:$0xff] }
 0x16e   :  { %13396 = vmatmul.mubr.f32.gmra.mxu0 %v17226_v61  ;;  %v12941_v56 = vpop.f32.mrf.mxu0  ;;  %v17678_v8 = vpop.f32.mrf.mxu1  ;;  %13421 = vmatpush3.msra.mxu1 %v3048_v43 }
 0x16f   :  { %21755 = vst [vmem:[#allocation34_spill] sm:$0xff] %v17678_v8  ;;  %13398 = vmatprep.mubr.f32.mxu0 %v17243_v7  ;;  %v1016_v63 = vadd.f32 %v12941_v56, %v17518_v25  ;;  %13422 = vmatprep.subr.mxu1 %v21729_v30  ;;  %v3036_v25 = vld [vmem:[#allocation2 + $0x78] sm:$0xff] }
 0x170   :  { %v17683_v1 = vpop.f32.mrf.mxu0  ;;  %v13015_v60 = vpop.f32.mrf.mxu1  ;;  %13518 = vmatpush3.msra.mxu0 %v3036_v25 }
 0x171   :  { %21756 = vst [vmem:[#allocation35_spill] sm:$0xff] %v17683_v1  ;;  %v17685_v14 = vadd.f32 %v13015_v60, %v1016_v63  ;;  %v3047_v63 = vld [vmem:[#allocation2 + $0xc8] sm:$0xff]  ;;  %13519 = vmatprep.subr.mxu0 %v21729_v30 }
 0x172   :  { %13399 = vmatmul.mubr.f32.gmra.mxu0 %v17256_v19  ;;  %v12944_v28 = vpop.f32.mrf.mxu0  ;;  %v17688_v61 = vpop.f32.mrf.mxu1  ;;  %v3035_v19 = vld [vmem:[#allocation2 + $0x70] sm:$0xff]  ;;  %13423 = vmatpush3.msra.mxu1 %v3047_v63 }
 0x173   :  { %21757 = vst [vmem:[#allocation36_spill] sm:$0xff] %v17688_v61  ;;  %13401 = vmatprep.mubr.f32.mxu0 %v17266_v23  ;;  %v1018_v7 = vadd.f32 %v12944_v28, %v17532_v62  ;;  %13520 = vmatpush3.msra.mxu0 %v3035_v19  ;;  %v3034_v62 = vld [vmem:[#allocation2 + $0x68] sm:$0xff]  ;;  %v3045_v19 = vld [vmem:[#allocation2 + $0xb8] sm:$0xff] }
 0x174   :  { %v17693_v54 = vpop.f32.mrf.mxu0  ;;  %v13018_v29 = vpop.f32.mrf.mxu1  ;;  %13424 = vmatprep.subr.mxu1 %v21729_v30  ;;  %13521 = vmatprep.subr.mxu0 %v21729_v30 }
 0x175   :  { %21758 = vst [vmem:[#allocation37_spill] sm:$0xff] %v17693_v54  ;;  %v17695_v56 = vadd.f32 %v13018_v29, %v1018_v7  ;;  %13522 = vmatpush3.msra.mxu0 %v3034_v62  ;;  %v3033_v29 = vld [vmem:[#allocation2 + $0x60] sm:$0xff]  ;;  %v3032_v62 = vld [vmem:[#allocation2 + $0x58] sm:$0xff] }
 0x176   :  { %13402 = vmatmul.mubr.f32.gmra.mxu0 %v17283_v48  ;;  %v12947_v60 = vpop.f32.mrf.mxu0  ;;  %v17699_v43 = vpop.f32.mrf.mxu1  ;;  %v3046_v48 = vld [vmem:[#allocation2 + $0xc0] sm:$0xff]  ;;  %13523 = vmatprep.subr.mxu0 %v21729_v30 }
 0x177   :  { %21759 = vst [vmem:[#allocation38_spill] sm:$0xff] %v17699_v43  ;;  %13404 = vmatprep.mubr.f32.mxu0 %v17293_v39  ;;  %v1020_v23 = vadd.f32 %v12947_v60, %v17556_v32  ;;  %13425 = vmatpush3.msra.mxu1 %v3046_v48 }
 0x178   :  { %v17703_v28 = vpop.f32.mrf.mxu0  ;;  %v13021_v7 = vpop.f32.mrf.mxu1  ;;  %13426 = vmatprep.subr.mxu1 %v21729_v30  ;;  %13524 = vmatpush3.msra.mxu0 %v3033_v29 }
 0x179   :  { %21760 = vst [vmem:[#allocation39_spill] sm:$0xff] %v17703_v28  ;;  %v17707_v25 = vadd.f32 %v13021_v7, %v1020_v23  ;;  %13427 = vmatpush3.msra.mxu1 %v3045_v19  ;;  %13525 = vmatprep.subr.mxu0 %v21729_v30 }
 0x17a   :  { %13405 = vmatmul.mubr.f32.gmra.mxu0 %v17551_v13  ;;  %v12950_v63 = vpop.f32.mrf.mxu0  ;;  %v17710_v39 = vpop.f32.mrf.mxu1  ;;  %13428 = vmatprep.subr.mxu1 %v21729_v30 }
 0x17b   :  { %21761 = vst [vmem:[#allocation40_spill] sm:$0xff] %v17710_v39  ;;  %13407 = vmatprep.mubr.f32.mxu0 %v17543_v4  ;;  %v1022_v32 = vadd.f32 %v12950_v63, %v17573_v15  ;;  %v3031_v15 = vld [vmem:[#allocation2 + $0x50] sm:$0xff]  ;;  %13526 = vmatpush3.msra.mxu0 %v3032_v62 }
 0x17c   :  { %v17715_v60 = vpop.f32.mrf.mxu0  ;;  %v13024_v23 = vpop.f32.mrf.mxu1  ;;  %v3044_v63 = vld [vmem:[#allocation2 + $0xb0] sm:$0xff]  ;;  %13527 = vmatprep.subr.mxu0 %v21729_v30 }
 0x17d   :  { %21762 = vst [vmem:[#allocation41_spill] sm:$0xff] %v17715_v60  ;;  %v17718_v7 = vadd.f32 %v13024_v23, %v1022_v32  ;;  %13429 = vmatpush3.msra.mxu1 %v3044_v63  ;;  %v3030_v32 = vld [vmem:[#allocation2 + $0x48] sm:$0xff]  ;;  %13528 = vmatpush3.msra.mxu0 %v3031_v15 }
 0x17e   :  { %13408 = vmatmul.mubr.f32.gmra.mxu0 %v17569_v58  ;;  %v12953_v4 = vpop.f32.mrf.mxu0  ;;  %v17722_v13 = vpop.f32.mrf.mxu1  ;;  %13430 = vmatprep.subr.mxu1 %v21729_v30 }
 0x17f   :  { %21763 = vst [vmem:[#allocation42_spill] sm:$0xff] %v17722_v13  ;;  %v1024_v48 = vadd.f32 %v12953_v4, %v17582_v26  ;;  %13529 = vmatprep.subr.mxu0 %v21729_v30  ;;  %v3029_v26 = vld [vmem:[#allocation2 + $0x40] sm:$0xff]  ;;  %v3043_v4 = vld [vmem:[#allocation2 + $0xa8] sm:$0xff]  ;;  %13549 = vmatprep.mubr.msk.f32.mxu0 %vm16288_vm7, %v21729_v30 }
 0x180   :  { %v17726_v39 = vpop.f32.mrf.mxu0  ;;  %v13027_v29 = vpop.f32.mrf.mxu1  ;;  %13530 = vmatpush3.msra.mxu0 %v3030_v32  ;;  %13431 = vmatpush3.msra.mxu1 %v3043_v4 }
 0x181   :  { %21764 = vst [vmem:[#allocation43_spill] sm:$0xff] %v17726_v39  ;;  %v17729_v19 = vadd.f32 %v13027_v29, %v1024_v48  ;;  %13531 = vmatprep.subr.mxu0 %v21729_v30  ;;  %v3028_v48 = vld [vmem:[#allocation2 + $0x38] sm:$0xff]  ;;  %13432 = vmatprep.subr.mxu1 %v21729_v30 }
 0x182   :  { %v12956_v58 = vpop.f32.mrf.mxu0  ;;  %v17732_v23 = vpop.f32.mrf.mxu1  ;;  %13532 = vmatpush3.msra.mxu0 %v3029_v26  ;;  %v3041_v26 = vld [vmem:[#allocation2 + $0x98] sm:$0xff] }
 0x183   :  { %21765 = vst [vmem:[#allocation44_spill] sm:$0xff] %v17732_v23  ;;  %v1026_v62 = vadd.f32 %v12956_v58, %v17592_v45  ;;  %13533 = vmatprep.subr.mxu0 %v21729_v30  ;;  %v3027_v45 = vld [vmem:[#allocation2 + $0x30] sm:$0xff]  ;;  %v3042_v58 = vld [vmem:[#allocation2 + $0xa0] sm:$0xff] }
 0x184   :  { %v17736_v13 = vpop.f32.mrf.mxu0  ;;  %v13030_v43 = vpop.f32.mrf.mxu1  ;;  %13534 = vmatpush3.msra.mxu0 %v3028_v48  ;;  %13433 = vmatpush3.msra.mxu1 %v3042_v58 }
 0x185   :  { %21766 = vst [vmem:[#allocation45_spill] sm:$0xff] %v17736_v13  ;;  %v17739_v15 = vadd.f32 %v13030_v43, %v1026_v62  ;;  %13535 = vmatprep.subr.mxu0 %v21729_v30  ;;  %v3026_v43 = vld [vmem:[#allocation2 + $0x28] sm:$0xff]  ;;  %13434 = vmatprep.subr.mxu1 %v21729_v30 }
 0x186   :  { %v12959_v63 = vpop.f32.mrf.mxu0  ;;  %v17742_v29 = vpop.f32.mrf.mxu1  ;;  %13536 = vmatpush3.msra.mxu0 %v3027_v45  ;;  %13435 = vmatpush3.msra.mxu1 %v3041_v26  ;;  %v3024_v45 = vld [vmem:[#allocation2 + $0x18] sm:$0xff] }
 0x187   :  { %21767 = vst [vmem:[#allocation46_spill] sm:$0xff] %v17742_v29  ;;  %v1028_v32 = vadd.f32 %v12959_v63, %v17602_v20  ;;  %13537 = vmatprep.subr.mxu0 %v21729_v30  ;;  %v3025_v29 = vld [vmem:[#allocation2 + $0x20] sm:$0xff]  ;;  %13436 = vmatprep.subr.mxu1 %v21729_v30 }
 0x188   :  { %v17746_v23 = vpop.f32.mrf.mxu0  ;;  %v13033_v62 = vpop.f32.mrf.mxu1  ;;  %13538 = vmatpush3.msra.mxu0 %v3026_v43  ;;  %v3040_v43 = vld [vmem:[#allocation2 + $0x90] sm:$0xff] }
 0x189   :  { %21768 = vst [vmem:[#allocation47_spill] sm:$0xff] %v17746_v23  ;;  %v17750_v4 = vadd.f32 %v13033_v62, %v1028_v32  ;;  %13539 = vmatprep.subr.mxu0 %v21729_v30  ;;  %v3023_v62 = vld [vmem:[#allocation2 + $0x10] sm:$0xff]  ;;  %13437 = vmatpush3.msra.mxu1 %v3040_v43 }
 0x18a   :  { %v17753_v48 = vpop.f32.mrf.mxu1  ;;  %13540 = vmatpush3.msra.mxu0 %v3025_v29  ;;  %13438 = vmatprep.subr.mxu1 %v21729_v30  ;;  %v3039_v29 = vld [vmem:[#allocation2 + $0x88] sm:$0xff] }
 0x18b   :  { %v12962_v20 = vpop.f32.mrf.mxu0  ;;  %21769 = vst [vmem:[#allocation48_spill] sm:$0xff] %v17753_v48  ;;  %13541 = vmatprep.subr.mxu0 %v21729_v30  ;;  %13439 = vmatpush3.msra.mxu1 %v3039_v29 }
 0x18c   :  { %v1030_v63 = vadd.f32 %v12962_v20, %v17612_v24  ;;  %13542 = vmatpush3.msra.mxu0 %v3024_v45  ;;  %v3022_v24 = vld [vmem:[#allocation2 + $0x8] sm:$0xff]  ;;  %13440 = vmatprep.subr.mxu1 %v21729_v30 }
 0x18d   :  { %v17758_v58 = vpop.f32.mrf.mxu0  ;;  %13543 = vmatprep.subr.mxu0 %v21729_v30 }
 0x18e   :  { %21770 = vst [vmem:[#allocation49_spill] sm:$0xff] %v17758_v58  ;;  %v13036_v32 = vpop.f32.mrf.mxu1  ;;  %13544 = vmatpush3.msra.mxu0 %v3023_v62  ;;  %v3038_v62 = vld [vmem:[#allocation2 + $0x80] sm:$0xff] }
 0x18f   :  { %v17761_v26 = vadd.f32 %v13036_v32, %v1030_v63  ;;  %13545 = vmatprep.subr.mxu0 %v21729_v30  ;;  %v3021_v63 = vld [vmem:[#allocation2] sm:$0xff]  ;;  %13441 = vmatpush3.msra.mxu1 %v3038_v62 }
 0x190   :  { %v12965_v23 = vpop.f32.mrf.mxu0  ;;  %v17763_v48 = vpop.f32.mrf.mxu1  ;;  %13546 = vmatpush3.msra.mxu0 %v3022_v24  ;;  %13624 = vmatprep.subr.mxu1 %v21729_v30 }
 0x191   :  { %21771 = vst [vmem:[#allocation50_spill] sm:$0xff] %v17763_v48  ;;  %v1032_v20 = vadd.f32 %v12965_v23, %v17621_v55  ;;  %13547 = vmatprep.subr.mxu0 %v21729_v30 }
 0x192   :  { %v17767_v58 = vpop.f32.mrf.mxu0  ;;  %13548 = vmatpush3.msra.mxu0 %v3021_v63 }
 0x193   :  { %21772 = vst [vmem:[#allocation51_spill] sm:$0xff] %v17767_v58  ;;  %v13039_v45 = vpop.f32.mrf.mxu1  ;;  %13731 = vmatprep.subr.mxu0 %v21729_v30 }
 0x194   :  { %v17771_v32 = vadd.f32 %v13039_v45, %v1032_v20 }
 0x195   :  { %v17776_v55 = vpop.f32.mrf.mxu1  ;;  %v13074_v23 = vpop.f32.mrf.mxu0 }
 0x196   :  { %21773 = vst [vmem:[#allocation52_spill] sm:$0xff] %v17776_v55  ;;  %v17780_v43 = vadd.f32 %v13074_v23, %v17633_v44 }
 0x197   :  { %v17784_v24 = vpop.f32.mrf.mxu0 }
 0x198   :  { %v17788_v20 = vpop.f32.mrf.mxu1 }
 0x199   :  { %v13077_v29 = vpop.f32.mrf.mxu0 }
 0x19a   :  { %v17790_v63 = vpop.f32.mrf.mxu1  ;;  %v17793_v45 = vadd.f32 %v13077_v29, %v17644_v38 }
 0x19b   :  { %v17795_v44 = vpop.f32.mrf.mxu0 }
 0x19c   :  { %v17797_v23 = vpop.f32.mrf.mxu1 }
 0x19d   :  { %v13080_v62 = vpop.f32.mrf.mxu0 }
 0x19e   :  { %v17799_v55 = vpop.f32.mrf.mxu1  ;;  %v17802_v48 = vadd.f32 %v13080_v62, %v17654_v17 }
 0x19f   :  { %v17804_v58 = vpop.f32.mrf.mxu0 }
 0x1a0   :  { %v17806_v30 = vpop.f32.mrf.mxu1 }
 0x1a2   :  { %v13083_v13 = vpop.f32.mrf.mxu0  ;;  %v17808_v39 = vpop.f32.mrf.mxu1 }
 0x1a3   :  { %v1681_v38 = vadd.f32 %v13083_v13, %v17664_v12 }
 0x1a4   :  { %v17811_v29 = vpop.f32.mrf.mxu0  ;;  %v13157_v5 = vpop.f32.mrf.mxu1 }
 0x1a5   :  { %v17813_v60 = vadd.f32 %v13157_v5, %v1681_v38 }
 0x1a6   :  { %v13086_v28 = vpop.f32.mrf.mxu0  ;;  %v17815_v54 = vpop.f32.mrf.mxu1 }
 0x1a7   :  { %21774 = vst [vmem:[#allocation53_spill] sm:$0xff] %v17815_v54  ;;  %v1683_v17 = vadd.f32 %v13086_v28, %v17674_v42 }
 0x1a8   :  { %v17818_v62 = vpop.f32.mrf.mxu0  ;;  %v13160_v61 = vpop.f32.mrf.mxu1 }
 0x1a9   :  { %21775 = vst [vmem:[#allocation54_spill] sm:$0xff] %v17818_v62  ;;  %v17820_v57 = vadd.f32 %v13160_v61, %v1683_v17 }
 0x1aa   :  { %v13089_v31 = vpop.f32.mrf.mxu0  ;;  %v17822_v40 = vpop.f32.mrf.mxu1 }
 0x1ab   :  { %21776 = vst [vmem:[#allocation55_spill] sm:$0xff] %v17822_v40  ;;  %v1685_v12 = vadd.f32 %v13089_v31, %v17685_v14 }
 0x1ac   :  { %v17825_v13 = vpop.f32.mrf.mxu0  ;;  %v13163_v51 = vpop.f32.mrf.mxu1 }
 0x1ad   :  { %21777 = vst [vmem:[#allocation56_spill] sm:$0xff] %v17825_v13  ;;  %v17827_v5 = vadd.f32 %v13163_v51, %v1685_v12 }
 0x1ae   :  { %v13092_v38 = vpop.f32.mrf.mxu0  ;;  %v17829_v1 = vpop.f32.mrf.mxu1 }
 0x1af   :  { %21778 = vst [vmem:[#allocation57_spill] sm:$0xff] %v17829_v1  ;;  %v1687_v42 = vadd.f32 %v13092_v38, %v17695_v56 }
 0x1b0   :  { %v17832_v28 = vpop.f32.mrf.mxu0  ;;  %v13166_v62 = vpop.f32.mrf.mxu1 }
 0x1b1   :  { %21779 = vst [vmem:[#allocation58_spill] sm:$0xff] %v17832_v28  ;;  %v17834_v61 = vadd.f32 %v13166_v62, %v1687_v42 }
 0x1b2   :  { %v13095_v17 = vpop.f32.mrf.mxu0  ;;  %v17836_v50 = vpop.f32.mrf.mxu1 }
 0x1b3   :  { %21780 = vst [vmem:[#allocation59_spill] sm:$0xff] %v17836_v50  ;;  %v1689_v31 = vadd.f32 %v13095_v17, %v17707_v25 }
 0x1b4   :  { %v17839_v14 = vpop.f32.mrf.mxu0  ;;  %v13169_v13 = vpop.f32.mrf.mxu1 }
 0x1b5   :  { %21781 = vst [vmem:[#allocation60_spill] sm:$0xff] %v17839_v14  ;;  %v17841_v51 = vadd.f32 %v13169_v13, %v1689_v31 }
 0x1b6   :  { %v13098_v12 = vpop.f32.mrf.mxu0  ;;  %v17843_v40 = vpop.f32.mrf.mxu1 }
 0x1b7   :  { %21782 = vst [vmem:[#allocation61_spill] sm:$0xff] %v17843_v40  ;;  %v1691_v56 = vadd.f32 %v13098_v12, %v17718_v7 }
 0x1b8   :  { %v17846_v38 = vpop.f32.mrf.mxu0  ;;  %v13172_v28 = vpop.f32.mrf.mxu1 }
 0x1b9   :  { %21783 = vst [vmem:[#allocation62_spill] sm:$0xff] %v17846_v38  ;;  %v17848_v62 = vadd.f32 %v13172_v28, %v1691_v56 }
 0x1ba   :  { %v13101_v42 = vpop.f32.mrf.mxu0  ;;  %v17850_v1 = vpop.f32.mrf.mxu1 }
 0x1bb   :  { %21784 = vst [vmem:[#allocation63_spill] sm:$0xff] %v17850_v1  ;;  %v1693_v25 = vadd.f32 %v13101_v42, %v17729_v19 }
 0x1bc   :  { %v17853_v17 = vpop.f32.mrf.mxu0  ;;  %v13175_v50 = vpop.f32.mrf.mxu1 }
 0x1bd   :  { %21785 = vst [vmem:[#allocation64_spill] sm:$0xff] %v17853_v17  ;;  %v17855_v13 = vadd.f32 %v13175_v50, %v1693_v25 }
 0x1be   :  { %v13104_v31 = vpop.f32.mrf.mxu0  ;;  %v17857_v14 = vpop.f32.mrf.mxu1 }
 0x1bf   :  { %21786 = vst [vmem:[#allocation65_spill] sm:$0xff] %v17857_v14  ;;  %v1695_v7 = vadd.f32 %v13104_v31, %v17739_v15 }
 0x1c0   :  { %v17860_v12 = vpop.f32.mrf.mxu0  ;;  %v13178_v38 = vpop.f32.mrf.mxu1 }
 0x1c1   :  { %21787 = vst [vmem:[#allocation66_spill] sm:$0xff] %v17860_v12  ;;  %v17862_v28 = vadd.f32 %v13178_v38, %v1695_v7 }
 0x1c2   :  { %v13107_v56 = vpop.f32.mrf.mxu0  ;;  %v17864_v40 = vpop.f32.mrf.mxu1 }
 0x1c3   :  { %21788 = vst [vmem:[#allocation67_spill] sm:$0xff] %v17864_v40  ;;  %v1697_v19 = vadd.f32 %v13107_v56, %v17750_v4 }
 0x1c4   :  { %v17867_v42 = vpop.f32.mrf.mxu0  ;;  %v13181_v1 = vpop.f32.mrf.mxu1 }
 0x1c5   :  { %21789 = vst [vmem:[#allocation68_spill] sm:$0xff] %v17867_v42  ;;  %v17869_v50 = vadd.f32 %v13181_v1, %v1697_v19 }
 0x1c6   :  { %v17871_v17 = vpop.f32.mrf.mxu1 }
 0x1c7   :  { %v13110_v25 = vpop.f32.mrf.mxu0  ;;  %21790 = vst [vmem:[#allocation69_spill] sm:$0xff] %v17871_v17 }
 0x1c8   :  { %v1699_v15 = vadd.f32 %v13110_v25, %v17761_v26 }
 0x1c9   :  { %v17874_v31 = vpop.f32.mrf.mxu0 }
 0x1ca   :  { %21791 = vst [vmem:[#allocation70_spill] sm:$0xff] %v17874_v31  ;;  %v13184_v14 = vpop.f32.mrf.mxu1 }
 0x1cb   :  { %v17876_v38 = vadd.f32 %v13184_v14, %v1699_v15 }
 0x1cc   :  { %v13113_v7 = vpop.f32.mrf.mxu0  ;;  %v17878_v12 = vpop.f32.mrf.mxu1 }
 0x1cd   :  { %21792 = vst [vmem:[#allocation71_spill] sm:$0xff] %v17878_v12  ;;  %v1701_v4 = vadd.f32 %v13113_v7, %v17771_v32 }
 0x1ce   :  { %v17881_v56 = vpop.f32.mrf.mxu0 }
 0x1cf   :  { %21793 = vst [vmem:[#allocation72_spill] sm:$0xff] %v17881_v56  ;;  %v13187_v40 = vpop.f32.mrf.mxu1 }
 0x1d0   :  { %v17883_v1 = vadd.f32 %v13187_v40, %v1701_v4 }
 0x1d1   :  { %v17885_v19 = vpop.f32.mrf.mxu1  ;;  %v17887_v17 = vpop.f32.mrf.mxu0 }
 0x1d2   :  { %21794 = vst [vmem:[#allocation73_spill] sm:$0xff] %v17885_v19 }
 0x1d3   :  { %v17889_v26 = vpop.f32.mrf.mxu0 }
 0x1d4   :  { %v17891_v25 = vpop.f32.mrf.mxu1 }
 0x1d5   :  { %v17893_v14 = vpop.f32.mrf.mxu0 }
 0x1d6   :  { %v17895_v15 = vpop.f32.mrf.mxu1 }
 0x1d7   :  { %v17897_v12 = vpop.f32.mrf.mxu0 }
 0x1d8   :  { %v17899_v32 = vpop.f32.mrf.mxu1 }
 0x1d9   :  { %v17901_v7 = vpop.f32.mrf.mxu0 }
 0x1da   :  { %21795 = vst [vmem:[#allocation74_spill] sm:$0xff] %v17901_v7  ;;  %v17903_v40 = vpop.f32.mrf.mxu1 }
 0x1db   :  { %v17905_v4 = vpop.f32.mrf.mxu0 }
 0x1dc   :  { %v17907_v19 = vpop.f32.mrf.mxu1 }
 0x1dd   :  { %21796 = vst [vmem:[#allocation75_spill] sm:$0xff] %v17907_v19 }
 0x1de   :  { %v13231_v56 = vpop.f32.mrf.mxu0  ;;  %v17909_v31 = vpop.f32.mrf.mxu1 }
 0x1df   :  { %v17912_v42 = vadd.f32 %v13231_v56, %v17813_v60 }
 0x1e0   :  { %v17914_v47 = vpop.f32.mrf.mxu0  ;;  %v17916_v27 = vpop.f32.mrf.mxu1 }
 0x1e1   :  { %21797 = vst [vmem:[#allocation76_spill] sm:$0xff] %v17912_v42  ;;  %21798 = vst [vmem:[#allocation77_spill] sm:$0xff] %v17914_v47 }
 0x1e2   :  { %21799 = vst [vmem:[#allocation78_spill] sm:$0xff] %v17916_v27  ;;  %v13234_v53 = vpop.f32.mrf.mxu0  ;;  %v17918_v8 = vpop.f32.mrf.mxu1 }
 0x1e3   :  { %v17921_v7 = vadd.f32 %v13234_v53, %v17820_v57 }
 0x1e4   :  { %v17923_v54 = vpop.f32.mrf.mxu0  ;;  %v17925_v49 = vpop.f32.mrf.mxu1 }
 0x1e5   :  { %21800 = vst [vmem:[#allocation79_spill] sm:$0xff] %v17921_v7  ;;  %21801 = vst [vmem:[#allocation80_spill] sm:$0xff] %v17923_v54 }
 0x1e6   :  { %21802 = vst [vmem:[#allocation81_spill] sm:$0xff] %v17925_v49  ;;  %v13237_v19 = vpop.f32.mrf.mxu0  ;;  %v17927_v34 = vpop.f32.mrf.mxu1 }
 0x1e7   :  { %v17930_v60 = vadd.f32 %v13237_v19, %v17827_v5 }
 0x1e8   :  { %v17932_v56 = vpop.f32.mrf.mxu0  ;;  %v17934_v42 = vpop.f32.mrf.mxu1 }
 0x1e9   :  { %21803 = vst [vmem:[#allocation82_spill] sm:$0xff] %v17930_v60  ;;  %21804 = vst [vmem:[#allocation83_spill] sm:$0xff] %v17932_v56 }
 0x1ea   :  { %21805 = vst [vmem:[#allocation84_spill] sm:$0xff] %v17934_v42  ;;  %v13240_v27 = vpop.f32.mrf.mxu0  ;;  %v17936_v47 = vpop.f32.mrf.mxu1 }
 0x1eb   :  { %v17939_v53 = vadd.f32 %v13240_v27, %v17834_v61 }
 0x1ec   :  { %v17941_v57 = vpop.f32.mrf.mxu0  ;;  %v17943_v7 = vpop.f32.mrf.mxu1 }
 0x1ed   :  { %21806 = vst [vmem:[#allocation85_spill] sm:$0xff] %v17939_v53  ;;  %21807 = vst [vmem:[#allocation86_spill] sm:$0xff] %v17941_v57 }
 0x1ee   :  { %21808 = vst [vmem:[#allocation87_spill] sm:$0xff] %v17943_v7  ;;  %v13243_v49 = vpop.f32.mrf.mxu0  ;;  %v17945_v54 = vpop.f32.mrf.mxu1 }
 0x1ef   :  { %21809 = vst [vmem:[#allocation88_spill] sm:$0xff] %v17945_v54  ;;  %v17948_v5 = vadd.f32 %v13243_v49, %v17841_v51 }
 0x1f0   :  { %v17950_v19 = vpop.f32.mrf.mxu0  ;;  %v17952_v60 = vpop.f32.mrf.mxu1 }
 0x1f1   :  { %21810 = vst [vmem:[#allocation89_spill] sm:$0xff] %v17948_v5  ;;  %21811 = vst [vmem:[#allocation90_spill] sm:$0xff] %v17950_v19 }
 0x1f2   :  { %21812 = vst [vmem:[#allocation91_spill] sm:$0xff] %v17952_v60  ;;  %v13246_v42 = vpop.f32.mrf.mxu0  ;;  %v17954_v56 = vpop.f32.mrf.mxu1  ;;  %v561_v60 = vadd.f32 %v17430_v36, %v17428_v21 }
 0x1f3   :  { %21813 = vst [vmem:[#allocation92_spill] sm:$0xff] %v17954_v56  ;;  %v17957_v27 = vadd.f32 %v13246_v42, %v17848_v62 }
 0x1f4   :  { %v17959_v61 = vpop.f32.mrf.mxu0  ;;  %v17961_v53 = vpop.f32.mrf.mxu1  ;;  %v1005_v42 = vadd.f32 %v17631_v46, %v561_v60  ;;  %v581_v46 = vadd.f32 %v17470_v9, %v17468_v18  ;;  %v591_v18 = vadd.f32 %v17490_v37, %v17488_v6  ;;  %v2011_v6 = vadd.f32 %v17797_v23, %v17793_v45  ;;  %v18036_v23 = vld [vmem:[%s21717_s2] ss:$0 sm:$0xff] }
 0x1f5   :  { %21814 = vst [vmem:[#allocation93_spill] sm:$0xff] %v17959_v61 }
 0x1f6   :  { %v13249_v7 = vpop.f32.mrf.mxu0  ;;  %v17963_v57 = vpop.f32.mrf.mxu1  ;;  %v1340_v21 = vadd.f32 %v17636_v52, %v1005_v42 }
 0x1f7   :  { %21815 = vst [vmem:[#allocation94_spill] sm:$0xff] %v17963_v57  ;;  %v17966_v49 = vadd.f32 %v13249_v7, %v17855_v13  ;;  %v571_v13 = vadd.f32 %v17450_v59, %v17448_v22  ;;  %v1009_v22 = vadd.f32 %v17652_v11, %v581_v46 }
 0x1f8   :  { %v17968_v51 = vpop.f32.mrf.mxu0  ;;  %v17970_v5 = vpop.f32.mrf.mxu1 }
 0x1f9   :  { %v1007_v36 = vadd.f32 %v17640_v3, %v571_v13  ;;  %v2009_v3 = vadd.f32 %v17788_v20, %v17780_v43  ;;  %v1011_v43 = vadd.f32 %v17662_v16, %v591_v18  ;;  %v2346_v16 = vadd.f32 %v17893_v14, %v2011_v6  ;;  %v21818_v18 = vld [vmem:[#allocation16_spill] sm:$0xff] }
 0x1fa   :  { %v13252_v56 = vpop.f32.mrf.mxu0  ;;  %v17974_v62 = vpop.f32.mrf.mxu1 }
 0x1fb   :  { %21816 = vst [vmem:[#allocation95_spill] sm:$0xff] %v17974_v62  ;;  %v17978_v61 = vadd.f32 %v13252_v56, %v17862_v28  ;;  %v1674_v56 = vadd.f32 %v17784_v24, %v1340_v21  ;;  %v1342_v52 = vadd.f32 %v17647_v41, %v1007_v36  ;;  %v2344_v13 = vadd.f32 %v17887_v17, %v2009_v3 }
 0x1fc   :  { %v17980_v19 = vpop.f32.mrf.mxu0  ;;  %v17982_v57 = vpop.f32.mrf.mxu1  ;;  %v1344_v41 = vadd.f32 %v17658_v0, %v1009_v22 }
 0x1fd   :  { %v2008_v24 = vadd.f32 %v17790_v63, %v1674_v56  ;;  %v1676_v11 = vadd.f32 %v17795_v44, %v1342_v52  ;;  %v2681_v0 = vadd.f32 %v17891_v25, %v2344_v13  ;;  %v1346_v56 = vadd.f32 %v17668_v35, %v1011_v43 }
 0x1fe   :  { %v13255_v7 = vpop.f32.mrf.mxu0  ;;  %v17986_v54 = vpop.f32.mrf.mxu1  ;;  %v1678_v44 = vadd.f32 %v17804_v58, %v1344_v41  ;;  %v2683_v35 = vadd.f32 %v17899_v32, %v2346_v16  ;;  %v21819_v32 = vld [vmem:[#allocation17_spill] sm:$0xff] }
 0x1ff   :  { %21817 = vst [vmem:[#allocation96_spill] sm:$0xff] %v17986_v54  ;;  %v17991_v62 = vadd.f32 %v13255_v7, %v17869_v50  ;;  %v2343_v37 = vadd.f32 %v17889_v26, %v2008_v24  ;;  %v2010_v36 = vadd.f32 %v17799_v55, %v1676_v11  ;;  %v601_v55 = vadd.f32 %v17510_v10, %v17508_v33  ;;  %v21820_v24 = vld [vmem:[#allocation18_spill] sm:$0xff]  ;;  %v21821_v11 = vld [vmem:[#allocation19_spill] sm:$0xff] }
 0x200   :  { %v17995_v28 = vpop.f32.mrf.mxu0  ;;  %v17997_v60 = vpop.f32.mrf.mxu1  ;;  %v2012_v25 = vadd.f32 %v17808_v39, %v1678_v44  ;;  %v1680_v14 = vadd.f32 %v17811_v29, %v1346_v56  ;;  %v621_v13 = vadd.f32 %v21821_v11, %v21820_v24  ;;  %v21826_v44 = vld [vmem:[#allocation34_spill] sm:$0xff] }
 0x201   :  { %v2680_v58 = vadd.f32 %v17895_v15, %v2343_v37  ;;  %v1013_v3 = vadd.f32 %v17672_v2, %v601_v55  ;;  %v2013_v15 = vadd.f32 %v17806_v30, %v17802_v48  ;;  %v21822_v2 = vld [vmem:[#allocation53_spill] sm:$0xff]  ;;  %v21823_v30 = vld [vmem:[#allocation20_spill] sm:$0xff] }
 0x202   :  { %v13258_v59 = vpop.f32.mrf.mxu0  ;;  %v18001_v54 = vpop.f32.mrf.mxu1  ;;  %v2014_v41 = vadd.f32 %v21822_v2, %v1680_v14  ;;  %v21824_v48 = vld [vmem:[#allocation21_spill] sm:$0xff]  ;;  %v21828_v14 = vld [vmem:[#allocation22_spill] sm:$0xff]  ;;  %v21835_v2 = vld [vmem:[#allocation35_spill] sm:$0xff] }
 0x203   :  { %v2368_v50 = vadd.f32 %v13258_v59, %v17876_v38 }
 0x204   :  { %v18009_v9 = vpop.f32.mrf.mxu0  ;;  %v13332_v42 = vpop.f32.mrf.mxu1 }
 0x205   :  { %v18014_v7 = vadd.f32 %v13332_v42, %v2368_v50  ;;  %v611_v42 = vadd.f32 %v21819_v32, %v21818_v18 }
 0x206   :  { %v13261_v20 = vpop.f32.mrf.mxu0  ;;  %v18018_v38 = vpop.f32.mrf.mxu1 }
 0x207   :  { %v2370_v63 = vadd.f32 %v13261_v20, %v17883_v1  ;;  %v2345_v1 = vadd.f32 %v17897_v12, %v2010_v36  ;;  %v2347_v12 = vadd.f32 %v17905_v4, %v2012_v25  ;;  %v631_v4 = vadd.f32 %v21824_v48, %v21823_v30  ;;  %v21825_v20 = vld [vmem:[#allocation74_spill] sm:$0xff] }
 0x208   :  { %v18025_v21 = vpop.f32.mrf.mxu0  ;;  %v13335_v17 = vpop.f32.mrf.mxu1  ;;  %v2348_v6 = vadd.f32 %v21825_v20, %v2013_v15  ;;  %v3854_v25 = vld [vmem:[#allocation2 + $0x1f0] sm:$0xff] }
 0x209   :  { %v18030_v46 = vadd.f32 %v13335_v17, %v2370_v63  ;;  %v2682_v33 = vadd.f32 %v17903_v40, %v2345_v1  ;;  %v3855_v63 = vld [vmem:[#allocation2 + $0x1f8] sm:$0xff]  ;;  %v1348_v17 = vadd.f32 %v21826_v44, %v1013_v3  ;;  %v2684_v36 = vadd.f32 %v17909_v31, %v2347_v12 }
 0x20a   :  { %v13370_v45 = vpop.f32.mrf.mxu0  ;;  %v21832_v31 = vld [vmem:[#allocation54_spill] sm:$0xff] }
 0x20b   :  { %v2931_v26 = vadd.f32 %v13370_v45, %v2681_v0  ;;  %v21827_v0 = vld [vmem:[#allocation77_spill] sm:$0xff]  ;;  %v1682_v15 = vadd.f32 %v21832_v31, %v1348_v17  ;;  %v21838_v17 = vld [vmem:[#allocation28_spill] sm:$0xff] }
 0x20c   :  { %v2791_v22 = vpop.f32.mrf.mxu0  ;;  %v2349_v16 = vadd.f32 %v21827_v0, %v2014_v41  ;;  %v1015_v41 = vadd.f32 %v21835_v2, %v611_v42  ;;  %v21847_v2 = vld [vmem:[#allocation80_spill] sm:$0xff] }
 0x20d   :  { %v2966_v59 = vadd.f32 %v18036_v23, %v2931_v26  ;;  %v2930_v52 = vadd.f32 %v2791_v22, %v2680_v58  ;;  %v21829_v22 = vld [vmem:[#allocation23_spill] sm:$0xff] }
 0x20e   :  { %v13373_v50 = vpop.f32.mrf.mxu0 }
 0x20f   :  { %v18051_v10 = vmax.f32 %v2966_v59, 0.0  ;;  %v2965_v39 = vadd.f32 %v18036_v23, %v2930_v52  ;;  %v2933_v29 = vadd.f32 %v13373_v50, %v2683_v35  ;;  %v641_v35 = vadd.f32 %v21829_v22, %v21828_v14  ;;  %v21830_v59 = vld [vmem:[#allocation24_spill] sm:$0xff]  ;;  %v21831_v52 = vld [vmem:[#allocation25_spill] sm:$0xff] }
 0x210   :  { %v2801_v43 = vpop.f32.mrf.mxu0  ;;  %v651_v3 = vadd.f32 %v21831_v52, %v21830_v59  ;;  %v21833_v50 = vmov 0.0   ;;  %v3548_v59 = vld [vmem:[#allocation2 + $0x170] sm:$0xff]  ;;  %v21843_v52 = vld [vmem:[#allocation36_spill] sm:$0xff] }
 0x211   :  { %v2993_v40 = vmax.f32 %v2965_v39, 0.0  ;;  %v2932_v37 = vadd.f32 %v2801_v43, %v2682_v33  ;;  %v2968_v56 = vadd.f32 %v18036_v23, %v2933_v29  ;;  %v3080_v55 = vrot.slane %v18051_v10, 1  ;;  %v3549_v33 = vld [vmem:[#allocation2 + $0x178] sm:$0xff] }
 0x212   :  { %v13376_v45 = vpop.f32.mrf.mxu0  ;;  %v3551_v39 = vrot.slane %v18051_v10, 2  ;;  %v21834_v29 = vld [vmem:[#allocation75_spill] sm:$0xff]  ;;  %v2686_v43 = vadd.f32 %v17918_v8, %v2349_v16  ;;  %v21836_v8 = vld [vmem:[#allocation26_spill] sm:$0xff]  ;;  %v1350_v31 = vadd.f32 %v21843_v52, %v1015_v41 }
 0x213   :  { %v3079_v58 = vrot.slane %v2993_v40, 1  ;;  %v3550_v1 = vrot.slane %v2993_v40, 2  ;;  %v2967_v26 = vadd.f32 %v18036_v23, %v2932_v37  ;;  %13550 = vmatmul.mubr.f32.vlgmr.msra.gmra.mxu0 %v2993_v40  ;;  %v2685_v18 = vadd.f32 %v21834_v29, %v2348_v6  ;;  %v3853_v37 = vld [vmem:[#allocation2 + $0x1e8] sm:$0xff]  ;;  %v21840_v16 = vld [vmem:[#allocation30_spill] sm:$0xff]  ;;  %v21845_v29 = vld [vmem:[#allocation39_spill] sm:$0xff] }
 0x214   :  { %v2811_v12 = vpop.f32.mrf.mxu0  ;;  %13552 = vmatprep.mubr.msk.f32.mxu0 %vm16288_vm7, %v21833_v50  ;;  %13732 = vmatpush3.msra.mxu0 %v3855_v63  ;;  %v18088_v20 = vmax.f32 %v2968_v56, 0.0  ;;  %v21837_v63 = vld [vmem:[#allocation27_spill] sm:$0xff] }
 0x215   :  { %v18077_v32 = vmax.f32 %v2967_v26, 0.0  ;;  %v2934_v24 = vadd.f32 %v2811_v12, %v2684_v36  ;;  %v3081_v11 = vsel %vm205_vm0, %v3079_v58, %v3080_v55  ;;  %13733 = vmatprep.subr.mxu0 %v21833_v50  ;;  %v18086_v48 = vsel %vm716_vm1, %v3550_v1, %v3551_v39  ;;  %v21839_v36 = vld [vmem:[#allocation29_spill] sm:$0xff]  ;;  %v21841_v58 = vld [vmem:[#allocation31_spill] sm:$0xff] }
 0x216   :  { %v13379_v30 = vpop.f32.mrf.mxu0  ;;  %13443 = vmatmul.mubr.f32.vlgmr.msra.gmra.mxu1 %v3081_v11  ;;  %13734 = vmatpush3.msra.mxu0 %v3854_v25  ;;  %v2935_v6 = vadd.f32 %v13376_v45, %v2685_v18  ;;  %v661_v44 = vadd.f32 %v21837_v63, %v21836_v8  ;;  %v671_v0 = vadd.f32 %v21839_v36, %v21838_v17  ;;  %v21842_v45 = vld [vmem:[#allocation55_spill] sm:$0xff]  ;;  %v21844_v12 = vld [vmem:[#allocation37_spill] sm:$0xff]  ;;  %v3084_v41 = vrot.slane %v18088_v20, 1 }
 0x217   :  { %v2969_v40 = vadd.f32 %v18036_v23, %v2934_v24  ;;  %13553 = vmatmul.mubr.f32.gmra.mxu0 %v18051_v10  ;;  %13625 = vmatpush3.msra.mxu1 %v3549_v33  ;;  %v3082_v42 = vrot.slane %v18077_v32, 1  ;;  %v681_v1 = vadd.f32 %v21841_v58, %v21840_v16  ;;  %v2016_v26 = vadd.f32 %v21842_v45, %v1682_v15  ;;  %v21846_v15 = vld [vmem:[#allocation41_spill] sm:$0xff]  ;;  %v21850_v63 = vld [vmem:[#allocation43_spill] sm:$0xff]  ;;  %v21853_v16 = vld [vmem:[#allocation78_spill] sm:$0xff] }
 0x218   :  { %v2821_v56 = vpop.f32.mrf.mxu0  ;;  %13445 = vmatprep.mubr.msk.f32.mxu1 %vm16288_vm7, %v21833_v50  ;;  %13555 = vmatprep.mubr.msk.f32.mxu0 %vm16288_vm7, %v21833_v50  ;;  %v1017_v33 = vadd.f32 %v21844_v12, %v621_v13  ;;  %v1019_v18 = vadd.f32 %v21845_v29, %v631_v4  ;;  %v1021_v11 = vadd.f32 %v21846_v15, %v641_v35  ;;  %v3852_v13 = vld [vmem:[#allocation2 + $0x1e0] sm:$0xff]  ;;  %v21849_v4 = vld [vmem:[#allocation33_spill] sm:$0xff] }
 0x219   :  { %v18104_v25 = vmax.f32 %v2969_v40, 0.0  ;;  %v2936_v14 = vadd.f32 %v2821_v56, %v2686_v43  ;;  %v3083_v22 = vsel %vm205_vm0, %v3080_v55, %v3082_v42  ;;  %13626 = vmatprep.subr.mxu1 %v21833_v50  ;;  %13735 = vmatprep.subr.mxu0 %v21833_v50  ;;  %v2351_v43 = vadd.f32 %v21847_v2, %v2016_v26  ;;  %v21848_v40 = vld [vmem:[#allocation32_spill] sm:$0xff]  ;;  %v21856_v29 = vld [vmem:[#allocation45_spill] sm:$0xff] }
 0x21a   :  { %v18112_v24 = vpop.f32.mrf.mxu0  ;;  %13446 = vmatmul.mubr.f32.gmra.mxu1 %v3083_v22  ;;  %13736 = vmatpush3.msra.mxu0 %v3853_v37  ;;  %v2970_v55 = vadd.f32 %v18036_v23, %v2935_v6  ;;  %v691_v8 = vadd.f32 %v21849_v4, %v21848_v40  ;;  %v1023_v17 = vadd.f32 %v21850_v63, %v651_v3  ;;  %v21851_v37 = vld [vmem:[#allocation56_spill] sm:$0xff]  ;;  %v21854_v3 = vld [vmem:[#allocation38_spill] sm:$0xff] }
 0x21b   :  { %13556 = vmatmul.mubr.f32.gmra.mxu0 %v18077_v32  ;;  %13448 = vmatprep.mubr.msk.f32.mxu1 %vm16288_vm7, %v21833_v50  ;;  %v1684_v36 = vadd.f32 %v21851_v37, %v1350_v31  ;;  %v21852_v6 = vld [vmem:[#allocation76_spill] sm:$0xff]  ;;  %v2971_v56 = vadd.f32 %v18036_v23, %v2936_v14  ;;  %v3085_v45 = vsel %vm205_vm0, %v3082_v42, %v3084_v41  ;;  %v3086_v26 = vrot.slane %v18104_v25, 1  ;;  %v21857_v14 = vld [vmem:[#allocation42_spill] sm:$0xff] }
 0x21c   :  { %v2831_v35 = vpop.f32.mrf.mxu0  ;;  %13558 = vmatprep.mubr.msk.f32.mxu0 %vm16288_vm7, %v21833_v50  ;;  %13627 = vmatpush3.msra.mxu1 %v3548_v59  ;;  %v2687_v58 = vadd.f32 %v21853_v16, %v21852_v6  ;;  %v3547_v22 = vld [vmem:[#allocation2 + $0x168] sm:$0xff]  ;;  %v1352_v52 = vadd.f32 %v21854_v3, %v1017_v33  ;;  %v1025_v59 = vadd.f32 %v21856_v29, %v661_v44  ;;  %v18141_v40 = vmax.f32 %v2970_v55, 0.0  ;;  %v3851_v33 = vld [vmem:[#allocation2 + $0x1d8] sm:$0xff] }
 0x21d   :  { %13628 = vmatprep.subr.mxu1 %v21833_v50  ;;  %13737 = vmatprep.subr.mxu0 %v21833_v50  ;;  %v21855_v31 = vld [vmem:[#allocation40_spill] sm:$0xff]  ;;  %v1356_v2 = vadd.f32 %v21857_v14, %v1021_v11  ;;  %v2688_v42 = vadd.f32 %v17927_v34, %v2351_v43  ;;  %v21859_v44 = vld [vmem:[#allocation47_spill] sm:$0xff]  ;;  %v21860_v6 = vld [vmem:[#allocation49_spill] sm:$0xff]  ;;  %v3087_v55 = vsel %vm205_vm0, %v3084_v41, %v3086_v26 }
 0x21e   :  { %v1354_v12 = vadd.f32 %v21855_v31, %v1019_v18  ;;  %v18137_v15 = vpop.f32.mrf.mxu0  ;;  %13449 = vmatmul.mubr.f32.gmra.mxu1 %v3085_v45  ;;  %13738 = vmatpush3.msra.mxu0 %v3852_v13  ;;  %v2937_v4 = vadd.f32 %v13379_v30, %v2687_v58  ;;  %v21858_v18 = vld [vmem:[#allocation44_spill] sm:$0xff]  ;;  %v1027_v37 = vadd.f32 %v21859_v44, %v671_v0  ;;  %v21861_v34 = vld [vmem:[#allocation57_spill] sm:$0xff]  ;;  %v18152_v30 = vmax.f32 %v2971_v56, 0.0  ;;  %v21862_v0 = vld [vmem:[#allocation46_spill] sm:$0xff] }
 0x21f   :  { %13559 = vmatmul.mubr.f32.gmra.mxu0 %v18088_v20  ;;  %13451 = vmatprep.mubr.msk.f32.mxu1 %vm16288_vm7, %v21833_v50  ;;  %v1358_v63 = vadd.f32 %v21858_v18, %v1023_v17  ;;  %v1029_v16 = vadd.f32 %v21860_v6, %v681_v1  ;;  %v2018_v11 = vadd.f32 %v21861_v34, %v1684_v36  ;;  %v3546_v58 = vld [vmem:[#allocation2 + $0x160] sm:$0xff]  ;;  %v21864_v3 = vld [vmem:[#allocation58_spill] sm:$0xff] }
 0x220   :  { %v2841_v13 = vpop.f32.mrf.mxu0  ;;  %13561 = vmatprep.mubr.msk.f32.mxu0 %vm16288_vm7, %v21833_v50  ;;  %13629 = vmatpush3.msra.mxu1 %v3547_v22  ;;  %v2938_v43 = vadd.f32 %v2831_v35, %v2688_v42  ;;  %v1360_v17 = vadd.f32 %v21862_v0, %v1025_v59  ;;  %v21863_v1 = vld [vmem:[#allocation51_spill] sm:$0xff]  ;;  %v1686_v31 = vadd.f32 %v21864_v3, %v1352_v52  ;;  %v21865_v36 = vld [vmem:[#allocation60_spill] sm:$0xff]  ;;  %v3088_v59 = vrot.slane %v18141_v40, 1 }
 0x221   :  { %13630 = vmatprep.subr.mxu1 %v21833_v50  ;;  %13739 = vmatprep.subr.mxu0 %v21833_v50  ;;  %v1031_v45 = vadd.f32 %v21863_v1, %v691_v8  ;;  %v1688_v56 = vadd.f32 %v21865_v36, %v1354_v12  ;;  %v21866_v35 = vld [vmem:[#allocation83_spill] sm:$0xff]  ;;  %v2972_v41 = vadd.f32 %v18036_v23, %v2937_v4  ;;  %v3850_v8 = vld [vmem:[#allocation2 + $0x1d0] sm:$0xff]  ;;  %v21867_v14 = vld [vmem:[#allocation48_spill] sm:$0xff]  ;;  %v3090_v0 = vrot.slane %v18152_v30, 1 }
 0x222   :  { %v18160_v29 = vpop.f32.mrf.mxu0  ;;  %13452 = vmatmul.mubr.f32.gmra.mxu1 %v3087_v55  ;;  %13740 = vmatpush3.msra.mxu0 %v3851_v33  ;;  %v2353_v22 = vadd.f32 %v21866_v35, %v2018_v11  ;;  %v1362_v52 = vadd.f32 %v21867_v14, %v1027_v37  ;;  %v21868_v42 = vld [vmem:[#allocation64_spill] sm:$0xff]  ;;  %v21869_v44 = vld [vmem:[#allocation79_spill] sm:$0xff]  ;;  %v21870_v33 = vld [vmem:[#allocation81_spill] sm:$0xff]  ;;  %v2973_v11 = vadd.f32 %v18036_v23, %v2938_v43 }
 0x223   :  { %13562 = vmatmul.mubr.f32.gmra.mxu0 %v18104_v25  ;;  %13454 = vmatprep.mubr.msk.f32.mxu1 %vm16288_vm7, %v21833_v50  ;;  %v1692_v18 = vadd.f32 %v21868_v42, %v1358_v63  ;;  %v2689_v6 = vadd.f32 %v21870_v33, %v21869_v44  ;;  %v21871_v4 = vld [vmem:[#allocation50_spill] sm:$0xff]  ;;  %v3089_v55 = vsel %vm205_vm0, %v3086_v26, %v3088_v59  ;;  %v21872_v37 = vld [vmem:[#allocation52_spill] sm:$0xff]  ;;  %v21873_v3 = vld [vmem:[#allocation59_spill] sm:$0xff]  ;;  %v18195_v44 = vmax.f32 %v2972_v41, 0.0 }
 0x224   :  { %v18173_v12 = vpop.f32.mrf.mxu0  ;;  %13564 = vmatprep.mubr.msk.f32.mxu0 %vm16288_vm7, %v21833_v50  ;;  %13631 = vmatpush3.msra.mxu1 %v3546_v58  ;;  %v1364_v34 = vadd.f32 %v21871_v4, %v1029_v16  ;;  %v3545_v63 = vld [vmem:[#allocation2 + $0x158] sm:$0xff]  ;;  %v18184_v1 = vadd.f32 %v21872_v37, %v1031_v45  ;;  %v2020_v36 = vadd.f32 %v21873_v3, %v1686_v31  ;;  %v21874_v16 = vld [vmem:[#allocation61_spill] sm:$0xff] }
 0x225   :  { %13632 = vmatprep.subr.mxu1 %v21833_v50  ;;  %13741 = vmatprep.subr.mxu0 %v21833_v50  ;;  %v2939_v58 = vadd.f32 %v18112_v24, %v2689_v6  ;;  %v18191_v26 = vadd.f32 %v21874_v16, %v1688_v56  ;;  %v21875_v43 = vld [vmem:[#allocation66_spill] sm:$0xff]  ;;  %v2690_v42 = vadd.f32 %v17936_v47, %v2353_v22  ;;  %v3849_v45 = vld [vmem:[#allocation2 + $0x1c8] sm:$0xff] }
 0x226   :  { %v18188_v35 = vpop.f32.mrf.mxu0  ;;  %13455 = vmatmul.mubr.f32.gmra.mxu1 %v3089_v55  ;;  %13742 = vmatpush3.msra.mxu0 %v3850_v8  ;;  %v1694_v14 = vadd.f32 %v21875_v43, %v1360_v17  ;;  %v21876_v24 = vld [vmem:[#allocation62_spill] sm:$0xff]  ;;  %v21877_v33 = vld [vmem:[#allocation65_spill] sm:$0xff]  ;;  %v21878_v6 = vld [vmem:[#allocation68_spill] sm:$0xff]  ;;  %v2697_v47 = vadd.f32 %v17961_v53, %v17957_v27  ;;  %v18211_v17 = vmax.f32 %v2973_v11, 0.0  ;;  %v3091_v41 = vsel %vm205_vm0, %v3088_v59, %v3090_v0 }
 0x227   :  { %13565 = vmatmul.mubr.f32.gmra.mxu0 %v18141_v40  ;;  %13457 = vmatprep.mubr.msk.f32.mxu1 %vm16288_vm7, %v21833_v50  ;;  %v18201_v31 = vadd.f32 %v21876_v24, %v1356_v2  ;;  %v2026_v8 = vadd.f32 %v21877_v33, %v1692_v18  ;;  %v1696_v56 = vadd.f32 %v21878_v6, %v1362_v52  ;;  %v3544_v2 = vld [vmem:[#allocation2 + $0x150] sm:$0xff]  ;;  %v21881_v53 = vld [vmem:[#allocation67_spill] sm:$0xff]  ;;  %v3092_v59 = vrot.slane %v18195_v44, 1  ;;  %v3543_v6 = vld [vmem:[#allocation2 + $0x148] sm:$0xff] }
 0x228   :  { %v18205_v4 = vpop.f32.mrf.mxu0  ;;  %13567 = vmatprep.mubr.msk.f32.mxu0 %vm16288_vm7, %v21833_v50  ;;  %13633 = vmatpush3.msra.mxu1 %v3545_v63  ;;  %v2940_v22 = vadd.f32 %v2841_v13, %v2690_v42  ;;  %v21879_v52 = vld [vmem:[#allocation70_spill] sm:$0xff]  ;;  %v2974_v3 = vadd.f32 %v18036_v23, %v2939_v58  ;;  %v2028_v27 = vadd.f32 %v21881_v53, %v1694_v14  ;;  %v21882_v16 = vld [vmem:[#allocation69_spill] sm:$0xff]  ;;  %v21884_v58 = vld [vmem:[#allocation84_spill] sm:$0xff] }
 0x229   :  { %13634 = vmatprep.subr.mxu1 %v21833_v50  ;;  %13743 = vmatprep.subr.mxu0 %v21833_v50  ;;  %v1698_v18 = vadd.f32 %v21879_v52, %v1364_v34  ;;  %v21880_v55 = vld [vmem:[#allocation86_spill] sm:$0xff]  ;;  %v2361_v13 = vadd.f32 %v17968_v51, %v2026_v8  ;;  %v3848_v34 = vld [vmem:[#allocation2 + $0x1c0] sm:$0xff]  ;;  %v3093_v33 = vsel %vm205_vm0, %v3090_v0, %v3092_v59  ;;  %v3094_v8 = vrot.slane %v18211_v17, 1 }
 0x22a   :  { %v2355_v37 = vadd.f32 %v21880_v55, %v2020_v36  ;;  %v13394_v63 = vpop.f32.mrf.mxu0  ;;  %13458 = vmatmul.mubr.f32.gmra.mxu1 %v3091_v41  ;;  %13744 = vmatpush3.msra.mxu0 %v3849_v45  ;;  %v2030_v36 = vadd.f32 %v21882_v16, %v1696_v56  ;;  %v21883_v43 = vld [vmem:[#allocation82_spill] sm:$0xff]  ;;  %v2699_v45 = vadd.f32 %v17970_v5, %v17966_v49  ;;  %v21885_v5 = vld [vmem:[#allocation71_spill] sm:$0xff]  ;;  %v21886_v56 = vld [vmem:[#allocation88_spill] sm:$0xff]  ;;  %v18244_v41 = vmax.f32 %v2974_v3, 0.0 }
 0x22b   :  { %v2947_v11 = vadd.f32 %v13394_v63, %v2697_v47  ;;  %13568 = vmatmul.mubr.f32.gmra.mxu0 %v18152_v30  ;;  %13460 = vmatprep.mubr.msk.f32.mxu1 %vm16288_vm7, %v21833_v50  ;;  %v2691_v42 = vadd.f32 %v21884_v58, %v21883_v43  ;;  %v2975_v51 = vadd.f32 %v18036_v23, %v2940_v22  ;;  %v21887_v52 = vld [vmem:[#allocation95_spill] sm:$0xff] }
 0x22c   :  { %v18230_v14 = vpop.f32.mrf.mxu0  ;;  %13570 = vmatprep.mubr.msk.f32.mxu0 %vm16288_vm7, %v21833_v50  ;;  %13635 = vmatpush3.msra.mxu1 %v3544_v2  ;;  %v2032_v49 = vadd.f32 %v21885_v5, %v1698_v18  ;;  %v2692_v47 = vadd.f32 %v21886_v56, %v2355_v37  ;;  %v2698_v0 = vadd.f32 %v21887_v52, %v2361_v13  ;;  %v3847_v18 = vld [vmem:[#allocation2 + $0x1b8] sm:$0xff]  ;;  %v21888_v37 = vld [vmem:[#allocation72_spill] sm:$0xff]  ;;  %v3096_v58 = vrot.slane %v18244_v41, 1 }
 0x22d   :  { %v18236_v24 = vadd.f32 %v18036_v23, %v2947_v11  ;;  %13636 = vmatprep.subr.mxu1 %v21833_v50  ;;  %13745 = vmatprep.subr.mxu0 %v21833_v50  ;;  %v2941_v22 = vadd.f32 %v18137_v15, %v2691_v42  ;;  %v2363_v55 = vadd.f32 %v17980_v19, %v2028_v27  ;;  %v18259_v19 = vmax.f32 %v2975_v51, 0.0  ;;  %v21890_v42 = vld [vmem:[#allocation96_spill] sm:$0xff] }
 0x22e   :  { %v13397_v2 = vpop.f32.mrf.mxu0  ;;  %13461 = vmatmul.mubr.f32.gmra.mxu1 %v3093_v33  ;;  %13746 = vmatpush3.msra.mxu0 %v3848_v34  ;;  %v1700_v3 = vadd.f32 %v21888_v37, %v18184_v1  ;;  %v2701_v15 = vadd.f32 %v17982_v57, %v17978_v61  ;;  %v2942_v53 = vadd.f32 %v18173_v12, %v2692_v47  ;;  %v3542_v1 = vld [vmem:[#allocation2 + $0x140] sm:$0xff]  ;;  %v21889_v57 = vld [vmem:[#allocation90_spill] sm:$0xff] }
 0x22f   :  { %v2949_v63 = vadd.f32 %v13397_v2, %v2699_v45  ;;  %13571 = vmatmul.mubr.f32.gmra.mxu0 %v18195_v44  ;;  %13463 = vmatprep.mubr.msk.f32.mxu1 %vm16288_vm7, %v21833_v50  ;;  %v3095_v34 = vsel %vm205_vm0, %v3092_v59, %v3094_v8  ;;  %v2357_v61 = vadd.f32 %v21889_v57, %v18191_v26  ;;  %v3846_v26 = vld [vmem:[#allocation2 + $0x1b0] sm:$0xff]  ;;  %v3098_v52 = vrot.slane %v18259_v19, 1 }
 0x230   :  { %v2881_v11 = vpop.f32.mrf.mxu0  ;;  %13573 = vmatprep.mubr.msk.f32.mxu0 %vm16288_vm7, %v21833_v50  ;;  %13637 = vmatpush3.msra.mxu1 %v3543_v6  ;;  %v2365_v12 = vadd.f32 %v17995_v28, %v2030_v36  ;;  %v2976_v16 = vadd.f32 %v18036_v23, %v2941_v22  ;;  %v2700_v45 = vadd.f32 %v21890_v42, %v2363_v55  ;;  %v21891_v28 = vld [vmem:[#allocation85_spill] sm:$0xff]  ;;  %v21892_v36 = vld [vmem:[#allocation87_spill] sm:$0xff] }
 0x231   :  { %v18262_v27 = vadd.f32 %v18036_v23, %v2949_v63  ;;  %v2948_v13 = vadd.f32 %v2881_v11, %v2698_v0  ;;  %13638 = vmatprep.subr.mxu1 %v21833_v50  ;;  %13747 = vmatprep.subr.mxu0 %v21833_v50  ;;  %v2693_v33 = vadd.f32 %v21892_v36, %v21891_v28  ;;  %v3541_v0 = vld [vmem:[#allocation2 + $0x138] sm:$0xff]  ;;  %v3845_v11 = vld [vmem:[#allocation2 + $0x1a8] sm:$0xff] }
 0x232   :  { %v13400_v43 = vpop.f32.mrf.mxu0  ;;  %13464 = vmatmul.mubr.f32.gmra.mxu1 %v3095_v34  ;;  %13748 = vmatpush3.msra.mxu0 %v3847_v18  ;;  %v2703_v6 = vadd.f32 %v17997_v60, %v17991_v62  ;;  %v3097_v56 = vsel %vm205_vm0, %v3094_v8, %v3096_v58  ;;  %v2977_v47 = vadd.f32 %v18036_v23, %v2942_v53  ;;  %v21893_v62 = vld [vmem:[#allocation92_spill] sm:$0xff]  ;;  %v18296_v63 = vmax.f32 %v2976_v16, 0.0  ;;  %v21898_v36 = vld [vmem:[#allocation91_spill] sm:$0xff] }
 0x233   :  { %v18274_v59 = vadd.f32 %v18036_v23, %v2948_v13  ;;  %v2951_v51 = vadd.f32 %v13400_v43, %v2701_v15  ;;  %13574 = vmatmul.mubr.f32.gmra.mxu0 %v18211_v17  ;;  %13466 = vmatprep.mubr.msk.f32.mxu1 %vm16288_vm7, %v21833_v50  ;;  %v2694_v60 = vadd.f32 %v21893_v62, %v2357_v61  ;;  %v21899_v62 = vld [vmem:[#allocation94_spill] sm:$0xff] }
 0x234   :  { %v2891_v5 = vpop.f32.mrf.mxu0  ;;  %13576 = vmatprep.mubr.msk.f32.mxu0 %vm16288_vm7, %v21833_v50  ;;  %13639 = vmatpush3.msra.mxu1 %v3542_v1  ;;  %v2702_v8 = vadd.f32 %v18001_v54, %v2365_v12  ;;  %v2367_v55 = vadd.f32 %v18009_v9, %v2032_v49  ;;  %v2943_v37 = vadd.f32 %v18160_v29, %v2693_v33  ;;  %v21894_v54 = vld [vmem:[#allocation63_spill] sm:$0xff]  ;;  %v21895_v49 = vld [vmem:[#allocation73_spill] sm:$0xff]  ;;  %v18311_v29 = vmax.f32 %v2977_v47, 0.0 }
 0x235   :  { %v18288_v22 = vadd.f32 %v18036_v23, %v2951_v51  ;;  %v2950_v2 = vadd.f32 %v2891_v5, %v2700_v45  ;;  %13640 = vmatprep.subr.mxu1 %v21833_v50  ;;  %13749 = vmatprep.subr.mxu0 %v21833_v50  ;;  %v2024_v9 = vadd.f32 %v21894_v54, %v18201_v31  ;;  %v3540_v31 = vld [vmem:[#allocation2 + $0x130] sm:$0xff]  ;;  %v3100_v45 = vrot.slane %v18296_v63, 1  ;;  %v2671_v51 = vpop.f32.mrf.mxu1 }
 0x236   :  { %v13403_v18 = vpop.f32.mrf.mxu0  ;;  %13467 = vmatmul.mubr.f32.gmra.mxu1 %v3097_v56  ;;  %13750 = vmatpush3.msra.mxu0 %v3846_v26  ;;  %v2034_v13 = vadd.f32 %v21895_v49, %v1700_v3  ;;  %v2944_v34 = vadd.f32 %v18205_v4, %v2694_v60  ;;  %v3099_v12 = vsel %vm205_vm0, %v3096_v58, %v3098_v52  ;;  %v21896_v3 = vld [vmem:[#allocation93_spill] sm:$0xff] }
 0x237   :  { %v18300_v15 = vadd.f32 %v18036_v23, %v2950_v2  ;;  %v2953_v53 = vadd.f32 %v13403_v18, %v2703_v6  ;;  %13577 = vmatmul.mubr.f32.gmra.mxu0 %v18244_v41  ;;  %13469 = vmatprep.mubr.msk.f32.mxu1 %vm16288_vm7, %v21833_v50  ;;  %v2359_v4 = vadd.f32 %v21896_v3, %v2024_v9  ;;  %v3102_v2 = vrot.slane %v18311_v29, 1 }
 0x238   :  { %v2901_v1 = vpop.f32.mrf.mxu0  ;;  %13579 = vmatprep.mubr.msk.f32.mxu0 %vm16288_vm7, %v21833_v50  ;;  %13641 = vmatpush3.msra.mxu1 %v3541_v0  ;;  %v2704_v16 = vadd.f32 %v18018_v38, %v2367_v55  ;;  %v2369_v43 = vadd.f32 %v18025_v21, %v2034_v13  ;;  %v2978_v26 = vadd.f32 %v18036_v23, %v2943_v37  ;;  %v3844_v38 = vld [vmem:[#allocation2 + $0x1a0] sm:$0xff]  ;;  %v21897_v21 = vld [vmem:[#allocation89_spill] sm:$0xff] }
 0x239   :  { %v18314_v57 = vadd.f32 %v18036_v23, %v2953_v53  ;;  %v2952_v61 = vadd.f32 %v2901_v1, %v2702_v8  ;;  %13642 = vmatprep.subr.mxu1 %v21833_v50  ;;  %13751 = vmatprep.subr.mxu0 %v21833_v50  ;;  %v2695_v33 = vadd.f32 %v21898_v36, %v21897_v21  ;;  %v3539_v0 = vld [vmem:[#allocation2 + $0x128] sm:$0xff] }
 0x23a   :  { %v13406_v42 = vpop.f32.mrf.mxu0  ;;  %13470 = vmatmul.mubr.f32.gmra.mxu1 %v3099_v12  ;;  %13752 = vmatpush3.msra.mxu0 %v3845_v11  ;;  %v3101_v5 = vsel %vm205_vm0, %v3098_v52, %v3100_v45  ;;  %v2979_v56 = vadd.f32 %v18036_v23, %v2944_v34  ;;  %v2696_v60 = vadd.f32 %v21899_v62, %v2359_v4  ;;  %v18344_v55 = vmax.f32 %v2978_v26, 0.0  ;;  %v3843_v11 = vld [vmem:[#allocation2 + $0x198] sm:$0xff]  ;;  %v3538_v34 = vld [vmem:[#allocation2 + $0x120] sm:$0xff]  ;;  %v3842_v12 = vld [vmem:[#allocation2 + $0x190] sm:$0xff] }
 0x23b   :  { %v18325_v58 = vadd.f32 %v18036_v23, %v2952_v61  ;;  %v2955_v28 = vadd.f32 %v13406_v42, %v18014_v7  ;;  %13580 = vmatmul.mubr.f32.gmra.mxu0 %v18259_v19  ;;  %13472 = vmatprep.mubr.msk.f32.mxu1 %vm16288_vm7, %v21833_v50  ;;  %v2706_v52 = vadd.f32 %v2671_v51, %v2369_v43  ;;  %v3841_v42 = vld [vmem:[#allocation2 + $0x188] sm:$0xff]  ;;  %v3536_v51 = vld [vmem:[#allocation2 + $0x110] sm:$0xff] }
 0x23c   :  { %v2911_v6 = vpop.f32.mrf.mxu0  ;;  %13582 = vmatprep.mubr.msk.f32.mxu0 %vm16288_vm7, %v21833_v50  ;;  %13643 = vmatpush3.msra.mxu1 %v3540_v31  ;;  %v2945_v18 = vadd.f32 %v18188_v35, %v2695_v33  ;;  %v2946_v54 = vadd.f32 %v18230_v14, %v2696_v60  ;;  %v18357_v49 = vmax.f32 %v2979_v56, 0.0  ;;  %v3104_v61 = vrot.slane %v18344_v55, 1  ;;  %v3535_v36 = vld [vmem:[#allocation2 + $0x108] sm:$0xff]  ;;  %v3534_v56 = vld [vmem:[#allocation2 + $0x100] sm:$0xff] }
 0x23d   :  { %v18338_v7 = vadd.f32 %v18036_v23, %v2955_v28  ;;  %v2954_v47 = vadd.f32 %v2911_v6, %v2704_v16  ;;  %13644 = vmatprep.subr.mxu1 %v21833_v50  ;;  %13753 = vmatprep.subr.mxu0 %v21833_v50  ;;  %v3537_v16 = vld [vmem:[#allocation2 + $0x118] sm:$0xff]  ;;  %v3840_v28 = vld [vmem:[#allocation2 + $0x180] sm:$0xff]  ;;  %v18403_v33 = vmax.f32 %v18236_v24, 0.0  ;;  %v18411_v6 = vmax.f32 %v18274_v59, 0.0 }
 0x23e   :  { %v13409_v8 = vpop.f32.mrf.mxu0  ;;  %13473 = vmatmul.mubr.f32.gmra.mxu1 %v3101_v5  ;;  %13754 = vmatpush3.msra.mxu0 %v3844_v38  ;;  %v2980_v14 = vadd.f32 %v18036_v23, %v2945_v18  ;;  %v2981_v31 = vadd.f32 %v18036_v23, %v2946_v54  ;;  %v3105_v3 = vsel %vm205_vm0, %v3102_v2, %v3104_v61  ;;  %v3106_v4 = vrot.slane %v18357_v49, 1 }
 0x23f   :  { %v18348_v37 = vadd.f32 %v18036_v23, %v2954_v47  ;;  %v2957_v53 = vadd.f32 %v13409_v8, %v18030_v46  ;;  %13583 = vmatmul.mubr.f32.gmra.mxu0 %v18296_v63  ;;  %13475 = vmatprep.mubr.msk.f32.mxu1 %vm16288_vm7, %v21833_v50  ;;  %v3103_v46 = vsel %vm205_vm0, %v3100_v45, %v3102_v2  ;;  %v3112_v24 = vrot.slane %v18403_v33, 1 }
 0x240   :  { %v2921_v9 = vpop.f32.mrf.mxu0  ;;  %13585 = vmatprep.mubr.msk.f32.mxu0 %vm16288_vm7, %v21833_v50  ;;  %13645 = vmatpush3.msra.mxu1 %v3539_v0  ;;  %v18380_v43 = vmax.f32 %v2980_v14, 0.0  ;;  %v3107_v45 = vsel %vm205_vm0, %v3104_v61, %v3106_v4  ;;  %v3114_v47 = vrot.slane %v18411_v6, 1  ;;  %v18426_v2 = vmax.f32 %v18262_v27, 0.0  ;;  %v4468_v61 = vld [vmem:[#allocation2 + $0x2f8] sm:$0xff] }
 0x241   :  { %v18360_v35 = vadd.f32 %v18036_v23, %v2957_v53  ;;  %v2956_v13 = vadd.f32 %v2921_v9, %v2706_v52  ;;  %13646 = vmatprep.subr.mxu1 %v21833_v50  ;;  %13755 = vmatprep.subr.mxu0 %v21833_v50  ;;  %v18434_v0 = vmax.f32 %v18300_v15, 0.0  ;;  %v18446_v15 = vmax.f32 %v18288_v22, 0.0 }
 0x242   :  { %13476 = vmatmul.mubr.f32.gmra.mxu1 %v3103_v46  ;;  %13756 = vmatpush3.msra.mxu0 %v3843_v11  ;;  %v3108_v26 = vrot.slane %v18380_v43, 1  ;;  %v3115_v62 = vsel %vm205_vm0, %v3112_v24, %v3114_v47  ;;  %v3116_v27 = vrot.slane %v18426_v2, 1  ;;  %v18454_v8 = vmax.f32 %v18325_v58, 0.0 }
 0x243   :  { %21900 = vst [vmem:[#allocation16_spill] sm:$0xff] %v18360_v35  ;;  %v18367_v1 = vadd.f32 %v18036_v23, %v2956_v13  ;;  %13586 = vmatmul.mubr.f32.gmra.mxu0 %v18311_v29  ;;  %13478 = vmatprep.mubr.msk.f32.mxu1 %vm16288_vm7, %v21833_v50  ;;  %v18387_v23 = vmax.f32 %v2981_v31, 0.0  ;;  %v3118_v52 = vrot.slane %v18434_v0, 1  ;;  %v3120_v22 = vrot.slane %v18446_v15, 1  ;;  %v4467_v31 = vld [vmem:[#allocation2 + $0x2f0] sm:$0xff] }
 0x244   :  { %13588 = vmatprep.mubr.msk.f32.mxu0 %vm16288_vm7, %v21833_v50  ;;  %13647 = vmatpush3.msra.mxu1 %v3538_v34  ;;  %v3109_v38 = vsel %vm205_vm0, %v3106_v4, %v3108_v26  ;;  %v3117_v60 = vsel %vm205_vm0, %v3114_v47, %v3116_v27  ;;  %v3122_v11 = vrot.slane %v18454_v8, 1  ;;  %v18466_v58 = vmax.f32 %v18314_v57, 0.0  ;;  %v4162_v4 = vld [vmem:[#allocation2 + $0x278] sm:$0xff] }
 0x245   :  { %13648 = vmatprep.subr.mxu1 %v21833_v50  ;;  %13757 = vmatprep.subr.mxu0 %v21833_v50  ;;  %v3110_v21 = vrot.slane %v18387_v23, 1  ;;  %v3119_v18 = vsel %vm205_vm0, %v3116_v27, %v3118_v52  ;;  %v3121_v53 = vsel %vm205_vm0, %v3118_v52, %v3120_v22  ;;  %v18474_v54 = vmax.f32 %v18348_v37, 0.0  ;;  %v4464_v47 = vld [vmem:[#allocation2 + $0x2d8] sm:$0xff]  ;;  %v4159_v27 = vld [vmem:[#allocation2 + $0x260] sm:$0xff] }
 0x246   :  { %13479 = vmatmul.mubr.f32.gmra.mxu1 %v3105_v3  ;;  %13758 = vmatpush3.msra.mxu0 %v3842_v12  ;;  %v3123_v9 = vsel %vm205_vm0, %v3120_v22, %v3122_v11  ;;  %v3124_v57 = vrot.slane %v18466_v58, 1  ;;  %v3858_v34 = vrot.slane %v18077_v32, 3  ;;  %v3857_v14 = vrot.slane %v18051_v10, 3 }
 0x247   :  { %13589 = vmatmul.mubr.f32.gmra.mxu0 %v18344_v55  ;;  %13481 = vmatprep.mubr.msk.f32.mxu1 %vm16288_vm7, %v21833_v50  ;;  %v3111_v5 = vsel %vm205_vm0, %v3108_v26, %v3110_v21  ;;  %v3113_v59 = vsel %vm205_vm0, %v3110_v21, %v3112_v24  ;;  %21901 = vst [vmem:[#allocation17_spill] sm:$0xff] %v18474_v54  ;;  %v3126_v46 = vrot.slane %v18474_v54, 1  ;;  %v3860_v3 = vrot.slane %v18088_v20, 3  ;;  %v4465_v21 = vld [vmem:[#allocation2 + $0x2e0] sm:$0xff] }
 0x248   :  { %13591 = vmatprep.mubr.msk.f32.mxu0 %vm16288_vm7, %v21833_v50  ;;  %13649 = vmatpush3.msra.mxu1 %v3537_v16  ;;  %v3125_v13 = vsel %vm205_vm0, %v3122_v11, %v3124_v57  ;;  %v3859_v12 = vsel %vm1051_vm2, %v3857_v14, %v3858_v34  ;;  %v3553_v16 = vrot.slane %v18077_v32, 2  ;;  %v3559_v52 = vrot.slane %v18141_v40, 2 }
 0x249   :  { %13650 = vmatprep.subr.mxu1 %v21833_v50  ;;  %13759 = vmatprep.subr.mxu0 %v21833_v50  ;;  %v3127_v37 = vsel %vm205_vm0, %v3124_v57, %v3126_v46  ;;  %v3868_v22 = vrot.slane %v18195_v44, 3  ;;  %v3561_v11 = vrot.slane %v18152_v30, 2 }
 0x24a   :  { %13482 = vmatmul.mubr.f32.gmra.mxu1 %v3107_v45  ;;  %13760 = vmatpush3.msra.mxu0 %v3841_v42  ;;  %v3861_v42 = vsel %vm1051_vm2, %v3858_v34, %v3860_v3  ;;  %v3862_v45 = vrot.slane %v18104_v25, 3  ;;  %v3554_v26 = vsel %vm716_vm1, %v3551_v39, %v3553_v16  ;;  %v3864_v39 = vrot.slane %v18141_v40, 3  ;;  %v4157_v34 = vld [vmem:[#allocation2 + $0x250] sm:$0xff] }
 0x24b   :  { %13592 = vmatmul.mubr.f32.gmra.mxu0 %v18357_v49  ;;  %13484 = vmatprep.mubr.msk.f32.mxu1 %vm16288_vm7, %v21833_v50 }
 0x24c   :  { %13594 = vmatprep.mubr.msk.f32.mxu0 %vm16288_vm7, %v21833_v50  ;;  %13651 = vmatpush3.msra.mxu1 %v3536_v51  ;;  %v4466_v51 = vld [vmem:[#allocation2 + $0x2e8] sm:$0xff]  ;;  %v3865_v24 = vsel %vm1051_vm2, %v3862_v45, %v3864_v39 }
 0x24d   :  { %13652 = vmatprep.subr.mxu1 %v21833_v50  ;;  %13761 = vmatprep.subr.mxu0 %v21833_v50 }
 0x24e   :  { %13485 = vmatmul.mubr.f32.gmra.mxu1 %v3109_v38  ;;  %13762 = vmatpush3.msra.mxu0 %v3840_v28  ;;  %v3863_v28 = vsel %vm1051_vm2, %v3860_v3, %v3862_v45  ;;  %v3555_v38 = vrot.slane %v18088_v20, 2  ;;  %v3874_v45 = vrot.slane %v18259_v19, 3 }
 0x24f   :  { %13595 = vmatmul.mubr.f32.gmra.mxu0 %v18380_v43  ;;  %13487 = vmatprep.mubr.msk.f32.mxu1 %vm16288_vm7, %v21833_v50 }
 0x250   :  { %13597 = vmatprep.mubr.msk.f32.mxu0 %vm16288_vm7, %v21833_v50  ;;  %13653 = vmatpush3.msra.mxu1 %v3535_v36  ;;  %v3556_v36 = vsel %vm716_vm1, %v3553_v16, %v3555_v38  ;;  %v4156_v16 = vld [vmem:[#allocation2 + $0x248] sm:$0xff] }
 0x251   :  { %13654 = vmatprep.subr.mxu1 %v21833_v50  ;;  %13945 = vmatprep.subr.mxu0 %v21833_v50 }
 0x252   :  { %13488 = vmatmul.mubr.f32.gmra.mxu1 %v3111_v5  ;;  %v3557_v5 = vrot.slane %v18104_v25, 2 }
 0x253   :  { %13598 = vmatmul.mubr.f32.gmra.mxu0 %v18387_v23  ;;  %13490 = vmatprep.mubr.msk.f32.mxu1 %vm16288_vm7, %v21833_v50 }
 0x254   :  { %13600 = vmatprep.mubr.msk.f32.mxu0 %vm16288_vm7, %v21833_v50  ;;  %13655 = vmatpush3.msra.mxu1 %v3534_v56  ;;  %v4160_v56 = vld [vmem:[#allocation2 + $0x268] sm:$0xff] }
 0x255   :  { %13838 = vmatprep.subr.mxu1 %v21833_v50 }
 0x256   :  { %13491 = vmatmul.mubr.f32.gmra.mxu1 %v3113_v59  ;;  %v3866_v59 = vrot.slane %v18152_v30, 3 }
 0x257   :  { %13601 = vmatmul.mubr.f32.gmra.mxu0 %v18403_v33  ;;  %13493 = vmatprep.mubr.msk.f32.mxu1 %vm16288_vm7, %v21833_v50 }
 0x258   :  { %13603 = vmatprep.mubr.msk.f32.mxu0 %vm16288_vm7, %v21833_v50  ;;  %v3869_v57 = vsel %vm1051_vm2, %v3866_v59, %v3868_v22 }
 0x25a   :  { %13494 = vmatmul.mubr.f32.gmra.mxu1 %v3115_v62  ;;  %v3558_v62 = vsel %vm716_vm1, %v3555_v38, %v3557_v5  ;;  %v3567_v38 = vrot.slane %v18244_v41, 2 }
 0x25b   :  { %13604 = vmatmul.mubr.f32.gmra.mxu0 %v18411_v6  ;;  %13496 = vmatprep.mubr.msk.f32.mxu1 %vm16288_vm7, %v21833_v50 }
 0x25c   :  { %13606 = vmatprep.mubr.msk.f32.mxu0 %vm16288_vm7, %v21833_v50 }
 0x25e   :  { %13497 = vmatmul.mubr.f32.gmra.mxu1 %v3117_v60  ;;  %v3867_v60 = vsel %vm1051_vm2, %v3864_v39, %v3866_v59  ;;  %v3876_v39 = vrot.slane %v18296_v63, 3  ;;  %v3878_v59 = vrot.slane %v18311_v29, 3 }
 0x25f   :  { %13607 = vmatmul.mubr.f32.gmra.mxu0 %v18426_v2  ;;  %13499 = vmatprep.mubr.msk.f32.mxu1 %vm16288_vm7, %v21833_v50 }
 0x260   :  { %13609 = vmatprep.mubr.msk.f32.mxu0 %vm16288_vm7, %v21833_v50 }
 0x262   :  { %13500 = vmatmul.mubr.f32.gmra.mxu1 %v3119_v18  ;;  %v4463_v18 = vld [vmem:[#allocation2 + $0x2d0] sm:$0xff] }
 0x263   :  { %13610 = vmatmul.mubr.f32.gmra.mxu0 %v18434_v0  ;;  %13502 = vmatprep.mubr.msk.f32.mxu1 %vm16288_vm7, %v21833_v50 }
 0x264   :  { %13612 = vmatprep.mubr.msk.f32.mxu0 %vm16288_vm7, %v21833_v50 }
 0x266   :  { %13503 = vmatmul.mubr.f32.gmra.mxu1 %v3121_v53  ;;  %v3560_v53 = vsel %vm716_vm1, %v3557_v5, %v3559_v52  ;;  %v3569_v5 = vrot.slane %v18259_v19, 2 }
 0x267   :  { %13613 = vmatmul.mubr.f32.gmra.mxu0 %v18446_v15  ;;  %13505 = vmatprep.mubr.msk.f32.mxu1 %vm16288_vm7, %v21833_v50 }
 0x268   :  { %13615 = vmatprep.mubr.msk.f32.mxu0 %vm16288_vm7, %v21833_v50 }
 0x26a   :  { %13506 = vmatmul.mubr.f32.gmra.mxu1 %v3123_v9  ;;  %v4158_v9 = vld [vmem:[#allocation2 + $0x258] sm:$0xff] }
 0x26b   :  { %13616 = vmatmul.mubr.f32.gmra.mxu0 %v18454_v8  ;;  %13508 = vmatprep.mubr.msk.f32.mxu1 %vm16288_vm7, %v21833_v50 }
 0x26c   :  { %13618 = vmatprep.mubr.msk.f32.mxu0 %vm16288_vm7, %v21833_v50 }
 0x26e   :  { %13509 = vmatmul.mubr.f32.gmra.mxu1 %v3125_v13  ;;  %v3870_v13 = vrot.slane %v18211_v17, 3 }
 0x26f   :  { %13619 = vmatmul.mubr.f32.gmra.mxu0 %v18466_v58  ;;  %13511 = vmatprep.mubr.msk.f32.mxu1 %vm16288_vm7, %v21833_v50 }
 0x270   :  { %13621 = vmatprep.mubr.msk.f32.mxu0 %vm16288_vm7, %v21833_v50  ;;  %v3871_v14 = vsel %vm1051_vm2, %v3868_v22, %v3870_v13  ;;  %v3880_v22 = vrot.slane %v18344_v55, 3 }
 0x272   :  { %13512 = vmatmul.mubr.f32.gmra.mxu1 %v3127_v37  ;;  %v3562_v37 = vsel %vm716_vm1, %v3559_v52, %v3561_v11  ;;  %v3571_v52 = vrot.slane %v18296_v63, 2 }
 0x273   :  { %13622 = vmatmul.mubr.f32.gmra.mxu0 %v18474_v54  ;;  %13514 = vmatprep.mubr.msk.f32.mxu1 %vm16288_vm7, %v21833_v50 }
 0x274   :  { %13763 = vmatprep.mubr.msk.f32.mxu0 %vm16288_vm7, %v21833_v50 }
 0x276   :  { %13515 = vmatmul.mubr.f32.gmra.mxu1 %v3126_v46  ;;  %v4462_v46 = vld [vmem:[#allocation2 + $0x2c8] sm:$0xff] }
 0x277   :  { %13764 = vmatmul.mubr.f32.vlgmr.msra.gmra.mxu0 %v3859_v12  ;;  %13656 = vmatprep.mubr.msk.f32.mxu1 %vm16288_vm7, %v21833_v50  ;;  %v4461_v12 = vld [vmem:[#allocation2 + $0x2c0] sm:$0xff] }
 0x278   :  { %13766 = vmatprep.mubr.msk.f32.mxu0 %vm16288_vm7, %v21833_v50  ;;  %13946 = vmatpush3.msra.mxu0 %v4468_v61  ;;  %v3563_v61 = vrot.slane %v18195_v44, 2 }
 0x279   :  { %13947 = vmatprep.subr.mxu0 %v21833_v50 }
 0x27a   :  { %13657 = vmatmul.mubr.f32.vlgmr.msra.gmra.mxu1 %v18086_v48  ;;  %13948 = vmatpush3.msra.mxu0 %v4467_v31  ;;  %v4161_v48 = vld [vmem:[#allocation2 + $0x270] sm:$0xff]  ;;  %v3872_v31 = vrot.slane %v18244_v41, 3  ;;  %v3564_v3 = vsel %vm716_vm1, %v3561_v11, %v3563_v61  ;;  %v3573_v11 = vrot.slane %v18311_v29, 2 }
 0x27b   :  { %13767 = vmatmul.mubr.f32.gmra.mxu0 %v3861_v42  ;;  %13839 = vmatpush3.msra.mxu1 %v4162_v4  ;;  %v3565_v4 = vrot.slane %v18211_v17, 2 }
 0x27c   :  { %13659 = vmatprep.mubr.msk.f32.mxu1 %vm16288_vm7, %v21833_v50  ;;  %13769 = vmatprep.mubr.msk.f32.mxu0 %vm16288_vm7, %v21833_v50  ;;  %v3873_v42 = vsel %vm1051_vm2, %v3870_v13, %v3872_v31  ;;  %v3882_v13 = vrot.slane %v18357_v49, 3 }
 0x27d   :  { %13840 = vmatprep.subr.mxu1 %v21833_v50  ;;  %13949 = vmatprep.subr.mxu0 %v21833_v50 }
 0x27e   :  { %13660 = vmatmul.mubr.f32.gmra.mxu1 %v3554_v26  ;;  %13950 = vmatpush3.msra.mxu0 %v4466_v51  ;;  %v4460_v51 = vld [vmem:[#allocation2 + $0x2b8] sm:$0xff]  ;;  %v3566_v26 = vsel %vm716_vm1, %v3563_v61, %v3565_v4  ;;  %v3575_v61 = vrot.slane %v18344_v55, 2 }
 0x27f   :  { %13770 = vmatmul.mubr.f32.gmra.mxu0 %v3863_v28  ;;  %13662 = vmatprep.mubr.msk.f32.mxu1 %vm16288_vm7, %v21833_v50  ;;  %v3875_v28 = vsel %vm1051_vm2, %v3872_v31, %v3874_v45  ;;  %v3884_v31 = vrot.slane %v18380_v43, 3 }
 0x280   :  { %13772 = vmatprep.mubr.msk.f32.mxu0 %vm16288_vm7, %v21833_v50  ;;  %13841 = vmatpush3.msra.mxu1 %v4161_v48  ;;  %v4155_v48 = vld [vmem:[#allocation2 + $0x240] sm:$0xff] }
 0x281   :  { %13842 = vmatprep.subr.mxu1 %v21833_v50  ;;  %13951 = vmatprep.subr.mxu0 %v21833_v50 }
 0x282   :  { %13663 = vmatmul.mubr.f32.gmra.mxu1 %v3556_v36  ;;  %13952 = vmatpush3.msra.mxu0 %v4465_v21  ;;  %v4459_v21 = vld [vmem:[#allocation2 + $0x2b0] sm:$0xff]  ;;  %v3568_v36 = vsel %vm716_vm1, %v3565_v4, %v3567_v38  ;;  %v3577_v4 = vrot.slane %v18357_v49, 2 }
 0x283   :  { %13773 = vmatmul.mubr.f32.gmra.mxu0 %v3865_v24  ;;  %13665 = vmatprep.mubr.msk.f32.mxu1 %vm16288_vm7, %v21833_v50  ;;  %v3877_v24 = vsel %vm1051_vm2, %v3874_v45, %v3876_v39  ;;  %v3886_v45 = vrot.slane %v18387_v23, 3 }
 0x284   :  { %13775 = vmatprep.mubr.msk.f32.mxu0 %vm16288_vm7, %v21833_v50  ;;  %13843 = vmatpush3.msra.mxu1 %v4160_v56  ;;  %v4154_v56 = vld [vmem:[#allocation2 + $0x238] sm:$0xff] }
 0x285   :  { %13844 = vmatprep.subr.mxu1 %v21833_v50  ;;  %13953 = vmatprep.subr.mxu0 %v21833_v50 }
 0x286   :  { %13666 = vmatmul.mubr.f32.gmra.mxu1 %v3558_v62  ;;  %13954 = vmatpush3.msra.mxu0 %v4464_v47  ;;  %v4458_v47 = vld [vmem:[#allocation2 + $0x2a8] sm:$0xff]  ;;  %v3570_v62 = vsel %vm716_vm1, %v3567_v38, %v3569_v5  ;;  %v3579_v38 = vrot.slane %v18380_v43, 2 }
 0x287   :  { %13776 = vmatmul.mubr.f32.gmra.mxu0 %v3867_v60  ;;  %13668 = vmatprep.mubr.msk.f32.mxu1 %vm16288_vm7, %v21833_v50  ;;  %v3879_v60 = vsel %vm1051_vm2, %v3876_v39, %v3878_v59  ;;  %v3888_v39 = vrot.slane %v18403_v33, 3 }
 0x288   :  { %13778 = vmatprep.mubr.msk.f32.mxu0 %vm16288_vm7, %v21833_v50  ;;  %13845 = vmatpush3.msra.mxu1 %v4159_v27  ;;  %v4153_v27 = vld [vmem:[#allocation2 + $0x230] sm:$0xff] }
 0x289   :  { %13846 = vmatprep.subr.mxu1 %v21833_v50  ;;  %13955 = vmatprep.subr.mxu0 %v21833_v50 }
 0x28a   :  { %13669 = vmatmul.mubr.f32.gmra.mxu1 %v3560_v53  ;;  %13956 = vmatpush3.msra.mxu0 %v4463_v18  ;;  %v4457_v18 = vld [vmem:[#allocation2 + $0x2a0] sm:$0xff]  ;;  %v3572_v53 = vsel %vm716_vm1, %v3569_v5, %v3571_v52  ;;  %v3581_v5 = vrot.slane %v18387_v23, 2 }
 0x28b   :  { %13779 = vmatmul.mubr.f32.gmra.mxu0 %v3869_v57  ;;  %13671 = vmatprep.mubr.msk.f32.mxu1 %vm16288_vm7, %v21833_v50  ;;  %v3881_v57 = vsel %vm1051_vm2, %v3878_v59, %v3880_v22  ;;  %v3890_v59 = vrot.slane %v18411_v6, 3 }
 0x28c   :  { %13781 = vmatprep.mubr.msk.f32.mxu0 %vm16288_vm7, %v21833_v50  ;;  %13847 = vmatpush3.msra.mxu1 %v4158_v9  ;;  %v4152_v9 = vld [vmem:[#allocation2 + $0x228] sm:$0xff] }
 0x28d   :  { %13848 = vmatprep.subr.mxu1 %v21833_v50  ;;  %13957 = vmatprep.subr.mxu0 %v21833_v50 }
 0x28e   :  { %13672 = vmatmul.mubr.f32.gmra.mxu1 %v3562_v37  ;;  %13958 = vmatpush3.msra.mxu0 %v4462_v46  ;;  %v4456_v46 = vld [vmem:[#allocation2 + $0x298] sm:$0xff]  ;;  %v3574_v37 = vsel %vm716_vm1, %v3571_v52, %v3573_v11  ;;  %v3892_v52 = vrot.slane %v18426_v2, 3 }
 0x28f   :  { %13782 = vmatmul.mubr.f32.gmra.mxu0 %v3871_v14  ;;  %13674 = vmatprep.mubr.msk.f32.mxu1 %vm16288_vm7, %v21833_v50  ;;  %v3883_v14 = vsel %vm1051_vm2, %v3880_v22, %v3882_v13  ;;  %v3585_v22 = vrot.slane %v18411_v6, 2 }
 0x290   :  { %13784 = vmatprep.mubr.msk.f32.mxu0 %vm16288_vm7, %v21833_v50  ;;  %13849 = vmatpush3.msra.mxu1 %v4157_v34  ;;  %v4151_v34 = vld [vmem:[#allocation2 + $0x220] sm:$0xff] }
 0x291   :  { %13850 = vmatprep.subr.mxu1 %v21833_v50  ;;  %13959 = vmatprep.subr.mxu0 %v21833_v50 }
 0x292   :  { %13675 = vmatmul.mubr.f32.gmra.mxu1 %v3564_v3  ;;  %13960 = vmatpush3.msra.mxu0 %v4461_v12  ;;  %v4455_v12 = vld [vmem:[#allocation2 + $0x290] sm:$0xff]  ;;  %v3576_v3 = vsel %vm716_vm1, %v3573_v11, %v3575_v61  ;;  %v3894_v11 = vrot.slane %v18434_v0, 3 }
 0x293   :  { %13785 = vmatmul.mubr.f32.gmra.mxu0 %v3873_v42  ;;  %13677 = vmatprep.mubr.msk.f32.mxu1 %vm16288_vm7, %v21833_v50  ;;  %v3885_v42 = vsel %vm1051_vm2, %v3882_v13, %v3884_v31  ;;  %v3587_v13 = vrot.slane %v18426_v2, 2 }
 0x294   :  { %13787 = vmatprep.mubr.msk.f32.mxu0 %vm16288_vm7, %v21833_v50  ;;  %13851 = vmatpush3.msra.mxu1 %v4156_v16  ;;  %v4150_v16 = vld [vmem:[#allocation2 + $0x218] sm:$0xff] }
 0x295   :  { %13852 = vmatprep.subr.mxu1 %v21833_v50  ;;  %13961 = vmatprep.subr.mxu0 %v21833_v50 }
 0x296   :  { %13678 = vmatmul.mubr.f32.gmra.mxu1 %v3566_v26  ;;  %13962 = vmatpush3.msra.mxu0 %v4460_v51  ;;  %v4454_v51 = vld [vmem:[#allocation2 + $0x288] sm:$0xff]  ;;  %v3578_v26 = vsel %vm716_vm1, %v3575_v61, %v3577_v4  ;;  %v3898_v61 = vrot.slane %v18454_v8, 3 }
 0x297   :  { %13788 = vmatmul.mubr.f32.gmra.mxu0 %v3875_v28  ;;  %13680 = vmatprep.mubr.msk.f32.mxu1 %vm16288_vm7, %v21833_v50  ;;  %v3887_v28 = vsel %vm1051_vm2, %v3884_v31, %v3886_v45 }
 0x298   :  { %13790 = vmatprep.mubr.msk.f32.mxu0 %vm16288_vm7, %v21833_v50  ;;  %13853 = vmatpush3.msra.mxu1 %v4155_v48  ;;  %v4149_v48 = vld [vmem:[#allocation2 + $0x210] sm:$0xff] }
 0x299   :  { %13854 = vmatprep.subr.mxu1 %v21833_v50  ;;  %13963 = vmatprep.subr.mxu0 %v21833_v50 }
 0x29a   :  { %13681 = vmatmul.mubr.f32.gmra.mxu1 %v3568_v36  ;;  %13964 = vmatpush3.msra.mxu0 %v4459_v21  ;;  %v4453_v21 = vld [vmem:[#allocation2 + $0x280] sm:$0xff]  ;;  %v3580_v36 = vsel %vm716_vm1, %v3577_v4, %v3579_v38  ;;  %v3900_v4 = vrot.slane %v18466_v58, 3 }
 0x29b   :  { %13791 = vmatmul.mubr.f32.gmra.mxu0 %v3877_v24  ;;  %13683 = vmatprep.mubr.msk.f32.mxu1 %vm16288_vm7, %v21833_v50  ;;  %v3889_v24 = vsel %vm1051_vm2, %v3886_v45, %v3888_v39 }
 0x29c   :  { %13793 = vmatprep.mubr.msk.f32.mxu0 %vm16288_vm7, %v21833_v50  ;;  %13855 = vmatpush3.msra.mxu1 %v4154_v56  ;;  %v4148_v56 = vld [vmem:[#allocation2 + $0x208] sm:$0xff]  ;;  %v3901_v45 = vsel %vm1051_vm2, %v3898_v61, %v3900_v4 }
 0x29d   :  { %13856 = vmatprep.subr.mxu1 %v21833_v50  ;;  %13965 = vmatprep.subr.mxu0 %v21833_v50 }
 0x29e   :  { %13684 = vmatmul.mubr.f32.gmra.mxu1 %v3570_v62  ;;  %13966 = vmatpush3.msra.mxu0 %v4458_v47  ;;  %v3582_v47 = vsel %vm716_vm1, %v3579_v38, %v3581_v5  ;;  %v4147_v62 = vld [vmem:[#allocation2 + $0x200] sm:$0xff]  ;;  %v3595_v38 = vrot.slane %v18466_v58, 2 }
 0x29f   :  { %13794 = vmatmul.mubr.f32.gmra.mxu0 %v3879_v60  ;;  %13686 = vmatprep.mubr.msk.f32.mxu1 %vm16288_vm7, %v21833_v50  ;;  %v3583_v60 = vrot.slane %v18403_v33, 2 }
 0x2a0   :  { %13796 = vmatprep.mubr.msk.f32.mxu0 %vm16288_vm7, %v21833_v50  ;;  %13857 = vmatpush3.msra.mxu1 %v4153_v27  ;;  %v3891_v27 = vsel %vm1051_vm2, %v3888_v39, %v3890_v59  ;;  %v3597_v39 = vrot.slane %v18474_v54, 2 }
 0x2a1   :  { %13858 = vmatprep.subr.mxu1 %v21833_v50  ;;  %13967 = vmatprep.subr.mxu0 %v21833_v50 }
 0x2a2   :  { %13687 = vmatmul.mubr.f32.gmra.mxu1 %v3572_v53  ;;  %13968 = vmatpush3.msra.mxu0 %v4457_v18  ;;  %v3584_v18 = vsel %vm716_vm1, %v3581_v5, %v3583_v60  ;;  %v3893_v53 = vsel %vm1051_vm2, %v3890_v59, %v3892_v52 }
 0x2a3   :  { %13797 = vmatmul.mubr.f32.gmra.mxu0 %v3881_v57  ;;  %13689 = vmatprep.mubr.msk.f32.mxu1 %vm16288_vm7, %v21833_v50  ;;  %v3895_v57 = vsel %vm1051_vm2, %v3892_v52, %v3894_v11  ;;  %v4469_v52 = vrot.slane %v18051_v10, 5 }
 0x2a4   :  { %13799 = vmatprep.mubr.msk.f32.mxu0 %vm16288_vm7, %v21833_v50  ;;  %13859 = vmatpush3.msra.mxu1 %v4152_v9  ;;  %v3586_v9 = vsel %vm716_vm1, %v3583_v60, %v3585_v22 }
 0x2a5   :  { %13860 = vmatprep.subr.mxu1 %v21833_v50  ;;  %13969 = vmatprep.subr.mxu0 %v21833_v50 }
 0x2a6   :  { %13690 = vmatmul.mubr.f32.gmra.mxu1 %v3574_v37  ;;  %13970 = vmatpush3.msra.mxu0 %v4456_v46  ;;  %v3896_v46 = vrot.slane %v18446_v15, 3  ;;  %v3588_v37 = vsel %vm716_vm1, %v3585_v22, %v3587_v13  ;;  %v4164_v22 = vrot.slane %v18077_v32, 4 }
 0x2a7   :  { %13800 = vmatmul.mubr.f32.gmra.mxu0 %v3883_v14  ;;  %13692 = vmatprep.mubr.msk.f32.mxu1 %vm16288_vm7, %v21833_v50 }
 0x2a8   :  { %13802 = vmatprep.mubr.msk.f32.mxu0 %vm16288_vm7, %v21833_v50  ;;  %13861 = vmatpush3.msra.mxu1 %v4151_v34  ;;  %v3589_v34 = vrot.slane %v18434_v0, 2  ;;  %v3897_v14 = vsel %vm1051_vm2, %v3894_v11, %v3896_v46  ;;  %v3899_v31 = vsel %vm1051_vm2, %v3896_v46, %v3898_v61  ;;  %v4163_v46 = vrot.slane %v18051_v10, 4  ;;  %v4774_v61 = vld [vmem:[#allocation2 + $0x378] sm:$0xff] }
 0x2a9   :  { %13862 = vmatprep.subr.mxu1 %v21833_v50  ;;  %13971 = vmatprep.subr.mxu0 %v21833_v50  ;;  %v4474_v10 = vrot.slane %v18104_v25, 5 }
 0x2aa   :  { %13693 = vmatmul.mubr.f32.gmra.mxu1 %v3576_v3  ;;  %13972 = vmatpush3.msra.mxu0 %v4455_v12  ;;  %v3590_v12 = vsel %vm716_vm1, %v3587_v13, %v3589_v34  ;;  %v3591_v3 = vrot.slane %v18446_v15, 2 }
 0x2ab   :  { %13803 = vmatmul.mubr.f32.gmra.mxu0 %v3885_v42  ;;  %13695 = vmatprep.mubr.msk.f32.mxu1 %vm16288_vm7, %v21833_v50  ;;  %v3593_v42 = vrot.slane %v18454_v8, 2 }
 0x2ac   :  { %13805 = vmatprep.mubr.msk.f32.mxu0 %vm16288_vm7, %v21833_v50  ;;  %13863 = vmatpush3.msra.mxu1 %v4150_v16  ;;  %v3592_v16 = vsel %vm716_vm1, %v3589_v34, %v3591_v3 }
 0x2ad   :  { %13864 = vmatprep.subr.mxu1 %v21833_v50  ;;  %13973 = vmatprep.subr.mxu0 %v21833_v50 }
 0x2ae   :  { %13696 = vmatmul.mubr.f32.gmra.mxu1 %v3578_v26  ;;  %13974 = vmatpush3.msra.mxu0 %v4454_v51  ;;  %v3902_v51 = vrot.slane %v18474_v54, 3  ;;  %v18705_v26 = vmax.f32 %v18338_v7, 0.0 }
 0x2af   :  { %13806 = vmatmul.mubr.f32.gmra.mxu0 %v3887_v28  ;;  %13698 = vmatprep.mubr.msk.f32.mxu1 %vm16288_vm7, %v21833_v50 }
 0x2b0   :  { %13808 = vmatprep.mubr.msk.f32.mxu0 %vm16288_vm7, %v21833_v50  ;;  %13865 = vmatpush3.msra.mxu1 %v4149_v48  ;;  %21902 = vst [vmem:[#allocation18_spill] sm:$0xff] %v18705_v26  ;;  %v3594_v48 = vsel %vm716_vm1, %v3591_v3, %v3593_v42  ;;  %v3903_v28 = vsel %vm1051_vm2, %v3900_v4, %v3902_v51  ;;  %v3904_v7 = vrot.slane %v18705_v26, 3 }
 0x2b1   :  { %13866 = vmatprep.subr.mxu1 %v21833_v50  ;;  %13975 = vmatprep.subr.mxu0 %v21833_v50 }
 0x2b2   :  { %13699 = vmatmul.mubr.f32.gmra.mxu1 %v3580_v36  ;;  %13976 = vmatpush3.msra.mxu0 %v4453_v21  ;;  %v3596_v21 = vsel %vm716_vm1, %v3593_v42, %v3595_v38  ;;  %v3905_v36 = vsel %vm1051_vm2, %v3902_v51, %v3904_v7  ;;  %v5079_v51 = vld [vmem:[#allocation2 + $0x3e8] sm:$0xff] }
 0x2b3   :  { %13809 = vmatmul.mubr.f32.gmra.mxu0 %v3889_v24  ;;  %13701 = vmatprep.mubr.msk.f32.mxu1 %vm16288_vm7, %v21833_v50  ;;  %v3598_v24 = vsel %vm716_vm1, %v3595_v38, %v3597_v39 }
 0x2b4   :  { %13811 = vmatprep.mubr.msk.f32.mxu0 %vm16288_vm7, %v21833_v50  ;;  %13867 = vmatpush3.msra.mxu1 %v4148_v56 }
 0x2b5   :  { %13868 = vmatprep.subr.mxu1 %v21833_v50  ;;  %14159 = vmatprep.subr.mxu0 %v21833_v50 }
 0x2b6   :  { %13702 = vmatmul.mubr.f32.gmra.mxu1 %v3582_v47  ;;  %v4470_v47 = vrot.slane %v18077_v32, 5 }
 0x2b7   :  { %13812 = vmatmul.mubr.f32.gmra.mxu0 %v3891_v27  ;;  %13704 = vmatprep.mubr.msk.f32.mxu1 %vm16288_vm7, %v21833_v50 }
 0x2b8   :  { %13814 = vmatprep.mubr.msk.f32.mxu0 %vm16288_vm7, %v21833_v50  ;;  %13869 = vmatpush3.msra.mxu1 %v4147_v62 }
 0x2b9   :  { %14052 = vmatprep.subr.mxu1 %v21833_v50 }
 0x2ba   :  { %13705 = vmatmul.mubr.f32.gmra.mxu1 %v3584_v18 }
 0x2bb   :  { %13815 = vmatmul.mubr.f32.gmra.mxu0 %v3893_v53  ;;  %13707 = vmatprep.mubr.msk.f32.mxu1 %vm16288_vm7, %v21833_v50  ;;  %v5081_v53 = vld [vmem:[#allocation2 + $0x3f8] sm:$0xff] }
 0x2bc   :  { %13817 = vmatprep.mubr.msk.f32.mxu0 %vm16288_vm7, %v21833_v50 }
 0x2be   :  { %13708 = vmatmul.mubr.f32.gmra.mxu1 %v3586_v9  ;;  %v4471_v9 = vsel %vm1719_vm4, %v4469_v52, %v4470_v47  ;;  %v4772_v52 = vld [vmem:[#allocation2 + $0x368] sm:$0xff] }
 0x2bf   :  { %13818 = vmatmul.mubr.f32.gmra.mxu0 %v3895_v57  ;;  %13710 = vmatprep.mubr.msk.f32.mxu1 %vm16288_vm7, %v21833_v50 }
 0x2c0   :  { %13820 = vmatprep.mubr.msk.f32.mxu0 %vm16288_vm7, %v21833_v50 }
 0x2c2   :  { %13711 = vmatmul.mubr.f32.gmra.mxu1 %v3588_v37  ;;  %v5080_v37 = vld [vmem:[#allocation2 + $0x3f0] sm:$0xff] }
 0x2c3   :  { %13821 = vmatmul.mubr.f32.gmra.mxu0 %v3897_v14  ;;  %13713 = vmatprep.mubr.msk.f32.mxu1 %vm16288_vm7, %v21833_v50  ;;  %v4472_v14 = vrot.slane %v18088_v20, 5 }
 0x2c4   :  { %13823 = vmatprep.mubr.msk.f32.mxu0 %vm16288_vm7, %v21833_v50 }
 0x2c5   :  { %v4473_v4 = vsel %vm1719_vm4, %v4470_v47, %v4472_v14  ;;  %v4476_v47 = vrot.slane %v18141_v40, 5 }
 0x2c6   :  { %13714 = vmatmul.mubr.f32.gmra.mxu1 %v3590_v12 }
 0x2c7   :  { %13824 = vmatmul.mubr.f32.gmra.mxu0 %v3899_v31  ;;  %13716 = vmatprep.mubr.msk.f32.mxu1 %vm16288_vm7, %v21833_v50  ;;  %v4165_v31 = vsel %vm1385_vm3, %v4163_v46, %v4164_v22  ;;  %v5077_v46 = vld [vmem:[#allocation2 + $0x3d8] sm:$0xff] }
 0x2c8   :  { %13826 = vmatprep.mubr.msk.f32.mxu0 %vm16288_vm7, %v21833_v50 }
 0x2ca   :  { %13717 = vmatmul.mubr.f32.gmra.mxu1 %v3592_v16 }
 0x2cb   :  { %13827 = vmatmul.mubr.f32.gmra.mxu0 %v3901_v45  ;;  %13719 = vmatprep.mubr.msk.f32.mxu1 %vm16288_vm7, %v21833_v50  ;;  %v4166_v45 = vrot.slane %v18088_v20, 4 }
 0x2cc   :  { %13829 = vmatprep.mubr.msk.f32.mxu0 %vm16288_vm7, %v21833_v50 }
 0x2cd   :  { %v4167_v38 = vsel %vm1385_vm3, %v4164_v22, %v4166_v45  ;;  %v4477_v22 = vsel %vm1719_vm4, %v4474_v10, %v4476_v47 }
 0x2ce   :  { %13720 = vmatmul.mubr.f32.gmra.mxu1 %v3594_v48 }
 0x2cf   :  { %13830 = vmatmul.mubr.f32.gmra.mxu0 %v3903_v28  ;;  %13722 = vmatprep.mubr.msk.f32.mxu1 %vm16288_vm7, %v21833_v50 }
 0x2d0   :  { %13832 = vmatprep.mubr.msk.f32.mxu0 %vm16288_vm7, %v21833_v50 }
 0x2d2   :  { %13723 = vmatmul.mubr.f32.gmra.mxu1 %v3596_v21  ;;  %v4773_v21 = vld [vmem:[#allocation2 + $0x370] sm:$0xff] }
 0x2d3   :  { %v3409_v5 = vpop.f32.mrf.mxu0  ;;  %13833 = vmatmul.mubr.f32.gmra.mxu0 %v3905_v36  ;;  %13725 = vmatprep.mubr.msk.f32.mxu1 %vm16288_vm7, %v21833_v50  ;;  %v4475_v36 = vsel %vm1719_vm4, %v4472_v14, %v4474_v10 }
 0x2d4   :  { %13835 = vmatprep.mubr.msk.f32.mxu0 %vm16288_vm7, %v21833_v50 }
 0x2d5   :  { %v13551_v56 = vpop.f32.mrf.mxu0 }
 0x2d6   :  { %v3219_v59 = vpop.f32.mrf.mxu1  ;;  %13726 = vmatmul.mubr.f32.gmra.mxu1 %v3598_v24  ;;  %v5078_v24 = vld [vmem:[#allocation2 + $0x3e0] sm:$0xff] }
 0x2d7   :  { %v18726_v62 = vadd.f32 %v3409_v5, %v3219_v59  ;;  %v3414_v27 = vpop.f32.mrf.mxu0  ;;  %13836 = vmatmul.mubr.f32.gmra.mxu0 %v3904_v7  ;;  %13728 = vmatprep.mubr.msk.f32.mxu1 %vm16288_vm7, %v21833_v50  ;;  %v4168_v7 = vrot.slane %v18104_v25, 4 }
 0x2d8   :  { %v13444_v60 = vpop.f32.mrf.mxu1  ;;  %13977 = vmatprep.mubr.msk.f32.mxu0 %vm16288_vm7, %v21833_v50 }
 0x2d9   :  { %v13554_v18 = vpop.f32.mrf.mxu0  ;;  %v4169_v60 = vsel %vm1385_vm3, %v4166_v45, %v4168_v7 }
 0x2da   :  { %v3224_v11 = vpop.f32.mrf.mxu1  ;;  %13729 = vmatmul.mubr.f32.gmra.mxu1 %v3597_v39 }
 0x2db   :  { %v18735_v57 = vadd.f32 %v3414_v27, %v3224_v11  ;;  %v3419_v13 = vpop.f32.mrf.mxu0  ;;  %13978 = vmatmul.mubr.f32.vlgmr.msra.gmra.mxu0 %v4471_v9  ;;  %13870 = vmatprep.mubr.msk.f32.mxu1 %vm16288_vm7, %v21833_v50 }
 0x2dc   :  { %v13447_v34 = vpop.f32.mrf.mxu1  ;;  %13980 = vmatprep.mubr.msk.f32.mxu0 %vm16288_vm7, %v21833_v50  ;;  %14160 = vmatpush3.msra.mxu0 %v5081_v53  ;;  %v4478_v53 = vrot.slane %v18152_v30, 5 }
 0x2dd   :  { %v13557_v12 = vpop.f32.mrf.mxu0  ;;  %14161 = vmatprep.subr.mxu0 %v21833_v50 }
 0x2de   :  { %v3229_v3 = vpop.f32.mrf.mxu1  ;;  %13871 = vmatmul.mubr.f32.vlgmr.msra.gmra.mxu1 %v4165_v31  ;;  %14162 = vmatpush3.msra.mxu0 %v5080_v37  ;;  %v4771_v12 = vld [vmem:[#allocation2 + $0x360] sm:$0xff] }
 0x2df   :  { %v18747_v16 = vadd.f32 %v3419_v13, %v3229_v3  ;;  %v3424_v42 = vpop.f32.mrf.mxu0  ;;  %13981 = vmatmul.mubr.f32.gmra.mxu0 %v4473_v4  ;;  %14053 = vmatpush3.msra.mxu1 %v4774_v61  ;;  %v4170_v13 = vrot.slane %v18141_v40, 4  ;;  %v4172_v61 = vrot.slane %v18152_v30, 4  ;;  %v4479_v3 = vsel %vm1719_vm4, %v4476_v47, %v4478_v53 }
 0x2e0   :  { %v13450_v48 = vpop.f32.mrf.mxu1  ;;  %13873 = vmatprep.mubr.msk.f32.mxu1 %vm16288_vm7, %v21833_v50  ;;  %13983 = vmatprep.mubr.msk.f32.mxu0 %vm16288_vm7, %v21833_v50 }
 0x2e1   :  { %v13560_v28 = vpop.f32.mrf.mxu0  ;;  %14054 = vmatprep.subr.mxu1 %v21833_v50  ;;  %14163 = vmatprep.subr.mxu0 %v21833_v50  ;;  %v4171_v14 = vsel %vm1385_vm3, %v4168_v7, %v4170_v13 }
 0x2e2   :  { %v3234_v39 = vpop.f32.mrf.mxu1  ;;  %13874 = vmatmul.mubr.f32.gmra.mxu1 %v4167_v38  ;;  %14164 = vmatpush3.msra.mxu0 %v5079_v51  ;;  %v4480_v51 = vrot.slane %v18195_v44, 5  ;;  %v4173_v28 = vsel %vm1385_vm3, %v4170_v13, %v4172_v61  ;;  %v4770_v38 = vld [vmem:[#allocation2 + $0x358] sm:$0xff] }
 0x2e3   :  { %v18759_v5 = vadd.f32 %v3424_v42, %v3234_v39  ;;  %v3429_v56 = vpop.f32.mrf.mxu0  ;;  %13984 = vmatmul.mubr.f32.gmra.mxu0 %v4475_v36  ;;  %13876 = vmatprep.mubr.msk.f32.mxu1 %vm16288_vm7, %v21833_v50  ;;  %v5076_v42 = vld [vmem:[#allocation2 + $0x3d0] sm:$0xff]  ;;  %v4482_v39 = vrot.slane %v18211_v17, 5 }
 0x2e4   :  { %v13453_v59 = vpop.f32.mrf.mxu1  ;;  %13986 = vmatprep.mubr.msk.f32.mxu0 %vm16288_vm7, %v21833_v50  ;;  %14055 = vmatpush3.msra.mxu1 %v4773_v21  ;;  %v4481_v21 = vsel %vm1719_vm4, %v4478_v53, %v4480_v51 }
 0x2e5   :  { %v13563_v27 = vpop.f32.mrf.mxu0  ;;  %14056 = vmatprep.subr.mxu1 %v21833_v50  ;;  %14165 = vmatprep.subr.mxu0 %v21833_v50  ;;  %v5075_v59 = vld [vmem:[#allocation2 + $0x3c8] sm:$0xff]  ;;  %v4483_v53 = vsel %vm1719_vm4, %v4480_v51, %v4482_v39  ;;  %v4178_v51 = vrot.slane %v18244_v41, 4 }
 0x2e6   :  { %v3239_v18 = vpop.f32.mrf.mxu1  ;;  %13877 = vmatmul.mubr.f32.gmra.mxu1 %v4169_v60  ;;  %14166 = vmatpush3.msra.mxu0 %v5078_v24  ;;  %v4174_v24 = vrot.slane %v18195_v44, 4 }
 0x2e7   :  { %v18771_v11 = vadd.f32 %v3429_v56, %v3239_v18  ;;  %v3434_v9 = vpop.f32.mrf.mxu0  ;;  %13987 = vmatmul.mubr.f32.gmra.mxu0 %v4477_v22  ;;  %13879 = vmatprep.mubr.msk.f32.mxu1 %vm16288_vm7, %v21833_v50  ;;  %v4769_v18 = vld [vmem:[#allocation2 + $0x350] sm:$0xff] }
 0x2e8   :  { %v13456_v37 = vpop.f32.mrf.mxu1  ;;  %13989 = vmatprep.mubr.msk.f32.mxu0 %vm16288_vm7, %v21833_v50  ;;  %14057 = vmatpush3.msra.mxu1 %v4772_v52  ;;  %v4175_v60 = vsel %vm1385_vm3, %v4172_v61, %v4174_v24  ;;  %v4176_v52 = vrot.slane %v18211_v17, 4 }
 0x2e9   :  { %v13566_v34 = vpop.f32.mrf.mxu0  ;;  %14058 = vmatprep.subr.mxu1 %v21833_v50  ;;  %14167 = vmatprep.subr.mxu0 %v21833_v50 }
 0x2ea   :  { %v3244_v31 = vpop.f32.mrf.mxu1  ;;  %13880 = vmatmul.mubr.f32.gmra.mxu1 %v4171_v14  ;;  %14168 = vmatpush3.msra.mxu0 %v5077_v46  ;;  %v5074_v46 = vld [vmem:[#allocation2 + $0x3c0] sm:$0xff]  ;;  %v4484_v34 = vrot.slane %v18244_v41, 5  ;;  %v4177_v61 = vsel %vm1385_vm3, %v4174_v24, %v4176_v52 }
 0x2eb   :  { %v18783_v4 = vadd.f32 %v3434_v9, %v3244_v31  ;;  %v3439_v10 = vpop.f32.mrf.mxu0  ;;  %13990 = vmatmul.mubr.f32.gmra.mxu0 %v4479_v3  ;;  %13882 = vmatprep.mubr.msk.f32.mxu1 %vm16288_vm7, %v21833_v50 }
 0x2ec   :  { %v13459_v45 = vpop.f32.mrf.mxu1  ;;  %13992 = vmatprep.mubr.msk.f32.mxu0 %vm16288_vm7, %v21833_v50  ;;  %14059 = vmatpush3.msra.mxu1 %v4771_v12  ;;  %v4768_v12 = vld [vmem:[#allocation2 + $0x348] sm:$0xff]  ;;  %v4485_v3 = vsel %vm1719_vm4, %v4482_v39, %v4484_v34  ;;  %v4767_v39 = vld [vmem:[#allocation2 + $0x340] sm:$0xff] }
 0x2ed   :  { %v13569_v48 = vpop.f32.mrf.mxu0  ;;  %14060 = vmatprep.subr.mxu1 %v21833_v50  ;;  %14169 = vmatprep.subr.mxu0 %v21833_v50 }
 0x2ee   :  { %v3249_v7 = vpop.f32.mrf.mxu1  ;;  %13883 = vmatmul.mubr.f32.gmra.mxu1 %v4173_v28  ;;  %14170 = vmatpush3.msra.mxu0 %v5076_v42  ;;  %v5073_v48 = vld [vmem:[#allocation2 + $0x3b8] sm:$0xff] }
 0x2ef   :  { %v18795_v36 = vadd.f32 %v3439_v10, %v3249_v7  ;;  %v3444_v56 = vpop.f32.mrf.mxu0  ;;  %13993 = vmatmul.mubr.f32.gmra.mxu0 %v4481_v21  ;;  %13885 = vmatprep.mubr.msk.f32.mxu1 %vm16288_vm7, %v21833_v50  ;;  %v4486_v10 = vrot.slane %v18259_v19, 5  ;;  %v4179_v7 = vsel %vm1385_vm3, %v4176_v52, %v4178_v51  ;;  %v4180_v21 = vrot.slane %v18259_v19, 4 }
 0x2f0   :  { %v13462_v47 = vpop.f32.mrf.mxu1  ;;  %13995 = vmatprep.mubr.msk.f32.mxu0 %vm16288_vm7, %v21833_v50  ;;  %14061 = vmatpush3.msra.mxu1 %v4770_v38  ;;  %v4488_v52 = vrot.slane %v18296_v63, 5 }
 0x2f1   :  { %v13572_v27 = vpop.f32.mrf.mxu0  ;;  %14062 = vmatprep.subr.mxu1 %v21833_v50  ;;  %14171 = vmatprep.subr.mxu0 %v21833_v50  ;;  %v4487_v24 = vsel %vm1719_vm4, %v4484_v34, %v4486_v10 }
 0x2f2   :  { %v3254_v22 = vpop.f32.mrf.mxu1  ;;  %13886 = vmatmul.mubr.f32.gmra.mxu1 %v4175_v60  ;;  %14172 = vmatpush3.msra.mxu0 %v5075_v59  ;;  %v5072_v27 = vld [vmem:[#allocation2 + $0x3b0] sm:$0xff] }
 0x2f3   :  { %v18807_v9 = vadd.f32 %v3444_v56, %v3254_v22  ;;  %v3449_v13 = vpop.f32.mrf.mxu0  ;;  %13996 = vmatmul.mubr.f32.gmra.mxu0 %v4483_v53  ;;  %13888 = vmatprep.mubr.msk.f32.mxu1 %vm16288_vm7, %v21833_v50  ;;  %v4181_v22 = vsel %vm1385_vm3, %v4178_v51, %v4180_v21  ;;  %v4766_v53 = vld [vmem:[#allocation2 + $0x338] sm:$0xff]  ;;  %v4765_v51 = vld [vmem:[#allocation2 + $0x330] sm:$0xff] }
 0x2f4   :  { %v13465_v37 = vpop.f32.mrf.mxu1  ;;  %13998 = vmatprep.mubr.msk.f32.mxu0 %vm16288_vm7, %v21833_v50  ;;  %14063 = vmatpush3.msra.mxu1 %v4769_v18 }
 0x2f5   :  { %v13575_v14 = vpop.f32.mrf.mxu0  ;;  %14064 = vmatprep.subr.mxu1 %v21833_v50  ;;  %14173 = vmatprep.subr.mxu0 %v21833_v50  ;;  %v4490_v37 = vrot.slane %v18311_v29, 5 }
 0x2f6   :  { %v3259_v31 = vpop.f32.mrf.mxu1  ;;  %13889 = vmatmul.mubr.f32.gmra.mxu1 %v4177_v61  ;;  %14174 = vmatpush3.msra.mxu0 %v5074_v46  ;;  %v4489_v46 = vsel %vm1719_vm4, %v4486_v10, %v4488_v52  ;;  %v4182_v61 = vrot.slane %v18296_v63, 4 }
 0x2f7   :  { %v18819_v42 = vadd.f32 %v3449_v13, %v3259_v31  ;;  %v3454_v45 = vpop.f32.mrf.mxu0  ;;  %13999 = vmatmul.mubr.f32.gmra.mxu0 %v4485_v3  ;;  %13891 = vmatprep.mubr.msk.f32.mxu1 %vm16288_vm7, %v21833_v50 }
 0x2f8   :  { %v13468_v28 = vpop.f32.mrf.mxu1  ;;  %14001 = vmatprep.mubr.msk.f32.mxu0 %vm16288_vm7, %v21833_v50  ;;  %14065 = vmatpush3.msra.mxu1 %v4768_v12  ;;  %v5071_v12 = vld [vmem:[#allocation2 + $0x3a8] sm:$0xff]  ;;  %v4183_v10 = vsel %vm1385_vm3, %v4180_v21, %v4182_v61  ;;  %v5070_v21 = vld [vmem:[#allocation2 + $0x3a0] sm:$0xff] }
 0x2f9   :  { %v13578_v38 = vpop.f32.mrf.mxu0  ;;  %14066 = vmatprep.subr.mxu1 %v21833_v50  ;;  %14175 = vmatprep.subr.mxu0 %v21833_v50  ;;  %v4491_v28 = vsel %vm1719_vm4, %v4488_v52, %v4490_v37 }
 0x2fa   :  { %v3264_v56 = vpop.f32.mrf.mxu1  ;;  %13892 = vmatmul.mubr.f32.gmra.mxu1 %v4179_v7  ;;  %14176 = vmatpush3.msra.mxu0 %v5073_v48 }
 0x2fb   :  { %v18831_v59 = vadd.f32 %v3454_v45, %v3264_v56  ;;  %v3459_v47 = vpop.f32.mrf.mxu0  ;;  %14002 = vmatmul.mubr.f32.gmra.mxu0 %v4487_v24  ;;  %13894 = vmatprep.mubr.msk.f32.mxu1 %vm16288_vm7, %v21833_v50  ;;  %v4184_v45 = vrot.slane %v18311_v29, 4  ;;  %v4492_v56 = vrot.slane %v18344_v55, 5 }
 0x2fc   :  { %v13471_v60 = vpop.f32.mrf.mxu1  ;;  %14004 = vmatprep.mubr.msk.f32.mxu0 %vm16288_vm7, %v21833_v50  ;;  %14067 = vmatpush3.msra.mxu1 %v4767_v39 }
 0x2fd   :  { %v13581_v18 = vpop.f32.mrf.mxu0  ;;  %14068 = vmatprep.subr.mxu1 %v21833_v50  ;;  %14177 = vmatprep.subr.mxu0 %v21833_v50  ;;  %v4493_v52 = vsel %vm1719_vm4, %v4490_v37, %v4492_v56 }
 0x2fe   :  { %v3269_v13 = vpop.f32.mrf.mxu1  ;;  %13895 = vmatmul.mubr.f32.gmra.mxu1 %v4181_v22  ;;  %14178 = vmatpush3.msra.mxu0 %v5072_v27  ;;  %v4764_v27 = vld [vmem:[#allocation2 + $0x328] sm:$0xff]  ;;  %v4494_v18 = vrot.slane %v18357_v49, 5 }
 0x2ff   :  { %v18843_v34 = vadd.f32 %v3459_v47, %v3269_v13  ;;  %v3464_v14 = vpop.f32.mrf.mxu0  ;;  %14005 = vmatmul.mubr.f32.gmra.mxu0 %v4489_v46  ;;  %13897 = vmatprep.mubr.msk.f32.mxu1 %vm16288_vm7, %v21833_v50  ;;  %v4185_v47 = vsel %vm1385_vm3, %v4182_v61, %v4184_v45  ;;  %v4186_v13 = vrot.slane %v18344_v55, 4  ;;  %v5069_v46 = vld [vmem:[#allocation2 + $0x398] sm:$0xff] }
 0x300   :  { %v13474_v31 = vpop.f32.mrf.mxu1  ;;  %14007 = vmatprep.mubr.msk.f32.mxu0 %vm16288_vm7, %v21833_v50  ;;  %14069 = vmatpush3.msra.mxu1 %v4766_v53 }
 0x301   :  { %v13584_v3 = vpop.f32.mrf.mxu0  ;;  %14070 = vmatprep.subr.mxu1 %v21833_v50  ;;  %14179 = vmatprep.subr.mxu0 %v21833_v50  ;;  %v4187_v37 = vsel %vm1385_vm3, %v4184_v45, %v4186_v13  ;;  %v4763_v31 = vld [vmem:[#allocation2 + $0x320] sm:$0xff]  ;;  %v5068_v45 = vld [vmem:[#allocation2 + $0x390] sm:$0xff] }
 0x302   :  { %v3274_v48 = vpop.f32.mrf.mxu1  ;;  %13898 = vmatmul.mubr.f32.gmra.mxu1 %v4183_v10  ;;  %14180 = vmatpush3.msra.mxu0 %v5071_v12  ;;  %v4188_v12 = vrot.slane %v18357_v49, 4  ;;  %v4495_v10 = vsel %vm1719_vm4, %v4492_v56, %v4494_v18  ;;  %v4762_v56 = vld [vmem:[#allocation2 + $0x318] sm:$0xff] }
 0x303   :  { %v18855_v38 = vadd.f32 %v3464_v14, %v3274_v48  ;;  %v3469_v7 = vpop.f32.mrf.mxu0  ;;  %14008 = vmatmul.mubr.f32.gmra.mxu0 %v4491_v28  ;;  %13900 = vmatprep.mubr.msk.f32.mxu1 %vm16288_vm7, %v21833_v50 }
 0x304   :  { %v13477_v39 = vpop.f32.mrf.mxu1  ;;  %14010 = vmatprep.mubr.msk.f32.mxu0 %vm16288_vm7, %v21833_v50  ;;  %14071 = vmatpush3.msra.mxu1 %v4765_v51 }
 0x305   :  { %v13587_v24 = vpop.f32.mrf.mxu0  ;;  %14072 = vmatprep.subr.mxu1 %v21833_v50  ;;  %14181 = vmatprep.subr.mxu0 %v21833_v50  ;;  %v4189_v39 = vsel %vm1385_vm3, %v4186_v13, %v4188_v12  ;;  %v5067_v13 = vld [vmem:[#allocation2 + $0x388] sm:$0xff] }
 0x306   :  { %v3279_v60 = vpop.f32.mrf.mxu1  ;;  %13901 = vmatmul.mubr.f32.gmra.mxu1 %v4185_v47  ;;  %14182 = vmatpush3.msra.mxu0 %v5070_v21 }
 0x307   :  { %v18867_v22 = vadd.f32 %v3469_v7, %v3279_v60  ;;  %v3474_v53 = vpop.f32.mrf.mxu0  ;;  %14011 = vmatmul.mubr.f32.gmra.mxu0 %v4493_v52  ;;  %13903 = vmatprep.mubr.msk.f32.mxu1 %vm16288_vm7, %v21833_v50  ;;  %v4496_v7 = vrot.slane %v18380_v43, 5 }
 0x308   :  { %v13480_v14 = vpop.f32.mrf.mxu1  ;;  %14013 = vmatprep.mubr.msk.f32.mxu0 %vm16288_vm7, %v21833_v50  ;;  %14073 = vmatpush3.msra.mxu1 %v4764_v27  ;;  %v4498_v27 = vrot.slane %v18387_v23, 5 }
 0x309   :  { %v13590_v61 = vpop.f32.mrf.mxu0  ;;  %14074 = vmatprep.subr.mxu1 %v21833_v50  ;;  %14183 = vmatprep.subr.mxu0 %v21833_v50  ;;  %v4497_v47 = vsel %vm1719_vm4, %v4494_v18, %v4496_v7 }
 0x30a   :  { %v3284_v3 = vpop.f32.mrf.mxu1  ;;  %13904 = vmatmul.mubr.f32.gmra.mxu1 %v4187_v37  ;;  %14184 = vmatpush3.msra.mxu0 %v5069_v46  ;;  %v4192_v61 = vrot.slane %v18387_v23, 4  ;;  %v4761_v37 = vld [vmem:[#allocation2 + $0x310] sm:$0xff] }
 0x30b   :  { %v18879_v51 = vadd.f32 %v3474_v53, %v3284_v3  ;;  %v3479_v48 = vpop.f32.mrf.mxu0  ;;  %14014 = vmatmul.mubr.f32.gmra.mxu0 %v4495_v10  ;;  %13906 = vmatprep.mubr.msk.f32.mxu1 %vm16288_vm7, %v21833_v50  ;;  %v4190_v53 = vrot.slane %v18380_v43, 4  ;;  %v4499_v3 = vsel %vm1719_vm4, %v4496_v7, %v4498_v27  ;;  %v4760_v7 = vld [vmem:[#allocation2 + $0x308] sm:$0xff] }
 0x30c   :  { %v13483_v28 = vpop.f32.mrf.mxu1  ;;  %14016 = vmatprep.mubr.msk.f32.mxu0 %vm16288_vm7, %v21833_v50  ;;  %14075 = vmatpush3.msra.mxu1 %v4763_v31 }
 0x30d   :  { %v13593_v21 = vpop.f32.mrf.mxu0  ;;  %14076 = vmatprep.subr.mxu1 %v21833_v50  ;;  %14185 = vmatprep.subr.mxu0 %v21833_v50  ;;  %v4191_v18 = vsel %vm1385_vm3, %v4188_v12, %v4190_v53  ;;  %v5066_v12 = vld [vmem:[#allocation2 + $0x380] sm:$0xff]  ;;  %v4500_v28 = vrot.slane %v18403_v33, 5 }
 0x30e   :  { %v3289_v24 = vpop.f32.mrf.mxu1  ;;  %13907 = vmatmul.mubr.f32.gmra.mxu1 %v4189_v39  ;;  %14186 = vmatpush3.msra.mxu0 %v5068_v45  ;;  %v4193_v39 = vsel %vm1385_vm3, %v4190_v53, %v4192_v61  ;;  %v4194_v53 = vrot.slane %v18403_v33, 4 }
 0x30f   :  { %v18891_v60 = vadd.f32 %v3479_v48, %v3289_v24  ;;  %v3484_v52 = vpop.f32.mrf.mxu0  ;;  %14017 = vmatmul.mubr.f32.gmra.mxu0 %v4497_v47  ;;  %13909 = vmatprep.mubr.msk.f32.mxu1 %vm16288_vm7, %v21833_v50  ;;  %v4501_v24 = vsel %vm1719_vm4, %v4498_v27, %v4500_v28  ;;  %v4502_v47 = vrot.slane %v18411_v6, 5 }
 0x310   :  { %v13486_v46 = vpop.f32.mrf.mxu1  ;;  %14019 = vmatprep.mubr.msk.f32.mxu0 %vm16288_vm7, %v21833_v50  ;;  %14077 = vmatpush3.msra.mxu1 %v4762_v56  ;;  %v4195_v27 = vsel %vm1385_vm3, %v4192_v61, %v4194_v53  ;;  %v4504_v61 = vrot.slane %v18426_v2, 5 }
 0x311   :  { %v13596_v14 = vpop.f32.mrf.mxu0  ;;  %14078 = vmatprep.subr.mxu1 %v21833_v50  ;;  %14187 = vmatprep.subr.mxu0 %v21833_v50 }
 0x312   :  { %v3294_v31 = vpop.f32.mrf.mxu1  ;;  %13910 = vmatmul.mubr.f32.gmra.mxu1 %v4191_v18  ;;  %14188 = vmatpush3.msra.mxu0 %v5067_v13  ;;  %v4196_v18 = vrot.slane %v18411_v6, 4 }
 0x313   :  { %v18903_v10 = vadd.f32 %v3484_v52, %v3294_v31  ;;  %v3489_v48 = vpop.f32.mrf.mxu0  ;;  %14020 = vmatmul.mubr.f32.gmra.mxu0 %v4499_v3  ;;  %13912 = vmatprep.mubr.msk.f32.mxu1 %vm16288_vm7, %v21833_v50  ;;  %v4503_v3 = vsel %vm1719_vm4, %v4500_v28, %v4502_v47 }
 0x314   :  { %v13489_v45 = vpop.f32.mrf.mxu1  ;;  %14022 = vmatprep.mubr.msk.f32.mxu0 %vm16288_vm7, %v21833_v50  ;;  %14079 = vmatpush3.msra.mxu1 %v4761_v37  ;;  %v4759_v37 = vld [vmem:[#allocation2 + $0x300] sm:$0xff] }
 0x315   :  { %v13599_v21 = vpop.f32.mrf.mxu0  ;;  %14080 = vmatprep.subr.mxu1 %v21833_v50  ;;  %14189 = vmatprep.subr.mxu0 %v21833_v50 }
 0x316   :  { %v3299_v56 = vpop.f32.mrf.mxu1  ;;  %13913 = vmatmul.mubr.f32.gmra.mxu1 %v4193_v39  ;;  %14190 = vmatpush3.msra.mxu0 %v5066_v12  ;;  %v4197_v39 = vsel %vm1385_vm3, %v4194_v53, %v4196_v18 }
 0x317   :  { %v18915_v52 = vadd.f32 %v3489_v48, %v3299_v56  ;;  %v3494_v13 = vpop.f32.mrf.mxu0  ;;  %14023 = vmatmul.mubr.f32.gmra.mxu0 %v4501_v24  ;;  %13915 = vmatprep.mubr.msk.f32.mxu1 %vm16288_vm7, %v21833_v50  ;;  %v4506_v56 = vrot.slane %v18434_v0, 5 }
 0x318   :  { %v13492_v46 = vpop.f32.mrf.mxu1  ;;  %14025 = vmatprep.mubr.msk.f32.mxu0 %vm16288_vm7, %v21833_v50  ;;  %14081 = vmatpush3.msra.mxu1 %v4760_v7  ;;  %v4505_v7 = vsel %vm1719_vm4, %v4502_v47, %v4504_v61  ;;  %v4200_v47 = vrot.slane %v18434_v0, 4 }
 0x319   :  { %v13602_v14 = vpop.f32.mrf.mxu0  ;;  %14082 = vmatprep.subr.mxu1 %v21833_v50  ;;  %v4198_v46 = vrot.slane %v18426_v2, 4 }
 0x31a   :  { %v3304_v31 = vpop.f32.mrf.mxu1  ;;  %13916 = vmatmul.mubr.f32.gmra.mxu1 %v4195_v27 }
 0x31b   :  { %v18926_v48 = vadd.f32 %v3494_v13, %v3304_v31  ;;  %v3499_v12 = vpop.f32.mrf.mxu0  ;;  %14026 = vmatmul.mubr.f32.gmra.mxu0 %v4503_v3  ;;  %13918 = vmatprep.mubr.msk.f32.mxu1 %vm16288_vm7, %v21833_v50  ;;  %v4199_v27 = vsel %vm1385_vm3, %v4196_v18, %v4198_v46  ;;  %v4507_v31 = vsel %vm1719_vm4, %v4504_v61, %v4506_v56 }
 0x31c   :  { %v13495_v45 = vpop.f32.mrf.mxu1  ;;  %14028 = vmatprep.mubr.msk.f32.mxu0 %vm16288_vm7, %v21833_v50  ;;  %14083 = vmatpush3.msra.mxu1 %v4759_v37 }
 0x31d   :  { %v13605_v21 = vpop.f32.mrf.mxu0  ;;  %14266 = vmatprep.subr.mxu1 %v21833_v50 }
 0x31e   :  { %v3309_v28 = vpop.f32.mrf.mxu1  ;;  %13919 = vmatmul.mubr.f32.gmra.mxu1 %v4197_v39  ;;  %v4508_v21 = vrot.slane %v18446_v15, 5  ;;  %v4201_v39 = vsel %vm1385_vm3, %v4198_v46, %v4200_v47 }
 0x31f   :  { %v18937_v24 = vadd.f32 %v3499_v12, %v3309_v28  ;;  %v3504_v13 = vpop.f32.mrf.mxu0  ;;  %14029 = vmatmul.mubr.f32.gmra.mxu0 %v4505_v7  ;;  %13921 = vmatprep.mubr.msk.f32.mxu1 %vm16288_vm7, %v21833_v50  ;;  %v4510_v7 = vrot.slane %v18454_v8, 5 }
 0x320   :  { %v13498_v14 = vpop.f32.mrf.mxu1  ;;  %14031 = vmatprep.mubr.msk.f32.mxu0 %vm16288_vm7, %v21833_v50  ;;  %v4509_v61 = vsel %vm1719_vm4, %v4506_v56, %v4508_v21  ;;  %v4204_v56 = vrot.slane %v18454_v8, 4 }
 0x321   :  { %v13608_v53 = vpop.f32.mrf.mxu0 }
 0x322   :  { %v3314_v37 = vpop.f32.mrf.mxu1  ;;  %13922 = vmatmul.mubr.f32.gmra.mxu1 %v4199_v27  ;;  %v4202_v53 = vrot.slane %v18446_v15, 4 }
 0x323   :  { %v18947_v3 = vadd.f32 %v3504_v13, %v3314_v37  ;;  %v3509_v12 = vpop.f32.mrf.mxu0  ;;  %14032 = vmatmul.mubr.f32.gmra.mxu0 %v4507_v31  ;;  %13924 = vmatprep.mubr.msk.f32.mxu1 %vm16288_vm7, %v21833_v50 }
 0x324   :  { %v13501_v45 = vpop.f32.mrf.mxu1  ;;  %14034 = vmatprep.mubr.msk.f32.mxu0 %vm16288_vm7, %v21833_v50  ;;  %v4203_v37 = vsel %vm1385_vm3, %v4200_v47, %v4202_v53 }
 0x325   :  { %v13611_v18 = vpop.f32.mrf.mxu0 }
 0x326   :  { %v3319_v28 = vpop.f32.mrf.mxu1  ;;  %13925 = vmatmul.mubr.f32.gmra.mxu1 %v4201_v39 }
 0x327   :  { %v18957_v13 = vadd.f32 %v3509_v12, %v3319_v28  ;;  %v3514_v14 = vpop.f32.mrf.mxu0  ;;  %14035 = vmatmul.mubr.f32.gmra.mxu0 %v4509_v61  ;;  %13927 = vmatprep.mubr.msk.f32.mxu1 %vm16288_vm7, %v21833_v50  ;;  %v4511_v12 = vsel %vm1719_vm4, %v4508_v21, %v4510_v7  ;;  %v4512_v28 = vrot.slane %v18466_v58, 5  ;;  %v4205_v61 = vsel %vm1385_vm3, %v4202_v53, %v4204_v56 }
 0x328   :  { %v13504_v27 = vpop.f32.mrf.mxu1  ;;  %14037 = vmatprep.mubr.msk.f32.mxu0 %vm16288_vm7, %v21833_v50 }
 0x329   :  { %v13614_v46 = vpop.f32.mrf.mxu0  ;;  %v4513_v21 = vsel %vm1719_vm4, %v4510_v7, %v4512_v28  ;;  %v4208_v7 = vrot.slane %v18474_v54, 4 }
 0x32a   :  { %v3324_v31 = vpop.f32.mrf.mxu1  ;;  %13928 = vmatmul.mubr.f32.gmra.mxu1 %v4203_v37 }
 0x32b   :  { %v18967_v45 = vadd.f32 %v3514_v14, %v3324_v31  ;;  %v3519_v18 = vpop.f32.mrf.mxu0  ;;  %14038 = vmatmul.mubr.f32.gmra.mxu0 %v4511_v12  ;;  %13930 = vmatprep.mubr.msk.f32.mxu1 %vm16288_vm7, %v21833_v50  ;;  %v4514_v14 = vrot.slane %v18474_v54, 5  ;;  %v4206_v31 = vrot.slane %v18466_v58, 4 }
 0x32c   :  { %v13507_v39 = vpop.f32.mrf.mxu1  ;;  %14040 = vmatprep.mubr.msk.f32.mxu0 %vm16288_vm7, %v21833_v50 }
 0x32d   :  { %v13617_v47 = vpop.f32.mrf.mxu0  ;;  %v4207_v39 = vsel %vm1385_vm3, %v4204_v56, %v4206_v31 }
 0x32e   :  { %v3329_v27 = vpop.f32.mrf.mxu1  ;;  %13931 = vmatmul.mubr.f32.gmra.mxu1 %v4205_v61 }
 0x32f   :  { %v18977_v46 = vadd.f32 %v3519_v18, %v3329_v27  ;;  %v3524_v37 = vpop.f32.mrf.mxu0  ;;  %14041 = vmatmul.mubr.f32.gmra.mxu0 %v4513_v21  ;;  %13933 = vmatprep.mubr.msk.f32.mxu1 %vm16288_vm7, %v21833_v50  ;;  %v4515_v18 = vsel %vm1719_vm4, %v4512_v28, %v4514_v14 }
 0x330   :  { %v13510_v12 = vpop.f32.mrf.mxu1  ;;  %14043 = vmatprep.mubr.msk.f32.mxu0 %vm16288_vm7, %v21833_v50 }
 0x331   :  { %v13620_v53 = vpop.f32.mrf.mxu0  ;;  %v4516_v12 = vrot.slane %v18705_v26, 5 }
 0x332   :  { %v3334_v47 = vpop.f32.mrf.mxu1  ;;  %13934 = vmatmul.mubr.f32.gmra.mxu1 %v4207_v39  ;;  %v4209_v53 = vsel %vm1385_vm3, %v4206_v31, %v4208_v7 }
 0x333   :  { %v18987_v61 = vadd.f32 %v3524_v37, %v3334_v47  ;;  %v3529_v27 = vpop.f32.mrf.mxu0  ;;  %14044 = vmatmul.mubr.f32.gmra.mxu0 %v4515_v18  ;;  %13936 = vmatprep.mubr.msk.f32.mxu1 %vm16288_vm7, %v21833_v50  ;;  %v4517_v28 = vsel %vm1719_vm4, %v4514_v14, %v4516_v12  ;;  %v4210_v47 = vrot.slane %v18705_v26, 4  ;;  %v5083_v14 = vrot.slane %v18077_v32, 7 }
 0x334   :  { %v13513_v21 = vpop.f32.mrf.mxu1  ;;  %14046 = vmatprep.mubr.msk.f32.mxu0 %vm16288_vm7, %v21833_v50 }
 0x335   :  { %v13623_v56 = vpop.f32.mrf.mxu0  ;;  %v4211_v31 = vsel %vm1385_vm3, %v4208_v7, %v4210_v47  ;;  %v4776_v7 = vrot.slane %v18077_v32, 6  ;;  %v5390_v32 = vld [vmem:[#allocation2 + $0x478] sm:$0xff] }
 0x336   :  { %v3339_v35 = vpop.f32.mrf.mxu1  ;;  %13937 = vmatmul.mubr.f32.gmra.mxu1 %v4209_v53 }
 0x337   :  { %v18996_v37 = vadd.f32 %v3529_v27, %v3339_v35  ;;  %v3997_v39 = vpop.f32.mrf.mxu0  ;;  %14047 = vmatmul.mubr.f32.gmra.mxu0 %v4517_v28  ;;  %13939 = vmatprep.mubr.msk.f32.mxu1 %vm16288_vm7, %v21833_v50  ;;  %v5084_v28 = vrot.slane %v18088_v20, 7 }
 0x338   :  { %v13516_v18 = vpop.f32.mrf.mxu1  ;;  %14049 = vmatprep.mubr.msk.f32.mxu0 %vm16288_vm7, %v21833_v50 }
 0x339   :  { %21903 = vst [vmem:[#allocation19_spill] sm:$0xff] %v18996_v37  ;;  %v13765_v21 = vpop.f32.mrf.mxu0 }
 0x33a   :  { %v3690_v56 = vpop.f32.mrf.mxu1  ;;  %13940 = vmatmul.mubr.f32.gmra.mxu1 %v4211_v31 }
 0x33b   :  { %v3814_v35 = vadd.f32 %v3690_v56, %v18726_v62  ;;  %v4002_v27 = vpop.f32.mrf.mxu0  ;;  %14050 = vmatmul.mubr.f32.gmra.mxu0 %v4516_v12  ;;  %13942 = vmatprep.mubr.msk.f32.mxu1 %vm16288_vm7, %v21833_v50  ;;  %v5085_v62 = vsel %vm2389_vm6, %v5083_v14, %v5084_v28  ;;  %v5086_v12 = vrot.slane %v18104_v25, 7  ;;  %v4779_v14 = vrot.slane %v18104_v25, 6 }
 0x33c   :  { %v13658_v53 = vpop.f32.mrf.mxu1  ;;  %14191 = vmatprep.mubr.msk.f32.mxu0 %vm16288_vm7, %v21833_v50 }
 0x33d   :  { %v13768_v18 = vpop.f32.mrf.mxu0  ;;  %v19012_v21 = vadd.f32 %v3997_v39, %v3814_v35  ;;  %v4777_v53 = vrot.slane %v18088_v20, 6 }
 0x33e   :  { %v3695_v31 = vpop.f32.mrf.mxu1  ;;  %13943 = vmatmul.mubr.f32.gmra.mxu1 %v4210_v47 }
 0x33f   :  { %21904 = vst [vmem:[#allocation53_spill] sm:$0xff] %v19012_v21  ;;  %v3815_v56 = vadd.f32 %v3695_v31, %v18735_v57  ;;  %v4007_v37 = vpop.f32.mrf.mxu0  ;;  %14192 = vmatmul.mubr.f32.vlgmr.msra.gmra.mxu0 %v5085_v62  ;;  %14084 = vmatprep.mubr.msk.f32.mxu1 %vm16288_vm7, %v21833_v50  ;;  %v4778_v47 = vsel %vm2054_vm5, %v4776_v7, %v4777_v53  ;;  %v5088_v7 = vrot.slane %v18141_v40, 7 }
 0x340   :  { %v13661_v18 = vpop.f32.mrf.mxu1  ;;  %14194 = vmatprep.mubr.msk.f32.mxu0 %vm16288_vm7, %v21833_v50  ;;  %v5087_v31 = vsel %vm2389_vm6, %v5084_v28, %v5086_v12  ;;  %v5389_v28 = vld [vmem:[#allocation2 + $0x470] sm:$0xff] }
 0x341   :  { %v13771_v39 = vpop.f32.mrf.mxu0  ;;  %v19024_v35 = vadd.f32 %v4002_v27, %v3815_v56  ;;  %v4780_v56 = vsel %vm2054_vm5, %v4777_v53, %v4779_v14  ;;  %v4781_v53 = vrot.slane %v18141_v40, 6 }
 0x342   :  { %v3700_v57 = vpop.f32.mrf.mxu1  ;;  %14085 = vmatmul.mubr.f32.vlgmr.msra.gmra.mxu1 %v4778_v47  ;;  %v5090_v47 = vrot.slane %v18152_v30, 7 }
 0x343   :  { %v3816_v62 = vadd.f32 %v3700_v57, %v18747_v16  ;;  %v4012_v21 = vpop.f32.mrf.mxu0  ;;  %14195 = vmatmul.mubr.f32.gmra.mxu0 %v5087_v31  ;;  %14267 = vmatpush3.msra.mxu1 %v5390_v32  ;;  %v5089_v32 = vsel %vm2389_vm6, %v5086_v12, %v5088_v7  ;;  %v4783_v12 = vrot.slane %v18152_v30, 6 }
 0x344   :  { %v13664_v18 = vpop.f32.mrf.mxu1  ;;  %14087 = vmatprep.mubr.msk.f32.mxu1 %vm16288_vm7, %v21833_v50  ;;  %14197 = vmatprep.mubr.msk.f32.mxu0 %vm16288_vm7, %v21833_v50 }
 0x345   :  { %v13774_v27 = vpop.f32.mrf.mxu0  ;;  %14268 = vmatprep.subr.mxu1 %v21833_v50  ;;  %v19035_v39 = vadd.f32 %v4007_v37, %v3816_v62  ;;  %v4782_v62 = vsel %vm2054_vm5, %v4779_v14, %v4781_v53  ;;  %v5092_v14 = vrot.slane %v18195_v44, 7 }
 0x346   :  { %v3705_v16 = vpop.f32.mrf.mxu1  ;;  %14088 = vmatmul.mubr.f32.gmra.mxu1 %v4780_v56 }
 0x347   :  { %v3817_v57 = vadd.f32 %v3705_v16, %v18759_v5  ;;  %v4017_v31 = vpop.f32.mrf.mxu0  ;;  %14198 = vmatmul.mubr.f32.gmra.mxu0 %v5089_v32  ;;  %14090 = vmatprep.mubr.msk.f32.mxu1 %vm16288_vm7, %v21833_v50  ;;  %v5388_v5 = vld [vmem:[#allocation2 + $0x468] sm:$0xff]  ;;  %v5091_v16 = vsel %vm2389_vm6, %v5088_v7, %v5090_v47  ;;  %v5387_v7 = vld [vmem:[#allocation2 + $0x460] sm:$0xff] }
 0x348   :  { %v13667_v18 = vpop.f32.mrf.mxu1  ;;  %14200 = vmatprep.mubr.msk.f32.mxu0 %vm16288_vm7, %v21833_v50  ;;  %14269 = vmatpush3.msra.mxu1 %v5389_v28 }
 0x349   :  { %v13777_v37 = vpop.f32.mrf.mxu0  ;;  %14270 = vmatprep.subr.mxu1 %v21833_v50  ;;  %v19048_v27 = vadd.f32 %v4012_v21, %v3817_v57  ;;  %v4784_v57 = vsel %vm2054_vm5, %v4781_v53, %v4783_v12  ;;  %v4785_v53 = vrot.slane %v18195_v44, 6 }
 0x34a   :  { %v3710_v56 = vpop.f32.mrf.mxu1  ;;  %14091 = vmatmul.mubr.f32.gmra.mxu1 %v4782_v62  ;;  %v5093_v62 = vsel %vm2389_vm6, %v5090_v47, %v5092_v14  ;;  %v4787_v47 = vrot.slane %v18211_v17, 6 }
 0x34b   :  { %v3818_v32 = vadd.f32 %v3710_v56, %v18771_v11  ;;  %v4022_v18 = vpop.f32.mrf.mxu0  ;;  %14201 = vmatmul.mubr.f32.gmra.mxu0 %v5091_v16  ;;  %14093 = vmatprep.mubr.msk.f32.mxu1 %vm16288_vm7, %v21833_v50  ;;  %v5094_v56 = vrot.slane %v18211_v17, 7 }
 0x34c   :  { %v13670_v28 = vpop.f32.mrf.mxu1  ;;  %14203 = vmatprep.mubr.msk.f32.mxu0 %vm16288_vm7, %v21833_v50  ;;  %14271 = vmatpush3.msra.mxu1 %v5388_v5 }
 0x34d   :  { %v13780_v21 = vpop.f32.mrf.mxu0  ;;  %14272 = vmatprep.subr.mxu1 %v21833_v50  ;;  %v19059_v37 = vadd.f32 %v4017_v31, %v3818_v32  ;;  %v4786_v32 = vsel %vm2054_vm5, %v4783_v12, %v4785_v53  ;;  %v5096_v12 = vrot.slane %v18244_v41, 7 }
 0x34e   :  { %v3715_v11 = vpop.f32.mrf.mxu1  ;;  %14094 = vmatmul.mubr.f32.gmra.mxu1 %v4784_v57 }
 0x34f   :  { %v3819_v16 = vadd.f32 %v3715_v11, %v18783_v4  ;;  %v4027_v28 = vpop.f32.mrf.mxu0  ;;  %14204 = vmatmul.mubr.f32.gmra.mxu0 %v5093_v62  ;;  %14096 = vmatprep.mubr.msk.f32.mxu1 %vm16288_vm7, %v21833_v50  ;;  %v5386_v4 = vld [vmem:[#allocation2 + $0x458] sm:$0xff]  ;;  %v5095_v11 = vsel %vm2389_vm6, %v5092_v14, %v5094_v56  ;;  %v5385_v14 = vld [vmem:[#allocation2 + $0x450] sm:$0xff] }
 0x350   :  { %v13673_v5 = vpop.f32.mrf.mxu1  ;;  %14206 = vmatprep.mubr.msk.f32.mxu0 %vm16288_vm7, %v21833_v50  ;;  %14273 = vmatpush3.msra.mxu1 %v5387_v7 }
 0x351   :  { %v13783_v31 = vpop.f32.mrf.mxu0  ;;  %14274 = vmatprep.subr.mxu1 %v21833_v50  ;;  %v19072_v21 = vadd.f32 %v4022_v18, %v3819_v16  ;;  %v4788_v16 = vsel %vm2054_vm5, %v4785_v53, %v4787_v47  ;;  %v4789_v53 = vrot.slane %v18244_v41, 6 }
 0x352   :  { %v3720_v57 = vpop.f32.mrf.mxu1  ;;  %14097 = vmatmul.mubr.f32.gmra.mxu1 %v4786_v32  ;;  %v5097_v32 = vsel %vm2389_vm6, %v5094_v56, %v5096_v12  ;;  %v4791_v56 = vrot.slane %v18259_v19, 6 }
 0x353   :  { %v3820_v62 = vadd.f32 %v3720_v57, %v18795_v36  ;;  %v4032_v5 = vpop.f32.mrf.mxu0  ;;  %14207 = vmatmul.mubr.f32.gmra.mxu0 %v5095_v11  ;;  %14099 = vmatprep.mubr.msk.f32.mxu1 %vm16288_vm7, %v21833_v50  ;;  %v5098_v57 = vrot.slane %v18259_v19, 7 }
 0x354   :  { %v13676_v7 = vpop.f32.mrf.mxu1  ;;  %14209 = vmatprep.mubr.msk.f32.mxu0 %vm16288_vm7, %v21833_v50  ;;  %14275 = vmatpush3.msra.mxu1 %v5386_v4 }
 0x355   :  { %v13786_v18 = vpop.f32.mrf.mxu0  ;;  %14276 = vmatprep.subr.mxu1 %v21833_v50  ;;  %v19083_v31 = vadd.f32 %v4027_v28, %v3820_v62  ;;  %v4790_v62 = vsel %vm2054_vm5, %v4787_v47, %v4789_v53  ;;  %v5100_v47 = vrot.slane %v18296_v63, 7 }
 0x356   :  { %v3725_v36 = vpop.f32.mrf.mxu1  ;;  %14100 = vmatmul.mubr.f32.gmra.mxu1 %v4788_v16 }
 0x357   :  { %v3821_v11 = vadd.f32 %v3725_v36, %v18807_v9  ;;  %v4037_v7 = vpop.f32.mrf.mxu0  ;;  %14210 = vmatmul.mubr.f32.gmra.mxu0 %v5097_v32  ;;  %14102 = vmatprep.mubr.msk.f32.mxu1 %vm16288_vm7, %v21833_v50  ;;  %v5384_v9 = vld [vmem:[#allocation2 + $0x448] sm:$0xff]  ;;  %v5099_v36 = vsel %vm2389_vm6, %v5096_v12, %v5098_v57  ;;  %v5383_v12 = vld [vmem:[#allocation2 + $0x440] sm:$0xff] }
 0x358   :  { %v13679_v4 = vpop.f32.mrf.mxu1  ;;  %14212 = vmatprep.mubr.msk.f32.mxu0 %vm16288_vm7, %v21833_v50  ;;  %14277 = vmatpush3.msra.mxu1 %v5385_v14 }
 0x359   :  { %v13789_v28 = vpop.f32.mrf.mxu0  ;;  %14278 = vmatprep.subr.mxu1 %v21833_v50  ;;  %v19096_v18 = vadd.f32 %v4032_v5, %v3821_v11  ;;  %v4792_v11 = vsel %vm2054_vm5, %v4789_v53, %v4791_v56  ;;  %v4793_v53 = vrot.slane %v18296_v63, 6 }
 0x35a   :  { %v3730_v16 = vpop.f32.mrf.mxu1  ;;  %14103 = vmatmul.mubr.f32.gmra.mxu1 %v4790_v62  ;;  %v5101_v62 = vsel %vm2389_vm6, %v5098_v57, %v5100_v47  ;;  %v4795_v57 = vrot.slane %v18311_v29, 6 }
 0x35b   :  { %v3822_v32 = vadd.f32 %v3730_v16, %v18819_v42  ;;  %v4042_v4 = vpop.f32.mrf.mxu0  ;;  %14213 = vmatmul.mubr.f32.gmra.mxu0 %v5099_v36  ;;  %14105 = vmatprep.mubr.msk.f32.mxu1 %vm16288_vm7, %v21833_v50  ;;  %v5102_v16 = vrot.slane %v18311_v29, 7 }
 0x35c   :  { %v13682_v14 = vpop.f32.mrf.mxu1  ;;  %14215 = vmatprep.mubr.msk.f32.mxu0 %vm16288_vm7, %v21833_v50  ;;  %14279 = vmatpush3.msra.mxu1 %v5384_v9 }
 0x35d   :  { %v13792_v5 = vpop.f32.mrf.mxu0  ;;  %14280 = vmatprep.subr.mxu1 %v21833_v50  ;;  %v19107_v28 = vadd.f32 %v4037_v7, %v3822_v32  ;;  %v4794_v32 = vsel %vm2054_vm5, %v4791_v56, %v4793_v53  ;;  %v5104_v56 = vrot.slane %v18344_v55, 7 }
 0x35e   :  { %v3735_v42 = vpop.f32.mrf.mxu1  ;;  %14106 = vmatmul.mubr.f32.gmra.mxu1 %v4792_v11 }
 0x35f   :  { %v3823_v36 = vadd.f32 %v3735_v42, %v18831_v59  ;;  %v4047_v14 = vpop.f32.mrf.mxu0  ;;  %14216 = vmatmul.mubr.f32.gmra.mxu0 %v5101_v62  ;;  %14108 = vmatprep.mubr.msk.f32.mxu1 %vm16288_vm7, %v21833_v50  ;;  %v5382_v59 = vld [vmem:[#allocation2 + $0x438] sm:$0xff]  ;;  %v5103_v42 = vsel %vm2389_vm6, %v5100_v47, %v5102_v16  ;;  %v5381_v47 = vld [vmem:[#allocation2 + $0x430] sm:$0xff] }
 0x360   :  { %v13685_v9 = vpop.f32.mrf.mxu1  ;;  %14218 = vmatprep.mubr.msk.f32.mxu0 %vm16288_vm7, %v21833_v50  ;;  %14281 = vmatpush3.msra.mxu1 %v5383_v12 }
 0x361   :  { %v13795_v7 = vpop.f32.mrf.mxu0  ;;  %14282 = vmatprep.subr.mxu1 %v21833_v50  ;;  %v19120_v5 = vadd.f32 %v4042_v4, %v3823_v36  ;;  %v4796_v36 = vsel %vm2054_vm5, %v4793_v53, %v4795_v57  ;;  %v4797_v53 = vrot.slane %v18344_v55, 6 }
 0x362   :  { %v3740_v11 = vpop.f32.mrf.mxu1  ;;  %14109 = vmatmul.mubr.f32.gmra.mxu1 %v4794_v32  ;;  %v5105_v32 = vsel %vm2389_vm6, %v5102_v16, %v5104_v56  ;;  %v4799_v16 = vrot.slane %v18357_v49, 6 }
 0x363   :  { %v3824_v62 = vadd.f32 %v3740_v11, %v18843_v34  ;;  %v4052_v9 = vpop.f32.mrf.mxu0  ;;  %14219 = vmatmul.mubr.f32.gmra.mxu0 %v5103_v42  ;;  %14111 = vmatprep.mubr.msk.f32.mxu1 %vm16288_vm7, %v21833_v50  ;;  %v5106_v11 = vrot.slane %v18357_v49, 7 }
 0x364   :  { %v13688_v12 = vpop.f32.mrf.mxu1  ;;  %14221 = vmatprep.mubr.msk.f32.mxu0 %vm16288_vm7, %v21833_v50  ;;  %14283 = vmatpush3.msra.mxu1 %v5382_v59 }
 0x365   :  { %v13798_v4 = vpop.f32.mrf.mxu0  ;;  %14284 = vmatprep.subr.mxu1 %v21833_v50  ;;  %v19131_v7 = vadd.f32 %v4047_v14, %v3824_v62  ;;  %v4798_v62 = vsel %vm2054_vm5, %v4795_v57, %v4797_v53  ;;  %v5108_v57 = vrot.slane %v18380_v43, 7 }
 0x366   :  { %v3745_v34 = vpop.f32.mrf.mxu1  ;;  %14112 = vmatmul.mubr.f32.gmra.mxu1 %v4796_v36 }
 0x367   :  { %v3825_v42 = vadd.f32 %v3745_v34, %v18855_v38  ;;  %v4057_v12 = vpop.f32.mrf.mxu0  ;;  %14222 = vmatmul.mubr.f32.gmra.mxu0 %v5105_v32  ;;  %14114 = vmatprep.mubr.msk.f32.mxu1 %vm16288_vm7, %v21833_v50  ;;  %v5380_v38 = vld [vmem:[#allocation2 + $0x428] sm:$0xff]  ;;  %v5107_v34 = vsel %vm2389_vm6, %v5104_v56, %v5106_v11  ;;  %v5379_v56 = vld [vmem:[#allocation2 + $0x420] sm:$0xff] }
 0x368   :  { %v13691_v59 = vpop.f32.mrf.mxu1  ;;  %14224 = vmatprep.mubr.msk.f32.mxu0 %vm16288_vm7, %v21833_v50  ;;  %14285 = vmatpush3.msra.mxu1 %v5381_v47 }
 0x369   :  { %v13801_v14 = vpop.f32.mrf.mxu0  ;;  %14286 = vmatprep.subr.mxu1 %v21833_v50  ;;  %v19144_v4 = vadd.f32 %v4052_v9, %v3825_v42  ;;  %v4800_v42 = vsel %vm2054_vm5, %v4797_v53, %v4799_v16  ;;  %v4801_v53 = vrot.slane %v18380_v43, 6 }
 0x36a   :  { %v3750_v36 = vpop.f32.mrf.mxu1  ;;  %14115 = vmatmul.mubr.f32.gmra.mxu1 %v4798_v62  ;;  %v5109_v62 = vsel %vm2389_vm6, %v5106_v11, %v5108_v57  ;;  %v4803_v11 = vrot.slane %v18387_v23, 6 }
 0x36b   :  { %v3826_v32 = vadd.f32 %v3750_v36, %v18867_v22  ;;  %v4062_v59 = vpop.f32.mrf.mxu0  ;;  %14225 = vmatmul.mubr.f32.gmra.mxu0 %v5107_v34  ;;  %14117 = vmatprep.mubr.msk.f32.mxu1 %vm16288_vm7, %v21833_v50  ;;  %v5110_v36 = vrot.slane %v18387_v23, 7 }
 0x36c   :  { %v13694_v47 = vpop.f32.mrf.mxu1  ;;  %14227 = vmatprep.mubr.msk.f32.mxu0 %vm16288_vm7, %v21833_v50  ;;  %14287 = vmatpush3.msra.mxu1 %v5380_v38 }
 0x36d   :  { %v13804_v9 = vpop.f32.mrf.mxu0  ;;  %14288 = vmatprep.subr.mxu1 %v21833_v50  ;;  %v19155_v14 = vadd.f32 %v4057_v12, %v3826_v32  ;;  %v4802_v32 = vsel %vm2054_vm5, %v4799_v16, %v4801_v53  ;;  %v5112_v16 = vrot.slane %v18403_v33, 7 }
 0x36e   :  { %v3755_v22 = vpop.f32.mrf.mxu1  ;;  %14118 = vmatmul.mubr.f32.gmra.mxu1 %v4800_v42 }
 0x36f   :  { %v3827_v34 = vadd.f32 %v3755_v22, %v18879_v51  ;;  %v4067_v47 = vpop.f32.mrf.mxu0  ;;  %14228 = vmatmul.mubr.f32.gmra.mxu0 %v5109_v62  ;;  %14120 = vmatprep.mubr.msk.f32.mxu1 %vm16288_vm7, %v21833_v50  ;;  %v5378_v51 = vld [vmem:[#allocation2 + $0x418] sm:$0xff]  ;;  %v5111_v22 = vsel %vm2389_vm6, %v5108_v57, %v5110_v36  ;;  %v5377_v57 = vld [vmem:[#allocation2 + $0x410] sm:$0xff] }
 0x370   :  { %v13697_v38 = vpop.f32.mrf.mxu1  ;;  %14230 = vmatprep.mubr.msk.f32.mxu0 %vm16288_vm7, %v21833_v50  ;;  %14289 = vmatpush3.msra.mxu1 %v5379_v56 }
 0x371   :  { %v13807_v12 = vpop.f32.mrf.mxu0  ;;  %14290 = vmatprep.subr.mxu1 %v21833_v50  ;;  %v19168_v9 = vadd.f32 %v4062_v59, %v3827_v34  ;;  %v4804_v34 = vsel %vm2054_vm5, %v4801_v53, %v4803_v11  ;;  %v4805_v53 = vrot.slane %v18403_v33, 6 }
 0x372   :  { %v3760_v42 = vpop.f32.mrf.mxu1  ;;  %14121 = vmatmul.mubr.f32.gmra.mxu1 %v4802_v32  ;;  %v5113_v32 = vsel %vm2389_vm6, %v5110_v36, %v5112_v16  ;;  %v4807_v36 = vrot.slane %v18411_v6, 6 }
 0x373   :  { %v3828_v62 = vadd.f32 %v3760_v42, %v18891_v60  ;;  %v4072_v38 = vpop.f32.mrf.mxu0  ;;  %14231 = vmatmul.mubr.f32.gmra.mxu0 %v5111_v22  ;;  %14123 = vmatprep.mubr.msk.f32.mxu1 %vm16288_vm7, %v21833_v50  ;;  %v5114_v42 = vrot.slane %v18411_v6, 7 }
 0x374   :  { %v13700_v56 = vpop.f32.mrf.mxu1  ;;  %14233 = vmatprep.mubr.msk.f32.mxu0 %vm16288_vm7, %v21833_v50  ;;  %14291 = vmatpush3.msra.mxu1 %v5378_v51 }
 0x375   :  { %v13810_v59 = vpop.f32.mrf.mxu0  ;;  %14292 = vmatprep.subr.mxu1 %v21833_v50  ;;  %v19179_v12 = vadd.f32 %v4067_v47, %v3828_v62  ;;  %v4806_v62 = vsel %vm2054_vm5, %v4803_v11, %v4805_v53  ;;  %v5116_v11 = vrot.slane %v18426_v2, 7 }
 0x376   :  { %v3765_v60 = vpop.f32.mrf.mxu1  ;;  %14124 = vmatmul.mubr.f32.gmra.mxu1 %v4804_v34 }
 0x377   :  { %v3829_v22 = vadd.f32 %v3765_v60, %v18903_v10  ;;  %v4077_v56 = vpop.f32.mrf.mxu0  ;;  %14234 = vmatmul.mubr.f32.gmra.mxu0 %v5113_v32  ;;  %14126 = vmatprep.mubr.msk.f32.mxu1 %vm16288_vm7, %v21833_v50  ;;  %v5376_v10 = vld [vmem:[#allocation2 + $0x408] sm:$0xff]  ;;  %v5115_v60 = vsel %vm2389_vm6, %v5112_v16, %v5114_v42  ;;  %v5375_v16 = vld [vmem:[#allocation2 + $0x400] sm:$0xff] }
 0x378   :  { %v13703_v51 = vpop.f32.mrf.mxu1  ;;  %14236 = vmatprep.mubr.msk.f32.mxu0 %vm16288_vm7, %v21833_v50  ;;  %14293 = vmatpush3.msra.mxu1 %v5377_v57 }
 0x379   :  { %v13813_v47 = vpop.f32.mrf.mxu0  ;;  %14294 = vmatprep.subr.mxu1 %v21833_v50  ;;  %v19192_v59 = vadd.f32 %v4072_v38, %v3829_v22  ;;  %v4808_v22 = vsel %vm2054_vm5, %v4805_v53, %v4807_v36  ;;  %v4809_v53 = vrot.slane %v18426_v2, 6 }
 0x37a   :  { %v3770_v34 = vpop.f32.mrf.mxu1  ;;  %14127 = vmatmul.mubr.f32.gmra.mxu1 %v4806_v62  ;;  %v5117_v62 = vsel %vm2389_vm6, %v5114_v42, %v5116_v11  ;;  %v4811_v42 = vrot.slane %v18434_v0, 6 }
 0x37b   :  { %v3830_v32 = vadd.f32 %v3770_v34, %v18915_v52  ;;  %v4082_v51 = vpop.f32.mrf.mxu0  ;;  %14237 = vmatmul.mubr.f32.gmra.mxu0 %v5115_v60  ;;  %14129 = vmatprep.mubr.msk.f32.mxu1 %vm16288_vm7, %v21833_v50  ;;  %v5118_v34 = vrot.slane %v18434_v0, 7 }
 0x37c   :  { %v13706_v57 = vpop.f32.mrf.mxu1  ;;  %14239 = vmatprep.mubr.msk.f32.mxu0 %vm16288_vm7, %v21833_v50  ;;  %14295 = vmatpush3.msra.mxu1 %v5376_v10 }
 0x37d   :  { %v13816_v38 = vpop.f32.mrf.mxu0  ;;  %14296 = vmatprep.subr.mxu1 %v21833_v50  ;;  %v19203_v47 = vadd.f32 %v4077_v56, %v3830_v32  ;;  %v4810_v32 = vsel %vm2054_vm5, %v4807_v36, %v4809_v53  ;;  %v5120_v36 = vrot.slane %v18446_v15, 7 }
 0x37e   :  { %v3775_v52 = vpop.f32.mrf.mxu1  ;;  %14130 = vmatmul.mubr.f32.gmra.mxu1 %v4808_v22  ;;  %v5119_v22 = vsel %vm2389_vm6, %v5116_v11, %v5118_v34  ;;  %v5122_v11 = vrot.slane %v18454_v8, 7 }
 0x37f   :  { %v3831_v60 = vadd.f32 %v3775_v52, %v18926_v48  ;;  %v4087_v57 = vpop.f32.mrf.mxu0  ;;  %14240 = vmatmul.mubr.f32.gmra.mxu0 %v5117_v62  ;;  %14132 = vmatprep.mubr.msk.f32.mxu1 %vm16288_vm7, %v21833_v50 }
 0x380   :  { %v13709_v10 = vpop.f32.mrf.mxu1  ;;  %14242 = vmatprep.mubr.msk.f32.mxu0 %vm16288_vm7, %v21833_v50  ;;  %14297 = vmatpush3.msra.mxu1 %v5375_v16 }
 0x381   :  { %v13819_v56 = vpop.f32.mrf.mxu0  ;;  %v19215_v38 = vadd.f32 %v4082_v51, %v3831_v60  ;;  %v4812_v51 = vsel %vm2054_vm5, %v4809_v53, %v4811_v42 }
 0x382   :  { %v3780_v48 = vpop.f32.mrf.mxu1  ;;  %14133 = vmatmul.mubr.f32.gmra.mxu1 %v4810_v32 }
 0x383   :  { %v3832_v52 = vadd.f32 %v3780_v48, %v18937_v24  ;;  %v4092_v62 = vpop.f32.mrf.mxu0  ;;  %14243 = vmatmul.mubr.f32.gmra.mxu0 %v5119_v22  ;;  %14135 = vmatprep.mubr.msk.f32.mxu1 %vm16288_vm7, %v21833_v50  ;;  %v5121_v24 = vsel %vm2389_vm6, %v5118_v34, %v5120_v36  ;;  %v4813_v22 = vrot.slane %v18446_v15, 6  ;;  %v4815_v34 = vrot.slane %v18454_v8, 6 }
 0x384   :  { %v13712_v10 = vpop.f32.mrf.mxu1  ;;  %14245 = vmatprep.mubr.msk.f32.mxu0 %vm16288_vm7, %v21833_v50 }
 0x385   :  { %v13822_v16 = vpop.f32.mrf.mxu0  ;;  %v19225_v60 = vadd.f32 %v4087_v57, %v3832_v52  ;;  %v4814_v53 = vsel %vm2054_vm5, %v4811_v42, %v4813_v22  ;;  %v5124_v42 = vrot.slane %v18466_v58, 7 }
 0x386   :  { %v3785_v56 = vpop.f32.mrf.mxu1  ;;  %14136 = vmatmul.mubr.f32.gmra.mxu1 %v4812_v51 }
 0x387   :  { %v3833_v32 = vadd.f32 %v3785_v56, %v18947_v3  ;;  %v4097_v48 = vpop.f32.mrf.mxu0  ;;  %14246 = vmatmul.mubr.f32.gmra.mxu0 %v5121_v24  ;;  %14138 = vmatprep.mubr.msk.f32.mxu1 %vm16288_vm7, %v21833_v50  ;;  %v5123_v3 = vsel %vm2389_vm6, %v5120_v36, %v5122_v11  ;;  %v5126_v36 = vrot.slane %v18474_v54, 7 }
 0x388   :  { %v13715_v10 = vpop.f32.mrf.mxu1  ;;  %14248 = vmatprep.mubr.msk.f32.mxu0 %vm16288_vm7, %v21833_v50 }
 0x389   :  { %v13825_v57 = vpop.f32.mrf.mxu0  ;;  %v19237_v52 = vadd.f32 %v4092_v62, %v3833_v32  ;;  %v4816_v62 = vsel %vm2054_vm5, %v4813_v22, %v4815_v34 }
 0x38a   :  { %v3790_v16 = vpop.f32.mrf.mxu1  ;;  %14139 = vmatmul.mubr.f32.gmra.mxu1 %v4814_v53 }
 0x38b   :  { %v3834_v51 = vadd.f32 %v3790_v16, %v18957_v13  ;;  %v4102_v56 = vpop.f32.mrf.mxu0  ;;  %14249 = vmatmul.mubr.f32.gmra.mxu0 %v5123_v3  ;;  %14141 = vmatprep.mubr.msk.f32.mxu1 %vm16288_vm7, %v21833_v50  ;;  %v5125_v13 = vsel %vm2389_vm6, %v5122_v11, %v5124_v42  ;;  %v4817_v3 = vrot.slane %v18466_v58, 6  ;;  %v4819_v11 = vrot.slane %v18474_v54, 6 }
 0x38c   :  { %v13718_v24 = vpop.f32.mrf.mxu1  ;;  %14251 = vmatprep.mubr.msk.f32.mxu0 %vm16288_vm7, %v21833_v50 }
 0x38d   :  { %v13828_v10 = vpop.f32.mrf.mxu0  ;;  %v19247_v32 = vadd.f32 %v4097_v48, %v3834_v51  ;;  %v4818_v22 = vsel %vm2054_vm5, %v4815_v34, %v4817_v3  ;;  %v5128_v34 = vrot.slane %v18705_v26, 7 }
 0x38e   :  { %v3795_v57 = vpop.f32.mrf.mxu1  ;;  %14142 = vmatmul.mubr.f32.gmra.mxu1 %v4816_v62  ;;  %v5127_v62 = vsel %vm2389_vm6, %v5124_v42, %v5126_v36 }
 0x38f   :  { %v3835_v53 = vadd.f32 %v3795_v57, %v18967_v45  ;;  %v4107_v16 = vpop.f32.mrf.mxu0  ;;  %14252 = vmatmul.mubr.f32.gmra.mxu0 %v5125_v13  ;;  %14144 = vmatprep.mubr.msk.f32.mxu1 %vm16288_vm7, %v21833_v50  ;;  %v19262_v45 = vmax.f32 %v18367_v1, 0.0  ;;  %v4820_v1 = vsel %vm2054_vm5, %v4817_v3, %v4819_v11 }
 0x390   :  { %v13721_v24 = vpop.f32.mrf.mxu1  ;;  %14254 = vmatprep.mubr.msk.f32.mxu0 %vm16288_vm7, %v21833_v50 }
 0x391   :  { %v13831_v48 = vpop.f32.mrf.mxu0  ;;  %v19259_v51 = vadd.f32 %v4102_v56, %v3835_v53  ;;  %v5130_v42 = vrot.slane %v19262_v45, 7 }
 0x392   :  { %v3800_v10 = vpop.f32.mrf.mxu1  ;;  %14145 = vmatmul.mubr.f32.gmra.mxu1 %v4818_v22 }
 0x393   :  { %v3836_v57 = vadd.f32 %v3800_v10, %v18977_v46  ;;  %v4112_v13 = vpop.f32.mrf.mxu0  ;;  %14255 = vmatmul.mubr.f32.gmra.mxu0 %v5127_v62  ;;  %14147 = vmatprep.mubr.msk.f32.mxu1 %vm16288_vm7, %v21833_v50  ;;  %v5129_v46 = vsel %vm2389_vm6, %v5126_v36, %v5128_v34  ;;  %v4821_v62 = vrot.slane %v18705_v26, 6 }
 0x394   :  { %v13724_v24 = vpop.f32.mrf.mxu1  ;;  %14257 = vmatprep.mubr.msk.f32.mxu0 %vm16288_vm7, %v21833_v50 }
 0x395   :  { %v13834_v56 = vpop.f32.mrf.mxu0  ;;  %v19272_v53 = vadd.f32 %v4107_v16, %v3836_v57  ;;  %v21905_v24 = vld [vmem:[#allocation16_spill] sm:$0xff]  ;;  %v4822_v36 = vsel %vm2054_vm5, %v4819_v11, %v4821_v62  ;;  %v4823_v57 = vrot.slane %v19262_v45, 6 }
 0x396   :  { %v3805_v48 = vpop.f32.mrf.mxu1  ;;  %14148 = vmatmul.mubr.f32.gmra.mxu1 %v4820_v1  ;;  %v21734_v56 = vmax.f32 %v21905_v24, 0.0 }
 0x397   :  { %v3837_v22 = vadd.f32 %v3805_v48, %v18987_v61  ;;  %v4117_v10 = vpop.f32.mrf.mxu0  ;;  %14258 = vmatmul.mubr.f32.gmra.mxu0 %v5129_v46  ;;  %14150 = vmatprep.mubr.msk.f32.mxu1 %vm16288_vm7, %v21833_v50  ;;  %v5131_v48 = vsel %vm2389_vm6, %v5128_v34, %v5130_v42  ;;  %v21906_v46 = vld [vmem:[#allocation19_spill] sm:$0xff] }
 0x398   :  { %v13727_v3 = vpop.f32.mrf.mxu1  ;;  %14260 = vmatprep.mubr.msk.f32.mxu0 %vm16288_vm7, %v21833_v50 }
 0x399   :  { %v13837_v16 = vpop.f32.mrf.mxu0  ;;  %v19285_v1 = vadd.f32 %v4112_v13, %v3837_v22  ;;  %v5132_v3 = vrot.slane %v21734_v56, 7  ;;  %v4824_v13 = vsel %vm2054_vm5, %v4821_v62, %v4823_v57 }
 0x39a   :  { %v3810_v61 = vpop.f32.mrf.mxu1  ;;  %14151 = vmatmul.mubr.f32.gmra.mxu1 %v4822_v36 }
 0x39b   :  { %v3838_v54 = vadd.f32 %v3810_v61, %v21906_v46  ;;  %v4609_v26 = vpop.f32.mrf.mxu0  ;;  %14261 = vmatmul.mubr.f32.gmra.mxu0 %v5131_v48  ;;  %14153 = vmatprep.mubr.msk.f32.mxu1 %vm16288_vm7, %v21833_v50  ;;  %v5133_v36 = vsel %vm2389_vm6, %v5130_v42, %v5132_v3  ;;  %v21907_v61 = vld [vmem:[#allocation53_spill] sm:$0xff] }
 0x39c   :  { %v13730_v16 = vpop.f32.mrf.mxu1  ;;  %14263 = vmatprep.mubr.msk.f32.mxu0 %vm16288_vm7, %v21833_v50 }
 0x39d   :  { %v13979_v11 = vpop.f32.mrf.mxu0  ;;  %v19296_v22 = vadd.f32 %v4117_v10, %v3838_v54 }
 0x39e   :  { %v4303_v34 = vpop.f32.mrf.mxu1  ;;  %14154 = vmatmul.mubr.f32.gmra.mxu1 %v4824_v13 }
 0x39f   :  { %v4427_v48 = vadd.f32 %v4303_v34, %v21907_v61  ;;  %v4614_v46 = vpop.f32.mrf.mxu0  ;;  %14264 = vmatmul.mubr.f32.gmra.mxu0 %v5133_v36  ;;  %14156 = vmatprep.mubr.msk.f32.mxu1 %vm16288_vm7, %v21833_v50 }
 0x3a0   :  { %v13872_v16 = vpop.f32.mrf.mxu1 }
 0x3a1   :  { %v13982_v56 = vpop.f32.mrf.mxu0  ;;  %v19302_v24 = vadd.f32 %v4609_v26, %v4427_v48 }
 0x3a2   :  { %v4308_v11 = vpop.f32.mrf.mxu1  ;;  %14157 = vmatmul.mubr.f32.gmra.mxu1 %v4823_v57 }
 0x3a3   :  { %v4428_v54 = vadd.f32 %v4308_v11, %v19024_v35  ;;  %v4619_v10 = vpop.f32.mrf.mxu0  ;;  %14298 = vmatprep.mubr.msk.f32.mxu1 %vm16288_vm7, %v21833_v50 }
 0x3a4   :  { %v13875_v42 = vpop.f32.mrf.mxu1 }
 0x3a5   :  { %v13985_v62 = vpop.f32.mrf.mxu0  ;;  %v19307_v3 = vadd.f32 %v4614_v46, %v4428_v54 }
 0x3a6   :  { %v4313_v13 = vpop.f32.mrf.mxu1  ;;  %14299 = vmatmul.mubr.f32.vlgmr.msra.gmra.mxu1 %v18088_v20 }
 0x3a7   :  { %v4429_v34 = vadd.f32 %v4313_v13, %v19035_v39  ;;  %v4624_v56 = vpop.f32.mrf.mxu0  ;;  %14301 = vmatprep.mubr.msk.f32.mxu1 %vm16288_vm7, %v21833_v50 }
 0x3a8   :  { %v13878_v26 = vpop.f32.mrf.mxu1 }
 0x3a9   :  { %v13988_v57 = vpop.f32.mrf.mxu0  ;;  %v19313_v35 = vadd.f32 %v4619_v10, %v4429_v34 }
 0x3aa   :  { %v4318_v36 = vpop.f32.mrf.mxu1  ;;  %14302 = vmatmul.mubr.f32.gmra.mxu1 %v18104_v25 }
 0x3ab   :  { %v4430_v61 = vadd.f32 %v4318_v36, %v19048_v27  ;;  %v4629_v48 = vpop.f32.mrf.mxu0  ;;  %14304 = vmatprep.mubr.msk.f32.mxu1 %vm16288_vm7, %v21833_v50 }
 0x3ac   :  { %v13881_v20 = vpop.f32.mrf.mxu1 }
 0x3ad   :  { %v13991_v46 = vpop.f32.mrf.mxu0  ;;  %v19319_v39 = vadd.f32 %v4624_v56, %v4430_v61  ;;  %v5695_v61 = vld [vmem:[#allocation5 + $0xf8] sm:$0xff] }
 0x3ae   :  { %v4323_v16 = vpop.f32.mrf.mxu1  ;;  %14305 = vmatmul.mubr.f32.gmra.mxu1 %v18141_v40  ;;  %14373 = vmatprep.subr.mxu0 %v5695_v61 }
 0x3af   :  { %v4431_v11 = vadd.f32 %v4323_v16, %v19059_v37  ;;  %v4634_v54 = vpop.f32.mrf.mxu0  ;;  %14307 = vmatprep.mubr.msk.f32.mxu1 %vm16288_vm7, %v21833_v50  ;;  %14374 = vmatpush3.msra.mxu0 %v5695_v61 }
 0x3b0   :  { %v13884_v25 = vpop.f32.mrf.mxu1 }
 0x3b1   :  { %v13994_v10 = vpop.f32.mrf.mxu0  ;;  %v19325_v27 = vadd.f32 %v4629_v48, %v4431_v11 }
 0x3b2   :  { %v4328_v42 = vpop.f32.mrf.mxu1  ;;  %14308 = vmatmul.mubr.f32.gmra.mxu1 %v18152_v30 }
 0x3b3   :  { %v4432_v62 = vadd.f32 %v4328_v42, %v19072_v21  ;;  %v4639_v13 = vpop.f32.mrf.mxu0  ;;  %14310 = vmatprep.mubr.msk.f32.mxu1 %vm16288_vm7, %v21833_v50 }
 0x3b4   :  { %v13887_v40 = vpop.f32.mrf.mxu1 }
 0x3b5   :  { %v13997_v34 = vpop.f32.mrf.mxu0  ;;  %v19331_v37 = vadd.f32 %v4634_v54, %v4432_v62 }
 0x3b6   :  { %v4333_v56 = vpop.f32.mrf.mxu1  ;;  %14311 = vmatmul.mubr.f32.gmra.mxu1 %v18195_v44 }
 0x3b7   :  { %v4433_v26 = vadd.f32 %v4333_v56, %v19083_v31  ;;  %v4644_v57 = vpop.f32.mrf.mxu0  ;;  %14313 = vmatprep.mubr.msk.f32.mxu1 %vm16288_vm7, %v21833_v50 }
 0x3b8   :  { %v13890_v30 = vpop.f32.mrf.mxu1 }
 0x3b9   :  { %v14000_v36 = vpop.f32.mrf.mxu0  ;;  %v19337_v21 = vadd.f32 %v4639_v13, %v4433_v26 }
 0x3ba   :  { %v4338_v48 = vpop.f32.mrf.mxu1  ;;  %14314 = vmatmul.mubr.f32.gmra.mxu1 %v18211_v17 }
 0x3bb   :  { %v4434_v20 = vadd.f32 %v4338_v48, %v19096_v18  ;;  %v4649_v46 = vpop.f32.mrf.mxu0  ;;  %14316 = vmatprep.mubr.msk.f32.mxu1 %vm16288_vm7, %v21833_v50  ;;  %v5694_v18 = vld [vmem:[#allocation5 + $0xf0] sm:$0xff] }
 0x3bc   :  { %v13893_v44 = vpop.f32.mrf.mxu1  ;;  %14375 = vmatprep.subr.mxu0 %v5694_v18 }
 0x3bd   :  { %v14003_v31 = vpop.f32.mrf.mxu0  ;;  %v19343_v16 = vadd.f32 %v4644_v57, %v4434_v20  ;;  %14376 = vmatpush3.msra.mxu0 %v5694_v18 }
 0x3be   :  { %v4343_v11 = vpop.f32.mrf.mxu1  ;;  %14317 = vmatmul.mubr.f32.gmra.mxu1 %v18244_v41 }
 0x3bf   :  { %v4435_v54 = vadd.f32 %v4343_v11, %v19107_v28  ;;  %v4654_v25 = vpop.f32.mrf.mxu0  ;;  %14319 = vmatprep.mubr.msk.f32.mxu1 %vm16288_vm7, %v21833_v50 }
 0x3c0   :  { %v13896_v17 = vpop.f32.mrf.mxu1 }
 0x3c1   :  { %v14006_v10 = vpop.f32.mrf.mxu0  ;;  %v19349_v42 = vadd.f32 %v4649_v46, %v4435_v54 }
 0x3c2   :  { %v4348_v62 = vpop.f32.mrf.mxu1  ;;  %14320 = vmatmul.mubr.f32.gmra.mxu1 %v18259_v19  ;;  %v5693_v19 = vld [vmem:[#allocation5 + $0xe8] sm:$0xff] }
 0x3c3   :  { %v4436_v13 = vadd.f32 %v4348_v62, %v19120_v5  ;;  %v4659_v40 = vpop.f32.mrf.mxu0  ;;  %14322 = vmatprep.mubr.msk.f32.mxu1 %vm16288_vm7, %v21833_v50  ;;  %14377 = vmatprep.subr.mxu0 %v5693_v19 }
 0x3c4   :  { %v13899_v41 = vpop.f32.mrf.mxu1  ;;  %14378 = vmatpush3.msra.mxu0 %v5693_v19 }
 0x3c5   :  { %v14009_v28 = vpop.f32.mrf.mxu0  ;;  %v19355_v34 = vadd.f32 %v4654_v25, %v4436_v13 }
 0x3c6   :  { %v4353_v56 = vpop.f32.mrf.mxu1  ;;  %14323 = vmatmul.mubr.f32.gmra.mxu1 %v18296_v63 }
 0x3c7   :  { %v4437_v26 = vadd.f32 %v4353_v56, %v19131_v7  ;;  %v4664_v57 = vpop.f32.mrf.mxu0  ;;  %14325 = vmatprep.mubr.msk.f32.mxu1 %vm16288_vm7, %v21833_v50  ;;  %v5692_v7 = vld [vmem:[#allocation5 + $0xe0] sm:$0xff] }
 0x3c8   :  { %v13902_v30 = vpop.f32.mrf.mxu1  ;;  %14379 = vmatprep.subr.mxu0 %v5692_v7 }
 0x3c9   :  { %v14012_v5 = vpop.f32.mrf.mxu0  ;;  %v19361_v36 = vadd.f32 %v4659_v40, %v4437_v26  ;;  %14380 = vmatpush3.msra.mxu0 %v5692_v7  ;;  %v6146_v7 = vld [vmem:[#allocation5 + $0x160] sm:$0xff] }
 0x3ca   :  { %v4358_v61 = vpop.f32.mrf.mxu1  ;;  %14326 = vmatmul.mubr.f32.gmra.mxu1 %v18311_v29 }
 0x3cb   :  { %v4438_v48 = vadd.f32 %v4358_v61, %v19144_v4  ;;  %v4669_v20 = vpop.f32.mrf.mxu0  ;;  %14328 = vmatprep.mubr.msk.f32.mxu1 %vm16288_vm7, %v21833_v50  ;;  %v6147_v61 = vld [vmem:[#allocation5 + $0x168] sm:$0xff] }
 0x3cc   :  { %v13905_v63 = vpop.f32.mrf.mxu1 }
 0x3cd   :  { %v14015_v46 = vpop.f32.mrf.mxu0  ;;  %v19367_v44 = vadd.f32 %v4664_v57, %v4438_v48  ;;  %v5690_v57 = vld [vmem:[#allocation5 + $0xd0] sm:$0xff] }
 0x3ce   :  { %v4363_v31 = vpop.f32.mrf.mxu1  ;;  %14329 = vmatmul.mubr.f32.gmra.mxu1 %v18344_v55  ;;  %v5691_v55 = vld [vmem:[#allocation5 + $0xd8] sm:$0xff]  ;;  %v5689_v46 = vld [vmem:[#allocation5 + $0xc8] sm:$0xff] }
 0x3cf   :  { %v4439_v11 = vadd.f32 %v4363_v31, %v19155_v14  ;;  %v4674_v54 = vpop.f32.mrf.mxu0  ;;  %14331 = vmatprep.mubr.msk.f32.mxu1 %vm16288_vm7, %v21833_v50  ;;  %14381 = vmatprep.subr.mxu0 %v5691_v55 }
 0x3d0   :  { %v13908_v29 = vpop.f32.mrf.mxu1  ;;  %14382 = vmatpush3.msra.mxu0 %v5691_v55  ;;  %v5688_v55 = vld [vmem:[#allocation5 + $0xc0] sm:$0xff] }
 0x3d1   :  { %v14018_v4 = vpop.f32.mrf.mxu0  ;;  %v19373_v25 = vadd.f32 %v4669_v20, %v4439_v11  ;;  %14383 = vmatprep.subr.mxu0 %v5690_v57  ;;  %v6145_v11 = vld [vmem:[#allocation5 + $0x158] sm:$0xff] }
 0x3d2   :  { %v4368_v17 = vpop.f32.mrf.mxu1  ;;  %14332 = vmatmul.mubr.f32.gmra.mxu1 %v18357_v49  ;;  %14384 = vmatpush3.msra.mxu0 %v5690_v57 }
 0x3d3   :  { %v4440_v18 = vadd.f32 %v4368_v17, %v19168_v9  ;;  %v4679_v10 = vpop.f32.mrf.mxu0  ;;  %14334 = vmatprep.mubr.msk.f32.mxu1 %vm16288_vm7, %v21833_v50  ;;  %v6149_v9 = vld [vmem:[#allocation5 + $0x178] sm:$0xff]  ;;  %14385 = vmatprep.subr.mxu0 %v5689_v46  ;;  %v6144_v17 = vld [vmem:[#allocation5 + $0x150] sm:$0xff] }
 0x3d4   :  { %v13911_v62 = vpop.f32.mrf.mxu1  ;;  %14503 = vmatprep.subr.mxu1 %v6149_v9  ;;  %14386 = vmatpush3.msra.mxu0 %v5689_v46 }
 0x3d5   :  { %v14021_v14 = vpop.f32.mrf.mxu0  ;;  %v19379_v13 = vadd.f32 %v4674_v54, %v4440_v18  ;;  %14504 = vmatpush3.msra.mxu1 %v6149_v9  ;;  %14387 = vmatprep.subr.mxu0 %v5688_v55 }
 0x3d6   :  { %v4373_v40 = vpop.f32.mrf.mxu1  ;;  %14335 = vmatmul.mubr.f32.gmra.mxu1 %v18380_v43  ;;  %14388 = vmatpush3.msra.mxu0 %v5688_v55  ;;  %v5682_v55 = vld [vmem:[#allocation5 + $0x90] sm:$0xff] }
 0x3d7   :  { %v4441_v41 = vadd.f32 %v4373_v40, %v19179_v12  ;;  %v4684_v28 = vpop.f32.mrf.mxu0  ;;  %14337 = vmatprep.mubr.msk.f32.mxu1 %vm16288_vm7, %v21833_v50  ;;  %v6148_v12 = vld [vmem:[#allocation5 + $0x170] sm:$0xff] }
 0x3d8   :  { %v13914_v49 = vpop.f32.mrf.mxu1  ;;  %14505 = vmatprep.subr.mxu1 %v6148_v12 }
 0x3d9   :  { %v14024_v56 = vpop.f32.mrf.mxu0  ;;  %v19385_v26 = vadd.f32 %v4679_v10, %v4441_v41  ;;  %14506 = vmatpush3.msra.mxu1 %v6148_v12  ;;  %v6143_v10 = vld [vmem:[#allocation5 + $0x148] sm:$0xff] }
 0x3da   :  { %v4378_v19 = vpop.f32.mrf.mxu1  ;;  %14338 = vmatmul.mubr.f32.gmra.mxu1 %v18387_v23  ;;  %14507 = vmatprep.subr.mxu1 %v6147_v61 }
 0x3db   :  { %v4442_v30 = vadd.f32 %v4378_v19, %v19192_v59  ;;  %v4689_v43 = vpop.f32.mrf.mxu0  ;;  %14340 = vmatprep.mubr.msk.f32.mxu1 %vm16288_vm7, %v21833_v50  ;;  %14508 = vmatpush3.msra.mxu1 %v6147_v61  ;;  %v6141_v19 = vld [vmem:[#allocation5 + $0x138] sm:$0xff]  ;;  %v5686_v61 = vld [vmem:[#allocation5 + $0xb0] sm:$0xff] }
 0x3dc   :  { %v13917_v5 = vpop.f32.mrf.mxu1  ;;  %14509 = vmatprep.subr.mxu1 %v6146_v7 }
 0x3dd   :  { %v14027_v48 = vpop.f32.mrf.mxu0  ;;  %v19391_v20 = vadd.f32 %v4684_v28, %v4442_v30  ;;  %14510 = vmatpush3.msra.mxu1 %v6146_v7 }
 0x3de   :  { %v4383_v63 = vpop.f32.mrf.mxu1  ;;  %14341 = vmatmul.mubr.f32.gmra.mxu1 %v18403_v33  ;;  %14511 = vmatprep.subr.mxu1 %v6145_v11  ;;  %v6140_v48 = vld [vmem:[#allocation5 + $0x130] sm:$0xff] }
 0x3df   :  { %v4443_v23 = vadd.f32 %v4383_v63, %v19203_v47  ;;  %v4694_v59 = vpop.f32.mrf.mxu0  ;;  %14343 = vmatprep.mubr.msk.f32.mxu1 %vm16288_vm7, %v21833_v50  ;;  %14512 = vmatpush3.msra.mxu1 %v6145_v11  ;;  %v5685_v63 = vld [vmem:[#allocation5 + $0xa8] sm:$0xff]  ;;  %v5684_v11 = vld [vmem:[#allocation5 + $0xa0] sm:$0xff] }
 0x3e0   :  { %v13920_v31 = vpop.f32.mrf.mxu1  ;;  %14513 = vmatprep.subr.mxu1 %v6144_v17 }
 0x3e1   :  { %v14030_v54 = vpop.f32.mrf.mxu0  ;;  %v19397_v29 = vadd.f32 %v4689_v43, %v4443_v23  ;;  %14514 = vmatpush3.msra.mxu1 %v6144_v17  ;;  %v5683_v17 = vld [vmem:[#allocation5 + $0x98] sm:$0xff] }
 0x3e2   :  { %v4388_v33 = vpop.f32.mrf.mxu1  ;;  %14344 = vmatmul.mubr.f32.gmra.mxu1 %v18411_v6  ;;  %14515 = vmatprep.subr.mxu1 %v6143_v10  ;;  %v6138_v54 = vld [vmem:[#allocation5 + $0x120] sm:$0xff] }
 0x3e3   :  { %v4444_v47 = vadd.f32 %v4388_v33, %v19215_v38  ;;  %v4699_v4 = vpop.f32.mrf.mxu0  ;;  %14346 = vmatprep.mubr.msk.f32.mxu1 %vm16288_vm7, %v21833_v50  ;;  %14516 = vmatpush3.msra.mxu1 %v6143_v10 }
 0x3e4   :  { %v13923_v18 = vpop.f32.mrf.mxu1 }
 0x3e5   :  { %v14033_v62 = vpop.f32.mrf.mxu0  ;;  %v19403_v14 = vadd.f32 %v4694_v59, %v4444_v47  ;;  %v6139_v59 = vld [vmem:[#allocation5 + $0x128] sm:$0xff] }
 0x3e6   :  { %v4393_v40 = vpop.f32.mrf.mxu1  ;;  %14347 = vmatmul.mubr.f32.gmra.mxu1 %v18426_v2  ;;  %v6142_v2 = vld [vmem:[#allocation5 + $0x140] sm:$0xff] }
 0x3e7   :  { %v4445_v6 = vadd.f32 %v4393_v40, %v19225_v60  ;;  %v4704_v38 = vpop.f32.mrf.mxu0  ;;  %14349 = vmatprep.mubr.msk.f32.mxu1 %vm16288_vm7, %v21833_v50  ;;  %v5687_v60 = vld [vmem:[#allocation5 + $0xb8] sm:$0xff]  ;;  %14517 = vmatprep.subr.mxu1 %v6142_v2  ;;  %v6136_v40 = vld [vmem:[#allocation5 + $0x110] sm:$0xff] }
 0x3e8   :  { %v13926_v41 = vpop.f32.mrf.mxu1  ;;  %14389 = vmatprep.subr.mxu0 %v5687_v60  ;;  %14518 = vmatpush3.msra.mxu1 %v6142_v2 }
 0x3e9   :  { %v14036_v28 = vpop.f32.mrf.mxu0  ;;  %v19409_v49 = vadd.f32 %v4699_v4, %v4445_v6  ;;  %14390 = vmatpush3.msra.mxu0 %v5687_v60  ;;  %14519 = vmatprep.subr.mxu1 %v6141_v19 }
 0x3ea   :  { %v4398_v9 = vpop.f32.mrf.mxu1  ;;  %14350 = vmatmul.mubr.f32.gmra.mxu1 %v18434_v0  ;;  %14391 = vmatprep.subr.mxu0 %v5686_v61  ;;  %v6135_v28 = vld [vmem:[#allocation5 + $0x108] sm:$0xff] }
 0x3eb   :  { %v4446_v56 = vadd.f32 %v4398_v9, %v19237_v52  ;;  %v4709_v57 = vpop.f32.mrf.mxu0  ;;  %14352 = vmatprep.mubr.msk.f32.mxu1 %vm16288_vm7, %v21833_v50  ;;  %14520 = vmatpush3.msra.mxu1 %v6141_v19  ;;  %v5680_v19 = vld [vmem:[#allocation5 + $0x80] sm:$0xff] }
 0x3ec   :  { %v13929_v30 = vpop.f32.mrf.mxu1  ;;  %14521 = vmatprep.subr.mxu1 %v6140_v48  ;;  %14392 = vmatpush3.msra.mxu0 %v5686_v61 }
 0x3ed   :  { %v14039_v43 = vpop.f32.mrf.mxu0  ;;  %v19415_v12 = vadd.f32 %v4704_v38, %v4446_v56  ;;  %14522 = vmatpush3.msra.mxu1 %v6140_v48  ;;  %14393 = vmatprep.subr.mxu0 %v5685_v63  ;;  %v6134_v30 = vld [vmem:[#allocation5 + $0x100] sm:$0xff] }
 0x3ee   :  { %v4403_v5 = vpop.f32.mrf.mxu1  ;;  %14353 = vmatmul.mubr.f32.gmra.mxu1 %v18446_v15  ;;  %14523 = vmatprep.subr.mxu1 %v6139_v59 }
 0x3ef   :  { %v4447_v0 = vadd.f32 %v4403_v5, %v19247_v32  ;;  %v4714_v52 = vpop.f32.mrf.mxu0  ;;  %14355 = vmatprep.mubr.msk.f32.mxu1 %vm16288_vm7, %v21833_v50  ;;  %14394 = vmatpush3.msra.mxu0 %v5685_v63  ;;  %v21909_v5 = vld [vmem:[#allocation18_spill] sm:$0xff] }
 0x3f0   :  { %v13932_v23 = vpop.f32.mrf.mxu1  ;;  %14524 = vmatpush3.msra.mxu1 %v6139_v59  ;;  %14395 = vmatprep.subr.mxu0 %v5684_v11 }
 0x3f1   :  { %v14042_v7 = vpop.f32.mrf.mxu0  ;;  %v19421_v46 = vadd.f32 %v4709_v57, %v4447_v0  ;;  %14525 = vmatprep.subr.mxu1 %v6138_v54  ;;  %14396 = vmatpush3.msra.mxu0 %v5684_v11 }
 0x3f2   :  { %v4408_v15 = vpop.f32.mrf.mxu1  ;;  %14356 = vmatmul.mubr.f32.gmra.mxu1 %v18454_v8  ;;  %v6137_v8 = vld [vmem:[#allocation5 + $0x118] sm:$0xff]  ;;  %14397 = vmatprep.subr.mxu0 %v5683_v17 }
 0x3f3   :  { %v4448_v32 = vadd.f32 %v4408_v15, %v19259_v51  ;;  %v4719_v31 = vpop.f32.mrf.mxu0  ;;  %14358 = vmatprep.mubr.msk.f32.mxu1 %vm16288_vm7, %v21833_v50  ;;  %14526 = vmatpush3.msra.mxu1 %v6138_v54 }
 0x3f4   :  { %v13935_v33 = vpop.f32.mrf.mxu1  ;;  %14527 = vmatprep.subr.mxu1 %v6137_v8  ;;  %14398 = vmatpush3.msra.mxu0 %v5683_v17 }
 0x3f5   :  { %v14045_v47 = vpop.f32.mrf.mxu0  ;;  %v19427_v4 = vadd.f32 %v4714_v52, %v4448_v32  ;;  %14528 = vmatpush3.msra.mxu1 %v6137_v8  ;;  %14399 = vmatprep.subr.mxu0 %v5682_v55 }
 0x3f6   :  { %v4413_v18 = vpop.f32.mrf.mxu1  ;;  %14359 = vmatmul.mubr.f32.gmra.mxu1 %v18466_v58  ;;  %v21908_v58 = vld [vmem:[#allocation17_spill] sm:$0xff]  ;;  %14529 = vmatprep.subr.mxu1 %v6136_v40 }
 0x3f7   :  { %v4449_v51 = vadd.f32 %v4413_v18, %v19272_v53  ;;  %v4724_v10 = vpop.f32.mrf.mxu0  ;;  %14361 = vmatprep.mubr.msk.f32.mxu1 %vm16288_vm7, %v21833_v50  ;;  %v5681_v53 = vld [vmem:[#allocation5 + $0x88] sm:$0xff]  ;;  %14400 = vmatpush3.msra.mxu0 %v5682_v55 }
 0x3f8   :  { %v13938_v62 = vpop.f32.mrf.mxu1  ;;  %14530 = vmatpush3.msra.mxu1 %v6136_v40  ;;  %14401 = vmatprep.subr.mxu0 %v5681_v53 }
 0x3f9   :  { %v14048_v6 = vpop.f32.mrf.mxu0  ;;  %v19433_v38 = vadd.f32 %v4719_v31, %v4449_v51  ;;  %14531 = vmatprep.subr.mxu1 %v6135_v28  ;;  %14402 = vmatpush3.msra.mxu0 %v5681_v53  ;;  %v21910_v31 = vld [vmem:[#allocation16_spill] sm:$0xff] }
 0x3fa   :  { %v4418_v41 = vpop.f32.mrf.mxu1  ;;  %14362 = vmatmul.mubr.f32.gmra.mxu1 %v21908_v58  ;;  %14403 = vmatprep.subr.mxu0 %v5680_v19  ;;  %v21911_v11 = vmax.f32 %v21910_v31, 0.0 }
 0x3fb   :  { %v4450_v9 = vadd.f32 %v4418_v41, %v19285_v1  ;;  %v4729_v56 = vpop.f32.mrf.mxu0  ;;  %14364 = vmatprep.mubr.msk.f32.mxu1 %vm16288_vm7, %v21833_v50  ;;  %14532 = vmatpush3.msra.mxu1 %v6135_v28 }
 0x3fc   :  { %v13941_v57 = vpop.f32.mrf.mxu1  ;;  %14533 = vmatprep.subr.mxu1 %v6134_v30  ;;  %14404 = vmatpush3.msra.mxu0 %v5680_v19 }
 0x3fd   :  { %v14051_v2 = vpop.f32.mrf.mxu0  ;;  %v19439_v60 = vadd.f32 %v4724_v10, %v4450_v9  ;;  %14534 = vmatpush3.msra.mxu1 %v6134_v30 }
 0x3fe   :  { %v4423_v43 = vpop.f32.mrf.mxu1  ;;  %14365 = vmatmul.mubr.f32.gmra.mxu1 %v21909_v5 }
 0x3ff   :  { %v4451_v1 = vadd.f32 %v4423_v43, %v19296_v22  ;;  %v5225_v0 = vpop.f32.mrf.mxu0  ;;  %14367 = vmatprep.mubr.msk.f32.mxu1 %vm16288_vm7, %v21833_v50 }
 0x400   :  { %v13944_v52 = vpop.f32.mrf.mxu1 }
 0x401   :  { %v14193_v61 = vpop.f32.mrf.mxu0  ;;  %v19445_v48 = vadd.f32 %v4729_v56, %v4451_v1 }
 0x402   :  { %v4916_v63 = vpop.f32.mrf.mxu1  ;;  %14368 = vmatmul.mubr.f32.gmra.mxu1 %v19262_v45 }
 0x403   :  { %v5040_v23 = vadd.f32 %v4916_v63, %v19302_v24  ;;  %v5230_v59 = vpop.f32.mrf.mxu0  ;;  %14370 = vmatprep.mubr.msk.f32.mxu1 %vm16288_vm7, %v21833_v50 }
 0x404   :  { %v14086_v22 = vpop.f32.mrf.mxu1 }
 0x405   :  { %v14196_v7 = vpop.f32.mrf.mxu0  ;;  %v19451_v15 = vadd.f32 %v5225_v0, %v5040_v23 }
 0x406   :  { %v4921_v32 = vpop.f32.mrf.mxu1  ;;  %14371 = vmatmul.mubr.f32.gmra.mxu1 %v21911_v11  ;;  %v19474_v7 = vld [vmem:[#allocation5 + $0x78] sm:$0xff] }
 0x407   :  { %v5041_v54 = vadd.f32 %v4921_v32, %v19307_v3  ;;  %v5235_v33 = vpop.f32.mrf.mxu0  ;;  %14438 = vmatprep.subr.mxu0 %v19474_v7 }
 0x408   :  { %v14089_v47 = vpop.f32.mrf.mxu1 }
 0x409   :  { %v14199_v17 = vpop.f32.mrf.mxu0  ;;  %v19456_v45 = vadd.f32 %v5230_v59, %v5041_v54 }
 0x40a   :  { %v4926_v24 = vpop.f32.mrf.mxu1 }
 0x40b   :  { %v5042_v8 = vadd.f32 %v4926_v24, %v19313_v35  ;;  %v5240_v18 = vpop.f32.mrf.mxu0 }
 0x40c   :  { %v14092_v51 = vpop.f32.mrf.mxu1 }
 0x40d   :  { %v14202_v10 = vpop.f32.mrf.mxu0  ;;  %v19459_v55 = vadd.f32 %v5235_v33, %v5042_v8 }
 0x40e   :  { %v4931_v62 = vpop.f32.mrf.mxu1 }
 0x40f   :  { %v5043_v40 = vadd.f32 %v4931_v62, %v19319_v39  ;;  %v5245_v6 = vpop.f32.mrf.mxu0 }
 0x410   :  { %v14095_v41 = vpop.f32.mrf.mxu1 }
 0x411   :  { %v14205_v58 = vpop.f32.mrf.mxu0  ;;  %v19462_v3 = vadd.f32 %v5240_v18, %v5043_v40  ;;  %v19486_v41 = vld [vmem:[#allocation5 + $0x278] sm:$0xff] }
 0x412   :  { %v4936_v53 = vpop.f32.mrf.mxu1  ;;  %14633 = vmatprep.subr.mxu1 %v19486_v41 }
 0x413   :  { %v5044_v28 = vadd.f32 %v4936_v53, %v19325_v27  ;;  %v5250_v9 = vpop.f32.mrf.mxu0 }
 0x414   :  { %v14098_v56 = vpop.f32.mrf.mxu1 }
 0x415   :  { %v14208_v57 = vpop.f32.mrf.mxu0  ;;  %v19465_v35 = vadd.f32 %v5245_v6, %v5044_v28 }
 0x416   :  { %v4941_v2 = vpop.f32.mrf.mxu1 }
 0x417   :  { %v5045_v19 = vadd.f32 %v4941_v2, %v19331_v37  ;;  %v5255_v30 = vpop.f32.mrf.mxu0 }
 0x418   :  { %v14101_v43 = vpop.f32.mrf.mxu1 }
 0x419   :  { %v14211_v5 = vpop.f32.mrf.mxu0  ;;  %v19468_v39 = vadd.f32 %v5250_v9, %v5045_v19 }
 0x41a   :  { %v4946_v1 = vpop.f32.mrf.mxu1 }
 0x41b   :  { %v5046_v0 = vadd.f32 %v4946_v1, %v19337_v21  ;;  %v5260_v52 = vpop.f32.mrf.mxu0 }
 0x41c   :  { %v14104_v61 = vpop.f32.mrf.mxu1 }
 0x41d   :  { %v14214_v63 = vpop.f32.mrf.mxu0  ;;  %v19471_v27 = vadd.f32 %v5255_v30, %v5046_v0 }
 0x41e   :  { %v4951_v23 = vpop.f32.mrf.mxu1 }
 0x41f   :  { %v5047_v59 = vadd.f32 %v4951_v23, %v19343_v16  ;;  %v5265_v22 = vpop.f32.mrf.mxu0 }
 0x420   :  { %v14107_v37 = vpop.f32.mrf.mxu1 }
 0x421   :  { %v14217_v32 = vpop.f32.mrf.mxu0  ;;  %v19477_v31 = vadd.f32 %v5260_v52, %v5047_v59 }
 0x422   :  { %v4956_v11 = vpop.f32.mrf.mxu1 }
 0x423   :  { %v5048_v21 = vadd.f32 %v4956_v11, %v19349_v42  ;;  %v5270_v54 = vpop.f32.mrf.mxu0 }
 0x424   :  { %v14110_v33 = vpop.f32.mrf.mxu1 }
 0x425   :  { %v14220_v47 = vpop.f32.mrf.mxu0  ;;  %v19480_v17 = vadd.f32 %v5265_v22, %v5048_v21 }
 0x426   :  { %v4961_v24 = vpop.f32.mrf.mxu1 }
 0x427   :  { %v5049_v16 = vadd.f32 %v4961_v24, %v19355_v34  ;;  %v5275_v8 = vpop.f32.mrf.mxu0 }
 0x428   :  { %v14113_v18 = vpop.f32.mrf.mxu1 }
 0x429   :  { %v14223_v51 = vpop.f32.mrf.mxu0  ;;  %v19483_v10 = vadd.f32 %v5270_v54, %v5049_v16 }
 0x42a   :  { %v4966_v62 = vpop.f32.mrf.mxu1 }
 0x42b   :  { %v5050_v40 = vadd.f32 %v4966_v62, %v19361_v36  ;;  %v5280_v6 = vpop.f32.mrf.mxu0 }
 0x42c   :  { %v14116_v42 = vpop.f32.mrf.mxu1 }
 0x42d   :  { %v14226_v58 = vpop.f32.mrf.mxu0  ;;  %v19489_v53 = vadd.f32 %v5275_v8, %v5050_v40 }
 0x42e   :  { %v4971_v28 = vpop.f32.mrf.mxu1 }
 0x42f   :  { %v5051_v34 = vadd.f32 %v4971_v28, %v19367_v44  ;;  %v5285_v9 = vpop.f32.mrf.mxu0 }
 0x430   :  { %v14119_v56 = vpop.f32.mrf.mxu1 }
 0x431   :  { %v14229_v57 = vpop.f32.mrf.mxu0  ;;  %v19492_v2 = vadd.f32 %v5280_v6, %v5051_v34 }
 0x432   :  { %v4976_v19 = vpop.f32.mrf.mxu1 }
 0x433   :  { %v5052_v36 = vadd.f32 %v4976_v19, %v19373_v25  ;;  %v5290_v30 = vpop.f32.mrf.mxu0 }
 0x434   :  { %v14122_v43 = vpop.f32.mrf.mxu1 }
 0x435   :  { %v14232_v5 = vpop.f32.mrf.mxu0  ;;  %v19495_v1 = vadd.f32 %v5285_v9, %v5052_v36 }
 0x436   :  { %v4981_v0 = vpop.f32.mrf.mxu1 }
 0x437   :  { %v5053_v52 = vadd.f32 %v4981_v0, %v19379_v13  ;;  %v5295_v61 = vpop.f32.mrf.mxu0 }
 0x438   :  { %v14125_v63 = vpop.f32.mrf.mxu1 }
 0x439   :  { %v14235_v23 = vpop.f32.mrf.mxu0  ;;  %v19498_v44 = vadd.f32 %v5290_v30, %v5053_v52 }
 0x43a   :  { %v4986_v59 = vpop.f32.mrf.mxu1 }
 0x43b   :  { %v5054_v22 = vadd.f32 %v4986_v59, %v19385_v26  ;;  %v5300_v37 = vpop.f32.mrf.mxu0 }
 0x43c   :  { %v14128_v32 = vpop.f32.mrf.mxu1 }
 0x43d   :  { %v14238_v11 = vpop.f32.mrf.mxu0  ;;  %v19501_v25 = vadd.f32 %v5295_v61, %v5054_v22 }
 0x43e   :  { %v4991_v21 = vpop.f32.mrf.mxu1 }
 0x43f   :  { %v5055_v54 = vadd.f32 %v4991_v21, %v19391_v20  ;;  %v5305_v33 = vpop.f32.mrf.mxu0 }
 0x440   :  { %v14131_v47 = vpop.f32.mrf.mxu1 }
 0x441   :  { %v14241_v24 = vpop.f32.mrf.mxu0  ;;  %v19504_v13 = vadd.f32 %v5300_v37, %v5055_v54 }
 0x442   :  { %v4996_v16 = vpop.f32.mrf.mxu1 }
 0x443   :  { %v5056_v8 = vadd.f32 %v4996_v16, %v19397_v29  ;;  %v5310_v18 = vpop.f32.mrf.mxu0 }
 0x444   :  { %v14134_v51 = vpop.f32.mrf.mxu1 }
 0x445   :  { %v14244_v62 = vpop.f32.mrf.mxu0  ;;  %v19507_v26 = vadd.f32 %v5305_v33, %v5056_v8 }
 0x446   :  { %v5001_v40 = vpop.f32.mrf.mxu1 }
 0x447   :  { %v5057_v6 = vadd.f32 %v5001_v40, %v19403_v14  ;;  %v5315_v42 = vpop.f32.mrf.mxu0 }
 0x448   :  { %v14137_v58 = vpop.f32.mrf.mxu1 }
 0x449   :  { %v14247_v28 = vpop.f32.mrf.mxu0  ;;  %v19510_v20 = vadd.f32 %v5310_v18, %v5057_v6 }
 0x44a   :  { %v5006_v34 = vpop.f32.mrf.mxu1 }
 0x44b   :  { %v5058_v9 = vadd.f32 %v5006_v34, %v19409_v49  ;;  %v5320_v56 = vpop.f32.mrf.mxu0  ;;  %v19536_v34 = vld [vmem:[%s21719_s4] ss:$0 sm:$0xff] }
 0x44c   :  { %v14140_v57 = vpop.f32.mrf.mxu1 }
 0x44d   :  { %v14250_v19 = vpop.f32.mrf.mxu0  ;;  %v19513_v29 = vadd.f32 %v5315_v42, %v5058_v9 }
 0x44e   :  { %v5011_v36 = vpop.f32.mrf.mxu1 }
 0x44f   :  { %v5059_v30 = vadd.f32 %v5011_v36, %v19415_v12  ;;  %v5325_v43 = vpop.f32.mrf.mxu0 }
 0x450   :  { %v14143_v5 = vpop.f32.mrf.mxu1 }
 0x451   :  { %v14253_v0 = vpop.f32.mrf.mxu0  ;;  %v19516_v14 = vadd.f32 %v5320_v56, %v5059_v30 }
 0x452   :  { %v5016_v52 = vpop.f32.mrf.mxu1 }
 0x453   :  { %v5060_v61 = vadd.f32 %v5016_v52, %v19421_v46  ;;  %v5330_v63 = vpop.f32.mrf.mxu0 }
 0x454   :  { %v14146_v23 = vpop.f32.mrf.mxu1 }
 0x455   :  { %v14256_v59 = vpop.f32.mrf.mxu0  ;;  %v19519_v49 = vadd.f32 %v5325_v43, %v5060_v61 }
 0x456   :  { %v5021_v22 = vpop.f32.mrf.mxu1 }
 0x457   :  { %v5061_v37 = vadd.f32 %v5021_v22, %v19427_v4  ;;  %v5335_v32 = vpop.f32.mrf.mxu0 }
 0x458   :  { %v14149_v11 = vpop.f32.mrf.mxu1 }
 0x459   :  { %v14259_v21 = vpop.f32.mrf.mxu0  ;;  %v19522_v12 = vadd.f32 %v5330_v63, %v5061_v37 }
 0x45a   :  { %v5026_v54 = vpop.f32.mrf.mxu1 }
 0x45b   :  { %v5062_v33 = vadd.f32 %v5026_v54, %v19433_v38  ;;  %v5340_v47 = vpop.f32.mrf.mxu0 }
 0x45c   :  { %v14152_v24 = vpop.f32.mrf.mxu1 }
 0x45d   :  { %v14262_v16 = vpop.f32.mrf.mxu0  ;;  %v19525_v46 = vadd.f32 %v5335_v32, %v5062_v33 }
 0x45e   :  { %v5031_v8 = vpop.f32.mrf.mxu1 }
 0x45f   :  { %v5063_v18 = vadd.f32 %v5031_v8, %v19439_v60  ;;  %v5345_v51 = vpop.f32.mrf.mxu0 }
 0x460   :  { %v14155_v62 = vpop.f32.mrf.mxu1 }
 0x461   :  { %v14265_v40 = vpop.f32.mrf.mxu0  ;;  %v19528_v4 = vadd.f32 %v5340_v47, %v5063_v18  ;;  %v5677_v18 = vld [vmem:[#allocation5 + $0x70] sm:$0xff] }
 0x462   :  { %v5036_v6 = vpop.f32.mrf.mxu1 }
 0x463   :  { %v5064_v42 = vadd.f32 %v5036_v6, %v19445_v48 }
 0x464   :  { %v14158_v58 = vpop.f32.mrf.mxu1 }
 0x465   :  { %v19531_v28 = vadd.f32 %v5345_v51, %v5064_v42  ;;  %v6707_v51 = vld [vmem:[#allocation5 + $0x270] sm:$0xff]  ;;  %v5676_v58 = vld [vmem:[#allocation5 + $0x68] sm:$0xff] }
 0x466   :  { %v5457_v38 = vpop.f32.mrf.mxu1 }
 0x467   :  { %v5581_v9 = vadd.f32 %v5457_v38, %v19451_v15  ;;  %v6706_v38 = vld [vmem:[#allocation5 + $0x268] sm:$0xff] }
 0x468   :  { %v14300_v60 = vpop.f32.mrf.mxu1 }
 0x469   :  { %v5613_v56 = vadd.f32 %v19536_v34, %v5581_v9 }
 0x46a   :  { %v5462_v57 = vpop.f32.mrf.mxu1 }
 0x46b   :  { %v5582_v19 = vadd.f32 %v5462_v57, %v19456_v45  ;;  %v19541_v36 = vmax.f32 %v5613_v56, 0.0 }
 0x46c   :  { %v14303_v48 = vpop.f32.mrf.mxu1 }
 0x46d   :  { %v5614_v30 = vadd.f32 %v19536_v34, %v5582_v19  ;;  %v5718_v61 = vrot.slane %v19541_v36, 1  ;;  %v6150_v23 = vrot.slane %v19541_v36, 2 }
 0x46e   :  { %v5467_v43 = vpop.f32.mrf.mxu1 }
 0x46f   :  { %v19544_v5 = vmax.f32 %v5614_v30, 0.0  ;;  %v5583_v0 = vadd.f32 %v5467_v43, %v19459_v55 }
 0x470   :  { %v14306_v52 = vpop.f32.mrf.mxu1 }
 0x471   :  { %v5615_v15 = vadd.f32 %v19536_v34, %v5583_v0  ;;  %v5719_v63 = vrot.slane %v19544_v5, 1  ;;  %v6151_v45 = vrot.slane %v19544_v5, 2 }
 0x472   :  { %v5472_v59 = vpop.f32.mrf.mxu1 }
 0x473   :  { %v19552_v22 = vmax.f32 %v5615_v15, 0.0  ;;  %v5584_v37 = vadd.f32 %v5472_v59, %v19462_v3  ;;  %v5720_v32 = vsel %vm205_vm0, %v5718_v61, %v5719_v63  ;;  %v6152_v55 = vsel %vm716_vm1, %v6150_v23, %v6151_v45  ;;  %v6704_v23 = vld [vmem:[#allocation5 + $0x258] sm:$0xff] }
 0x474   :  { %v14309_v11 = vpop.f32.mrf.mxu1  ;;  %14405 = vmatprep.mubr.f32.mxu0 %v5720_v32  ;;  %14535 = vmatprep.mubr.f32.mxu1 %v6152_v55  ;;  %v5673_v55 = vld [vmem:[#allocation5 + $0x50] sm:$0xff] }
 0x475   :  { %v5616_v21 = vadd.f32 %v19536_v34, %v5584_v37  ;;  %v5721_v54 = vrot.slane %v19552_v22, 1  ;;  %v6153_v33 = vrot.slane %v19552_v22, 2  ;;  %v6703_v11 = vld [vmem:[#allocation5 + $0x250] sm:$0xff] }
 0x476   :  { %v5477_v47 = vpop.f32.mrf.mxu1 }
 0x477   :  { %v19560_v24 = vmax.f32 %v5616_v21, 0.0  ;;  %v5585_v16 = vadd.f32 %v5477_v47, %v19465_v35  ;;  %v5722_v3 = vsel %vm205_vm0, %v5719_v63, %v5721_v54  ;;  %v6154_v8 = vsel %vm716_vm1, %v6151_v45, %v6153_v33  ;;  %v5674_v63 = vld [vmem:[#allocation5 + $0x58] sm:$0xff] }
 0x478   :  { %v14312_v62 = vpop.f32.mrf.mxu1  ;;  %14406 = vmatmul.mubr.f32.vlgmr.msra.gmra.mxu0 %v5722_v3  ;;  %14536 = vmatmul.mubr.f32.vlgmr.msra.gmra.mxu1 %v6154_v8  ;;  %v5672_v3 = vld [vmem:[#allocation5 + $0x48] sm:$0xff] }
 0x479   :  { %v5617_v40 = vadd.f32 %v19536_v34, %v5585_v16  ;;  %v5723_v6 = vrot.slane %v19560_v24, 1  ;;  %v6155_v42 = vrot.slane %v19560_v24, 2  ;;  %14439 = vmatpush3.msra.mxu0 %v19474_v7  ;;  %14634 = vmatpush3.msra.mxu1 %v19486_v41  ;;  %v5675_v7 = vld [vmem:[#allocation5 + $0x60] sm:$0xff]  ;;  %v6702_v8 = vld [vmem:[#allocation5 + $0x248] sm:$0xff] }
 0x47a   :  { %v5482_v35 = vpop.f32.mrf.mxu1  ;;  %14440 = vmatprep.subr.mxu0 %v5677_v18  ;;  %14635 = vmatprep.subr.mxu1 %v6707_v51  ;;  %v6705_v41 = vld [vmem:[#allocation5 + $0x260] sm:$0xff] }
 0x47b   :  { %v19570_v9 = vmax.f32 %v5617_v40, 0.0  ;;  %v5586_v60 = vadd.f32 %v5482_v35, %v19468_v39  ;;  %v5724_v56 = vsel %vm205_vm0, %v5721_v54, %v5723_v6  ;;  %v6156_v57 = vsel %vm716_vm1, %v6153_v33, %v6155_v42  ;;  %14441 = vmatpush3.msra.mxu0 %v5677_v18  ;;  %14636 = vmatpush3.msra.mxu1 %v6707_v51 }
 0x47c   :  { %v14315_v19 = vpop.f32.mrf.mxu1  ;;  %14408 = vmatprep.mubr.f32.mxu0 %v5724_v56  ;;  %14538 = vmatprep.mubr.f32.mxu1 %v6156_v57 }
 0x47d   :  { %v5618_v48 = vadd.f32 %v19536_v34, %v5586_v60  ;;  %v5725_v30 = vrot.slane %v19570_v9, 1  ;;  %v6157_v43 = vrot.slane %v19570_v9, 2  ;;  %14442 = vmatprep.subr.mxu0 %v5676_v58  ;;  %14637 = vmatprep.subr.mxu1 %v6706_v38 }
 0x47e   :  { %v5487_v39 = vpop.f32.mrf.mxu1  ;;  %14443 = vmatpush3.msra.mxu0 %v5676_v58  ;;  %14638 = vmatpush3.msra.mxu1 %v6706_v38  ;;  %v5671_v58 = vld [vmem:[#allocation5 + $0x40] sm:$0xff] }
 0x47f   :  { %v19578_v0 = vmax.f32 %v5618_v48, 0.0  ;;  %v5587_v52 = vadd.f32 %v5487_v39, %v19471_v27  ;;  %v5726_v61 = vsel %vm205_vm0, %v5723_v6, %v5725_v30  ;;  %v6158_v15 = vsel %vm716_vm1, %v6155_v42, %v6157_v43  ;;  %14444 = vmatprep.subr.mxu0 %v5675_v7  ;;  %14639 = vmatprep.subr.mxu1 %v6705_v41  ;;  %v6701_v38 = vld [vmem:[#allocation5 + $0x240] sm:$0xff] }
 0x480   :  { %v14318_v45 = vpop.f32.mrf.mxu1  ;;  %14409 = vmatmul.mubr.f32.gmra.mxu0 %v5726_v61  ;;  %14539 = vmatmul.mubr.f32.gmra.mxu1 %v6158_v15  ;;  %v5669_v61 = vld [vmem:[#allocation5 + $0x30] sm:$0xff] }
 0x481   :  { %v5619_v59 = vadd.f32 %v19536_v34, %v5587_v52  ;;  %v5727_v37 = vrot.slane %v19578_v0, 1  ;;  %v6159_v32 = vrot.slane %v19578_v0, 2  ;;  %14445 = vmatpush3.msra.mxu0 %v5675_v7  ;;  %14640 = vmatpush3.msra.mxu1 %v6705_v41  ;;  %v5670_v7 = vld [vmem:[#allocation5 + $0x38] sm:$0xff]  ;;  %v6699_v15 = vld [vmem:[#allocation5 + $0x230] sm:$0xff] }
 0x482   :  { %v5492_v27 = vpop.f32.mrf.mxu1  ;;  %14446 = vmatprep.subr.mxu0 %v5674_v63  ;;  %14641 = vmatprep.subr.mxu1 %v6704_v23  ;;  %v6700_v41 = vld [vmem:[#allocation5 + $0x238] sm:$0xff] }
 0x483   :  { %v19586_v21 = vmax.f32 %v5619_v59, 0.0  ;;  %v5588_v54 = vadd.f32 %v5492_v27, %v19477_v31  ;;  %v5728_v33 = vsel %vm205_vm0, %v5725_v30, %v5727_v37  ;;  %v6160_v47 = vsel %vm716_vm1, %v6157_v43, %v6159_v32  ;;  %14447 = vmatpush3.msra.mxu0 %v5674_v63  ;;  %14642 = vmatpush3.msra.mxu1 %v6704_v23 }
 0x484   :  { %v14321_v16 = vpop.f32.mrf.mxu1  ;;  %14411 = vmatprep.mubr.f32.mxu0 %v5728_v33  ;;  %14541 = vmatprep.mubr.f32.mxu1 %v6160_v47 }
 0x485   :  { %v5620_v18 = vadd.f32 %v19536_v34, %v5588_v54  ;;  %v5729_v51 = vrot.slane %v19586_v21, 1  ;;  %v6161_v62 = vrot.slane %v19586_v21, 2  ;;  %14448 = vmatprep.subr.mxu0 %v5673_v55  ;;  %14643 = vmatprep.subr.mxu1 %v6703_v11 }
 0x486   :  { %v5497_v31 = vpop.f32.mrf.mxu1  ;;  %14449 = vmatpush3.msra.mxu0 %v5673_v55  ;;  %14644 = vmatpush3.msra.mxu1 %v6703_v11  ;;  %v5668_v55 = vld [vmem:[#allocation5 + $0x28] sm:$0xff] }
 0x487   :  { %v19594_v40 = vmax.f32 %v5620_v18, 0.0  ;;  %v5589_v6 = vadd.f32 %v5497_v31, %v19480_v17  ;;  %v5730_v42 = vsel %vm205_vm0, %v5727_v37, %v5729_v51  ;;  %v6162_v35 = vsel %vm716_vm1, %v6159_v32, %v6161_v62  ;;  %14450 = vmatprep.subr.mxu0 %v5672_v3  ;;  %14645 = vmatprep.subr.mxu1 %v6702_v8  ;;  %v6698_v11 = vld [vmem:[#allocation5 + $0x228] sm:$0xff] }
 0x488   :  { %v14324_v60 = vpop.f32.mrf.mxu1  ;;  %14412 = vmatmul.mubr.f32.gmra.mxu0 %v5730_v42  ;;  %14542 = vmatmul.mubr.f32.gmra.mxu1 %v6162_v35  ;;  %v5666_v42 = vld [vmem:[#allocation5 + $0x18] sm:$0xff] }
 0x489   :  { %v5621_v56 = vadd.f32 %v19536_v34, %v5589_v6  ;;  %v5731_v57 = vrot.slane %v19594_v40, 1  ;;  %v6163_v19 = vrot.slane %v19594_v40, 2  ;;  %14451 = vmatpush3.msra.mxu0 %v5672_v3  ;;  %14646 = vmatpush3.msra.mxu1 %v6702_v8  ;;  %v5667_v3 = vld [vmem:[#allocation5 + $0x20] sm:$0xff]  ;;  %v6696_v35 = vld [vmem:[#allocation5 + $0x218] sm:$0xff] }
 0x48a   :  { %v5502_v17 = vpop.f32.mrf.mxu1  ;;  %14452 = vmatprep.subr.mxu0 %v5671_v58  ;;  %14647 = vmatprep.subr.mxu1 %v6701_v38  ;;  %v6697_v8 = vld [vmem:[#allocation5 + $0x220] sm:$0xff] }
 0x48b   :  { %v19602_v48 = vmax.f32 %v5621_v56, 0.0  ;;  %v5590_v30 = vadd.f32 %v5502_v17, %v19483_v10  ;;  %v5732_v43 = vsel %vm205_vm0, %v5729_v51, %v5731_v57  ;;  %v6164_v39 = vsel %vm716_vm1, %v6161_v62, %v6163_v19  ;;  %14453 = vmatpush3.msra.mxu0 %v5671_v58  ;;  %14648 = vmatpush3.msra.mxu1 %v6701_v38 }
 0x48c   :  { %v14327_v52 = vpop.f32.mrf.mxu1  ;;  %14414 = vmatprep.mubr.f32.mxu0 %v5732_v43  ;;  %14544 = vmatprep.mubr.f32.mxu1 %v6164_v39 }
 0x48d   :  { %v5622_v63 = vadd.f32 %v19536_v34, %v5590_v30  ;;  %v5733_v23 = vrot.slane %v19602_v48, 1  ;;  %v6165_v45 = vrot.slane %v19602_v48, 2  ;;  %14454 = vmatprep.subr.mxu0 %v5670_v7  ;;  %14649 = vmatprep.subr.mxu1 %v6700_v41 }
 0x48e   :  { %v5507_v10 = vpop.f32.mrf.mxu1  ;;  %14455 = vmatpush3.msra.mxu0 %v5670_v7  ;;  %14650 = vmatpush3.msra.mxu1 %v6700_v41  ;;  %v5665_v7 = vld [vmem:[#allocation5 + $0x10] sm:$0xff] }
 0x48f   :  { %v19610_v59 = vmax.f32 %v5622_v63, 0.0  ;;  %v5591_v37 = vadd.f32 %v5507_v10, %v19489_v53  ;;  %v5734_v32 = vsel %vm205_vm0, %v5731_v57, %v5733_v23  ;;  %v6166_v27 = vsel %vm716_vm1, %v6163_v19, %v6165_v45  ;;  %14456 = vmatprep.subr.mxu0 %v5669_v61  ;;  %14651 = vmatprep.subr.mxu1 %v6699_v15  ;;  %v6695_v41 = vld [vmem:[#allocation5 + $0x210] sm:$0xff] }
 0x490   :  { %v14330_v54 = vpop.f32.mrf.mxu1  ;;  %14415 = vmatmul.mubr.f32.gmra.mxu0 %v5734_v32  ;;  %14545 = vmatmul.mubr.f32.gmra.mxu1 %v6166_v27  ;;  %v5663_v32 = vld [vmem:[#allocation5] sm:$0xff] }
 0x491   :  { %v5623_v33 = vadd.f32 %v19536_v34, %v5591_v37  ;;  %v5735_v47 = vrot.slane %v19610_v59, 1  ;;  %v6167_v16 = vrot.slane %v19610_v59, 2  ;;  %14457 = vmatpush3.msra.mxu0 %v5669_v61  ;;  %14652 = vmatpush3.msra.mxu1 %v6699_v15  ;;  %v5664_v61 = vld [vmem:[#allocation5 + $0x8] sm:$0xff]  ;;  %v6693_v27 = vld [vmem:[#allocation5 + $0x200] sm:$0xff] }
 0x492   :  { %v5512_v53 = vpop.f32.mrf.mxu1  ;;  %14458 = vmatprep.subr.mxu0 %v5668_v55  ;;  %14653 = vmatprep.subr.mxu1 %v6698_v11  ;;  %v6694_v15 = vld [vmem:[#allocation5 + $0x208] sm:$0xff] }
 0x493   :  { %v19618_v18 = vmax.f32 %v5623_v33, 0.0  ;;  %v5592_v51 = vadd.f32 %v5512_v53, %v19492_v2  ;;  %v5736_v62 = vsel %vm205_vm0, %v5733_v23, %v5735_v47  ;;  %v6168_v31 = vsel %vm716_vm1, %v6165_v45, %v6167_v16  ;;  %14459 = vmatpush3.msra.mxu0 %v5668_v55  ;;  %14654 = vmatpush3.msra.mxu1 %v6698_v11 }
 0x494   :  { %v14333_v6 = vpop.f32.mrf.mxu1  ;;  %14417 = vmatprep.mubr.f32.mxu0 %v5736_v62  ;;  %14547 = vmatprep.mubr.f32.mxu1 %v6168_v31 }
 0x495   :  { %v5624_v58 = vadd.f32 %v19536_v34, %v5592_v51  ;;  %v5737_v38 = vrot.slane %v19618_v18, 1  ;;  %v6169_v60 = vrot.slane %v19618_v18, 2  ;;  %14460 = vmatprep.subr.mxu0 %v5667_v3  ;;  %14655 = vmatprep.subr.mxu1 %v6697_v8 }
 0x496   :  { %v5517_v2 = vpop.f32.mrf.mxu1  ;;  %14461 = vmatpush3.msra.mxu0 %v5667_v3  ;;  %14656 = vmatpush3.msra.mxu1 %v6697_v8  ;;  %v19647_v3 = vld [vmem:[#allocation5 + $0x1f8] sm:$0xff] }
 0x497   :  { %v19626_v56 = vmax.f32 %v5624_v58, 0.0  ;;  %v5593_v57 = vadd.f32 %v5517_v2, %v19495_v1  ;;  %v5738_v19 = vsel %vm205_vm0, %v5735_v47, %v5737_v38  ;;  %v6170_v17 = vsel %vm716_vm1, %v6167_v16, %v6169_v60  ;;  %14462 = vmatprep.subr.mxu0 %v5666_v42  ;;  %14657 = vmatprep.subr.mxu1 %v6696_v35  ;;  %v19649_v8 = vld [vmem:[#allocation5 + $0x378] sm:$0xff] }
 0x498   :  { %v14336_v30 = vpop.f32.mrf.mxu1  ;;  %14418 = vmatmul.mubr.f32.gmra.mxu0 %v5738_v19  ;;  %14548 = vmatmul.mubr.f32.gmra.mxu1 %v6170_v17 }
 0x499   :  { %v5625_v43 = vadd.f32 %v19536_v34, %v5593_v57  ;;  %v5739_v39 = vrot.slane %v19626_v56, 1  ;;  %v6171_v52 = vrot.slane %v19626_v56, 2  ;;  %14463 = vmatpush3.msra.mxu0 %v5666_v42  ;;  %14658 = vmatpush3.msra.mxu1 %v6696_v35 }
 0x49a   :  { %v5522_v1 = vpop.f32.mrf.mxu1  ;;  %14464 = vmatprep.subr.mxu0 %v5665_v7  ;;  %14659 = vmatprep.subr.mxu1 %v6695_v41 }
 0x49b   :  { %v19634_v63 = vmax.f32 %v5625_v43, 0.0  ;;  %v5594_v23 = vadd.f32 %v5522_v1, %v19498_v44  ;;  %v5740_v45 = vsel %vm205_vm0, %v5737_v38, %v5739_v39  ;;  %v6172_v10 = vsel %vm716_vm1, %v6169_v60, %v6171_v52  ;;  %14465 = vmatpush3.msra.mxu0 %v5665_v7  ;;  %14660 = vmatpush3.msra.mxu1 %v6695_v41 }
 0x49c   :  { %v14339_v37 = vpop.f32.mrf.mxu1  ;;  %14420 = vmatprep.mubr.f32.mxu0 %v5740_v45  ;;  %14550 = vmatprep.mubr.f32.mxu1 %v6172_v10 }
 0x49d   :  { %v5626_v55 = vadd.f32 %v19536_v34, %v5594_v23  ;;  %v5741_v11 = vrot.slane %v19634_v63, 1  ;;  %v6173_v54 = vrot.slane %v19634_v63, 2  ;;  %14466 = vmatprep.subr.mxu0 %v5664_v61  ;;  %14661 = vmatprep.subr.mxu1 %v6694_v15 }
 0x49e   :  { %v5527_v44 = vpop.f32.mrf.mxu1  ;;  %14467 = vmatpush3.msra.mxu0 %v5664_v61  ;;  %14662 = vmatpush3.msra.mxu1 %v6694_v15 }
 0x49f   :  { %v19642_v33 = vmax.f32 %v5626_v55, 0.0  ;;  %v5595_v47 = vadd.f32 %v5527_v44, %v19501_v25  ;;  %v5742_v16 = vsel %vm205_vm0, %v5739_v39, %v5741_v11  ;;  %v6174_v53 = vsel %vm716_vm1, %v6171_v52, %v6173_v54  ;;  %14468 = vmatprep.subr.mxu0 %v5663_v32  ;;  %14663 = vmatprep.subr.mxu1 %v6693_v27 }
 0x4a0   :  { %v14342_v51 = vpop.f32.mrf.mxu1  ;;  %14421 = vmatmul.mubr.f32.gmra.mxu0 %v5742_v16  ;;  %14551 = vmatmul.mubr.f32.gmra.mxu1 %v6174_v53 }
 0x4a1   :  { %v5627_v62 = vadd.f32 %v19536_v34, %v5595_v47  ;;  %v5743_v31 = vrot.slane %v19642_v33, 1  ;;  %v6175_v6 = vrot.slane %v19642_v33, 2  ;;  %14469 = vmatpush3.msra.mxu0 %v5663_v32  ;;  %14664 = vmatpush3.msra.mxu1 %v6693_v27 }
 0x4a2   :  { %v5532_v25 = vpop.f32.mrf.mxu1  ;;  %14568 = vmatprep.subr.mxu0 %v19647_v3  ;;  %14763 = vmatprep.subr.mxu1 %v19649_v8 }
 0x4a3   :  { %v19656_v42 = vmax.f32 %v5627_v62, 0.0  ;;  %v5596_v35 = vadd.f32 %v5532_v25, %v19504_v13  ;;  %v5744_v58 = vsel %vm205_vm0, %v5741_v11, %v5743_v31  ;;  %v6176_v38 = vsel %vm716_vm1, %v6173_v54, %v6175_v6 }
 0x4a4   :  { %v14345_v60 = vpop.f32.mrf.mxu1  ;;  %14423 = vmatprep.mubr.f32.mxu0 %v5744_v58  ;;  %14553 = vmatprep.mubr.f32.mxu1 %v6176_v38 }
 0x4a5   :  { %v5628_v2 = vadd.f32 %v19536_v34, %v5596_v35  ;;  %v5745_v57 = vrot.slane %v19656_v42, 1  ;;  %v6177_v19 = vrot.slane %v19656_v42, 2 }
 0x4a6   :  { %v5537_v17 = vpop.f32.mrf.mxu1 }
 0x4a7   :  { %v19664_v7 = vmax.f32 %v5628_v2, 0.0  ;;  %v5597_v41 = vadd.f32 %v5537_v17, %v19507_v26  ;;  %v5746_v13 = vsel %vm205_vm0, %v5743_v31, %v5745_v57  ;;  %v6178_v30 = vsel %vm716_vm1, %v6175_v6, %v6177_v19 }
 0x4a8   :  { %v14348_v43 = vpop.f32.mrf.mxu1  ;;  %14424 = vmatmul.mubr.f32.gmra.mxu0 %v5746_v13  ;;  %14554 = vmatmul.mubr.f32.gmra.mxu1 %v6178_v30 }
 0x4a9   :  { %v5629_v39 = vadd.f32 %v19536_v34, %v5597_v41  ;;  %v5747_v52 = vrot.slane %v19664_v7, 1  ;;  %v6179_v1 = vrot.slane %v19664_v7, 2 }
 0x4aa   :  { %v5542_v61 = vpop.f32.mrf.mxu1 }
 0x4ab   :  { %v19672_v15 = vmax.f32 %v5629_v39, 0.0  ;;  %v5598_v23 = vadd.f32 %v5542_v61, %v19510_v20  ;;  %v5748_v26 = vsel %vm205_vm0, %v5745_v57, %v5747_v52  ;;  %v6180_v45 = vsel %vm716_vm1, %v6177_v19, %v6179_v1 }
 0x4ac   :  { %v14351_v10 = vpop.f32.mrf.mxu1  ;;  %14426 = vmatprep.mubr.f32.mxu0 %v5748_v26  ;;  %14556 = vmatprep.mubr.f32.mxu1 %v6180_v45 }
 0x4ad   :  { %v5630_v37 = vadd.f32 %v19536_v34, %v5598_v23  ;;  %v5749_v32 = vrot.slane %v19672_v15, 1  ;;  %v6181_v27 = vrot.slane %v19672_v15, 2 }
 0x4ae   :  { %v5547_v55 = vpop.f32.mrf.mxu1 }
 0x4af   :  { %v19680_v11 = vmax.f32 %v5630_v37, 0.0  ;;  %v5599_v54 = vadd.f32 %v5547_v55, %v19513_v29  ;;  %v5750_v20 = vsel %vm205_vm0, %v5747_v52, %v5749_v32  ;;  %v6182_v44 = vsel %vm716_vm1, %v6179_v1, %v6181_v27 }
 0x4b0   :  { %v14354_v47 = vpop.f32.mrf.mxu1  ;;  %14427 = vmatmul.mubr.f32.gmra.mxu0 %v5750_v20  ;;  %14557 = vmatmul.mubr.f32.gmra.mxu1 %v6182_v44  ;;  %v6710_v44 = vrot.slane %v19552_v22, 4 }
 0x4b1   :  { %v5631_v16 = vadd.f32 %v19536_v34, %v5599_v54  ;;  %v5751_v53 = vrot.slane %v19680_v11, 1  ;;  %v6183_v51 = vrot.slane %v19680_v11, 2 }
 0x4b2   :  { %v5552_v62 = vpop.f32.mrf.mxu1 }
 0x4b3   :  { %v19688_v31 = vmax.f32 %v5631_v16, 0.0  ;;  %v5600_v6 = vadd.f32 %v5552_v62, %v19516_v14  ;;  %v5752_v29 = vsel %vm205_vm0, %v5749_v32, %v5751_v53  ;;  %v6184_v25 = vsel %vm716_vm1, %v6181_v27, %v6183_v51 }
 0x4b4   :  { %v14357_v35 = vpop.f32.mrf.mxu1  ;;  %14429 = vmatprep.mubr.f32.mxu0 %v5752_v29  ;;  %14559 = vmatprep.mubr.f32.mxu1 %v6184_v25  ;;  %v6709_v62 = vrot.slane %v19544_v5, 4  ;;  %v6712_v29 = vrot.slane %v19560_v24, 4 }
 0x4b5   :  { %v5632_v58 = vadd.f32 %v19536_v34, %v5600_v6  ;;  %v5753_v38 = vrot.slane %v19688_v31, 1  ;;  %v6185_v60 = vrot.slane %v19688_v31, 2 }
 0x4b6   :  { %v5557_v2 = vpop.f32.mrf.mxu1  ;;  %v6711_v25 = vsel %vm1385_vm3, %v6709_v62, %v6710_v44  ;;  %v6734_v62 = vrot.slane %v19656_v42, 4 }
 0x4b7   :  { %v19696_v57 = vmax.f32 %v5632_v58, 0.0  ;;  %v5601_v19 = vadd.f32 %v5557_v2, %v19519_v49  ;;  %v5754_v14 = vsel %vm205_vm0, %v5751_v53, %v5753_v38  ;;  %v6186_v17 = vsel %vm716_vm1, %v6183_v51, %v6185_v60  ;;  %v6427_v2 = vld [vmem:[#allocation5 + $0x1f0] sm:$0xff] }
 0x4b8   :  { %v14360_v41 = vpop.f32.mrf.mxu1  ;;  %14430 = vmatmul.mubr.f32.gmra.mxu0 %v5754_v14  ;;  %14560 = vmatmul.mubr.f32.gmra.mxu1 %v6186_v17  ;;  %v6718_v14 = vrot.slane %v19586_v21, 4  ;;  %v6426_v17 = vld [vmem:[#allocation5 + $0x1e8] sm:$0xff] }
 0x4b9   :  { %v5633_v13 = vadd.f32 %v19536_v34, %v5601_v19  ;;  %v5755_v30 = vrot.slane %v19696_v57, 1  ;;  %v6187_v43 = vrot.slane %v19696_v57, 2  ;;  %v6716_v19 = vrot.slane %v19578_v0, 4 }
 0x4ba   :  { %v5562_v39 = vpop.f32.mrf.mxu1  ;;  %v6720_v41 = vrot.slane %v19594_v40, 4 }
 0x4bb   :  { %v19704_v52 = vmax.f32 %v5633_v13, 0.0  ;;  %v5602_v1 = vadd.f32 %v5562_v39, %v19522_v12  ;;  %v5756_v49 = vsel %vm205_vm0, %v5753_v38, %v5755_v30  ;;  %v6188_v61 = vsel %vm716_vm1, %v6185_v60, %v6187_v43  ;;  %v7265_v13 = vld [vmem:[#allocation5 + $0x370] sm:$0xff] }
 0x4bc   :  { %v14363_v23 = vpop.f32.mrf.mxu1  ;;  %14432 = vmatprep.mubr.f32.mxu0 %v5756_v49  ;;  %14562 = vmatprep.mubr.f32.mxu1 %v6188_v61  ;;  %v6713_v60 = vsel %vm1385_vm3, %v6710_v44, %v6712_v29  ;;  %v6721_v39 = vsel %vm1385_vm3, %v6718_v14, %v6720_v41  ;;  %v7264_v49 = vld [vmem:[#allocation5 + $0x368] sm:$0xff]  ;;  %v6421_v44 = vld [vmem:[#allocation5 + $0x1c0] sm:$0xff] }
 0x4bd   :  { %v5634_v26 = vadd.f32 %v19536_v34, %v5602_v1  ;;  %v5757_v45 = vrot.slane %v19704_v52, 1  ;;  %v6189_v10 = vrot.slane %v19704_v52, 2  ;;  %v6724_v1 = vrot.slane %v19610_v59, 4 }
 0x4be   :  { %v19712_v37 = vpop.f32.mrf.mxu1  ;;  %v6726_v23 = vrot.slane %v19618_v18, 4 }
 0x4bf   :  { %v19714_v32 = vmax.f32 %v5634_v26, 0.0  ;;  %v5758_v27 = vsel %vm205_vm0, %v5755_v30, %v5757_v45  ;;  %v6190_v12 = vsel %vm716_vm1, %v6187_v43, %v6189_v10  ;;  %v6719_v30 = vsel %vm1385_vm3, %v6716_v19, %v6718_v14  ;;  %v6425_v43 = vld [vmem:[#allocation5 + $0x1e0] sm:$0xff] }
 0x4c0   :  { %v14366_v55 = vpop.f32.mrf.mxu1  ;;  %14433 = vmatmul.mubr.f32.gmra.mxu0 %v5758_v27  ;;  %14563 = vmatmul.mubr.f32.gmra.mxu1 %v6190_v12  ;;  %v6727_v27 = vsel %vm1385_vm3, %v6724_v1, %v6726_v23  ;;  %v6730_v12 = vrot.slane %v19634_v63, 4 }
 0x4c1   :  { %v5759_v54 = vrot.slane %v19714_v32, 1  ;;  %v6191_v20 = vrot.slane %v19714_v32, 2  ;;  %v6422_v55 = vld [vmem:[#allocation5 + $0x1c8] sm:$0xff] }
 0x4c2   :  { %v5572_v47 = vpop.f32.mrf.mxu1 }
 0x4c3   :  { %v19722_v16 = vadd.f32 %v5572_v47, %v19528_v4  ;;  %v5760_v53 = vsel %vm205_vm0, %v5757_v45, %v5759_v54  ;;  %v6192_v51 = vsel %vm716_vm1, %v6189_v10, %v6191_v20  ;;  %v6714_v4 = vrot.slane %v19570_v9, 4  ;;  %v6423_v45 = vld [vmem:[#allocation5 + $0x1d0] sm:$0xff] }
 0x4c4   :  { %v14369_v6 = vpop.f32.mrf.mxu1  ;;  %14435 = vmatprep.mubr.f32.mxu0 %v5760_v53  ;;  %14565 = vmatprep.mubr.f32.mxu1 %v6192_v51  ;;  %v6728_v10 = vrot.slane %v19626_v56, 4  ;;  %v6732_v47 = vrot.slane %v19642_v33, 4  ;;  %v7262_v51 = vld [vmem:[#allocation5 + $0x358] sm:$0xff] }
 0x4c5   :  { %14436 = vmatmul.mubr.f32.gmra.mxu0 %v5759_v54  ;;  %14566 = vmatmul.mubr.f32.gmra.mxu1 %v6191_v20  ;;  %v7263_v20 = vld [vmem:[#allocation5 + $0x360] sm:$0xff] }
 0x4c6   :  { %v5577_v35 = vpop.f32.mrf.mxu1  ;;  %14470 = vmatprep.mubr.f32.mxu0 %v19541_v36  ;;  %14665 = vmatprep.mubr.f32.mxu1 %v6711_v25  ;;  %v6715_v36 = vsel %vm1385_vm3, %v6712_v29, %v6714_v4  ;;  %v6729_v54 = vsel %vm1385_vm3, %v6726_v23, %v6728_v10  ;;  %v6731_v53 = vsel %vm1385_vm3, %v6728_v10, %v6730_v12  ;;  %v6420_v29 = vld [vmem:[#allocation5 + $0x1b8] sm:$0xff]  ;;  %v7261_v25 = vld [vmem:[#allocation5 + $0x350] sm:$0xff]  ;;  %v6748_v10 = vrot.slane %v19714_v32, 4 }
 0x4c7   :  { %v19732_v58 = vadd.f32 %v5577_v35, %v19531_v28  ;;  %v6717_v28 = vsel %vm1385_vm3, %v6714_v4, %v6716_v19  ;;  %v6733_v6 = vsel %vm1385_vm3, %v6730_v12, %v6732_v47  ;;  %v6736_v35 = vrot.slane %v19664_v7, 4  ;;  %v6419_v19 = vld [vmem:[#allocation5 + $0x1b0] sm:$0xff]  ;;  %v6416_v23 = vld [vmem:[#allocation5 + $0x198] sm:$0xff] }
 0x4c8   :  { %v14372_v38 = vpop.f32.mrf.mxu1  ;;  %v6735_v4 = vsel %vm1385_vm3, %v6732_v47, %v6734_v62  ;;  %v7254_v12 = vld [vmem:[#allocation5 + $0x318] sm:$0xff] }
 0x4c9   :  { %14471 = vmatmul.mubr.f32.vlgmr.msra.gmra.mxu0 %v19544_v5  ;;  %14666 = vmatmul.mubr.f32.vlgmr.msra.gmra.mxu1 %v6713_v60  ;;  %v6738_v38 = vrot.slane %v19672_v15, 4  ;;  %v7260_v60 = vld [vmem:[#allocation5 + $0x348] sm:$0xff] }
 0x4ca   :  { %14473 = vmatprep.mubr.f32.mxu0 %v19552_v22  ;;  %14569 = vmatpush3.msra.mxu0 %v19647_v3  ;;  %v6722_v3 = vrot.slane %v19602_v48, 4 }
 0x4cb   :  { %14668 = vmatprep.mubr.f32.mxu1 %v6715_v36  ;;  %14570 = vmatprep.subr.mxu0 %v6427_v2  ;;  %v6739_v14 = vsel %vm1385_vm3, %v6736_v35, %v6738_v38  ;;  %v7259_v36 = vld [vmem:[#allocation5 + $0x340] sm:$0xff] }
 0x4cc   :  { %14571 = vmatpush3.msra.mxu0 %v6427_v2  ;;  %14764 = vmatpush3.msra.mxu1 %v19649_v8  ;;  %v6424_v8 = vld [vmem:[#allocation5 + $0x1d8] sm:$0xff]  ;;  %v6723_v61 = vsel %vm1385_vm3, %v6720_v41, %v6722_v3  ;;  %v6725_v26 = vsel %vm1385_vm3, %v6722_v3, %v6724_v1  ;;  %v6737_v2 = vsel %vm1385_vm3, %v6734_v62, %v6736_v35  ;;  %v6418_v41 = vld [vmem:[#allocation5 + $0x1a8] sm:$0xff]  ;;  %v6413_v35 = vld [vmem:[#allocation5 + $0x180] sm:$0xff] }
 0x4cd   :  { %14474 = vmatmul.mubr.f32.gmra.mxu0 %v19560_v24  ;;  %14669 = vmatmul.mubr.f32.gmra.mxu1 %v6717_v28  ;;  %v6740_v28 = vrot.slane %v19680_v11, 4  ;;  %v7252_v62 = vld [vmem:[#allocation5 + $0x308] sm:$0xff] }
 0x4ce   :  { %14476 = vmatprep.mubr.f32.mxu0 %v19570_v9  ;;  %14671 = vmatprep.mubr.f32.mxu1 %v6719_v30  ;;  %v6742_v30 = vrot.slane %v19688_v31, 4 }
 0x4cf   :  { %14572 = vmatprep.subr.mxu0 %v6426_v17  ;;  %14765 = vmatprep.subr.mxu1 %v7265_v13  ;;  %v6741_v3 = vsel %vm1385_vm3, %v6738_v38, %v6740_v28  ;;  %v6433_v38 = vrot.slane %v19560_v24, 3 }
 0x4d0   :  { %14573 = vmatpush3.msra.mxu0 %v6426_v17  ;;  %14766 = vmatpush3.msra.mxu1 %v7265_v13  ;;  %v5603_v17 = vadd.f32 %v19712_v37, %v19525_v46  ;;  %v7258_v13 = vld [vmem:[#allocation5 + $0x338] sm:$0xff]  ;;  %v7257_v46 = vld [vmem:[#allocation5 + $0x330] sm:$0xff]  ;;  %v6417_v37 = vld [vmem:[#allocation5 + $0x1a0] sm:$0xff]  ;;  %v6743_v1 = vsel %vm1385_vm3, %v6740_v28, %v6742_v30 }
 0x4d1   :  { %14477 = vmatmul.mubr.f32.gmra.mxu0 %v19578_v0  ;;  %14672 = vmatmul.mubr.f32.gmra.mxu1 %v6721_v39  ;;  %v6744_v39 = vrot.slane %v19696_v57, 4 }
 0x4d2   :  { %14479 = vmatprep.mubr.f32.mxu0 %v19586_v21  ;;  %14574 = vmatprep.subr.mxu0 %v6425_v43 }
 0x4d3   :  { %14674 = vmatprep.mubr.f32.mxu1 %v6723_v61  ;;  %14575 = vmatpush3.msra.mxu0 %v6425_v43  ;;  %v5635_v43 = vadd.f32 %v19536_v34, %v5603_v17  ;;  %v6745_v34 = vsel %vm1385_vm3, %v6742_v30, %v6744_v39  ;;  %v6437_v17 = vrot.slane %v19578_v0, 3  ;;  %v6986_v30 = vld [vmem:[#allocation5 + $0x2f0] sm:$0xff] }
 0x4d4   :  { %14576 = vmatprep.subr.mxu0 %v6424_v8  ;;  %14767 = vmatprep.subr.mxu1 %v7264_v49 }
 0x4d5   :  { %14480 = vmatmul.mubr.f32.gmra.mxu0 %v19594_v40  ;;  %14675 = vmatmul.mubr.f32.gmra.mxu1 %v6725_v26  ;;  %v19787_v61 = vmax.f32 %v5635_v43, 0.0  ;;  %v7828_v43 = vld [vmem:[#allocation5 + $0x478] sm:$0xff] }
 0x4d6   :  { %14577 = vmatpush3.msra.mxu0 %v6424_v8  ;;  %14482 = vmatprep.mubr.f32.mxu0 %v19602_v48  ;;  %v6746_v8 = vrot.slane %v19704_v52, 4 }
 0x4d7   :  { %14677 = vmatprep.mubr.f32.mxu1 %v6727_v27  ;;  %14578 = vmatprep.subr.mxu0 %v6423_v45  ;;  %v6415_v27 = vld [vmem:[#allocation5 + $0x190] sm:$0xff] }
 0x4d8   :  { %14579 = vmatpush3.msra.mxu0 %v6423_v45  ;;  %14768 = vmatpush3.msra.mxu1 %v7264_v49  ;;  %v7256_v49 = vld [vmem:[#allocation5 + $0x328] sm:$0xff]  ;;  %v6747_v26 = vsel %vm1385_vm3, %v6744_v39, %v6746_v8  ;;  %v7255_v45 = vld [vmem:[#allocation5 + $0x320] sm:$0xff]  ;;  %v7277_v39 = vrot.slane %v19594_v40, 6 }
 0x4d9   :  { %14483 = vmatmul.mubr.f32.gmra.mxu0 %v19610_v59  ;;  %14678 = vmatmul.mubr.f32.gmra.mxu1 %v6729_v54  ;;  %v6749_v54 = vsel %vm1385_vm3, %v6746_v8, %v6748_v10 }
 0x4da   :  { %14485 = vmatprep.mubr.f32.mxu0 %v19618_v18  ;;  %14580 = vmatprep.subr.mxu0 %v6422_v55 }
 0x4db   :  { %14680 = vmatprep.mubr.f32.mxu1 %v6731_v53  ;;  %14581 = vmatpush3.msra.mxu0 %v6422_v55  ;;  %v6750_v55 = vrot.slane %v19787_v61, 4  ;;  %v6431_v53 = vrot.slane %v19552_v22, 3 }
 0x4dc   :  { %14769 = vmatprep.subr.mxu1 %v7263_v20  ;;  %14582 = vmatprep.subr.mxu0 %v6421_v44 }
 0x4dd   :  { %14770 = vmatpush3.msra.mxu1 %v7263_v20  ;;  %14486 = vmatmul.mubr.f32.gmra.mxu0 %v19626_v56  ;;  %v7253_v20 = vld [vmem:[#allocation5 + $0x310] sm:$0xff]  ;;  %v6751_v47 = vsel %vm1385_vm3, %v6748_v10, %v6750_v55  ;;  %v6434_v28 = vsel %vm1051_vm2, %v6431_v53, %v6433_v38 }
 0x4de   :  { %14681 = vmatmul.mubr.f32.gmra.mxu1 %v6733_v6  ;;  %14771 = vmatprep.subr.mxu1 %v7262_v51  ;;  %v6430_v6 = vrot.slane %v19544_v5, 3 }
 0x4df   :  { %14488 = vmatprep.mubr.f32.mxu0 %v19634_v63  ;;  %14583 = vmatpush3.msra.mxu0 %v6421_v44  ;;  %v6414_v44 = vld [vmem:[#allocation5 + $0x188] sm:$0xff] }
 0x4e0   :  { %14683 = vmatprep.mubr.f32.mxu1 %v6735_v4  ;;  %14772 = vmatpush3.msra.mxu1 %v7262_v51  ;;  %v7269_v51 = vrot.slane %v19560_v24, 6  ;;  %v7251_v4 = vld [vmem:[#allocation5 + $0x300] sm:$0xff] }
 0x4e1   :  { %14584 = vmatprep.subr.mxu0 %v6420_v29  ;;  %14773 = vmatprep.subr.mxu1 %v7261_v25 }
 0x4e2   :  { %14585 = vmatpush3.msra.mxu0 %v6420_v29  ;;  %14774 = vmatpush3.msra.mxu1 %v7261_v25  ;;  %v7268_v29 = vrot.slane %v19552_v22, 6  ;;  %v6432_v25 = vsel %vm1051_vm2, %v6430_v6, %v6431_v53  ;;  %v7826_v6 = vld [vmem:[#allocation5 + $0x468] sm:$0xff] }
 0x4e3   :  { %14489 = vmatmul.mubr.f32.gmra.mxu0 %v19642_v33  ;;  %14684 = vmatmul.mubr.f32.gmra.mxu1 %v6737_v2  ;;  %v7271_v2 = vrot.slane %v19570_v9, 6 }
 0x4e4   :  { %14775 = vmatprep.subr.mxu1 %v7260_v60  ;;  %14491 = vmatprep.mubr.f32.mxu0 %v19656_v42 }
 0x4e5   :  { %14586 = vmatprep.subr.mxu0 %v6419_v19  ;;  %14686 = vmatprep.mubr.f32.mxu1 %v6739_v14  ;;  %v6987_v14 = vld [vmem:[#allocation5 + $0x2f8] sm:$0xff] }
 0x4e6   :  { %14776 = vmatpush3.msra.mxu1 %v7260_v60  ;;  %14587 = vmatpush3.msra.mxu0 %v6419_v19  ;;  %v7270_v60 = vsel %vm2054_vm5, %v7268_v29, %v7269_v51  ;;  %v6435_v19 = vrot.slane %v19570_v9, 3 }
 0x4e7   :  { %14777 = vmatprep.subr.mxu1 %v7259_v36  ;;  %14492 = vmatmul.mubr.f32.gmra.mxu0 %v19664_v7 }
 0x4e8   :  { %14778 = vmatpush3.msra.mxu1 %v7259_v36  ;;  %14588 = vmatprep.subr.mxu0 %v6418_v41  ;;  %v7273_v36 = vrot.slane %v19578_v0, 6 }
 0x4e9   :  { %14687 = vmatmul.mubr.f32.gmra.mxu1 %v6741_v3  ;;  %14779 = vmatprep.subr.mxu1 %v7258_v13  ;;  %v7275_v3 = vrot.slane %v19586_v21, 6 }
 0x4ea   :  { %14494 = vmatprep.mubr.f32.mxu0 %v19672_v15  ;;  %14589 = vmatpush3.msra.mxu0 %v6418_v41  ;;  %v7272_v41 = vsel %vm2054_vm5, %v7269_v51, %v7271_v2  ;;  %v6983_v51 = vld [vmem:[#allocation5 + $0x2d8] sm:$0xff] }
 0x4eb   :  { %14689 = vmatprep.mubr.f32.mxu1 %v6743_v1  ;;  %14780 = vmatpush3.msra.mxu1 %v7258_v13  ;;  %v6436_v13 = vsel %vm1051_vm2, %v6433_v38, %v6435_v19  ;;  %v6438_v1 = vsel %vm1051_vm2, %v6435_v19, %v6437_v17  ;;  %v7276_v8 = vsel %vm2054_vm5, %v7273_v36, %v7275_v3  ;;  %v6982_v38 = vld [vmem:[#allocation5 + $0x2d0] sm:$0xff] }
 0x4ec   :  { %14781 = vmatprep.subr.mxu1 %v7257_v46  ;;  %14590 = vmatprep.subr.mxu0 %v6417_v37  ;;  %v7278_v10 = vsel %vm2054_vm5, %v7275_v3, %v7277_v39 }
 0x4ed   :  { %14782 = vmatpush3.msra.mxu1 %v7257_v46  ;;  %14495 = vmatmul.mubr.f32.gmra.mxu0 %v19680_v11  ;;  %v7274_v46 = vsel %vm2054_vm5, %v7271_v2, %v7273_v36  ;;  %v7287_v2 = vrot.slane %v19634_v63, 6 }
 0x4ee   :  { %14591 = vmatpush3.msra.mxu0 %v6417_v37  ;;  %14690 = vmatmul.mubr.f32.gmra.mxu1 %v6745_v34  ;;  %v6439_v37 = vrot.slane %v19586_v21, 3  ;;  %v6441_v34 = vrot.slane %v19594_v40, 3 }
 0x4ef   :  { %14783 = vmatprep.subr.mxu1 %v7256_v49  ;;  %14497 = vmatprep.mubr.f32.mxu0 %v19688_v31 }
 0x4f0   :  { %14592 = vmatprep.subr.mxu0 %v6416_v23  ;;  %14692 = vmatprep.mubr.f32.mxu1 %v6747_v26  ;;  %v7827_v26 = vld [vmem:[#allocation5 + $0x470] sm:$0xff] }
 0x4f1   :  { %14784 = vmatpush3.msra.mxu1 %v7256_v49  ;;  %14593 = vmatpush3.msra.mxu0 %v6416_v23  ;;  %v6985_v49 = vld [vmem:[#allocation5 + $0x2e8] sm:$0xff]  ;;  %v7279_v23 = vrot.slane %v19602_v48, 6 }
 0x4f2   :  { %14785 = vmatprep.subr.mxu1 %v7255_v45  ;;  %14498 = vmatmul.mubr.f32.gmra.mxu0 %v19696_v57 }
 0x4f3   :  { %14786 = vmatpush3.msra.mxu1 %v7255_v45  ;;  %14594 = vmatprep.subr.mxu0 %v6415_v27  ;;  %v6440_v45 = vsel %vm1051_vm2, %v6437_v17, %v6439_v37  ;;  %v6981_v17 = vld [vmem:[#allocation5 + $0x2c8] sm:$0xff] }
 0x4f4   :  { %14693 = vmatmul.mubr.f32.gmra.mxu1 %v6749_v54  ;;  %14787 = vmatprep.subr.mxu1 %v7254_v12  ;;  %v6442_v54 = vsel %vm1051_vm2, %v6439_v37, %v6441_v34  ;;  %v7291_v37 = vrot.slane %v19656_v42, 6 }
 0x4f5   :  { %14500 = vmatprep.mubr.f32.mxu0 %v19704_v52  ;;  %14595 = vmatpush3.msra.mxu0 %v6415_v27  ;;  %v6443_v27 = vrot.slane %v19602_v48, 3 }
 0x4f6   :  { %14695 = vmatprep.mubr.f32.mxu1 %v6751_v47  ;;  %14788 = vmatpush3.msra.mxu1 %v7254_v12  ;;  %v7281_v12 = vrot.slane %v19610_v59, 6  ;;  %v7283_v47 = vrot.slane %v19618_v18, 6 }
 0x4f7   :  { %14789 = vmatprep.subr.mxu1 %v7253_v20  ;;  %14596 = vmatprep.subr.mxu0 %v6414_v44  ;;  %v6444_v53 = vsel %vm1051_vm2, %v6441_v34, %v6443_v27 }
 0x4f8   :  { %14790 = vmatpush3.msra.mxu1 %v7253_v20  ;;  %14501 = vmatmul.mubr.f32.gmra.mxu0 %v19714_v32  ;;  %v7280_v20 = vsel %vm2054_vm5, %v7277_v39, %v7279_v23  ;;  %v7282_v29 = vsel %vm2054_vm5, %v7279_v23, %v7281_v12 }
 0x4f9   :  { %14597 = vmatpush3.msra.mxu0 %v6414_v44  ;;  %14696 = vmatmul.mubr.f32.gmra.mxu1 %v6750_v55  ;;  %v6984_v55 = vld [vmem:[#allocation5 + $0x2e0] sm:$0xff]  ;;  %v6445_v44 = vrot.slane %v19610_v59, 3 }
 0x4fa   :  { %14791 = vmatprep.subr.mxu1 %v7252_v62  ;;  %14600 = vmatprep.mubr.f32.mxu0 %v6432_v25  ;;  %v7285_v25 = vrot.slane %v19626_v56, 6 }
 0x4fb   :  { %14792 = vmatpush3.msra.mxu1 %v7252_v62  ;;  %14795 = vmatprep.mubr.f32.mxu1 %v7270_v60  ;;  %v6447_v62 = vrot.slane %v19618_v18, 3  ;;  %v6449_v60 = vrot.slane %v19626_v56, 3 }
 0x4fc   :  { %14598 = vmatprep.subr.mxu0 %v6413_v35  ;;  %14793 = vmatprep.subr.mxu1 %v7251_v4  ;;  %v7286_v36 = vsel %vm2054_vm5, %v7283_v47, %v7285_v25 }
 0x4fd   :  { %14599 = vmatpush3.msra.mxu0 %v6413_v35  ;;  %14794 = vmatpush3.msra.mxu1 %v7251_v4  ;;  %v6446_v35 = vsel %vm1051_vm2, %v6443_v27, %v6445_v44  ;;  %v7284_v4 = vsel %vm2054_vm5, %v7281_v12, %v7283_v47  ;;  %v6448_v19 = vsel %vm1051_vm2, %v6445_v44, %v6447_v62  ;;  %v6457_v27 = vrot.slane %v19664_v7, 3  ;;  %v7822_v44 = vld [vmem:[#allocation5 + $0x448] sm:$0xff] }
 0x4fe   :  { %14601 = vmatmul.mubr.f32.vlgmr.msra.gmra.mxu0 %v6434_v28  ;;  %14698 = vmatprep.subr.mxu0 %v6987_v14  ;;  %v7289_v28 = vrot.slane %v19642_v33, 6  ;;  %v7295_v12 = vrot.slane %v19672_v15, 6 }
 0x4ff   :  { %14796 = vmatmul.mubr.f32.vlgmr.msra.gmra.mxu1 %v7272_v41  ;;  %14603 = vmatprep.mubr.f32.mxu0 %v6436_v13  ;;  %v6450_v41 = vsel %vm1051_vm2, %v6447_v62, %v6449_v60  ;;  %v7288_v13 = vsel %vm2054_vm5, %v7285_v25, %v7287_v2  ;;  %v6461_v62 = vrot.slane %v19680_v11, 3  ;;  %v7821_v25 = vld [vmem:[#allocation5 + $0x440] sm:$0xff] }
 0x500   :  { %14699 = vmatpush3.msra.mxu0 %v6987_v14  ;;  %14798 = vmatprep.mubr.f32.mxu1 %v7274_v46  ;;  %v6451_v14 = vrot.slane %v19634_v63, 3  ;;  %v6980_v46 = vld [vmem:[#allocation5 + $0x2c0] sm:$0xff]  ;;  %v7290_v39 = vsel %vm2054_vm5, %v7287_v2, %v7289_v28  ;;  %v7292_v23 = vsel %vm2054_vm5, %v7289_v28, %v7291_v37  ;;  %v7820_v2 = vld [vmem:[#allocation5 + $0x438] sm:$0xff] }
 0x501   :  { %14700 = vmatprep.subr.mxu0 %v6986_v30  ;;  %14893 = vmatprep.subr.mxu1 %v7828_v43  ;;  %v19872_v28 = vld [vmem:[%s21719_s4] ss:$0 sm:$0xff] }
 0x502   :  { %14604 = vmatmul.mubr.f32.gmra.mxu0 %v6438_v1  ;;  %14894 = vmatpush3.msra.mxu1 %v7828_v43  ;;  %v6452_v3 = vsel %vm1051_vm2, %v6449_v60, %v6451_v14  ;;  %v7825_v43 = vld [vmem:[#allocation5 + $0x460] sm:$0xff]  ;;  %v6455_v1 = vrot.slane %v19656_v42, 3 }
 0x503   :  { %14701 = vmatpush3.msra.mxu0 %v6986_v30  ;;  %14799 = vmatmul.mubr.f32.gmra.mxu1 %v7276_v8  ;;  %v6453_v30 = vrot.slane %v19642_v33, 3  ;;  %v7824_v8 = vld [vmem:[#allocation5 + $0x458] sm:$0xff] }
 0x504   :  { %14606 = vmatprep.mubr.f32.mxu0 %v6440_v45  ;;  %14801 = vmatprep.mubr.f32.mxu1 %v7278_v10  ;;  %v6979_v45 = vld [vmem:[#allocation5 + $0x2b8] sm:$0xff]  ;;  %v7823_v10 = vld [vmem:[#allocation5 + $0x450] sm:$0xff]  ;;  %v6458_v47 = vsel %vm1051_vm2, %v6455_v1, %v6457_v27 }
 0x505   :  { %14702 = vmatprep.subr.mxu0 %v6985_v49  ;;  %14895 = vmatprep.subr.mxu1 %v7827_v26  ;;  %v6454_v34 = vsel %vm1051_vm2, %v6451_v14, %v6453_v30 }
 0x506   :  { %14703 = vmatpush3.msra.mxu0 %v6985_v49  ;;  %14896 = vmatpush3.msra.mxu1 %v7827_v26  ;;  %v7293_v49 = vrot.slane %v19664_v7, 6  ;;  %v6456_v26 = vsel %vm1051_vm2, %v6453_v30, %v6455_v1  ;;  %v6976_v30 = vld [vmem:[#allocation5 + $0x2a0] sm:$0xff] }
 0x507   :  { %14607 = vmatmul.mubr.f32.gmra.mxu0 %v6442_v54  ;;  %14802 = vmatmul.mubr.f32.gmra.mxu1 %v7280_v20  ;;  %v6459_v54 = vrot.slane %v19672_v15, 3  ;;  %v7297_v20 = vrot.slane %v19680_v11, 6 }
 0x508   :  { %14609 = vmatprep.mubr.f32.mxu0 %v6444_v53  ;;  %14704 = vmatprep.subr.mxu0 %v6984_v55  ;;  %v7296_v53 = vsel %vm2054_vm5, %v7293_v49, %v7295_v12 }
 0x509   :  { %14804 = vmatprep.mubr.f32.mxu1 %v7282_v29  ;;  %14705 = vmatpush3.msra.mxu0 %v6984_v55  ;;  %v7294_v55 = vsel %vm2054_vm5, %v7291_v37, %v7293_v49  ;;  %v7298_v29 = vsel %vm2054_vm5, %v7295_v12, %v7297_v20  ;;  %v6462_v60 = vsel %vm1051_vm2, %v6459_v54, %v6461_v62  ;;  %v7305_v37 = vrot.slane %v19714_v32, 6  ;;  %v6975_v49 = vld [vmem:[#allocation5 + $0x298] sm:$0xff] }
 0x50a   :  { %14706 = vmatprep.subr.mxu0 %v6983_v51  ;;  %14897 = vmatprep.subr.mxu1 %v7826_v6  ;;  %v6471_v12 = vrot.slane %v19787_v61, 3 }
 0x50b   :  { %14610 = vmatmul.mubr.f32.gmra.mxu0 %v6446_v35  ;;  %14805 = vmatmul.mubr.f32.gmra.mxu1 %v7284_v4  ;;  %v7299_v35 = vrot.slane %v19688_v31, 6  ;;  %v6977_v4 = vld [vmem:[#allocation5 + $0x2a8] sm:$0xff] }
 0x50c   :  { %14707 = vmatpush3.msra.mxu0 %v6983_v51  ;;  %14612 = vmatprep.mubr.f32.mxu0 %v6448_v19  ;;  %v6978_v51 = vld [vmem:[#allocation5 + $0x2b0] sm:$0xff]  ;;  %v7301_v19 = vrot.slane %v19696_v57, 6 }
 0x50d   :  { %14807 = vmatprep.mubr.f32.mxu1 %v7286_v36  ;;  %14708 = vmatprep.subr.mxu0 %v6982_v38  ;;  %v7300_v14 = vsel %vm2054_vm5, %v7297_v20, %v7299_v35  ;;  %v6465_v36 = vrot.slane %v19696_v57, 3 }
 0x50e   :  { %14709 = vmatpush3.msra.mxu0 %v6982_v38  ;;  %14898 = vmatpush3.msra.mxu1 %v7826_v6  ;;  %v6460_v6 = vsel %vm1051_vm2, %v6457_v27, %v6459_v54  ;;  %v6463_v38 = vrot.slane %v19688_v31, 3  ;;  %v6974_v27 = vld [vmem:[#allocation5 + $0x290] sm:$0xff]  ;;  %v7816_v54 = vld [vmem:[#allocation5 + $0x418] sm:$0xff] }
 0x50f   :  { %14613 = vmatmul.mubr.f32.gmra.mxu0 %v6450_v41  ;;  %14808 = vmatmul.mubr.f32.gmra.mxu1 %v7288_v13  ;;  %v7819_v13 = vld [vmem:[#allocation5 + $0x430] sm:$0xff] }
 0x510   :  { %14615 = vmatprep.mubr.f32.mxu0 %v6452_v3  ;;  %14710 = vmatprep.subr.mxu0 %v6981_v17  ;;  %v6464_v41 = vsel %vm1051_vm2, %v6461_v62, %v6463_v38  ;;  %v7303_v3 = vrot.slane %v19704_v52, 6 }
 0x511   :  { %14810 = vmatprep.mubr.f32.mxu1 %v7290_v39  ;;  %14711 = vmatpush3.msra.mxu0 %v6981_v17  ;;  %v5636_v17 = vadd.f32 %v19872_v28, %v19722_v16  ;;  %v6466_v16 = vsel %vm1051_vm2, %v6463_v38, %v6465_v36  ;;  %v7818_v39 = vld [vmem:[#allocation5 + $0x428] sm:$0xff]  ;;  %v7813_v38 = vld [vmem:[#allocation5 + $0x400] sm:$0xff] }
 0x512   :  { %14899 = vmatprep.subr.mxu1 %v7825_v43  ;;  %14712 = vmatprep.subr.mxu0 %v6980_v46 }
 0x513   :  { %14900 = vmatpush3.msra.mxu1 %v7825_v43  ;;  %14616 = vmatmul.mubr.f32.gmra.mxu0 %v6454_v34  ;;  %v7302_v43 = vsel %vm2054_vm5, %v7299_v35, %v7301_v19  ;;  %v19882_v1 = vmax.f32 %v5636_v17, 0.0  ;;  %v6469_v34 = vrot.slane %v19714_v32, 3  ;;  %v7545_v17 = vld [vmem:[#allocation5 + $0x3f0] sm:$0xff] }
 0x514   :  { %14811 = vmatmul.mubr.f32.gmra.mxu1 %v7292_v23  ;;  %14901 = vmatprep.subr.mxu1 %v7824_v8 }
 0x515   :  { %14618 = vmatprep.mubr.f32.mxu0 %v6456_v26  ;;  %14713 = vmatpush3.msra.mxu0 %v6980_v46  ;;  %v6467_v46 = vrot.slane %v19704_v52, 3  ;;  %v7306_v26 = vsel %vm2054_vm5, %v7303_v3, %v7305_v37  ;;  %v7309_v20 = vrot.slane %v19882_v1, 6 }
 0x516   :  { %14813 = vmatprep.mubr.f32.mxu1 %v7294_v55  ;;  %14902 = vmatpush3.msra.mxu1 %v7824_v8  ;;  %v7304_v8 = vsel %vm2054_vm5, %v7301_v19, %v7303_v3  ;;  %v7546_v19 = vld [vmem:[#allocation5 + $0x3f8] sm:$0xff]  ;;  %v6999_v3 = vrot.slane %v19594_v40, 5 }
 0x517   :  { %14714 = vmatprep.subr.mxu0 %v6979_v45  ;;  %14903 = vmatprep.subr.mxu1 %v7823_v10  ;;  %v6468_v23 = vsel %vm1051_vm2, %v6465_v36, %v6467_v46  ;;  %v6470_v55 = vsel %vm1051_vm2, %v6467_v46, %v6469_v34  ;;  %v7001_v46 = vrot.slane %v19602_v48, 5 }
 0x518   :  { %14715 = vmatpush3.msra.mxu0 %v6979_v45  ;;  %14904 = vmatpush3.msra.mxu1 %v7823_v10  ;;  %v7817_v45 = vld [vmem:[#allocation5 + $0x420] sm:$0xff]  ;;  %v7307_v10 = vrot.slane %v19787_v61, 6 }
 0x519   :  { %14619 = vmatmul.mubr.f32.gmra.mxu0 %v6458_v47  ;;  %14814 = vmatmul.mubr.f32.gmra.mxu1 %v7296_v53  ;;  %v6472_v47 = vsel %vm1051_vm2, %v6469_v34, %v6471_v12  ;;  %v7815_v53 = vld [vmem:[#allocation5 + $0x410] sm:$0xff]  ;;  %v7005_v34 = vrot.slane %v19618_v18, 5 }
 0x51a   :  { %14905 = vmatprep.subr.mxu1 %v7822_v44  ;;  %14621 = vmatprep.mubr.f32.mxu0 %v6460_v6  ;;  %v7310_v62 = vsel %vm2054_vm5, %v7307_v10, %v7309_v20  ;;  %v6989_v6 = vrot.slane %v19552_v22, 5 }
 0x51b   :  { %14716 = vmatprep.subr.mxu0 %v6978_v51  ;;  %14816 = vmatprep.mubr.f32.mxu1 %v7298_v29  ;;  %v7814_v29 = vld [vmem:[#allocation5 + $0x408] sm:$0xff] }
 0x51c   :  { %14906 = vmatpush3.msra.mxu1 %v7822_v44  ;;  %14717 = vmatpush3.msra.mxu0 %v6978_v51  ;;  %v7308_v44 = vsel %vm2054_vm5, %v7305_v37, %v7307_v10  ;;  %v6973_v51 = vld [vmem:[#allocation5 + $0x288] sm:$0xff]  ;;  %v7543_v37 = vld [vmem:[#allocation5 + $0x3e0] sm:$0xff] }
 0x51d   :  { %14907 = vmatprep.subr.mxu1 %v7821_v25  ;;  %14622 = vmatmul.mubr.f32.gmra.mxu0 %v6462_v60  ;;  %v6991_v60 = vrot.slane %v19560_v24, 5 }
 0x51e   :  { %14908 = vmatpush3.msra.mxu1 %v7821_v25  ;;  %14718 = vmatprep.subr.mxu0 %v6977_v4  ;;  %v6988_v25 = vrot.slane %v19544_v5, 5 }
 0x51f   :  { %14817 = vmatmul.mubr.f32.gmra.mxu1 %v7300_v14  ;;  %14909 = vmatprep.subr.mxu1 %v7820_v2  ;;  %v6992_v5 = vsel %vm1719_vm4, %v6989_v6, %v6991_v60  ;;  %v6995_v14 = vrot.slane %v19578_v0, 5 }
 0x520   :  { %14624 = vmatprep.mubr.f32.mxu0 %v6464_v41  ;;  %14719 = vmatpush3.msra.mxu0 %v6977_v4  ;;  %v6990_v35 = vsel %vm1719_vm4, %v6988_v25, %v6989_v6  ;;  %v6972_v4 = vld [vmem:[#allocation5 + $0x280] sm:$0xff]  ;;  %v6997_v41 = vrot.slane %v19586_v21, 5 }
 0x521   :  { %14819 = vmatprep.mubr.f32.mxu1 %v7302_v43  ;;  %14910 = vmatpush3.msra.mxu1 %v7820_v2  ;;  %v6993_v2 = vrot.slane %v19570_v9, 5 }
 0x522   :  { %14911 = vmatprep.subr.mxu1 %v7819_v13  ;;  %14720 = vmatprep.subr.mxu0 %v6976_v30  ;;  %v6998_v43 = vsel %vm1719_vm4, %v6995_v14, %v6997_v41 }
 0x523   :  { %14912 = vmatpush3.msra.mxu1 %v7819_v13  ;;  %14625 = vmatmul.mubr.f32.gmra.mxu0 %v6466_v16  ;;  %v6994_v36 = vsel %vm1719_vm4, %v6991_v60, %v6993_v2  ;;  %v6996_v13 = vsel %vm1719_vm4, %v6993_v2, %v6995_v14  ;;  %v7000_v16 = vsel %vm1719_vm4, %v6997_v41, %v6999_v3  ;;  %v7019_v60 = vrot.slane %v19680_v11, 5 }
 0x524   :  { %14721 = vmatpush3.msra.mxu0 %v6976_v30  ;;  %14820 = vmatmul.mubr.f32.gmra.mxu1 %v7304_v8  ;;  %v7544_v30 = vld [vmem:[#allocation5 + $0x3e8] sm:$0xff]  ;;  %v7002_v8 = vsel %vm1719_vm4, %v6999_v3, %v7001_v46  ;;  %v7023_v3 = vrot.slane %v19696_v57, 5 }
 0x525   :  { %14913 = vmatprep.subr.mxu1 %v7818_v39  ;;  %14627 = vmatprep.mubr.f32.mxu0 %v6468_v23 }
 0x526   :  { %14722 = vmatprep.subr.mxu0 %v6975_v49  ;;  %14822 = vmatprep.mubr.f32.mxu1 %v7306_v26  ;;  %v7541_v26 = vld [vmem:[#allocation5 + $0x3d0] sm:$0xff] }
 0x527   :  { %14914 = vmatpush3.msra.mxu1 %v7818_v39  ;;  %14723 = vmatpush3.msra.mxu0 %v6975_v49  ;;  %v7003_v39 = vrot.slane %v19610_v59, 5  ;;  %v7542_v49 = vld [vmem:[#allocation5 + $0x3d8] sm:$0xff] }
 0x528   :  { %14915 = vmatprep.subr.mxu1 %v7817_v45  ;;  %14628 = vmatmul.mubr.f32.gmra.mxu0 %v6470_v55 }
 0x529   :  { %14916 = vmatpush3.msra.mxu1 %v7817_v45  ;;  %14724 = vmatprep.subr.mxu0 %v6974_v27  ;;  %v7004_v23 = vsel %vm1719_vm4, %v7001_v46, %v7003_v39  ;;  %v7007_v45 = vrot.slane %v19626_v56, 5  ;;  %v7006_v10 = vsel %vm1719_vm4, %v7003_v39, %v7005_v34  ;;  %v7025_v46 = vrot.slane %v19704_v52, 5 }
 0x52a   :  { %14823 = vmatmul.mubr.f32.gmra.mxu1 %v7308_v44  ;;  %14917 = vmatprep.subr.mxu1 %v7816_v54  ;;  %v7539_v44 = vld [vmem:[#allocation5 + $0x3c0] sm:$0xff] }
 0x52b   :  { %14630 = vmatprep.mubr.f32.mxu0 %v6472_v47  ;;  %14725 = vmatpush3.msra.mxu0 %v6974_v27  ;;  %v7009_v27 = vrot.slane %v19634_v63, 5  ;;  %v7008_v55 = vsel %vm1719_vm4, %v7005_v34, %v7007_v45  ;;  %v7013_v47 = vrot.slane %v19656_v42, 5  ;;  %v7026_v34 = vsel %vm1719_vm4, %v7023_v3, %v7025_v46 }
 0x52c   :  { %14825 = vmatprep.mubr.f32.mxu1 %v7310_v62  ;;  %14918 = vmatpush3.msra.mxu1 %v7816_v54  ;;  %v7011_v54 = vrot.slane %v19642_v33, 5  ;;  %v7015_v62 = vrot.slane %v19664_v7, 5 }
 0x52d   :  { %14919 = vmatprep.subr.mxu1 %v7815_v53  ;;  %14726 = vmatprep.subr.mxu0 %v6973_v51 }
 0x52e   :  { %14920 = vmatpush3.msra.mxu1 %v7815_v53  ;;  %14631 = vmatmul.mubr.f32.gmra.mxu0 %v6471_v12  ;;  %v7540_v12 = vld [vmem:[#allocation5 + $0x3c8] sm:$0xff]  ;;  %v7012_v53 = vsel %vm1719_vm4, %v7009_v27, %v7011_v54  ;;  %v7014_v6 = vsel %vm1719_vm4, %v7011_v54, %v7013_v47 }
 0x52f   :  { %14727 = vmatpush3.msra.mxu0 %v6973_v51  ;;  %14826 = vmatmul.mubr.f32.gmra.mxu1 %v7309_v20  ;;  %v7010_v20 = vsel %vm1719_vm4, %v7007_v45, %v7009_v27  ;;  %v7538_v51 = vld [vmem:[#allocation5 + $0x3b8] sm:$0xff]  ;;  %v19977_v27 = vadd.f32 %v19872_v28, %v19732_v58 }
 0x530   :  { %14921 = vmatprep.subr.mxu1 %v7814_v29  ;;  %14730 = vmatprep.mubr.f32.mxu0 %v6990_v35 }
 0x531   :  { %14922 = vmatpush3.msra.mxu1 %v7814_v29  ;;  %14925 = vmatprep.mubr.f32.mxu1 %v19560_v24  ;;  %v7017_v29 = vrot.slane %v19672_v15, 5  ;;  %v5662_v28 = vmax.f32 %v19977_v27, 0.0 }
 0x532   :  { %14728 = vmatprep.subr.mxu0 %v6972_v4  ;;  %14923 = vmatprep.subr.mxu1 %v7813_v38 }
 0x533   :  { %14729 = vmatpush3.msra.mxu0 %v6972_v4  ;;  %14924 = vmatpush3.msra.mxu1 %v7813_v38  ;;  %v7537_v4 = vld [vmem:[#allocation5 + $0x3b0] sm:$0xff]  ;;  %v7016_v38 = vsel %vm1719_vm4, %v7013_v47, %v7015_v62  ;;  %v7018_v2 = vsel %vm1719_vm4, %v7015_v62, %v7017_v29  ;;  %v7548_v47 = vrot.slane %v19552_v22, 7 }
 0x534   :  { %14731 = vmatmul.mubr.f32.vlgmr.msra.gmra.mxu0 %v6992_v5  ;;  %14828 = vmatprep.subr.mxu0 %v7546_v19  ;;  %v7021_v5 = vrot.slane %v19688_v31, 5 }
 0x535   :  { %14926 = vmatmul.mubr.f32.vlgmr.msra.gmra.mxu1 %v19570_v9  ;;  %14733 = vmatprep.mubr.f32.mxu0 %v6994_v36 }
 0x536   :  { %14829 = vmatpush3.msra.mxu0 %v7546_v19  ;;  %14928 = vmatprep.mubr.f32.mxu1 %v19578_v0  ;;  %v7536_v19 = vld [vmem:[#allocation5 + $0x3a8] sm:$0xff] }
 0x537   :  { %14830 = vmatprep.subr.mxu0 %v7545_v17  ;;  %15047 = vmatprep.subr.mxu1 %v21833_v50 }
 0x538   :  { %14734 = vmatmul.mubr.f32.gmra.mxu0 %v6996_v13  ;;  %v19937_v25 = vpop.f32.mrf.mxu0  ;;  %v19939_v35 = vpop.f32.mrf.mxu1 }
 0x539   :  { %14831 = vmatpush3.msra.mxu0 %v7545_v17  ;;  %14929 = vmatmul.mubr.f32.gmra.mxu1 %v19586_v21  ;;  %v7020_v17 = vsel %vm1719_vm4, %v7017_v29, %v7019_v60  ;;  %v7553_v29 = vrot.slane %v19578_v0, 7  ;;  %v7557_v0 = vrot.slane %v19594_v40, 7 }
 0x53a   :  { %14736 = vmatprep.mubr.f32.mxu0 %v6998_v43  ;;  %14931 = vmatprep.mubr.f32.mxu1 %v19594_v40  ;;  %v19947_v14 = vpop.f32.mrf.mxu0  ;;  %v19949_v36 = vpop.f32.mrf.mxu1  ;;  %v7022_v43 = vsel %vm1719_vm4, %v7019_v60, %v7021_v5 }
 0x53b   :  { %14832 = vmatprep.subr.mxu0 %v7544_v30 }
 0x53c   :  { %14833 = vmatpush3.msra.mxu0 %v7544_v30  ;;  %v7535_v30 = vld [vmem:[#allocation5 + $0x3a0] sm:$0xff] }
 0x53d   :  { %14737 = vmatmul.mubr.f32.gmra.mxu0 %v7000_v16  ;;  %14932 = vmatmul.mubr.f32.gmra.mxu1 %v19602_v48  ;;  %v7024_v16 = vsel %vm1719_vm4, %v7021_v5, %v7023_v3 }
 0x53e   :  { %14739 = vmatprep.mubr.f32.mxu0 %v7002_v8  ;;  %14834 = vmatprep.subr.mxu0 %v7543_v37 }
 0x53f   :  { %14934 = vmatprep.mubr.f32.mxu1 %v19610_v59  ;;  %14835 = vmatpush3.msra.mxu0 %v7543_v37  ;;  %v7534_v37 = vld [vmem:[#allocation5 + $0x398] sm:$0xff] }
 0x540   :  { %14836 = vmatprep.subr.mxu0 %v7542_v49  ;;  %v19953_v41 = vpop.f32.mrf.mxu0  ;;  %v19955_v13 = vpop.f32.mrf.mxu1 }
 0x541   :  { %14740 = vmatmul.mubr.f32.gmra.mxu0 %v7004_v23  ;;  %14935 = vmatmul.mubr.f32.gmra.mxu1 %v19618_v18  ;;  %v7533_v23 = vld [vmem:[#allocation5 + $0x390] sm:$0xff] }
 0x542   :  { %14837 = vmatpush3.msra.mxu0 %v7542_v49  ;;  %14742 = vmatprep.mubr.f32.mxu0 %v7006_v10  ;;  %v19963_v39 = vpop.f32.mrf.mxu0  ;;  %v19965_v8 = vpop.f32.mrf.mxu1  ;;  %v7027_v49 = vrot.slane %v19714_v32, 5 }
 0x543   :  { %14937 = vmatprep.mubr.f32.mxu1 %v19626_v56  ;;  %14838 = vmatprep.subr.mxu0 %v7541_v26 }
 0x544   :  { %14839 = vmatpush3.msra.mxu0 %v7541_v26  ;;  %v7029_v26 = vrot.slane %v19787_v61, 5 }
 0x545   :  { %14743 = vmatmul.mubr.f32.gmra.mxu0 %v7008_v55  ;;  %14938 = vmatmul.mubr.f32.gmra.mxu1 %v19634_v63  ;;  %v7532_v55 = vld [vmem:[#allocation5 + $0x388] sm:$0xff] }
 0x546   :  { %14745 = vmatprep.mubr.f32.mxu0 %v7010_v20  ;;  %14840 = vmatprep.subr.mxu0 %v7540_v12  ;;  %v7030_v54 = vsel %vm1719_vm4, %v7027_v49, %v7029_v26  ;;  %v7549_v20 = vrot.slane %v19560_v24, 7 }
 0x547   :  { %14940 = vmatprep.mubr.f32.mxu1 %v19642_v33  ;;  %14841 = vmatpush3.msra.mxu0 %v7540_v12  ;;  %v7028_v12 = vsel %vm1719_vm4, %v7025_v46, %v7027_v49  ;;  %v7563_v46 = vrot.slane %v19618_v18, 7  ;;  %v7565_v49 = vrot.slane %v19626_v56, 7 }
 0x548   :  { %14842 = vmatprep.subr.mxu0 %v7539_v44  ;;  %v19971_v45 = vpop.f32.mrf.mxu0  ;;  %v19973_v10 = vpop.f32.mrf.mxu1 }
 0x549   :  { %14746 = vmatmul.mubr.f32.gmra.mxu0 %v7012_v53  ;;  %14941 = vmatmul.mubr.f32.gmra.mxu1 %v19656_v42  ;;  %v7531_v53 = vld [vmem:[#allocation5 + $0x380] sm:$0xff]  ;;  %v7566_v18 = vsel %vm2389_vm6, %v7563_v46, %v7565_v49 }
 0x54a   :  { %14748 = vmatprep.mubr.f32.mxu0 %v7014_v6  ;;  %14843 = vmatpush3.msra.mxu0 %v7539_v44  ;;  %v19984_v44 = vpop.f32.mrf.mxu0  ;;  %v19986_v58 = vpop.f32.mrf.mxu1  ;;  %v7550_v6 = vsel %vm2389_vm6, %v7548_v47, %v7549_v20  ;;  %v7573_v47 = vrot.slane %v19664_v7, 7 }
 0x54b   :  { %14943 = vmatprep.mubr.f32.mxu1 %v19664_v7  ;;  %14844 = vmatprep.subr.mxu0 %v7538_v51 }
 0x54c   :  { %14845 = vmatpush3.msra.mxu0 %v7538_v51  ;;  %v7551_v51 = vrot.slane %v19570_v9, 7  ;;  %v7555_v9 = vrot.slane %v19586_v21, 7  ;;  %v7559_v21 = vrot.slane %v19602_v48, 7 }
 0x54d   :  { %14749 = vmatmul.mubr.f32.gmra.mxu0 %v7016_v38  ;;  %14944 = vmatmul.mubr.f32.gmra.mxu1 %v19672_v15 }
 0x54e   :  { %14751 = vmatprep.mubr.f32.mxu0 %v7018_v2  ;;  %14846 = vmatprep.subr.mxu0 %v7537_v4  ;;  %v7552_v22 = vsel %vm2389_vm6, %v7549_v20, %v7551_v51  ;;  %v7554_v60 = vsel %vm2389_vm6, %v7551_v51, %v7553_v29  ;;  %v7556_v5 = vsel %vm2389_vm6, %v7553_v29, %v7555_v9  ;;  %v7571_v20 = vrot.slane %v19656_v42, 7 }
 0x54f   :  { %14946 = vmatprep.mubr.f32.mxu1 %v19680_v11  ;;  %14847 = vmatpush3.msra.mxu0 %v7537_v4  ;;  %v7560_v40 = vsel %vm2389_vm6, %v7557_v0, %v7559_v21 }
 0x550   :  { %14848 = vmatprep.subr.mxu0 %v7536_v19  ;;  %v19992_v62 = vpop.f32.mrf.mxu0  ;;  %v19994_v24 = vpop.f32.mrf.mxu1  ;;  %v7574_v42 = vsel %vm2389_vm6, %v7571_v20, %v7573_v47 }
 0x551   :  { %14752 = vmatmul.mubr.f32.gmra.mxu0 %v7020_v17  ;;  %14947 = vmatmul.mubr.f32.gmra.mxu1 %v19688_v31  ;;  %v7558_v17 = vsel %vm2389_vm6, %v7555_v9, %v7557_v0  ;;  %v7577_v9 = vrot.slane %v19680_v11, 7 }
 0x552   :  { %14754 = vmatprep.mubr.f32.mxu0 %v7022_v43  ;;  %14849 = vmatpush3.msra.mxu0 %v7536_v19  ;;  %v20004_v4 = vpop.f32.mrf.mxu0  ;;  %v20006_v38 = vpop.f32.mrf.mxu1 }
 0x553   :  { %14949 = vmatprep.mubr.f32.mxu1 %v19696_v57  ;;  %14850 = vmatprep.subr.mxu0 %v7535_v30 }
 0x554   :  { %14851 = vmatpush3.msra.mxu0 %v7535_v30  ;;  %v7561_v30 = vrot.slane %v19610_v59, 7 }
 0x555   :  { %14755 = vmatmul.mubr.f32.gmra.mxu0 %v7024_v16  ;;  %14950 = vmatmul.mubr.f32.gmra.mxu1 %v19704_v52 }
 0x556   :  { %14757 = vmatprep.mubr.f32.mxu0 %v7026_v34  ;;  %14852 = vmatprep.subr.mxu0 %v7534_v37  ;;  %v7562_v48 = vsel %vm2389_vm6, %v7559_v21, %v7561_v30  ;;  %v7564_v59 = vsel %vm2389_vm6, %v7561_v30, %v7563_v46  ;;  %v7567_v34 = vrot.slane %v19634_v63, 7  ;;  %v7581_v21 = vrot.slane %v19696_v57, 7 }
 0x557   :  { %14952 = vmatprep.mubr.f32.mxu1 %v19714_v32  ;;  %14853 = vmatpush3.msra.mxu0 %v7534_v37  ;;  %v7585_v46 = vrot.slane %v19714_v32, 7 }
 0x558   :  { %14854 = vmatprep.subr.mxu0 %v7533_v23  ;;  %v20011_v2 = vpop.f32.mrf.mxu0  ;;  %v20013_v19 = vpop.f32.mrf.mxu1  ;;  %v7568_v56 = vsel %vm2389_vm6, %v7565_v49, %v7567_v34 }
 0x559   :  { %14758 = vmatmul.mubr.f32.gmra.mxu0 %v7028_v12  ;;  %14953 = vmatmul.mubr.f32.gmra.mxu1 %v19787_v61  ;;  %v7569_v12 = vrot.slane %v19642_v33, 7 }
 0x55a   :  { %14760 = vmatprep.mubr.f32.mxu0 %v7030_v54  ;;  %14855 = vmatpush3.msra.mxu0 %v7533_v23  ;;  %v20019_v3 = vpop.f32.mrf.mxu0  ;;  %v20021_v43 = vpop.f32.mrf.mxu1 }
 0x55b   :  { %14955 = vmatprep.mubr.f32.mxu1 %v19882_v1  ;;  %14856 = vmatprep.subr.mxu0 %v7532_v55  ;;  %v7570_v63 = vsel %vm2389_vm6, %v7567_v34, %v7569_v12  ;;  %v7572_v33 = vsel %vm2389_vm6, %v7569_v12, %v7571_v20  ;;  %v7589_v12 = vrot.slane %v19882_v1, 7  ;;  %v7591_v20 = vrot.slane %v5662_v28, 7 }
 0x55c   :  { %14857 = vmatpush3.msra.mxu0 %v7532_v55 }
 0x55d   :  { %14761 = vmatmul.mubr.f32.gmra.mxu0 %v7029_v26  ;;  %14956 = vmatmul.mubr.f32.gmra.mxu1 %v5662_v28  ;;  %v7592_v27 = vsel %vm2389_vm6, %v7589_v12, %v7591_v20  ;;  %v8108_v28 = vld [vmem:[#allocation7 + $0xf0] sm:$0xff] }
 0x55e   :  { %14860 = vmatprep.mubr.f32.mxu0 %v7550_v6  ;;  %14858 = vmatprep.subr.mxu0 %v7531_v53  ;;  %v7575_v6 = vrot.slane %v19672_v15, 7 }
 0x55f   :  { %14859 = vmatpush3.msra.mxu0 %v7531_v53  ;;  %15079 = vmatprep.mubr.msk.f32.mxu1 %vm16288_vm7, %v21833_v50 }
 0x560   :  { %14958 = vmatprep.subr.mxu0 %v21833_v50  ;;  %v20025_v37 = vpop.f32.mrf.mxu0  ;;  %v20027_v16 = vpop.f32.mrf.mxu1  ;;  %v7576_v7 = vsel %vm2389_vm6, %v7573_v47, %v7575_v6  ;;  %v7578_v15 = vsel %vm2389_vm6, %v7575_v6, %v7577_v9 }
 0x561   :  { %14861 = vmatmul.mubr.f32.vlgmr.msra.gmra.mxu0 %v7552_v22 }
 0x562   :  { %14863 = vmatprep.mubr.f32.mxu0 %v7554_v60  ;;  %v20033_v23 = vpop.f32.mrf.mxu0  ;;  %v20035_v26 = vpop.f32.mrf.mxu1  ;;  %v7579_v60 = vrot.slane %v19688_v31, 7 }
 0x563   :  { %21912 = vst [vmem:[#allocation20_spill] sm:$0xff] %v20035_v26 }
 0x564   :  { %v7580_v11 = vsel %vm2389_vm6, %v7577_v9, %v7579_v60  ;;  %v7582_v31 = vsel %vm2389_vm6, %v7579_v60, %v7581_v21  ;;  %v8107_v60 = vld [vmem:[#allocation7 + $0xe8] sm:$0xff] }
 0x565   :  { %14864 = vmatmul.mubr.f32.gmra.mxu0 %v7556_v5 }
 0x566   :  { %14866 = vmatprep.mubr.f32.mxu0 %v7558_v17 }
 0x568   :  { %v20039_v55 = vpop.f32.mrf.mxu0  ;;  %v20041_v54 = vpop.f32.mrf.mxu1 }
 0x569   :  { %14867 = vmatmul.mubr.f32.gmra.mxu0 %v7560_v40  ;;  %v7583_v40 = vrot.slane %v19704_v52, 7 }
 0x56a   :  { %14869 = vmatprep.mubr.f32.mxu0 %v7562_v48  ;;  %v20047_v53 = vpop.f32.mrf.mxu0  ;;  %v20049_v51 = vpop.f32.mrf.mxu1 }
 0x56b   :  { %21913 = vst [vmem:[#allocation21_spill] sm:$0xff] %v20047_v53  ;;  %21914 = vst [vmem:[#allocation74_spill] sm:$0xff] %v20049_v51  ;;  %v7584_v57 = vsel %vm2389_vm6, %v7581_v21, %v7583_v40  ;;  %v7586_v52 = vsel %vm2389_vm6, %v7583_v40, %v7585_v46 }
 0x56d   :  { %14870 = vmatmul.mubr.f32.gmra.mxu0 %v7564_v59  ;;  %v7587_v59 = vrot.slane %v19787_v61, 7  ;;  %v8109_v61 = vld [vmem:[#allocation7 + $0xf8] sm:$0xff] }
 0x56e   :  { %14872 = vmatprep.mubr.f32.mxu0 %v7566_v18  ;;  %14959 = vmatpush3.msra.mxu0 %v8109_v61  ;;  %v8090_v61 = vld [vmem:[#allocation7 + $0x68] sm:$0xff] }
 0x56f   :  { %v7590_v47 = vsel %vm2389_vm6, %v7587_v59, %v7589_v12  ;;  %14960 = vmatprep.subr.mxu0 %v21833_v50  ;;  %v8091_v12 = vld [vmem:[#allocation7 + $0x70] sm:$0xff] }
 0x570   :  { %v20053_v29 = vpop.f32.mrf.mxu0  ;;  %v20055_v22 = vpop.f32.mrf.mxu1  ;;  %14961 = vmatpush3.msra.mxu0 %v8108_v28 }
 0x571   :  { %14873 = vmatmul.mubr.f32.gmra.mxu0 %v7568_v56  ;;  %14962 = vmatprep.subr.mxu0 %v21833_v50 }
 0x572   :  { %14875 = vmatprep.mubr.f32.mxu0 %v7570_v63  ;;  %v20061_v0 = vpop.f32.mrf.mxu0  ;;  %v20063_v5 = vpop.f32.mrf.mxu1  ;;  %v7588_v63 = vsel %vm2389_vm6, %v7585_v46, %v7587_v59  ;;  %14963 = vmatpush3.msra.mxu0 %v8107_v60  ;;  %v8092_v46 = vld [vmem:[#allocation7 + $0x78] sm:$0xff]  ;;  %v8089_v60 = vld [vmem:[#allocation7 + $0x60] sm:$0xff] }
 0x573   :  { %21915 = vst [vmem:[#allocation34_spill] sm:$0xff] %v20061_v0  ;;  %21916 = vst [vmem:[#allocation77_spill] sm:$0xff] %v20063_v5  ;;  %14964 = vmatprep.subr.mxu0 %v21833_v50  ;;  %15048 = vmatpush3.msra.mxu1 %v8092_v46  ;;  %v8085_v5 = vld [vmem:[#allocation7 + $0x40] sm:$0xff]  ;;  %v8084_v0 = vld [vmem:[#allocation7 + $0x38] sm:$0xff] }
 0x574   :  { %15049 = vmatprep.subr.mxu1 %v21833_v50 }
 0x575   :  { %14876 = vmatmul.mubr.f32.gmra.mxu0 %v7572_v33  ;;  %15050 = vmatpush3.msra.mxu1 %v8091_v12  ;;  %v8088_v12 = vld [vmem:[#allocation7 + $0x58] sm:$0xff] }
 0x576   :  { %14878 = vmatprep.mubr.f32.mxu0 %v7574_v42  ;;  %15051 = vmatprep.subr.mxu1 %v21833_v50 }
 0x577   :  { %15052 = vmatpush3.msra.mxu1 %v8090_v61  ;;  %v8087_v61 = vld [vmem:[#allocation7 + $0x50] sm:$0xff] }
 0x578   :  { %v20067_v17 = vpop.f32.mrf.mxu0  ;;  %v20069_v30 = vpop.f32.mrf.mxu1  ;;  %15053 = vmatprep.subr.mxu1 %v21833_v50 }
 0x579   :  { %14879 = vmatmul.mubr.f32.gmra.mxu0 %v7576_v7  ;;  %15054 = vmatpush3.msra.mxu1 %v8089_v60 }
 0x57a   :  { %14881 = vmatprep.mubr.f32.mxu0 %v7578_v15  ;;  %v20075_v48 = vpop.f32.mrf.mxu0  ;;  %v20077_v49 = vpop.f32.mrf.mxu1  ;;  %15055 = vmatprep.subr.mxu1 %v21833_v50 }
 0x57b   :  { %21917 = vst [vmem:[#allocation22_spill] sm:$0xff] %v20075_v48  ;;  %21918 = vst [vmem:[#allocation23_spill] sm:$0xff] %v20077_v49  ;;  %15056 = vmatpush3.msra.mxu1 %v8088_v12  ;;  %v8101_v12 = vld [vmem:[#allocation7 + $0xb8] sm:$0xff] }
 0x57c   :  { %15057 = vmatprep.subr.mxu1 %v21833_v50 }
 0x57d   :  { %14882 = vmatmul.mubr.f32.gmra.mxu0 %v7580_v11  ;;  %15058 = vmatpush3.msra.mxu1 %v8087_v61 }
 0x57e   :  { %14884 = vmatprep.mubr.f32.mxu0 %v7582_v31  ;;  %v8106_v31 = vld [vmem:[#allocation7 + $0xe0] sm:$0xff]  ;;  %15059 = vmatprep.subr.mxu1 %v21833_v50 }
 0x57f   :  { %14965 = vmatpush3.msra.mxu0 %v8106_v31 }
 0x580   :  { %v20081_v34 = vpop.f32.mrf.mxu0  ;;  %v20083_v18 = vpop.f32.mrf.mxu1  ;;  %14966 = vmatprep.subr.mxu0 %v21833_v50 }
 0x581   :  { %14885 = vmatmul.mubr.f32.gmra.mxu0 %v7584_v57 }
 0x582   :  { %14887 = vmatprep.mubr.f32.mxu0 %v7586_v52  ;;  %v20087_v32 = vpop.f32.mrf.mxu0  ;;  %v20089_v56 = vpop.f32.mrf.mxu1  ;;  %v8105_v52 = vld [vmem:[#allocation7 + $0xd8] sm:$0xff] }
 0x583   :  { %21919 = vst [vmem:[#allocation24_spill] sm:$0xff] %v20087_v32  ;;  %21920 = vst [vmem:[#allocation25_spill] sm:$0xff] %v20089_v56  ;;  %14967 = vmatpush3.msra.mxu0 %v8105_v52  ;;  %v8103_v52 = vld [vmem:[#allocation7 + $0xc8] sm:$0xff] }
 0x584   :  { %14968 = vmatprep.subr.mxu0 %v21833_v50 }
 0x585   :  { %14888 = vmatmul.mubr.f32.gmra.mxu0 %v7588_v63  ;;  %v20095_v33 = vpop.f32.mrf.mxu0  ;;  %v20097_v6 = vpop.f32.mrf.mxu1 }
 0x586   :  { %14890 = vmatprep.mubr.f32.mxu0 %v7590_v47  ;;  %v8104_v47 = vld [vmem:[#allocation7 + $0xd0] sm:$0xff] }
 0x587   :  { %v20099_v1 = vpop.f32.mrf.mxu0  ;;  %v20101_v42 = vpop.f32.mrf.mxu1  ;;  %14969 = vmatpush3.msra.mxu0 %v8104_v47  ;;  %v8102_v47 = vld [vmem:[#allocation7 + $0xc0] sm:$0xff] }
 0x588   :  { %21921 = vst [vmem:[#allocation54_spill] sm:$0xff] %v20099_v1  ;;  %21922 = vst [vmem:[#allocation75_spill] sm:$0xff] %v20101_v42  ;;  %14970 = vmatprep.subr.mxu0 %v21833_v50 }
 0x589   :  { %14891 = vmatmul.mubr.f32.gmra.mxu0 %v7592_v27  ;;  %v20105_v9 = vpop.f32.mrf.mxu0  ;;  %v20107_v7 = vpop.f32.mrf.mxu1 }
 0x58a   :  { %14990 = vmatprep.mubr.msk.f32.mxu0 %vm16288_vm7, %v21833_v50  ;;  %14971 = vmatpush3.msra.mxu0 %v8103_v52  ;;  %v8086_v52 = vld [vmem:[#allocation7 + $0x48] sm:$0xff] }
 0x58b   :  { %v20111_v15 = vpop.f32.mrf.mxu0  ;;  %v20113_v21 = vpop.f32.mrf.mxu1  ;;  %14972 = vmatprep.subr.mxu0 %v21833_v50  ;;  %15060 = vmatpush3.msra.mxu1 %v8086_v52 }
 0x58c   :  { %14973 = vmatpush3.msra.mxu0 %v8102_v47  ;;  %15061 = vmatprep.subr.mxu1 %v21833_v50  ;;  %v8100_v47 = vld [vmem:[#allocation7 + $0xb0] sm:$0xff] }
 0x58d   :  { %v20116_v11 = vpop.f32.mrf.mxu0  ;;  %v20118_v40 = vpop.f32.mrf.mxu1  ;;  %14974 = vmatprep.subr.mxu0 %v21833_v50  ;;  %15062 = vmatpush3.msra.mxu1 %v8085_v5  ;;  %v8099_v5 = vld [vmem:[#allocation7 + $0xa8] sm:$0xff] }
 0x58e   :  { %14975 = vmatpush3.msra.mxu0 %v8101_v12  ;;  %15063 = vmatprep.subr.mxu1 %v21833_v50 }
 0x58f   :  { %v20121_v57 = vpop.f32.mrf.mxu0  ;;  %v20123_v59 = vpop.f32.mrf.mxu1  ;;  %14976 = vmatprep.subr.mxu0 %v21833_v50  ;;  %15064 = vmatpush3.msra.mxu1 %v8084_v0 }
 0x590   :  { %14977 = vmatpush3.msra.mxu0 %v8100_v47  ;;  %15065 = vmatprep.subr.mxu1 %v21833_v50 }
 0x591   :  { %v20127_v20 = vpop.f32.mrf.mxu0  ;;  %v20129_v63 = vpop.f32.mrf.mxu1  ;;  %14978 = vmatprep.subr.mxu0 %v21833_v50 }
 0x592   :  { %14979 = vmatpush3.msra.mxu0 %v8099_v5  ;;  %v8082_v5 = vld [vmem:[#allocation7 + $0x28] sm:$0xff] }
 0x593   :  { %v20133_v27 = vpop.f32.mrf.mxu0  ;;  %v20135_v28 = vpop.f32.mrf.mxu1  ;;  %14980 = vmatprep.subr.mxu0 %v21833_v50 }
 0x595   :  { %v20139_v31 = vpop.f32.mrf.mxu0  ;;  %v20141_v46 = vpop.f32.mrf.mxu1 }
 0x597   :  { %v20144_v42 = vpop.f32.mrf.mxu0  ;;  %v20146_v1 = vpop.f32.mrf.mxu1 }
 0x598   :  { %21923 = vst [vmem:[#allocation35_spill] sm:$0xff] %v20146_v1 }
 0x599   :  { %v14484_v56 = vpop.f32.mrf.mxu0  ;;  %v20150_v32 = vpop.f32.mrf.mxu1 }
 0x59a   :  { %v20153_v60 = vadd.f32 %v14484_v56, %v20011_v2 }
 0x59b   :  { %v20157_v49 = vpop.f32.mrf.mxu0  ;;  %v20159_v48 = vpop.f32.mrf.mxu1 }
 0x59c   :  { %21924 = vst [vmem:[#allocation26_spill] sm:$0xff] %v20159_v48 }
 0x59d   :  { %v14487_v61 = vpop.f32.mrf.mxu0 }
 0x59e   :  { %v6080_v2 = vadd.f32 %v14487_v61, %v20025_v37  ;;  %v20164_v56 = vpop.f32.mrf.mxu1  ;;  %v8083_v37 = vld [vmem:[#allocation7 + $0x30] sm:$0xff] }
 0x59f   :  { %v20167_v51 = vpop.f32.mrf.mxu0  ;;  %15066 = vmatpush3.msra.mxu1 %v8083_v37 }
 0x5a0   :  { %v20169_v52 = vpop.f32.mrf.mxu1  ;;  %v20172_v12 = vadd.f32 %v20027_v16, %v6080_v2  ;;  %15067 = vmatprep.subr.mxu1 %v21833_v50 }
 0x5a1   :  { %21925 = vst [vmem:[#allocation27_spill] sm:$0xff] %v20169_v52  ;;  %15068 = vmatpush3.msra.mxu1 %v8082_v5 }
 0x5a2   :  { %15069 = vmatprep.subr.mxu1 %v21833_v50 }
 0x5a3   :  { %v14490_v61 = vpop.f32.mrf.mxu0  ;;  %v20178_v47 = vpop.f32.mrf.mxu1 }
 0x5a4   :  { %v6090_v0 = vadd.f32 %v14490_v61, %v20039_v55  ;;  %v8098_v61 = vld [vmem:[#allocation7 + $0xa0] sm:$0xff] }
 0x5a5   :  { %v20181_v52 = vpop.f32.mrf.mxu0  ;;  %v20183_v16 = vpop.f32.mrf.mxu1  ;;  %14981 = vmatpush3.msra.mxu0 %v8098_v61 }
 0x5a6   :  { %21926 = vst [vmem:[#allocation28_spill] sm:$0xff] %v20181_v52  ;;  %21927 = vst [vmem:[#allocation29_spill] sm:$0xff] %v20183_v16  ;;  %v20186_v2 = vadd.f32 %v20041_v54, %v6090_v0  ;;  %v8081_v16 = vld [vmem:[#allocation7 + $0x20] sm:$0xff]  ;;  %v8097_v54 = vld [vmem:[#allocation7 + $0x98] sm:$0xff]  ;;  %14982 = vmatprep.subr.mxu0 %v21833_v50 }
 0x5a7   :  { %v14493_v53 = vpop.f32.mrf.mxu0  ;;  %15070 = vmatpush3.msra.mxu1 %v8081_v16  ;;  %14983 = vmatpush3.msra.mxu0 %v8097_v54 }
 0x5a8   :  { %v6100_v37 = vadd.f32 %v14493_v53, %v20053_v29  ;;  %v8080_v53 = vld [vmem:[#allocation7 + $0x18] sm:$0xff]  ;;  %15071 = vmatprep.subr.mxu1 %v21833_v50  ;;  %14984 = vmatprep.subr.mxu0 %v21833_v50 }
 0x5a9   :  { %v20189_v48 = vpop.f32.mrf.mxu1  ;;  %v20191_v26 = vpop.f32.mrf.mxu0  ;;  %15072 = vmatpush3.msra.mxu1 %v8080_v53  ;;  %v8077_v53 = vld [vmem:[#allocation7] sm:$0xff] }
 0x5aa   :  { %21928 = vst [vmem:[#allocation30_spill] sm:$0xff] %v20191_v26  ;;  %v20194_v1 = vadd.f32 %v20055_v22, %v6100_v37  ;;  %v8079_v22 = vld [vmem:[#allocation7 + $0x10] sm:$0xff]  ;;  %15073 = vmatprep.subr.mxu1 %v21833_v50 }
 0x5ab   :  { %v20197_v55 = vpop.f32.mrf.mxu1  ;;  %v8096_v37 = vld [vmem:[#allocation7 + $0x90] sm:$0xff]  ;;  %15074 = vmatpush3.msra.mxu1 %v8079_v22 }
 0x5ac   :  { %21929 = vst [vmem:[#allocation31_spill] sm:$0xff] %v20197_v55  ;;  %14985 = vmatpush3.msra.mxu0 %v8096_v37  ;;  %15075 = vmatprep.subr.mxu1 %v21833_v50 }
 0x5ad   :  { %v14496_v0 = vpop.f32.mrf.mxu0  ;;  %14986 = vmatprep.subr.mxu0 %v21833_v50 }
 0x5ae   :  { %v6110_v29 = vadd.f32 %v14496_v0, %v20067_v17  ;;  %v20200_v52 = vpop.f32.mrf.mxu1  ;;  %v8078_v17 = vld [vmem:[#allocation7 + $0x8] sm:$0xff] }
 0x5af   :  { %v20204_v5 = vpop.f32.mrf.mxu0  ;;  %15076 = vmatpush3.msra.mxu1 %v8078_v17  ;;  %v8095_v0 = vld [vmem:[#allocation7 + $0x88] sm:$0xff]  ;;  %v6030_v17 = vadd.f32 %v20105_v9, %v19937_v25 }
 0x5b0   :  { %21930 = vst [vmem:[#allocation55_spill] sm:$0xff] %v20204_v5  ;;  %v20206_v55 = vpop.f32.mrf.mxu1  ;;  %v20209_v61 = vadd.f32 %v20069_v30, %v6110_v29  ;;  %15077 = vmatprep.subr.mxu1 %v21833_v50  ;;  %14987 = vmatpush3.msra.mxu0 %v8095_v0  ;;  %v8094_v29 = vld [vmem:[#allocation7 + $0x80] sm:$0xff] }
 0x5b1   :  { %21931 = vst [vmem:[#allocation36_spill] sm:$0xff] %v20206_v55  ;;  %15078 = vmatpush3.msra.mxu1 %v8077_v53  ;;  %14988 = vmatprep.subr.mxu0 %v21833_v50 }
 0x5b2   :  { %v14499_v16 = vpop.f32.mrf.mxu0  ;;  %14989 = vmatpush3.msra.mxu0 %v8094_v29  ;;  %15225 = vmatprep.subr.mxu1 %v21833_v50  ;;  %v6040_v29 = vadd.f32 %v20116_v11, %v19953_v41 }
 0x5b3   :  { %v6120_v54 = vadd.f32 %v14499_v16, %v20081_v34  ;;  %15136 = vmatprep.subr.mxu0 %v21833_v50 }
 0x5b4   :  { %v20216_v55 = vpop.f32.mrf.mxu1  ;;  %v20218_v30 = vpop.f32.mrf.mxu0  ;;  %v6393_v9 = vadd.f32 %v19955_v13, %v6040_v29  ;;  %v6060_v13 = vadd.f32 %v20139_v31, %v19992_v62  ;;  %v6399_v31 = vadd.f32 %v20013_v19, %v20153_v60 }
 0x5b5   :  { %21932 = vst [vmem:[#allocation37_spill] sm:$0xff] %v20218_v30  ;;  %v20222_v22 = vadd.f32 %v20083_v18, %v6120_v54 }
 0x5b6   :  { %v20225_v37 = vpop.f32.mrf.mxu1 }
 0x5b7   :  { %21933 = vst [vmem:[#allocation39_spill] sm:$0xff] %v20225_v37  ;;  %v6391_v37 = vadd.f32 %v19939_v35, %v6030_v17 }
 0x5b8   :  { %v14502_v34 = vpop.f32.mrf.mxu0 }
 0x5b9   :  { %v6130_v16 = vadd.f32 %v14502_v34, %v20095_v33  ;;  %v20232_v0 = vpop.f32.mrf.mxu1 }
 0x5ba   :  { %v20234_v18 = vpop.f32.mrf.mxu0 }
 0x5bb   :  { %21934 = vst [vmem:[#allocation41_spill] sm:$0xff] %v20234_v18  ;;  %v20236_v54 = vpop.f32.mrf.mxu1  ;;  %v20239_v53 = vadd.f32 %v20097_v6, %v6130_v16  ;;  %v6050_v6 = vadd.f32 %v20127_v20, %v19971_v45 }
 0x5bc   :  { %21935 = vst [vmem:[#allocation80_spill] sm:$0xff] %v20236_v54 }
 0x5be   :  { %v14602_v30 = vpop.f32.mrf.mxu0 }
 0x5bf   :  { %v6671_v5 = vadd.f32 %v14602_v30, %v6391_v37  ;;  %v20244_v26 = vpop.f32.mrf.mxu1 }
 0x5c0   :  { %v20246_v25 = vpop.f32.mrf.mxu0 }
 0x5c1   :  { %v20248_v33 = vpop.f32.mrf.mxu1  ;;  %v20252_v34 = vadd.f32 %v20107_v7, %v6671_v5  ;;  %v6395_v7 = vadd.f32 %v19973_v10, %v6050_v6 }
 0x5c2   :  { %v14605_v16 = vpop.f32.mrf.mxu0 }
 0x5c3   :  { %v6673_v41 = vadd.f32 %v14605_v16, %v6393_v9  ;;  %v20256_v11 = vpop.f32.mrf.mxu1  ;;  %v6397_v9 = vadd.f32 %v19994_v24, %v6060_v13 }
 0x5c4   :  { %v20258_v35 = vpop.f32.mrf.mxu0 }
 0x5c5   :  { %v20260_v30 = vpop.f32.mrf.mxu1  ;;  %v20263_v37 = vadd.f32 %v20118_v40, %v6673_v41 }
 0x5c7   :  { %v14608_v5 = vpop.f32.mrf.mxu0  ;;  %v20268_v17 = vpop.f32.mrf.mxu1 }
 0x5c8   :  { %v6675_v45 = vadd.f32 %v14608_v5, %v6395_v7 }
 0x5c9   :  { %v20270_v20 = vpop.f32.mrf.mxu0  ;;  %v20272_v29 = vpop.f32.mrf.mxu1 }
 0x5ca   :  { %21936 = vst [vmem:[#allocation32_spill] sm:$0xff] %v20272_v29  ;;  %v20276_v16 = vadd.f32 %v20129_v63, %v6675_v45 }
 0x5cb   :  { %v14611_v40 = vpop.f32.mrf.mxu0  ;;  %v20278_v41 = vpop.f32.mrf.mxu1 }
 0x5cc   :  { %21937 = vst [vmem:[#allocation33_spill] sm:$0xff] %v20278_v41  ;;  %v6677_v54 = vadd.f32 %v14611_v40, %v6397_v9 }
 0x5cd   :  { %v20280_v62 = vpop.f32.mrf.mxu0  ;;  %v20282_v10 = vpop.f32.mrf.mxu1 }
 0x5ce   :  { %21938 = vst [vmem:[#allocation43_spill] sm:$0xff] %v20282_v10  ;;  %v20287_v6 = vadd.f32 %v20141_v46, %v6677_v54 }
 0x5cf   :  { %v14614_v7 = vpop.f32.mrf.mxu0  ;;  %v20289_v5 = vpop.f32.mrf.mxu1 }
 0x5d0   :  { %21939 = vst [vmem:[#allocation56_spill] sm:$0xff] %v20287_v6  ;;  %21940 = vst [vmem:[#allocation76_spill] sm:$0xff] %v20289_v5  ;;  %v6679_v24 = vadd.f32 %v14614_v7, %v6399_v31 }
 0x5d1   :  { %v20291_v63 = vpop.f32.mrf.mxu0  ;;  %v20293_v13 = vpop.f32.mrf.mxu1 }
 0x5d2   :  { %21941 = vst [vmem:[#allocation78_spill] sm:$0xff] %v20293_v13  ;;  %v20296_v45 = vadd.f32 %v20150_v32, %v6679_v24 }
 0x5d3   :  { %v14617_v9 = vpop.f32.mrf.mxu0 }
 0x5d4   :  { %21942 = vst [vmem:[#allocation38_spill] sm:$0xff] %v20296_v45  ;;  %v6681_v40 = vadd.f32 %v14617_v9, %v20172_v12  ;;  %v20299_v18 = vpop.f32.mrf.mxu1 }
 0x5d5   :  { %21943 = vst [vmem:[#allocation40_spill] sm:$0xff] %v20299_v18  ;;  %v20301_v19 = vpop.f32.mrf.mxu0 }
 0x5d6   :  { %21944 = vst [vmem:[#allocation45_spill] sm:$0xff] %v20301_v19  ;;  %v20303_v46 = vpop.f32.mrf.mxu1  ;;  %v20306_v60 = vadd.f32 %v20164_v56, %v6681_v40 }
 0x5d7   :  { %21945 = vst [vmem:[#allocation42_spill] sm:$0xff] %v20303_v46 }
 0x5d8   :  { %21946 = vst [vmem:[#allocation44_spill] sm:$0xff] %v20306_v60 }
 0x5d9   :  { %v14620_v54 = vpop.f32.mrf.mxu0  ;;  %v14815_v31 = vpop.f32.mrf.mxu1 }
 0x5da   :  { %v6683_v7 = vadd.f32 %v14620_v54, %v20186_v2 }
 0x5db   :  { %v20309_v5 = vpop.f32.mrf.mxu0  ;;  %v20311_v32 = vpop.f32.mrf.mxu1 }
 0x5dc   :  { %21947 = vst [vmem:[#allocation47_spill] sm:$0xff] %v20309_v5  ;;  %21948 = vst [vmem:[#allocation49_spill] sm:$0xff] %v20311_v32  ;;  %v6962_v24 = vadd.f32 %v20178_v47, %v6683_v7 }
 0x5dd   :  { %v14623_v12 = vpop.f32.mrf.mxu0 }
 0x5de   :  { %v6685_v9 = vadd.f32 %v14623_v12, %v20194_v1 }
 0x5df   :  { %v14818_v18 = vpop.f32.mrf.mxu1  ;;  %v20315_v45 = vpop.f32.mrf.mxu0 }
 0x5e0   :  { %21949 = vst [vmem:[#allocation57_spill] sm:$0xff] %v20315_v45  ;;  %v6964_v46 = vadd.f32 %v20189_v48, %v6685_v9 }
 0x5e1   :  { %v20318_v56 = vpop.f32.mrf.mxu1 }
 0x5e2   :  { %21950 = vst [vmem:[#allocation46_spill] sm:$0xff] %v20318_v56 }
 0x5e3   :  { %v14626_v40 = vpop.f32.mrf.mxu0 }
 0x5e4   :  { %v6687_v60 = vadd.f32 %v14626_v40, %v20209_v61  ;;  %v14821_v2 = vpop.f32.mrf.mxu1 }
 0x5e5   :  { %v20321_v54 = vpop.f32.mrf.mxu0 }
 0x5e6   :  { %21951 = vst [vmem:[#allocation51_spill] sm:$0xff] %v20321_v54  ;;  %v6966_v32 = vadd.f32 %v20200_v52, %v6687_v60  ;;  %v20324_v5 = vpop.f32.mrf.mxu1 }
 0x5e7   :  { %21952 = vst [vmem:[#allocation58_spill] sm:$0xff] %v20324_v5 }
 0x5e8   :  { %v14629_v47 = vpop.f32.mrf.mxu0 }
 0x5e9   :  { %v6689_v1 = vadd.f32 %v14629_v47, %v20222_v22 }
 0x5ea   :  { %v20327_v7 = vpop.f32.mrf.mxu0  ;;  %v14824_v12 = vpop.f32.mrf.mxu1 }
 0x5eb   :  { %21953 = vst [vmem:[#allocation60_spill] sm:$0xff] %v20327_v7  ;;  %v6968_v48 = vadd.f32 %v20216_v55, %v6689_v1 }
 0x5ec   :  { %v20330_v56 = vpop.f32.mrf.mxu1 }
 0x5ed   :  { %21954 = vst [vmem:[#allocation83_spill] sm:$0xff] %v20330_v56 }
 0x5ee   :  { %v14632_v9 = vpop.f32.mrf.mxu0 }
 0x5ef   :  { %v6691_v61 = vadd.f32 %v14632_v9, %v20239_v53  ;;  %v14827_v52 = vpop.f32.mrf.mxu1 }
 0x5f0   :  { %v20333_v40 = vpop.f32.mrf.mxu0 }
 0x5f1   :  { %21955 = vst [vmem:[#allocation48_spill] sm:$0xff] %v20333_v40  ;;  %v6970_v54 = vadd.f32 %v20232_v0, %v6691_v61  ;;  %v20336_v45 = vpop.f32.mrf.mxu1 }
 0x5f2   :  { %21956 = vst [vmem:[#allocation64_spill] sm:$0xff] %v20336_v45 }
 0x5f4   :  { %v14732_v60 = vpop.f32.mrf.mxu0 }
 0x5f5   :  { %v20338_v7 = vpop.f32.mrf.mxu1 }
 0x5f6   :  { %v7119_v5 = vpop.f32.mrf.mxu0 }
 0x5f7   :  { %v20342_v55 = vpop.f32.mrf.mxu1 }
 0x5f8   :  { %v14735_v22 = vpop.f32.mrf.mxu0 }
 0x5f9   :  { %v20348_v9 = vpop.f32.mrf.mxu1 }
 0x5fa   :  { %v7129_v47 = vpop.f32.mrf.mxu0 }
 0x5fb   :  { %v20354_v40 = vpop.f32.mrf.mxu1 }
 0x5fc   :  { %21960 = vst [vmem:[#allocation52_spill] sm:$0xff] %v20354_v40 }
 0x5fd   :  { %v20340_v13 = vpop.f32.mrf.mxu0  ;;  %v20360_v41 = vpop.f32.mrf.mxu1 }
 0x5fe   :  { %21963 = vst [vmem:[#allocation66_spill] sm:$0xff] %v20360_v41 }
 0x5ff   :  { %v20344_v1 = vpop.f32.mrf.mxu0  ;;  %v20364_v6 = vpop.f32.mrf.mxu1 }
 0x601   :  { %v20346_v53 = vpop.f32.mrf.mxu0 }
 0x602   :  { %21957 = vst [vmem:[#allocation79_spill] sm:$0xff] %v20346_v53 }
 0x603   :  { %v20350_v0 = vpop.f32.mrf.mxu0 }
 0x604   :  { %21958 = vst [vmem:[#allocation81_spill] sm:$0xff] %v20350_v0 }
 0x605   :  { %v20352_v61 = vpop.f32.mrf.mxu0 }
 0x606   :  { %21959 = vst [vmem:[#allocation50_spill] sm:$0xff] %v20352_v61  ;;  %v6025_v61 = vadd.f32 %v20111_v15, %v19947_v14 }
 0x607   :  { %v20356_v45 = vpop.f32.mrf.mxu0 }
 0x608   :  { %21961 = vst [vmem:[#allocation59_spill] sm:$0xff] %v20356_v45  ;;  %v20372_v45 = vpop.f32.mrf.mxu1 }
 0x609   :  { %v20358_v56 = vpop.f32.mrf.mxu0 }
 0x60a   :  { %21962 = vst [vmem:[#allocation61_spill] sm:$0xff] %v20358_v56 }
 0x60b   :  { %v20362_v10 = vpop.f32.mrf.mxu0 }
 0x60c   :  { %21964 = vst [vmem:[#allocation62_spill] sm:$0xff] %v20362_v10 }
 0x60d   :  { %v14750_v19 = vpop.f32.mrf.mxu0 }
 0x60e   :  { %v7241_v50 = vadd.f32 %v14750_v19, %v6962_v24  ;;  %v6035_v19 = vadd.f32 %v20121_v57, %v19963_v39  ;;  %v6390_v24 = vadd.f32 %v19949_v36, %v6025_v61  ;;  %v7229_v57 = vadd.f32 %v14732_v60, %v20252_v34 }
 0x60f   :  { %v20366_v53 = vpop.f32.mrf.mxu0  ;;  %v6065_v61 = vadd.f32 %v20157_v49, %v20019_v3 }
 0x610   :  { %21965 = vst [vmem:[#allocation65_spill] sm:$0xff] %v20366_v53  ;;  %v20368_v29 = vadd.f32 %v14815_v31, %v7241_v50  ;;  %v20381_v50 = vpop.f32.mrf.mxu1  ;;  %v6670_v14 = vadd.f32 %v20246_v25, %v6390_v24 }
 0x611   :  { %v14753_v0 = vpop.f32.mrf.mxu0 }
 0x612   :  { %v7243_v40 = vadd.f32 %v14753_v0, %v6964_v46  ;;  %v6392_v0 = vadd.f32 %v19965_v8, %v6035_v19 }
 0x613   :  { %v20374_v56 = vpop.f32.mrf.mxu0 }
 0x614   :  { %v20376_v41 = vadd.f32 %v14818_v18, %v7243_v40  ;;  %v6045_v40 = vadd.f32 %v20133_v27, %v19984_v44  ;;  %v6672_v36 = vadd.f32 %v20258_v35, %v6392_v0  ;;  %v7231_v35 = vadd.f32 %v14735_v22, %v20263_v37 }
 0x615   :  { %v14756_v10 = vpop.f32.mrf.mxu0 }
 0x616   :  { %21966 = vst [vmem:[#allocation68_spill] sm:$0xff] %v20376_v41  ;;  %v7245_v53 = vadd.f32 %v14756_v10, %v6966_v32  ;;  %v20391_v41 = vpop.f32.mrf.mxu1  ;;  %v6949_v10 = vadd.f32 %v20113_v21, %v6670_v14  ;;  %v6055_v32 = vadd.f32 %v20144_v42, %v20004_v4  ;;  %v6394_v44 = vadd.f32 %v19986_v58, %v6045_v40 }
 0x617   :  { %v20383_v31 = vpop.f32.mrf.mxu0  ;;  %v6951_v34 = vadd.f32 %v20123_v59, %v6672_v36  ;;  %v7509_v21 = vadd.f32 %v20244_v26, %v7229_v57  ;;  %v20423_v26 = vld [vmem:[%s21721_s6] ss:$0 sm:$0xff]  ;;  %v6075_v14 = vadd.f32 %v20167_v51, %v20033_v23  ;;  %v21969_v57 = vld [vmem:[#allocation52_spill] sm:$0xff] }
 0x618   :  { %v20386_v15 = vadd.f32 %v14821_v2, %v7245_v53  ;;  %v7228_v2 = vadd.f32 %v7119_v5, %v6949_v10  ;;  %v20403_v27 = vpop.f32.mrf.mxu1  ;;  %v6674_v60 = vadd.f32 %v20270_v20, %v6394_v44  ;;  %v6396_v4 = vadd.f32 %v20006_v38, %v6055_v32  ;;  %v8729_v32 = vld [vmem:[#allocation7 + $0x1f8] sm:$0xff] }
 0x619   :  { %v14759_v46 = vpop.f32.mrf.mxu0  ;;  %v7230_v5 = vadd.f32 %v7129_v47, %v6951_v34 }
 0x61a   :  { %v7247_v18 = vadd.f32 %v14759_v46, %v6968_v48  ;;  %v7508_v58 = vadd.f32 %v20248_v33, %v7228_v2  ;;  %v6676_v37 = vadd.f32 %v20280_v62, %v6396_v4  ;;  %v20418_v22 = vpop.f32.mrf.mxu1  ;;  %v7233_v33 = vadd.f32 %v20340_v13, %v20276_v16  ;;  %v21967_v46 = vld [vmem:[#allocation35_spill] sm:$0xff] }
 0x61b   :  { %v20393_v39 = vpop.f32.mrf.mxu0  ;;  %v6953_v3 = vadd.f32 %v20135_v28, %v6674_v60  ;;  %v7510_v24 = vadd.f32 %v20260_v30, %v7230_v5  ;;  %v21972_v5 = vld [vmem:[#allocation56_spill] sm:$0xff] }
 0x61c   :  { %v20398_v25 = vadd.f32 %v14824_v12, %v7247_v18  ;;  %v6955_v0 = vadd.f32 %v21967_v46, %v6676_v37  ;;  %v20438_v16 = vpop.f32.mrf.mxu1  ;;  %v7513_v23 = vadd.f32 %v20268_v17, %v7233_v33 }
 0x61d   :  { %v14762_v8 = vpop.f32.mrf.mxu0 }
 0x61e   :  { %v7249_v48 = vadd.f32 %v14762_v8, %v6970_v54  ;;  %v21970_v8 = vld [vmem:[#allocation20_spill] sm:$0xff] }
 0x61f   :  { %v20405_v53 = vpop.f32.mrf.mxu0  ;;  %v6400_v2 = vadd.f32 %v21970_v8, %v6075_v14  ;;  %v21978_v14 = vld [vmem:[#allocation59_spill] sm:$0xff] }
 0x620   :  { %v20410_v12 = vadd.f32 %v14827_v52, %v7249_v48  ;;  %v7511_v52 = vadd.f32 %v20256_v11, %v7231_v35  ;;  %v7232_v11 = vadd.f32 %v20344_v1, %v6953_v3  ;;  %v20449_v48 = vpop.f32.mrf.mxu1  ;;  %v21976_v3 = vld [vmem:[#allocation45_spill] sm:$0xff] }
 0x621   :  { %v14862_v42 = vpop.f32.mrf.mxu0 }
 0x622   :  { %v7791_v54 = vadd.f32 %v14862_v42, %v7509_v21  ;;  %v8728_v42 = vld [vmem:[#allocation7 + $0x1f0] sm:$0xff] }
 0x623   :  { %v7681_v59 = vpop.f32.mrf.mxu0 }
 0x624   :  { %v8005_v38 = vadd.f32 %v20338_v7, %v7791_v54  ;;  %v7790_v20 = vadd.f32 %v7681_v59, %v7508_v58  ;;  %v6398_v7 = vadd.f32 %v20021_v43, %v6065_v61  ;;  %v21968_v43 = vld [vmem:[#allocation81_spill] sm:$0xff]  ;;  %v21973_v54 = vld [vmem:[#allocation79_spill] sm:$0xff]  ;;  %v21974_v61 = vld [vmem:[#allocation26_spill] sm:$0xff] }
 0x625   :  { %v14865_v49 = vpop.f32.mrf.mxu0  ;;  %v7234_v36 = vadd.f32 %v21968_v43, %v6955_v0  ;;  %v7235_v58 = vadd.f32 %v21973_v54, %v21972_v5 }
 0x626   :  { %v8034_v62 = vadd.f32 %v20423_v26, %v8005_v38  ;;  %v8004_v47 = vadd.f32 %v20342_v55, %v7790_v20  ;;  %v7793_v19 = vadd.f32 %v14865_v49, %v7511_v52  ;;  %v6678_v30 = vadd.f32 %v20291_v63, %v6398_v7  ;;  %v8499_v52 = vld [vmem:[#allocation7 + $0x178] sm:$0xff] }
 0x627   :  { %v7691_v28 = vpop.f32.mrf.mxu0  ;;  %v21975_v20 = vmov 0.0   ;;  %v6680_v49 = vadd.f32 %v21976_v3, %v6400_v2 }
 0x628   :  { %v20440_v13 = vmax.f32 %v8034_v62, 0.0  ;;  %v8033_v18 = vadd.f32 %v20423_v26, %v8004_v47  ;;  %v8007_v55 = vadd.f32 %v20348_v9, %v7793_v19  ;;  %v7792_v40 = vadd.f32 %v7691_v28, %v7510_v24  ;;  %v21971_v9 = vld [vmem:[#allocation32_spill] sm:$0xff]  ;;  %v21977_v47 = vld [vmem:[#allocation43_spill] sm:$0xff] }
 0x629   :  { %v14868_v51 = vpop.f32.mrf.mxu0  ;;  %v7512_v34 = vadd.f32 %v21971_v9, %v7232_v11  ;;  %v6957_v37 = vadd.f32 %v21974_v61, %v6678_v30  ;;  %v7514_v19 = vadd.f32 %v21977_v47, %v7234_v36  ;;  %v20468_v11 = vpop.f32.mrf.mxu1  ;;  %v21980_v36 = vld [vmem:[#allocation33_spill] sm:$0xff]  ;;  %v21985_v61 = vld [vmem:[#allocation50_spill] sm:$0xff] }
 0x62a   :  { %v8055_v1 = vmax.f32 %v8033_v18, 0.0  ;;  %v8006_v10 = vadd.f32 %v21969_v57, %v7792_v40  ;;  %v8036_v44 = vadd.f32 %v20423_v26, %v8007_v55  ;;  %v7795_v35 = vadd.f32 %v14868_v51, %v7513_v23  ;;  %v21979_v55 = vld [vmem:[#allocation66_spill] sm:$0xff] }
 0x62b   :  { %v7701_v21 = vpop.f32.mrf.mxu0  ;;  %v8130_v4 = vrot.slane %v20440_v13, 1  ;;  %v8501_v33 = vrot.slane %v20440_v13, 2  ;;  %v7236_v7 = vadd.f32 %v21978_v14, %v6957_v37  ;;  %v8498_v57 = vld [vmem:[#allocation7 + $0x170] sm:$0xff] }
 0x62c   :  { %v8129_v63 = vrot.slane %v8055_v1, 1  ;;  %v8500_v60 = vrot.slane %v8055_v1, 2  ;;  %v8035_v17 = vadd.f32 %v20423_v26, %v8006_v10  ;;  %15080 = vmatmul.mubr.f32.vlgmr.msra.gmra.mxu1 %v8055_v1  ;;  %v7794_v59 = vadd.f32 %v7701_v21, %v7512_v34  ;;  %v20493_v34 = vpop.f32.mrf.mxu1 }
 0x62d   :  { %v14871_v38 = vpop.f32.mrf.mxu0  ;;  %15082 = vmatprep.mubr.msk.f32.mxu1 %vm16288_vm7, %v21975_v20  ;;  %15226 = vmatpush3.msra.mxu1 %v8729_v32  ;;  %v20470_v46 = vmax.f32 %v8036_v44, 0.0  ;;  %v8009_v40 = vadd.f32 %v21979_v55, %v7795_v35  ;;  %v8731_v10 = vrot.slane %v20440_v13, 3  ;;  %v21981_v44 = vld [vmem:[#allocation21_spill] sm:$0xff]  ;;  %v21982_v35 = vld [vmem:[#allocation28_spill] sm:$0xff] }
 0x62e   :  { %v20462_v62 = vmax.f32 %v8035_v17, 0.0  ;;  %v8131_v24 = vsel %vm205_vm0, %v8129_v63, %v8130_v4  ;;  %15227 = vmatprep.subr.mxu1 %v21975_v20  ;;  %v8008_v0 = vadd.f32 %v20364_v6, %v7794_v59  ;;  %v20474_v18 = vsel %vm716_vm1, %v8500_v60, %v8501_v33  ;;  %v8727_v17 = vld [vmem:[#allocation7 + $0x1e8] sm:$0xff]  ;;  %v21986_v59 = vld [vmem:[#allocation27_spill] sm:$0xff] }
 0x62f   :  { %v7711_v28 = vpop.f32.mrf.mxu0  ;;  %14991 = vmatmul.mubr.f32.vlgmr.msra.gmra.mxu0 %v8131_v24  ;;  %15228 = vmatpush3.msra.mxu1 %v8728_v42  ;;  %v7515_v6 = vadd.f32 %v21980_v36, %v7235_v58  ;;  %v6085_v9 = vadd.f32 %v21982_v35, %v21981_v44  ;;  %v21983_v42 = vld [vmem:[#allocation78_spill] sm:$0xff]  ;;  %v8134_v54 = vrot.slane %v20470_v46, 1  ;;  %v21989_v36 = vld [vmem:[#allocation47_spill] sm:$0xff] }
 0x630   :  { %v7796_v30 = vadd.f32 %v7711_v28, %v7514_v19  ;;  %15083 = vmatmul.mubr.f32.gmra.mxu1 %v20440_v13  ;;  %15137 = vmatpush3.msra.mxu0 %v8499_v52  ;;  %v8132_v23 = vrot.slane %v20462_v62, 1  ;;  %v8732_v51 = vrot.slane %v20462_v62, 3  ;;  %v8037_v43 = vadd.f32 %v20423_v26, %v8008_v0  ;;  %v21984_v58 = vld [vmem:[#allocation38_spill] sm:$0xff]  ;;  %v20526_v28 = vpop.f32.mrf.mxu1  ;;  %v8496_v35 = vld [vmem:[#allocation7 + $0x160] sm:$0xff] }
 0x631   :  { %v14874_v1 = vpop.f32.mrf.mxu0  ;;  %14993 = vmatprep.mubr.msk.f32.mxu0 %vm16288_vm7, %v21975_v20  ;;  %15085 = vmatprep.mubr.msk.f32.mxu1 %vm16288_vm7, %v21975_v20  ;;  %v8503_v32 = vrot.slane %v20462_v62, 2  ;;  %v7797_v63 = vadd.f32 %v14871_v38, %v7515_v6  ;;  %v7516_v5 = vadd.f32 %v21983_v42, %v7236_v7  ;;  %v7237_v37 = vadd.f32 %v21985_v61, %v21984_v58  ;;  %v21987_v7 = vld [vmem:[#allocation74_spill] sm:$0xff] }
 0x632   :  { %v8010_v8 = vadd.f32 %v20381_v50, %v7796_v30  ;;  %v8133_v2 = vsel %vm205_vm0, %v8130_v4, %v8132_v23  ;;  %15138 = vmatprep.subr.mxu0 %v21975_v20  ;;  %v20495_v21 = vmax.f32 %v8037_v43, 0.0  ;;  %15229 = vmatprep.subr.mxu1 %v21975_v20  ;;  %v20501_v50 = vsel %vm1051_vm2, %v8731_v10, %v8732_v51  ;;  %v21988_v30 = vld [vmem:[#allocation62_spill] sm:$0xff] }
 0x633   :  { %v7721_v60 = vpop.f32.mrf.mxu0  ;;  %14994 = vmatmul.mubr.f32.gmra.mxu0 %v8133_v2  ;;  %v8038_v4 = vadd.f32 %v20423_v26, %v8009_v40  ;;  %v6959_v38 = vadd.f32 %v21986_v59, %v6680_v49  ;;  %v20519_v3 = vsel %vm716_vm1, %v8501_v33, %v8503_v32  ;;  %v8135_v24 = vsel %vm205_vm0, %v8132_v23, %v8134_v54  ;;  %v8497_v49 = vld [vmem:[#allocation7 + $0x168] sm:$0xff]  ;;  %v8726_v33 = vld [vmem:[#allocation7 + $0x1e0] sm:$0xff]  ;;  %v8725_v58 = vld [vmem:[#allocation7 + $0x1d8] sm:$0xff] }
 0x634   :  { %15086 = vmatmul.mubr.f32.gmra.mxu1 %v20462_v62  ;;  %15139 = vmatpush3.msra.mxu0 %v8498_v57  ;;  %v8039_v47 = vadd.f32 %v20423_v26, %v8010_v8  ;;  %v7798_v19 = vadd.f32 %v7721_v60, %v7516_v5  ;;  %v8136_v14 = vrot.slane %v20495_v21, 1  ;;  %v6402_v0 = vadd.f32 %v21987_v7, %v6085_v9  ;;  %v21990_v57 = vld [vmem:[#allocation76_spill] sm:$0xff]  ;;  %v21991_v9 = vld [vmem:[#allocation34_spill] sm:$0xff]  ;;  %v21995_v59 = vld [vmem:[#allocation61_spill] sm:$0xff] }
 0x635   :  { %v20510_v52 = vpop.f32.mrf.mxu0  ;;  %14996 = vmatprep.mubr.msk.f32.mxu0 %vm16288_vm7, %v21975_v20  ;;  %15088 = vmatprep.mubr.msk.f32.mxu1 %vm16288_vm7, %v21975_v20  ;;  %v8011_v55 = vadd.f32 %v20372_v45, %v7797_v63  ;;  %v7238_v43 = vadd.f32 %v21988_v30, %v6959_v38  ;;  %v20531_v23 = vmax.f32 %v8038_v4, 0.0  ;;  %v7517_v10 = vadd.f32 %v21990_v57, %v7237_v37  ;;  %v21992_v63 = vld [vmem:[#allocation30_spill] sm:$0xff]  ;;  %v21994_v37 = vld [vmem:[#allocation44_spill] sm:$0xff] }
 0x636   :  { %15140 = vmatprep.subr.mxu0 %v21975_v20  ;;  %15230 = vmatpush3.msra.mxu1 %v8727_v17  ;;  %v6682_v6 = vadd.f32 %v21989_v36, %v6402_v0  ;;  %v20542_v45 = vmax.f32 %v8039_v47, 0.0  ;;  %v8012_v2 = vadd.f32 %v20403_v27, %v7798_v19  ;;  %v8137_v44 = vsel %vm205_vm0, %v8134_v54, %v8136_v14  ;;  %v14951_v17 = vpop.f32.mrf.mxu1  ;;  %v21993_v61 = vld [vmem:[#allocation42_spill] sm:$0xff]  ;;  %v21996_v47 = vld [vmem:[#allocation29_spill] sm:$0xff] }
 0x637   :  { %v7731_v40 = vpop.f32.mrf.mxu0  ;;  %14997 = vmatmul.mubr.f32.gmra.mxu0 %v8135_v24  ;;  %15231 = vmatprep.subr.mxu1 %v21975_v20  ;;  %v6095_v60 = vadd.f32 %v21992_v63, %v21991_v9  ;;  %v8040_v4 = vadd.f32 %v20423_v26, %v8011_v55  ;;  %v7799_v42 = vadd.f32 %v14874_v1, %v7517_v10  ;;  %v8138_v54 = vrot.slane %v20531_v23, 1  ;;  %v8495_v55 = vld [vmem:[#allocation7 + $0x158] sm:$0xff] }
 0x638   :  { %15089 = vmatmul.mubr.f32.gmra.mxu1 %v20470_v46  ;;  %14999 = vmatprep.mubr.msk.f32.mxu0 %vm16288_vm7, %v21975_v20  ;;  %v7518_v27 = vadd.f32 %v21993_v61, %v7238_v43  ;;  %v7239_v38 = vadd.f32 %v21995_v59, %v21994_v37  ;;  %v6961_v19 = vadd.f32 %v21996_v47, %v6682_v6  ;;  %v8140_v0 = vrot.slane %v20542_v45, 1  ;;  %v21998_v43 = vld [vmem:[#allocation65_spill] sm:$0xff]  ;;  %v20569_v6 = vpop.f32.mrf.mxu1  ;;  %v22001_v61 = vld [vmem:[#allocation22_spill] sm:$0xff] }
 0x639   :  { %v20538_v8 = vpop.f32.mrf.mxu0  ;;  %15141 = vmatpush3.msra.mxu0 %v8497_v49  ;;  %15091 = vmatprep.mubr.msk.f32.mxu1 %vm16288_vm7, %v21975_v20  ;;  %v8041_v24 = vadd.f32 %v20423_v26, %v8012_v2  ;;  %v8139_v7 = vsel %vm205_vm0, %v8136_v14, %v8138_v54  ;;  %v20571_v57 = vmax.f32 %v8040_v4, 0.0  ;;  %v8013_v10 = vadd.f32 %v20391_v41, %v7799_v42  ;;  %v8724_v14 = vld [vmem:[#allocation7 + $0x1d0] sm:$0xff] }
 0x63a   :  { %15142 = vmatprep.subr.mxu0 %v21975_v20  ;;  %15232 = vmatpush3.msra.mxu1 %v8726_v33  ;;  %v7800_v49 = vadd.f32 %v7731_v40, %v7518_v27  ;;  %v21997_v33 = vld [vmem:[#allocation77_spill] sm:$0xff]  ;;  %v7240_v36 = vadd.f32 %v21998_v43, %v6961_v19  ;;  %v8141_v42 = vsel %vm205_vm0, %v8138_v54, %v8140_v0  ;;  %v22002_v27 = vld [vmem:[#allocation55_spill] sm:$0xff]  ;;  %v14954_v59 = vpop.f32.mrf.mxu1 }
 0x63b   :  { %v7741_v5 = vpop.f32.mrf.mxu0  ;;  %15000 = vmatmul.mubr.f32.gmra.mxu0 %v8137_v44  ;;  %15233 = vmatprep.subr.mxu1 %v21975_v20  ;;  %v6404_v30 = vadd.f32 %v21997_v33, %v6095_v60  ;;  %v21999_v40 = vld [vmem:[#allocation57_spill] sm:$0xff]  ;;  %v20584_v41 = vmax.f32 %v8041_v24, 0.0  ;;  %v6105_v37 = vadd.f32 %v22002_v27, %v22001_v61 }
 0x63c   :  { %15092 = vmatmul.mubr.f32.gmra.mxu1 %v20495_v21  ;;  %15002 = vmatprep.mubr.msk.f32.mxu0 %vm16288_vm7, %v21975_v20  ;;  %v8014_v60 = vadd.f32 %v20438_v16, %v7800_v49  ;;  %v22003_v47 = vld [vmem:[#allocation49_spill] sm:$0xff]  ;;  %v8142_v16 = vrot.slane %v20571_v57, 1 }
 0x63d   :  { %v20559_v1 = vpop.f32.mrf.mxu0  ;;  %15094 = vmatprep.mubr.msk.f32.mxu1 %vm16288_vm7, %v21975_v20  ;;  %15143 = vmatpush3.msra.mxu0 %v8496_v35  ;;  %v6684_v44 = vadd.f32 %v21999_v40, %v6404_v30  ;;  %v22000_v35 = vld [vmem:[#allocation40_spill] sm:$0xff]  ;;  %v7520_v19 = vadd.f32 %v22003_v47, %v7240_v36 }
 0x63e   :  { %15144 = vmatprep.subr.mxu0 %v21975_v20  ;;  %15234 = vmatpush3.msra.mxu1 %v8725_v58  ;;  %v7519_v9 = vadd.f32 %v22000_v35, %v7239_v38  ;;  %v8494_v58 = vld [vmem:[#allocation7 + $0x150] sm:$0xff]  ;;  %v8042_v38 = vadd.f32 %v20423_v26, %v8013_v10  ;;  %v8143_v43 = vsel %vm205_vm0, %v8140_v0, %v8142_v16  ;;  %v8144_v10 = vrot.slane %v20584_v41, 1 }
 0x63f   :  { %v20574_v2 = vpop.f32.mrf.mxu0  ;;  %15003 = vmatmul.mubr.f32.gmra.mxu0 %v8139_v7  ;;  %15235 = vmatprep.subr.mxu1 %v21975_v20  ;;  %v22004_v7 = vld [vmem:[#allocation31_spill] sm:$0xff]  ;;  %v7802_v33 = vadd.f32 %v7741_v5, %v7520_v19  ;;  %v8043_v36 = vadd.f32 %v20423_v26, %v8014_v60 }
 0x640   :  { %15095 = vmatmul.mubr.f32.gmra.mxu1 %v20531_v23  ;;  %15005 = vmatprep.mubr.msk.f32.mxu0 %vm16288_vm7, %v21975_v20  ;;  %v7801_v54 = vadd.f32 %v20510_v52, %v7519_v9  ;;  %v22005_v5 = vld [vmem:[#allocation23_spill] sm:$0xff]  ;;  %v20617_v35 = vmax.f32 %v8042_v38, 0.0  ;;  %v22007_v38 = vld [vmem:[#allocation24_spill] sm:$0xff] }
 0x641   :  { %v14886_v63 = vpop.f32.mrf.mxu0  ;;  %15097 = vmatprep.mubr.msk.f32.mxu1 %vm16288_vm7, %v21975_v20  ;;  %15145 = vmatpush3.msra.mxu0 %v8495_v55  ;;  %v6963_v55 = vadd.f32 %v22004_v7, %v6684_v44  ;;  %v6406_v40 = vadd.f32 %v22005_v5, %v6105_v37  ;;  %v20615_v44 = vpop.f32.mrf.mxu1  ;;  %v20630_v61 = vmax.f32 %v8043_v36, 0.0  ;;  %v8145_v37 = vsel %vm205_vm0, %v8142_v16, %v8144_v10  ;;  %v8721_v7 = vld [vmem:[#allocation7 + $0x1b8] sm:$0xff]  ;;  %v22011_v5 = vld [vmem:[#allocation25_spill] sm:$0xff] }
 0x642   :  { %v7807_v4 = vadd.f32 %v14886_v63, %v20386_v15  ;;  %15146 = vmatprep.subr.mxu0 %v21975_v20  ;;  %15236 = vmatpush3.msra.mxu1 %v8724_v14  ;;  %v8723_v15 = vld [vmem:[#allocation7 + $0x1c8] sm:$0xff]  ;;  %v8015_v63 = vadd.f32 %v20418_v22, %v7801_v54  ;;  %v7803_v16 = vadd.f32 %v20538_v8, %v20368_v29 }
 0x643   :  { %v20594_v24 = vpop.f32.mrf.mxu0  ;;  %15006 = vmatmul.mubr.f32.gmra.mxu0 %v8141_v42  ;;  %15237 = vmatprep.subr.mxu1 %v21975_v20  ;;  %v8493_v14 = vld [vmem:[#allocation7 + $0x148] sm:$0xff]  ;;  %v7242_v0 = vadd.f32 %v20374_v56, %v6963_v55  ;;  %v8016_v42 = vadd.f32 %v20468_v11, %v7802_v33  ;;  %v14957_v19 = vpop.f32.mrf.mxu1  ;;  %v8148_v8 = vrot.slane %v20630_v61, 1 }
 0x644   :  { %v8021_v49 = vadd.f32 %v14951_v17, %v7807_v4  ;;  %15098 = vmatmul.mubr.f32.gmra.mxu1 %v20542_v45  ;;  %15008 = vmatprep.mubr.msk.f32.mxu0 %vm16288_vm7, %v21975_v20  ;;  %v22006_v4 = vld [vmem:[#allocation51_spill] sm:$0xff]  ;;  %v22008_v11 = vld [vmem:[#allocation37_spill] sm:$0xff]  ;;  %v22010_v33 = vld [vmem:[#allocation36_spill] sm:$0xff] }
 0x645   :  { %v14889_v30 = vpop.f32.mrf.mxu0  ;;  %15100 = vmatprep.mubr.msk.f32.mxu1 %vm16288_vm7, %v21975_v20  ;;  %15147 = vmatpush3.msra.mxu0 %v8494_v58  ;;  %v6686_v56 = vadd.f32 %v22006_v4, %v6406_v40  ;;  %v6115_v47 = vadd.f32 %v22008_v11, %v22007_v38  ;;  %v8045_v36 = vadd.f32 %v20423_v26, %v8016_v42  ;;  %v8719_v42 = vld [vmem:[#allocation7 + $0x1a8] sm:$0xff]  ;;  %v22015_v11 = vld [vmem:[#allocation39_spill] sm:$0xff] }
 0x646   :  { %v20608_v52 = vadd.f32 %v20423_v26, %v8021_v49  ;;  %v7809_v17 = vadd.f32 %v14889_v30, %v20398_v25  ;;  %15148 = vmatprep.subr.mxu0 %v21975_v20  ;;  %15238 = vmatpush3.msra.mxu1 %v8723_v15  ;;  %v8722_v25 = vld [vmem:[#allocation7 + $0x1c0] sm:$0xff]  ;;  %v22009_v15 = vld [vmem:[#allocation46_spill] sm:$0xff]  ;;  %v8146_v49 = vrot.slane %v20617_v35, 1 }
 0x647   :  { %v20619_v9 = vpop.f32.mrf.mxu0  ;;  %15009 = vmatmul.mubr.f32.gmra.mxu0 %v8143_v43  ;;  %15239 = vmatprep.subr.mxu1 %v21975_v20  ;;  %v7522_v54 = vadd.f32 %v22009_v15, %v7242_v0  ;;  %v6965_v30 = vadd.f32 %v22010_v33, %v6686_v56  ;;  %v6408_v40 = vadd.f32 %v22011_v5, %v6115_v47  ;;  %v20672_v4 = vmax.f32 %v8045_v36, 0.0  ;;  %v22016_v5 = vld [vmem:[#allocation83_spill] sm:$0xff] }
 0x648   :  { %v8023_v60 = vadd.f32 %v14954_v59, %v7809_v17  ;;  %15101 = vmatmul.mubr.f32.gmra.mxu1 %v20571_v57  ;;  %15011 = vmatprep.mubr.msk.f32.mxu0 %vm16288_vm7, %v21975_v20  ;;  %v8492_v59 = vld [vmem:[#allocation7 + $0x140] sm:$0xff]  ;;  %v8147_v43 = vsel %vm205_vm0, %v8144_v10, %v8146_v49  ;;  %v8720_v10 = vld [vmem:[#allocation7 + $0x1b0] sm:$0xff]  ;;  %v9192_v33 = vrot.slane %v20462_v62, 5 }
 0x649   :  { %v14892_v58 = vpop.f32.mrf.mxu0  ;;  %15103 = vmatprep.mubr.msk.f32.mxu1 %vm16288_vm7, %v21975_v20  ;;  %15149 = vmatpush3.msra.mxu0 %v8493_v14  ;;  %v7804_v17 = vadd.f32 %v20574_v2, %v7522_v54  ;;  %v8491_v14 = vld [vmem:[#allocation7 + $0x138] sm:$0xff]  ;;  %v7244_v0 = vadd.f32 %v20383_v31, %v6965_v30  ;;  %v8017_v2 = vadd.f32 %v20449_v48, %v7803_v16  ;;  %v8490_v48 = vld [vmem:[#allocation7 + $0x130] sm:$0xff]  ;;  %v8152_v54 = vrot.slane %v20672_v4, 1 }
 0x64a   :  { %v20633_v27 = vadd.f32 %v20423_v26, %v8023_v60  ;;  %v7811_v22 = vadd.f32 %v14892_v58, %v20410_v12  ;;  %15150 = vmatprep.subr.mxu0 %v21975_v20  ;;  %15240 = vmatpush3.msra.mxu1 %v8722_v25  ;;  %v8044_v12 = vadd.f32 %v20423_v26, %v8015_v63  ;;  %v22012_v63 = vld [vmem:[#allocation60_spill] sm:$0xff]  ;;  %v8961_v30 = vrot.slane %v20440_v13, 4 }
 0x64b   :  { %15012 = vmatmul.mubr.f32.gmra.mxu0 %v8145_v37  ;;  %15241 = vmatprep.subr.mxu1 %v21975_v20  ;;  %v6688_v60 = vadd.f32 %v22012_v63, %v6408_v40  ;;  %v8018_v56 = vadd.f32 %v20526_v28, %v7804_v17  ;;  %v8149_v31 = vsel %vm205_vm0, %v8146_v49, %v8148_v8  ;;  %v8489_v49 = vld [vmem:[#allocation7 + $0x128] sm:$0xff]  ;;  %v8488_v17 = vld [vmem:[#allocation7 + $0x120] sm:$0xff] }
 0x64c   :  { %v8025_v55 = vadd.f32 %v14957_v19, %v7811_v22  ;;  %15104 = vmatmul.mubr.f32.gmra.mxu1 %v20584_v41  ;;  %15014 = vmatprep.mubr.msk.f32.mxu0 %vm16288_vm7, %v21975_v20  ;;  %v20663_v25 = vmax.f32 %v8044_v12, 0.0  ;;  %v8046_v58 = vadd.f32 %v20423_v26, %v8017_v2  ;;  %v22013_v22 = vld [vmem:[#allocation68_spill] sm:$0xff] }
 0x64d   :  { %15106 = vmatprep.mubr.msk.f32.mxu1 %vm16288_vm7, %v21975_v20  ;;  %15151 = vmatpush3.msra.mxu0 %v8492_v59  ;;  %v7805_v37 = vadd.f32 %v20559_v1, %v22013_v22  ;;  %v22014_v59 = vld [vmem:[#allocation58_spill] sm:$0xff]  ;;  %v6967_v47 = vadd.f32 %v22015_v11, %v6688_v60  ;;  %v8047_v19 = vadd.f32 %v20423_v26, %v8018_v56  ;;  %v8485_v11 = vld [vmem:[#allocation7 + $0x108] sm:$0xff] }
 0x64e   :  { %v20656_v29 = vadd.f32 %v20423_v26, %v8025_v55  ;;  %15152 = vmatprep.subr.mxu0 %v21975_v20  ;;  %15242 = vmatpush3.msra.mxu1 %v8721_v7  ;;  %v7524_v38 = vadd.f32 %v22014_v59, %v7244_v0  ;;  %v8150_v28 = vrot.slane %v20663_v25, 1  ;;  %v8718_v7 = vld [vmem:[#allocation7 + $0x1a0] sm:$0xff]  ;;  %v20696_v16 = vmax.f32 %v8046_v58, 0.0  ;;  %v8487_v56 = vld [vmem:[#allocation7 + $0x118] sm:$0xff]  ;;  %v8486_v22 = vld [vmem:[#allocation7 + $0x110] sm:$0xff] }
 0x64f   :  { %15015 = vmatmul.mubr.f32.gmra.mxu0 %v8147_v43  ;;  %15243 = vmatprep.subr.mxu1 %v21975_v20  ;;  %v7246_v12 = vadd.f32 %v20393_v39, %v6967_v47  ;;  %v8019_v55 = vadd.f32 %v20493_v34, %v7805_v37  ;;  %v8962_v39 = vrot.slane %v20462_v62, 4  ;;  %v20708_v43 = vmax.f32 %v8047_v19, 0.0  ;;  %v8715_v37 = vld [vmem:[#allocation7 + $0x188] sm:$0xff]  ;;  %v8714_v47 = vld [vmem:[#allocation7 + $0x180] sm:$0xff] }
 0x650   :  { %15107 = vmatmul.mubr.f32.gmra.mxu1 %v20617_v35  ;;  %15017 = vmatprep.mubr.msk.f32.mxu0 %vm16288_vm7, %v21975_v20  ;;  %v7806_v15 = vadd.f32 %v20594_v24, %v7524_v38  ;;  %v8151_v1 = vsel %vm205_vm0, %v8148_v8, %v8150_v28  ;;  %v9191_v24 = vrot.slane %v20440_v13, 5  ;;  %v8153_v36 = vsel %vm205_vm0, %v8150_v28, %v8152_v54  ;;  %v8717_v8 = vld [vmem:[#allocation7 + $0x198] sm:$0xff] }
 0x651   :  { %15109 = vmatprep.mubr.msk.f32.mxu1 %vm16288_vm7, %v21975_v20  ;;  %15153 = vmatpush3.msra.mxu0 %v8491_v14  ;;  %v20722_v14 = vsel %vm1385_vm3, %v8961_v30, %v8962_v39  ;;  %v7526_v40 = vadd.f32 %v22016_v5, %v7246_v12  ;;  %v8156_v60 = vrot.slane %v20708_v43, 1  ;;  %v20763_v19 = vmax.f32 %v20608_v52, 0.0  ;;  %v9190_v12 = vld [vmem:[#allocation7 + $0x2f8] sm:$0xff]  ;;  %v8958_v5 = vld [vmem:[#allocation7 + $0x268] sm:$0xff] }
 0x652   :  { %15154 = vmatprep.subr.mxu0 %v21975_v20  ;;  %15244 = vmatpush3.msra.mxu1 %v8720_v10  ;;  %v8020_v34 = vadd.f32 %v20569_v6, %v7806_v15  ;;  %v20717_v13 = vsel %vm1719_vm4, %v9191_v24, %v9192_v33  ;;  %v8048_v6 = vadd.f32 %v20423_v26, %v8019_v55  ;;  %v8154_v10 = vrot.slane %v20696_v16, 1  ;;  %v9189_v55 = vld [vmem:[#allocation7 + $0x2f0] sm:$0xff]  ;;  %v8960_v30 = vld [vmem:[#allocation7 + $0x278] sm:$0xff] }
 0x653   :  { %15018 = vmatmul.mubr.f32.gmra.mxu0 %v8149_v31  ;;  %15245 = vmatprep.subr.mxu1 %v21975_v20  ;;  %v7808_v2 = vadd.f32 %v20619_v9, %v7526_v40  ;;  %v8716_v31 = vld [vmem:[#allocation7 + $0x190] sm:$0xff]  ;;  %v8162_v52 = vrot.slane %v20763_v19, 1  ;;  %v8734_v24 = vrot.slane %v20470_v46, 3  ;;  %v8507_v40 = vrot.slane %v20495_v21, 2 }
 0x654   :  { %15110 = vmatmul.mubr.f32.gmra.mxu1 %v20630_v61  ;;  %15020 = vmatprep.mubr.msk.f32.mxu0 %vm16288_vm7, %v21975_v20  ;;  %v8049_v0 = vadd.f32 %v20423_v26, %v8020_v34  ;;  %v8155_v63 = vsel %vm205_vm0, %v8152_v54, %v8154_v10  ;;  %v8157_v58 = vsel %vm205_vm0, %v8154_v10, %v8156_v60 }
 0x655   :  { %15112 = vmatprep.mubr.msk.f32.mxu1 %vm16288_vm7, %v21975_v20  ;;  %15155 = vmatpush3.msra.mxu0 %v8490_v48  ;;  %v20738_v48 = vmax.f32 %v8048_v6, 0.0  ;;  %v8735_v34 = vsel %vm1051_vm2, %v8732_v51, %v8734_v24  ;;  %v8505_v51 = vrot.slane %v20470_v46, 2  ;;  %v8738_v6 = vrot.slane %v20531_v23, 3 }
 0x656   :  { %15156 = vmatprep.subr.mxu0 %v21975_v20  ;;  %15246 = vmatpush3.msra.mxu1 %v8719_v42  ;;  %v20745_v9 = vmax.f32 %v8049_v0, 0.0  ;;  %v8022_v42 = vadd.f32 %v20615_v44, %v7808_v2  ;;  %v8740_v0 = vrot.slane %v20542_v45, 3  ;;  %v9186_v2 = vld [vmem:[#allocation7 + $0x2d8] sm:$0xff] }
 0x657   :  { %15021 = vmatmul.mubr.f32.gmra.mxu0 %v8151_v1  ;;  %15247 = vmatprep.subr.mxu1 %v21975_v20  ;;  %v8158_v59 = vrot.slane %v20738_v48, 1  ;;  %v8484_v1 = vld [vmem:[#allocation7 + $0x100] sm:$0xff] }
 0x658   :  { %15113 = vmatmul.mubr.f32.gmra.mxu1 %v20663_v25  ;;  %15023 = vmatprep.mubr.msk.f32.mxu0 %vm16288_vm7, %v21975_v20  ;;  %v8051_v44 = vadd.f32 %v20423_v26, %v8022_v42  ;;  %v8160_v28 = vrot.slane %v20745_v9, 1  ;;  %v8742_v42 = vrot.slane %v20571_v57, 3 }
 0x659   :  { %15115 = vmatprep.mubr.msk.f32.mxu1 %vm16288_vm7, %v21975_v20  ;;  %15157 = vmatpush3.msra.mxu0 %v8489_v49  ;;  %v8159_v38 = vsel %vm205_vm0, %v8156_v60, %v8158_v59  ;;  %v8741_v60 = vsel %vm1051_vm2, %v8738_v6, %v8740_v0 }
 0x65a   :  { %15158 = vmatprep.subr.mxu0 %v21975_v20  ;;  %15248 = vmatpush3.msra.mxu1 %v8718_v7  ;;  %v20770_v26 = vmax.f32 %v8051_v44, 0.0  ;;  %v8161_v15 = vsel %vm205_vm0, %v8158_v59, %v8160_v28  ;;  %v8163_v54 = vsel %vm205_vm0, %v8160_v28, %v8162_v52  ;;  %v8743_v59 = vsel %vm1051_vm2, %v8740_v0, %v8742_v42  ;;  %v8951_v0 = vld [vmem:[#allocation7 + $0x230] sm:$0xff] }
 0x65b   :  { %15024 = vmatmul.mubr.f32.gmra.mxu0 %v8153_v36  ;;  %15249 = vmatprep.subr.mxu1 %v21975_v20  ;;  %v9188_v36 = vld [vmem:[#allocation7 + $0x2e8] sm:$0xff]  ;;  %v8744_v44 = vrot.slane %v20584_v41, 3 }
 0x65c   :  { %15116 = vmatmul.mubr.f32.gmra.mxu1 %v20672_v4  ;;  %15026 = vmatprep.mubr.msk.f32.mxu0 %vm16288_vm7, %v21975_v20  ;;  %v8164_v49 = vrot.slane %v20770_v26, 1 }
 0x65d   :  { %15118 = vmatprep.mubr.msk.f32.mxu1 %vm16288_vm7, %v21975_v20  ;;  %15159 = vmatpush3.msra.mxu0 %v8488_v17  ;;  %v8959_v17 = vld [vmem:[#allocation7 + $0x270] sm:$0xff] }
 0x65e   :  { %15160 = vmatprep.subr.mxu0 %v21975_v20  ;;  %15250 = vmatpush3.msra.mxu1 %v8717_v8  ;;  %v8165_v7 = vsel %vm205_vm0, %v8162_v52, %v8164_v49  ;;  %v9187_v8 = vld [vmem:[#allocation7 + $0x2e0] sm:$0xff]  ;;  %v8746_v52 = vrot.slane %v20617_v35, 3 }
 0x65f   :  { %15027 = vmatmul.mubr.f32.gmra.mxu0 %v8155_v63  ;;  %15251 = vmatprep.subr.mxu1 %v21975_v20  ;;  %v8957_v63 = vld [vmem:[#allocation7 + $0x260] sm:$0xff] }
 0x660   :  { %15119 = vmatmul.mubr.f32.gmra.mxu1 %v20696_v16  ;;  %15029 = vmatprep.mubr.msk.f32.mxu0 %vm16288_vm7, %v21975_v20 }
 0x661   :  { %15121 = vmatprep.mubr.msk.f32.mxu1 %vm16288_vm7, %v21975_v20  ;;  %15161 = vmatpush3.msra.mxu0 %v8487_v56  ;;  %v8509_v56 = vrot.slane %v20531_v23, 2 }
 0x662   :  { %15162 = vmatprep.subr.mxu0 %v21975_v20  ;;  %15252 = vmatpush3.msra.mxu1 %v8716_v31  ;;  %v9185_v31 = vld [vmem:[#allocation7 + $0x2d0] sm:$0xff] }
 0x663   :  { %15030 = vmatmul.mubr.f32.gmra.mxu0 %v8157_v58  ;;  %15253 = vmatprep.subr.mxu1 %v21975_v20  ;;  %v8510_v58 = vsel %vm716_vm1, %v8507_v40, %v8509_v56 }
 0x664   :  { %15122 = vmatmul.mubr.f32.gmra.mxu1 %v20708_v43  ;;  %15032 = vmatprep.mubr.msk.f32.mxu0 %vm16288_vm7, %v21975_v20 }
 0x665   :  { %15124 = vmatprep.mubr.msk.f32.mxu1 %vm16288_vm7, %v21975_v20  ;;  %15163 = vmatpush3.msra.mxu0 %v8486_v22  ;;  %v8511_v22 = vrot.slane %v20542_v45, 2 }
 0x666   :  { %15164 = vmatprep.subr.mxu0 %v21975_v20  ;;  %15254 = vmatpush3.msra.mxu1 %v8715_v37  ;;  %v8956_v37 = vld [vmem:[#allocation7 + $0x258] sm:$0xff] }
 0x667   :  { %15033 = vmatmul.mubr.f32.gmra.mxu0 %v8159_v38  ;;  %15255 = vmatprep.subr.mxu1 %v21975_v20  ;;  %v9184_v38 = vld [vmem:[#allocation7 + $0x2c8] sm:$0xff]  ;;  %v8512_v28 = vsel %vm716_vm1, %v8509_v56, %v8511_v22 }
 0x668   :  { %15125 = vmatmul.mubr.f32.gmra.mxu1 %v20738_v48  ;;  %15035 = vmatprep.mubr.msk.f32.mxu0 %vm16288_vm7, %v21975_v20 }
 0x669   :  { %15127 = vmatprep.mubr.msk.f32.mxu1 %vm16288_vm7, %v21975_v20  ;;  %15165 = vmatpush3.msra.mxu0 %v8485_v11  ;;  %v8955_v11 = vld [vmem:[#allocation7 + $0x250] sm:$0xff] }
 0x66a   :  { %15166 = vmatprep.subr.mxu0 %v21975_v20  ;;  %15256 = vmatpush3.msra.mxu1 %v8714_v47  ;;  %v8745_v47 = vsel %vm1051_vm2, %v8742_v42, %v8744_v44  ;;  %v8950_v42 = vld [vmem:[#allocation7 + $0x228] sm:$0xff] }
 0x66b   :  { %15036 = vmatmul.mubr.f32.gmra.mxu0 %v8161_v15  ;;  %15403 = vmatprep.subr.mxu1 %v21975_v20  ;;  %v8513_v15 = vrot.slane %v20571_v57, 2 }
 0x66c   :  { %15128 = vmatmul.mubr.f32.gmra.mxu1 %v20745_v9  ;;  %15038 = vmatprep.mubr.msk.f32.mxu0 %vm16288_vm7, %v21975_v20 }
 0x66d   :  { %15130 = vmatprep.mubr.msk.f32.mxu1 %vm16288_vm7, %v21975_v20  ;;  %15167 = vmatpush3.msra.mxu0 %v8484_v1  ;;  %v9183_v1 = vld [vmem:[#allocation7 + $0x2c0] sm:$0xff] }
 0x66e   :  { %15314 = vmatprep.subr.mxu0 %v21975_v20 }
 0x66f   :  { %15039 = vmatmul.mubr.f32.gmra.mxu0 %v8163_v54  ;;  %v8514_v54 = vsel %vm716_vm1, %v8511_v22, %v8513_v15  ;;  %v8756_v22 = vrot.slane %v20708_v43, 3 }
 0x670   :  { %15131 = vmatmul.mubr.f32.gmra.mxu1 %v20763_v19  ;;  %15041 = vmatprep.mubr.msk.f32.mxu0 %vm16288_vm7, %v21975_v20 }
 0x671   :  { %15133 = vmatprep.mubr.msk.f32.mxu1 %vm16288_vm7, %v21975_v20 }
 0x673   :  { %15042 = vmatmul.mubr.f32.gmra.mxu0 %v8165_v7  ;;  %v8954_v7 = vld [vmem:[#allocation7 + $0x248] sm:$0xff] }
 0x674   :  { %15134 = vmatmul.mubr.f32.gmra.mxu1 %v20770_v26  ;;  %15044 = vmatprep.mubr.msk.f32.mxu0 %vm16288_vm7, %v21975_v20 }
 0x675   :  { %15257 = vmatprep.mubr.msk.f32.mxu1 %vm16288_vm7, %v21975_v20 }
 0x677   :  { %15045 = vmatmul.mubr.f32.gmra.mxu0 %v8164_v49  ;;  %v8515_v49 = vrot.slane %v20584_v41, 2 }
 0x678   :  { %15258 = vmatmul.mubr.f32.vlgmr.msra.gmra.mxu1 %v20501_v50  ;;  %15168 = vmatprep.mubr.msk.f32.mxu0 %vm16288_vm7, %v21975_v20  ;;  %v8736_v50 = vrot.slane %v20495_v21, 3 }
 0x679   :  { %15260 = vmatprep.mubr.msk.f32.mxu1 %vm16288_vm7, %v21975_v20  ;;  %15404 = vmatpush3.msra.mxu1 %v9190_v12  ;;  %v8747_v12 = vsel %vm1051_vm2, %v8744_v44, %v8746_v52  ;;  %v8949_v44 = vld [vmem:[#allocation7 + $0x220] sm:$0xff] }
 0x67a   :  { %15405 = vmatprep.subr.mxu1 %v21975_v20  ;;  %v8739_v10 = vsel %vm1051_vm2, %v8736_v50, %v8738_v6  ;;  %v8952_v6 = vld [vmem:[#allocation7 + $0x238] sm:$0xff] }
 0x67b   :  { %15169 = vmatmul.mubr.f32.vlgmr.msra.gmra.mxu0 %v20474_v18  ;;  %15406 = vmatpush3.msra.mxu1 %v9189_v55  ;;  %v8737_v18 = vsel %vm1051_vm2, %v8734_v24, %v8736_v50  ;;  %v8748_v55 = vrot.slane %v20630_v61, 3  ;;  %v9182_v24 = vld [vmem:[#allocation7 + $0x2b8] sm:$0xff] }
 0x67c   :  { %15261 = vmatmul.mubr.f32.gmra.mxu1 %v8735_v34  ;;  %15315 = vmatpush3.msra.mxu0 %v8960_v30  ;;  %v8516_v30 = vsel %vm716_vm1, %v8513_v15, %v8515_v49  ;;  %v8953_v34 = vld [vmem:[#allocation7 + $0x240] sm:$0xff] }
 0x67d   :  { %15171 = vmatprep.mubr.msk.f32.mxu0 %vm16288_vm7, %v21975_v20  ;;  %15263 = vmatprep.mubr.msk.f32.mxu1 %vm16288_vm7, %v21975_v20  ;;  %v8749_v50 = vsel %vm1051_vm2, %v8746_v52, %v8748_v55  ;;  %v8948_v52 = vld [vmem:[#allocation7 + $0x218] sm:$0xff] }
 0x67e   :  { %15316 = vmatprep.subr.mxu0 %v21975_v20  ;;  %15407 = vmatprep.subr.mxu1 %v21975_v20 }
 0x67f   :  { %15172 = vmatmul.mubr.f32.gmra.mxu0 %v20519_v3  ;;  %15408 = vmatpush3.msra.mxu1 %v9188_v36  ;;  %v8506_v3 = vsel %vm716_vm1, %v8503_v32, %v8505_v51  ;;  %v8508_v32 = vsel %vm716_vm1, %v8505_v51, %v8507_v40  ;;  %v8517_v36 = vrot.slane %v20617_v35, 2  ;;  %v9180_v40 = vld [vmem:[#allocation7 + $0x2a8] sm:$0xff] }
 0x680   :  { %15264 = vmatmul.mubr.f32.gmra.mxu1 %v8737_v18  ;;  %15317 = vmatpush3.msra.mxu0 %v8959_v17  ;;  %v9181_v17 = vld [vmem:[#allocation7 + $0x2b0] sm:$0xff]  ;;  %v8750_v18 = vrot.slane %v20663_v25, 3 }
 0x681   :  { %15174 = vmatprep.mubr.msk.f32.mxu0 %vm16288_vm7, %v21975_v20  ;;  %15266 = vmatprep.mubr.msk.f32.mxu1 %vm16288_vm7, %v21975_v20  ;;  %v8518_v51 = vsel %vm716_vm1, %v8515_v49, %v8517_v36  ;;  %v8760_v49 = vrot.slane %v20745_v9, 3 }
 0x682   :  { %15318 = vmatprep.subr.mxu0 %v21975_v20  ;;  %15409 = vmatprep.subr.mxu1 %v21975_v20 }
 0x683   :  { %15175 = vmatmul.mubr.f32.gmra.mxu0 %v8506_v3  ;;  %15410 = vmatpush3.msra.mxu1 %v9187_v8  ;;  %v8519_v8 = vrot.slane %v20630_v61, 2  ;;  %v8751_v3 = vsel %vm1051_vm2, %v8748_v55, %v8750_v18  ;;  %v8947_v55 = vld [vmem:[#allocation7 + $0x210] sm:$0xff] }
 0x684   :  { %15267 = vmatmul.mubr.f32.gmra.mxu1 %v8739_v10  ;;  %15177 = vmatprep.mubr.msk.f32.mxu0 %vm16288_vm7, %v21975_v20 }
 0x685   :  { %15319 = vmatpush3.msra.mxu0 %v8958_v5  ;;  %15269 = vmatprep.mubr.msk.f32.mxu1 %vm16288_vm7, %v21975_v20  ;;  %v8752_v5 = vrot.slane %v20672_v4, 3  ;;  %v8520_v10 = vsel %vm716_vm1, %v8517_v36, %v8519_v8 }
 0x686   :  { %15320 = vmatprep.subr.mxu0 %v21975_v20  ;;  %15411 = vmatprep.subr.mxu1 %v21975_v20 }
 0x687   :  { %15178 = vmatmul.mubr.f32.gmra.mxu0 %v8508_v32  ;;  %15412 = vmatpush3.msra.mxu1 %v9186_v2  ;;  %v8753_v2 = vsel %vm1051_vm2, %v8750_v18, %v8752_v5  ;;  %v8521_v32 = vrot.slane %v20663_v25, 2  ;;  %v8946_v18 = vld [vmem:[#allocation7 + $0x208] sm:$0xff] }
 0x688   :  { %15270 = vmatmul.mubr.f32.gmra.mxu1 %v8741_v60  ;;  %15180 = vmatprep.mubr.msk.f32.mxu0 %vm16288_vm7, %v21975_v20  ;;  %v8754_v60 = vrot.slane %v20696_v16, 3 }
 0x689   :  { %15272 = vmatprep.mubr.msk.f32.mxu1 %vm16288_vm7, %v21975_v20  ;;  %15321 = vmatpush3.msra.mxu0 %v8957_v63  ;;  %v9179_v63 = vld [vmem:[#allocation7 + $0x2a0] sm:$0xff]  ;;  %v8522_v56 = vsel %vm716_vm1, %v8519_v8, %v8521_v32  ;;  %v8764_v8 = vrot.slane %v20770_v26, 3 }
 0x68a   :  { %15322 = vmatprep.subr.mxu0 %v21975_v20  ;;  %15413 = vmatprep.subr.mxu1 %v21975_v20 }
 0x68b   :  { %15181 = vmatmul.mubr.f32.gmra.mxu0 %v8510_v58  ;;  %15414 = vmatpush3.msra.mxu1 %v9185_v31  ;;  %v8523_v31 = vrot.slane %v20672_v4, 2  ;;  %v8755_v58 = vsel %vm1051_vm2, %v8752_v5, %v8754_v60  ;;  %v8945_v5 = vld [vmem:[#allocation7 + $0x200] sm:$0xff] }
 0x68c   :  { %15273 = vmatmul.mubr.f32.gmra.mxu1 %v8743_v59  ;;  %15183 = vmatprep.mubr.msk.f32.mxu0 %vm16288_vm7, %v21975_v20 }
 0x68d   :  { %15275 = vmatprep.mubr.msk.f32.mxu1 %vm16288_vm7, %v21975_v20  ;;  %15323 = vmatpush3.msra.mxu0 %v8956_v37  ;;  %v9178_v37 = vld [vmem:[#allocation7 + $0x298] sm:$0xff]  ;;  %v8524_v59 = vsel %vm716_vm1, %v8521_v32, %v8523_v31 }
 0x68e   :  { %15324 = vmatprep.subr.mxu0 %v21975_v20  ;;  %15415 = vmatprep.subr.mxu1 %v21975_v20 }
 0x68f   :  { %15184 = vmatmul.mubr.f32.gmra.mxu0 %v8512_v28  ;;  %15416 = vmatpush3.msra.mxu1 %v9184_v38  ;;  %v8757_v38 = vsel %vm1051_vm2, %v8754_v60, %v8756_v22  ;;  %v8525_v28 = vrot.slane %v20696_v16, 2  ;;  %v9651_v60 = vld [vmem:[#allocation7 + $0x3f8] sm:$0xff] }
 0x690   :  { %15276 = vmatmul.mubr.f32.gmra.mxu1 %v8745_v47  ;;  %15186 = vmatprep.mubr.msk.f32.mxu0 %vm16288_vm7, %v21975_v20  ;;  %v8758_v47 = vrot.slane %v20738_v48, 3 }
 0x691   :  { %15278 = vmatprep.mubr.msk.f32.mxu1 %vm16288_vm7, %v21975_v20  ;;  %15325 = vmatpush3.msra.mxu0 %v8955_v11  ;;  %v9177_v11 = vld [vmem:[#allocation7 + $0x290] sm:$0xff]  ;;  %v8526_v15 = vsel %vm716_vm1, %v8523_v31, %v8525_v28  ;;  %v9194_v31 = vrot.slane %v20470_v46, 5 }
 0x692   :  { %15326 = vmatprep.subr.mxu0 %v21975_v20  ;;  %15417 = vmatprep.subr.mxu1 %v21975_v20 }
 0x693   :  { %15187 = vmatmul.mubr.f32.gmra.mxu0 %v8514_v54  ;;  %15418 = vmatpush3.msra.mxu1 %v9183_v1  ;;  %v8527_v1 = vrot.slane %v20708_v43, 2  ;;  %v8759_v54 = vsel %vm1051_vm2, %v8756_v22, %v8758_v47  ;;  %v8964_v22 = vrot.slane %v20470_v46, 4 }
 0x694   :  { %15279 = vmatmul.mubr.f32.gmra.mxu1 %v8747_v12  ;;  %15189 = vmatprep.mubr.msk.f32.mxu0 %vm16288_vm7, %v21975_v20 }
 0x695   :  { %15281 = vmatprep.mubr.msk.f32.mxu1 %vm16288_vm7, %v21975_v20  ;;  %15327 = vmatpush3.msra.mxu0 %v8954_v7  ;;  %v9176_v7 = vld [vmem:[#allocation7 + $0x288] sm:$0xff]  ;;  %v8528_v12 = vsel %vm716_vm1, %v8525_v28, %v8527_v1 }
 0x696   :  { %15328 = vmatprep.subr.mxu0 %v21975_v20  ;;  %15419 = vmatprep.subr.mxu1 %v21975_v20 }
 0x697   :  { %15190 = vmatmul.mubr.f32.gmra.mxu0 %v8516_v30  ;;  %15420 = vmatpush3.msra.mxu1 %v9182_v24  ;;  %v8761_v24 = vsel %vm1051_vm2, %v8758_v47, %v8760_v49  ;;  %v8529_v30 = vrot.slane %v20738_v48, 2 }
 0x698   :  { %15282 = vmatmul.mubr.f32.gmra.mxu1 %v8749_v50  ;;  %15192 = vmatprep.mubr.msk.f32.mxu0 %vm16288_vm7, %v21975_v20  ;;  %v8762_v50 = vrot.slane %v20763_v19, 3 }
 0x699   :  { %15284 = vmatprep.mubr.msk.f32.mxu1 %vm16288_vm7, %v21975_v20  ;;  %15329 = vmatpush3.msra.mxu0 %v8953_v34  ;;  %v9175_v34 = vld [vmem:[#allocation7 + $0x280] sm:$0xff]  ;;  %v8530_v36 = vsel %vm716_vm1, %v8527_v1, %v8529_v30  ;;  %v8968_v1 = vrot.slane %v20531_v23, 4 }
 0x69a   :  { %15330 = vmatprep.subr.mxu0 %v21975_v20  ;;  %15421 = vmatprep.subr.mxu1 %v21975_v20 }
 0x69b   :  { %15193 = vmatmul.mubr.f32.gmra.mxu0 %v8518_v51  ;;  %15422 = vmatpush3.msra.mxu1 %v9181_v17  ;;  %v8531_v17 = vrot.slane %v20745_v9, 2  ;;  %v8763_v51 = vsel %vm1051_vm2, %v8760_v49, %v8762_v50  ;;  %v8970_v49 = vrot.slane %v20542_v45, 4 }
 0x69c   :  { %15285 = vmatmul.mubr.f32.gmra.mxu1 %v8751_v3  ;;  %15195 = vmatprep.mubr.msk.f32.mxu0 %vm16288_vm7, %v21975_v20 }
 0x69d   :  { %15287 = vmatprep.mubr.msk.f32.mxu1 %vm16288_vm7, %v21975_v20  ;;  %15331 = vmatpush3.msra.mxu0 %v8952_v6  ;;  %v20952_v6 = vmax.f32 %v20633_v27, 0.0  ;;  %v8532_v3 = vsel %vm716_vm1, %v8529_v30, %v8531_v17  ;;  %v8533_v27 = vrot.slane %v20763_v19, 2  ;;  %v8971_v30 = vsel %vm1385_vm3, %v8968_v1, %v8970_v49 }
 0x69e   :  { %15332 = vmatprep.subr.mxu0 %v21975_v20  ;;  %15423 = vmatprep.subr.mxu1 %v21975_v20 }
 0x69f   :  { %15196 = vmatmul.mubr.f32.gmra.mxu0 %v8520_v10  ;;  %15424 = vmatpush3.msra.mxu1 %v9180_v40  ;;  %v8765_v40 = vsel %vm1051_vm2, %v8762_v50, %v8764_v8  ;;  %v8766_v10 = vrot.slane %v20952_v6, 3 }
 0x6a0   :  { %15288 = vmatmul.mubr.f32.gmra.mxu1 %v8753_v2  ;;  %15198 = vmatprep.mubr.msk.f32.mxu0 %vm16288_vm7, %v21975_v20  ;;  %v8535_v2 = vrot.slane %v20770_v26, 2 }
 0x6a1   :  { %15290 = vmatprep.mubr.msk.f32.mxu1 %vm16288_vm7, %v21975_v20  ;;  %15333 = vmatpush3.msra.mxu0 %v8951_v0  ;;  %v8534_v0 = vsel %vm716_vm1, %v8531_v17, %v8533_v27  ;;  %v8767_v32 = vsel %vm1051_vm2, %v8764_v8, %v8766_v10  ;;  %v8972_v17 = vrot.slane %v20571_v57, 4  ;;  %v8974_v8 = vrot.slane %v20584_v41, 4 }
 0x6a2   :  { %15334 = vmatprep.subr.mxu0 %v21975_v20  ;;  %15425 = vmatprep.subr.mxu1 %v21975_v20 }
 0x6a3   :  { %15199 = vmatmul.mubr.f32.gmra.mxu0 %v8522_v56  ;;  %15426 = vmatpush3.msra.mxu1 %v9179_v63  ;;  %v8536_v63 = vsel %vm716_vm1, %v8533_v27, %v8535_v2  ;;  %v9650_v56 = vld [vmem:[#allocation7 + $0x3f0] sm:$0xff]  ;;  %v9206_v27 = vrot.slane %v20617_v35, 5 }
 0x6a4   :  { %15291 = vmatmul.mubr.f32.gmra.mxu1 %v8755_v58  ;;  %15201 = vmatprep.mubr.msk.f32.mxu0 %vm16288_vm7, %v21975_v20  ;;  %v9195_v58 = vsel %vm1719_vm4, %v9192_v33, %v9194_v31  ;;  %v8966_v33 = vrot.slane %v20495_v21, 4 }
 0x6a5   :  { %15293 = vmatprep.mubr.msk.f32.mxu1 %vm16288_vm7, %v21975_v20  ;;  %15335 = vmatpush3.msra.mxu0 %v8950_v42  ;;  %v9420_v42 = vld [vmem:[#allocation7 + $0x378] sm:$0xff] }
 0x6a6   :  { %15336 = vmatprep.subr.mxu0 %v21975_v20  ;;  %15427 = vmatprep.subr.mxu1 %v21975_v20  ;;  %v8967_v28 = vsel %vm1385_vm3, %v8964_v22, %v8966_v33 }
 0x6a7   :  { %15202 = vmatmul.mubr.f32.gmra.mxu0 %v8524_v59  ;;  %15428 = vmatpush3.msra.mxu1 %v9178_v37  ;;  %v9649_v37 = vld [vmem:[#allocation7 + $0x3e8] sm:$0xff]  ;;  %v9419_v59 = vld [vmem:[#allocation7 + $0x370] sm:$0xff] }
 0x6a8   :  { %15294 = vmatmul.mubr.f32.gmra.mxu1 %v8757_v38  ;;  %15204 = vmatprep.mubr.msk.f32.mxu0 %vm16288_vm7, %v21975_v20  ;;  %v9648_v38 = vld [vmem:[#allocation7 + $0x3e0] sm:$0xff] }
 0x6a9   :  { %15296 = vmatprep.mubr.msk.f32.mxu1 %vm16288_vm7, %v21975_v20  ;;  %15337 = vmatpush3.msra.mxu0 %v8949_v44 }
 0x6aa   :  { %15338 = vmatprep.subr.mxu0 %v21975_v20  ;;  %15429 = vmatprep.subr.mxu1 %v21975_v20 }
 0x6ab   :  { %15205 = vmatmul.mubr.f32.gmra.mxu0 %v8526_v15  ;;  %15430 = vmatpush3.msra.mxu1 %v9177_v11  ;;  %v9418_v11 = vld [vmem:[#allocation7 + $0x368] sm:$0xff]  ;;  %v9200_v15 = vrot.slane %v20542_v45, 5 }
 0x6ac   :  { %15297 = vmatmul.mubr.f32.gmra.mxu1 %v8759_v54  ;;  %15207 = vmatprep.mubr.msk.f32.mxu0 %vm16288_vm7, %v21975_v20  ;;  %v8969_v54 = vsel %vm1385_vm3, %v8966_v33, %v8968_v1  ;;  %v9212_v33 = vrot.slane %v20672_v4, 5 }
 0x6ad   :  { %15299 = vmatprep.mubr.msk.f32.mxu1 %vm16288_vm7, %v21975_v20  ;;  %15339 = vmatpush3.msra.mxu0 %v8948_v52  ;;  %v9647_v52 = vld [vmem:[#allocation7 + $0x3d8] sm:$0xff] }
 0x6ae   :  { %15340 = vmatprep.subr.mxu0 %v21975_v20  ;;  %15431 = vmatprep.subr.mxu1 %v21975_v20 }
 0x6af   :  { %15208 = vmatmul.mubr.f32.gmra.mxu0 %v8528_v12  ;;  %15432 = vmatpush3.msra.mxu1 %v9176_v7  ;;  %v9417_v7 = vld [vmem:[#allocation7 + $0x360] sm:$0xff] }
 0x6b0   :  { %15300 = vmatmul.mubr.f32.gmra.mxu1 %v8761_v24  ;;  %15210 = vmatprep.mubr.msk.f32.mxu0 %vm16288_vm7, %v21975_v20  ;;  %v9202_v24 = vrot.slane %v20571_v57, 5 }
 0x6b1   :  { %15302 = vmatprep.mubr.msk.f32.mxu1 %vm16288_vm7, %v21975_v20  ;;  %15341 = vmatpush3.msra.mxu0 %v8947_v55  ;;  %v9646_v55 = vld [vmem:[#allocation7 + $0x3d0] sm:$0xff] }
 0x6b2   :  { %15342 = vmatprep.subr.mxu0 %v21975_v20  ;;  %15433 = vmatprep.subr.mxu1 %v21975_v20  ;;  %v9203_v50 = vsel %vm1719_vm4, %v9200_v15, %v9202_v24 }
 0x6b3   :  { %15211 = vmatmul.mubr.f32.gmra.mxu0 %v8530_v36  ;;  %15434 = vmatpush3.msra.mxu1 %v9175_v34  ;;  %v9416_v34 = vld [vmem:[#allocation7 + $0x358] sm:$0xff]  ;;  %v9204_v36 = vrot.slane %v20584_v41, 5 }
 0x6b4   :  { %15303 = vmatmul.mubr.f32.gmra.mxu1 %v8763_v51  ;;  %15213 = vmatprep.mubr.msk.f32.mxu0 %vm16288_vm7, %v21975_v20  ;;  %v8973_v51 = vsel %vm1385_vm3, %v8970_v49, %v8972_v17  ;;  %v9214_v49 = vrot.slane %v20696_v16, 5 }
 0x6b5   :  { %15305 = vmatprep.mubr.msk.f32.mxu1 %vm16288_vm7, %v21975_v20  ;;  %15343 = vmatpush3.msra.mxu0 %v8946_v18  ;;  %v9645_v18 = vld [vmem:[#allocation7 + $0x3c8] sm:$0xff] }
 0x6b6   :  { %15344 = vmatprep.subr.mxu0 %v21975_v20  ;;  %15581 = vmatprep.subr.mxu1 %v21975_v20 }
 0x6b7   :  { %15214 = vmatmul.mubr.f32.gmra.mxu0 %v8532_v3  ;;  %v9415_v3 = vld [vmem:[#allocation7 + $0x350] sm:$0xff] }
 0x6b8   :  { %15306 = vmatmul.mubr.f32.gmra.mxu1 %v8765_v40  ;;  %15216 = vmatprep.mubr.msk.f32.mxu0 %vm16288_vm7, %v21975_v20  ;;  %v9644_v40 = vld [vmem:[#allocation7 + $0x3c0] sm:$0xff] }
 0x6b9   :  { %15308 = vmatprep.mubr.msk.f32.mxu1 %vm16288_vm7, %v21975_v20  ;;  %15345 = vmatpush3.msra.mxu0 %v8945_v5  ;;  %v9205_v5 = vsel %vm1719_vm4, %v9202_v24, %v9204_v36 }
 0x6ba   :  { %15492 = vmatprep.subr.mxu0 %v21975_v20 }
 0x6bb   :  { %15217 = vmatmul.mubr.f32.gmra.mxu0 %v8534_v0  ;;  %v9414_v0 = vld [vmem:[#allocation7 + $0x348] sm:$0xff] }
 0x6bc   :  { %15309 = vmatmul.mubr.f32.gmra.mxu1 %v8767_v32  ;;  %15219 = vmatprep.mubr.msk.f32.mxu0 %vm16288_vm7, %v21975_v20  ;;  %v9208_v32 = vrot.slane %v20630_v61, 5 }
 0x6bd   :  { %15311 = vmatprep.mubr.msk.f32.mxu1 %vm16288_vm7, %v21975_v20 }
 0x6bf   :  { %15220 = vmatmul.mubr.f32.gmra.mxu0 %v8536_v63  ;;  %v8976_v63 = vrot.slane %v20617_v35, 4 }
 0x6c0   :  { %15312 = vmatmul.mubr.f32.gmra.mxu1 %v8766_v10  ;;  %15222 = vmatprep.mubr.msk.f32.mxu0 %vm16288_vm7, %v21975_v20  ;;  %v8975_v10 = vsel %vm1385_vm3, %v8972_v17, %v8974_v8  ;;  %v8984_v17 = vrot.slane %v20696_v16, 4 }
 0x6c1   :  { %15435 = vmatprep.mubr.msk.f32.mxu1 %vm16288_vm7, %v21975_v20 }
 0x6c3   :  { %15223 = vmatmul.mubr.f32.gmra.mxu0 %v8535_v2  ;;  %v9207_v2 = vsel %vm1719_vm4, %v9204_v36, %v9206_v27 }
 0x6c4   :  { %15436 = vmatmul.mubr.f32.vlgmr.msra.gmra.mxu1 %v20717_v13  ;;  %15346 = vmatprep.mubr.msk.f32.mxu0 %vm16288_vm7, %v21975_v20  ;;  %v9196_v13 = vrot.slane %v20495_v21, 5 }
 0x6c5   :  { %15438 = vmatprep.mubr.msk.f32.mxu1 %vm16288_vm7, %v21975_v20  ;;  %15582 = vmatpush3.msra.mxu1 %v9651_v60  ;;  %v9643_v60 = vld [vmem:[#allocation7 + $0x3b8] sm:$0xff] }
 0x6c6   :  { %15583 = vmatprep.subr.mxu1 %v21975_v20  ;;  %v9197_v44 = vsel %vm1719_vm4, %v9194_v31, %v9196_v13  ;;  %v8978_v31 = vrot.slane %v20630_v61, 4 }
 0x6c7   :  { %15347 = vmatmul.mubr.f32.vlgmr.msra.gmra.mxu0 %v20722_v14  ;;  %15584 = vmatpush3.msra.mxu1 %v9650_v56  ;;  %v8965_v14 = vsel %vm1385_vm3, %v8962_v39, %v8964_v22  ;;  %v9198_v39 = vrot.slane %v20531_v23, 5  ;;  %v8977_v56 = vsel %vm1385_vm3, %v8974_v8, %v8976_v63  ;;  %v9210_v22 = vrot.slane %v20663_v25, 5 }
 0x6c8   :  { %15439 = vmatmul.mubr.f32.gmra.mxu1 %v9195_v58  ;;  %15493 = vmatpush3.msra.mxu0 %v9420_v42  ;;  %v9413_v42 = vld [vmem:[#allocation7 + $0x340] sm:$0xff]  ;;  %v9209_v58 = vsel %vm1719_vm4, %v9206_v27, %v9208_v32 }
 0x6c9   :  { %15349 = vmatprep.mubr.msk.f32.mxu0 %vm16288_vm7, %v21975_v20  ;;  %15441 = vmatprep.mubr.msk.f32.mxu1 %vm16288_vm7, %v21975_v20  ;;  %v9199_v47 = vsel %vm1719_vm4, %v9196_v13, %v9198_v39  ;;  %v9201_v12 = vsel %vm1719_vm4, %v9198_v39, %v9200_v15  ;;  %v9642_v13 = vld [vmem:[#allocation7 + $0x3b0] sm:$0xff]  ;;  %v21078_v39 = vpop.f32.mrf.mxu1  ;;  %v9213_v15 = vsel %vm1719_vm4, %v9210_v22, %v9212_v33 }
 0x6ca   :  { %15494 = vmatprep.subr.mxu0 %v21975_v20  ;;  %15585 = vmatprep.subr.mxu1 %v21975_v20 }
 0x6cb   :  { %15350 = vmatmul.mubr.f32.gmra.mxu0 %v8965_v14  ;;  %15586 = vmatpush3.msra.mxu1 %v9649_v37  ;;  %v8979_v37 = vsel %vm1385_vm3, %v8976_v63, %v8978_v31  ;;  %v9211_v14 = vsel %vm1719_vm4, %v9208_v32, %v9210_v22  ;;  %v9638_v32 = vld [vmem:[#allocation7 + $0x390] sm:$0xff]  ;;  %v9220_v22 = vrot.slane %v20745_v9, 5 }
 0x6cc   :  { %15442 = vmatmul.mubr.f32.gmra.mxu1 %v9197_v44  ;;  %15495 = vmatpush3.msra.mxu0 %v9419_v59  ;;  %v9412_v59 = vld [vmem:[#allocation7 + $0x338] sm:$0xff]  ;;  %v8980_v44 = vrot.slane %v20663_v25, 4 }
 0x6cd   :  { %15352 = vmatprep.mubr.msk.f32.mxu0 %vm16288_vm7, %v21975_v20  ;;  %15444 = vmatprep.mubr.msk.f32.mxu1 %vm16288_vm7, %v21975_v20 }
 0x6ce   :  { %15496 = vmatprep.subr.mxu0 %v21975_v20  ;;  %15587 = vmatprep.subr.mxu1 %v21975_v20 }
 0x6cf   :  { %15353 = vmatmul.mubr.f32.gmra.mxu0 %v8967_v28  ;;  %15588 = vmatpush3.msra.mxu1 %v9648_v38  ;;  %v9641_v38 = vld [vmem:[#allocation7 + $0x3a8] sm:$0xff]  ;;  %v8981_v28 = vsel %vm1385_vm3, %v8978_v31, %v8980_v44 }
 0x6d0   :  { %15445 = vmatmul.mubr.f32.gmra.mxu1 %v9199_v47  ;;  %15355 = vmatprep.mubr.msk.f32.mxu0 %vm16288_vm7, %v21975_v20  ;;  %v9411_v47 = vld [vmem:[#allocation7 + $0x330] sm:$0xff] }
 0x6d1   :  { %15497 = vmatpush3.msra.mxu0 %v9418_v11  ;;  %15447 = vmatprep.mubr.msk.f32.mxu1 %vm16288_vm7, %v21975_v20  ;;  %v8982_v11 = vrot.slane %v20672_v4, 4 }
 0x6d2   :  { %15498 = vmatprep.subr.mxu0 %v21975_v20  ;;  %15589 = vmatprep.subr.mxu1 %v21975_v20 }
 0x6d3   :  { %15356 = vmatmul.mubr.f32.gmra.mxu0 %v8969_v54  ;;  %15590 = vmatpush3.msra.mxu1 %v9647_v52  ;;  %v9640_v52 = vld [vmem:[#allocation7 + $0x3a0] sm:$0xff]  ;;  %v21087_v54 = vpop.f32.mrf.mxu0 }
 0x6d4   :  { %15448 = vmatmul.mubr.f32.gmra.mxu1 %v9201_v12  ;;  %15358 = vmatprep.mubr.msk.f32.mxu0 %vm16288_vm7, %v21975_v20  ;;  %v8983_v12 = vsel %vm1385_vm3, %v8980_v44, %v8982_v11 }
 0x6d5   :  { %15450 = vmatprep.mubr.msk.f32.mxu1 %vm16288_vm7, %v21975_v20  ;;  %15499 = vmatpush3.msra.mxu0 %v9417_v7 }
 0x6d6   :  { %15500 = vmatprep.subr.mxu0 %v21975_v20  ;;  %15591 = vmatprep.subr.mxu1 %v21975_v20 }
 0x6d7   :  { %15359 = vmatmul.mubr.f32.gmra.mxu0 %v8971_v30  ;;  %15592 = vmatpush3.msra.mxu1 %v9646_v55  ;;  %v9410_v55 = vld [vmem:[#allocation7 + $0x328] sm:$0xff]  ;;  %v9215_v30 = vsel %vm1719_vm4, %v9212_v33, %v9214_v49 }
 0x6d8   :  { %15451 = vmatmul.mubr.f32.gmra.mxu1 %v9203_v50  ;;  %15361 = vmatprep.mubr.msk.f32.mxu0 %vm16288_vm7, %v21975_v20  ;;  %v9637_v33 = vld [vmem:[#allocation7 + $0x388] sm:$0xff] }
 0x6d9   :  { %15453 = vmatprep.mubr.msk.f32.mxu1 %vm16288_vm7, %v21975_v20  ;;  %15501 = vmatpush3.msra.mxu0 %v9416_v34  ;;  %v9216_v34 = vrot.slane %v20708_v43, 5 }
 0x6da   :  { %15502 = vmatprep.subr.mxu0 %v21975_v20  ;;  %15593 = vmatprep.subr.mxu1 %v21975_v20 }
 0x6db   :  { %15362 = vmatmul.mubr.f32.gmra.mxu0 %v8973_v51  ;;  %15594 = vmatpush3.msra.mxu1 %v9645_v18  ;;  %v9639_v18 = vld [vmem:[#allocation7 + $0x398] sm:$0xff] }
 0x6dc   :  { %15454 = vmatmul.mubr.f32.gmra.mxu1 %v9205_v5  ;;  %15364 = vmatprep.mubr.msk.f32.mxu0 %vm16288_vm7, %v21975_v20  ;;  %v8986_v5 = vrot.slane %v20708_v43, 4 }
 0x6dd   :  { %15456 = vmatprep.mubr.msk.f32.mxu1 %vm16288_vm7, %v21975_v20  ;;  %15503 = vmatpush3.msra.mxu0 %v9415_v3  ;;  %v8985_v3 = vsel %vm1385_vm3, %v8982_v11, %v8984_v17  ;;  %v8990_v11 = vrot.slane %v20745_v9, 4 }
 0x6de   :  { %15504 = vmatprep.subr.mxu0 %v21975_v20  ;;  %15595 = vmatprep.subr.mxu1 %v21975_v20  ;;  %v8987_v31 = vsel %vm1385_vm3, %v8984_v17, %v8986_v5 }
 0x6df   :  { %15365 = vmatmul.mubr.f32.gmra.mxu0 %v8975_v10  ;;  %15596 = vmatpush3.msra.mxu1 %v9644_v40  ;;  %v9409_v40 = vld [vmem:[#allocation7 + $0x320] sm:$0xff]  ;;  %v9217_v10 = vsel %vm1719_vm4, %v9214_v49, %v9216_v34 }
 0x6e0   :  { %15457 = vmatmul.mubr.f32.gmra.mxu1 %v9207_v2  ;;  %15367 = vmatprep.mubr.msk.f32.mxu0 %vm16288_vm7, %v21975_v20 }
 0x6e1   :  { %15459 = vmatprep.mubr.msk.f32.mxu1 %vm16288_vm7, %v21975_v20  ;;  %15505 = vmatpush3.msra.mxu0 %v9414_v0 }
 0x6e2   :  { %15506 = vmatprep.subr.mxu0 %v21975_v20  ;;  %15597 = vmatprep.subr.mxu1 %v21975_v20 }
 0x6e3   :  { %15368 = vmatmul.mubr.f32.gmra.mxu0 %v8977_v56  ;;  %15598 = vmatpush3.msra.mxu1 %v9643_v60  ;;  %v9218_v60 = vrot.slane %v20738_v48, 5 }
 0x6e4   :  { %15460 = vmatmul.mubr.f32.gmra.mxu1 %v9209_v58  ;;  %15370 = vmatprep.mubr.msk.f32.mxu0 %vm16288_vm7, %v21975_v20 }
 0x6e5   :  { %15462 = vmatprep.mubr.msk.f32.mxu1 %vm16288_vm7, %v21975_v20  ;;  %15507 = vmatpush3.msra.mxu0 %v9413_v42  ;;  %v9408_v42 = vld [vmem:[#allocation7 + $0x318] sm:$0xff] }
 0x6e6   :  { %15508 = vmatprep.subr.mxu0 %v21975_v20  ;;  %15599 = vmatprep.subr.mxu1 %v21975_v20 }
 0x6e7   :  { %15371 = vmatmul.mubr.f32.gmra.mxu0 %v8979_v37  ;;  %15600 = vmatpush3.msra.mxu1 %v9642_v13  ;;  %v9219_v13 = vsel %vm1719_vm4, %v9216_v34, %v9218_v60  ;;  %v9406_v34 = vld [vmem:[#allocation7 + $0x308] sm:$0xff] }
 0x6e8   :  { %15463 = vmatmul.mubr.f32.gmra.mxu1 %v9211_v14  ;;  %15373 = vmatprep.mubr.msk.f32.mxu0 %vm16288_vm7, %v21975_v20  ;;  %v8988_v14 = vrot.slane %v20738_v48, 4 }
 0x6e9   :  { %15465 = vmatprep.mubr.msk.f32.mxu1 %vm16288_vm7, %v21975_v20  ;;  %15509 = vmatpush3.msra.mxu0 %v9412_v59 }
 0x6ea   :  { %15510 = vmatprep.subr.mxu0 %v21975_v20  ;;  %15601 = vmatprep.subr.mxu1 %v21975_v20 }
 0x6eb   :  { %15374 = vmatmul.mubr.f32.gmra.mxu0 %v8981_v28  ;;  %15602 = vmatpush3.msra.mxu1 %v9641_v38  ;;  %v8989_v28 = vsel %vm1385_vm3, %v8986_v5, %v8988_v14 }
 0x6ec   :  { %v8400_v1 = vpop.f32.mrf.mxu1  ;;  %15466 = vmatmul.mubr.f32.gmra.mxu1 %v9213_v15  ;;  %15376 = vmatprep.mubr.msk.f32.mxu0 %vm16288_vm7, %v21975_v20 }
 0x6ed   :  { %15468 = vmatprep.mubr.msk.f32.mxu1 %vm16288_vm7, %v21975_v20  ;;  %15511 = vmatpush3.msra.mxu0 %v9411_v47  ;;  %v9407_v47 = vld [vmem:[#allocation7 + $0x310] sm:$0xff] }
 0x6ee   :  { %v15081_v7 = vpop.f32.mrf.mxu1  ;;  %15512 = vmatprep.subr.mxu0 %v21975_v20  ;;  %15603 = vmatprep.subr.mxu1 %v21975_v20 }
 0x6ef   :  { %v8251_v24 = vpop.f32.mrf.mxu0  ;;  %15377 = vmatmul.mubr.f32.gmra.mxu0 %v8983_v12  ;;  %15604 = vmatpush3.msra.mxu1 %v9640_v52  ;;  %v9636_v7 = vld [vmem:[#allocation7 + $0x380] sm:$0xff] }
 0x6f0   :  { %v21097_v50 = vadd.f32 %v8400_v1, %v8251_v24  ;;  %v8405_v36 = vpop.f32.mrf.mxu1  ;;  %15469 = vmatmul.mubr.f32.gmra.mxu1 %v9215_v30  ;;  %15379 = vmatprep.mubr.msk.f32.mxu0 %vm16288_vm7, %v21975_v20  ;;  %v9221_v1 = vsel %vm1719_vm4, %v9218_v60, %v9220_v22  ;;  %v8991_v30 = vsel %vm1385_vm3, %v8988_v14, %v8990_v11 }
 0x6f1   :  { %v14992_v51 = vpop.f32.mrf.mxu0  ;;  %15471 = vmatprep.mubr.msk.f32.mxu1 %vm16288_vm7, %v21975_v20  ;;  %15513 = vmatpush3.msra.mxu0 %v9410_v55  ;;  %v9222_v55 = vrot.slane %v20763_v19, 5 }
 0x6f2   :  { %v15084_v8 = vpop.f32.mrf.mxu1  ;;  %15514 = vmatprep.subr.mxu0 %v21975_v20  ;;  %15605 = vmatprep.subr.mxu1 %v21975_v20 }
 0x6f3   :  { %v8256_v27 = vpop.f32.mrf.mxu0  ;;  %15380 = vmatmul.mubr.f32.gmra.mxu0 %v8985_v3  ;;  %15606 = vmatpush3.msra.mxu1 %v9639_v18  ;;  %v9223_v17 = vsel %vm1719_vm4, %v9220_v22, %v9222_v55  ;;  %v9224_v18 = vrot.slane %v20770_v26, 5  ;;  %v8992_v8 = vrot.slane %v20763_v19, 4 }
 0x6f4   :  { %v21109_v0 = vadd.f32 %v8405_v36, %v8256_v27  ;;  %v8410_v2 = vpop.f32.mrf.mxu1  ;;  %15472 = vmatmul.mubr.f32.gmra.mxu1 %v9217_v10  ;;  %15382 = vmatprep.mubr.msk.f32.mxu0 %vm16288_vm7, %v21975_v20  ;;  %v8994_v27 = vrot.slane %v20770_v26, 4  ;;  %v9405_v10 = vld [vmem:[#allocation7 + $0x300] sm:$0xff] }
 0x6f5   :  { %v14995_v63 = vpop.f32.mrf.mxu0  ;;  %15474 = vmatprep.mubr.msk.f32.mxu1 %vm16288_vm7, %v21975_v20  ;;  %15515 = vmatpush3.msra.mxu0 %v9409_v40  ;;  %v8993_v40 = vsel %vm1385_vm3, %v8990_v11, %v8992_v8 }
 0x6f6   :  { %v15087_v56 = vpop.f32.mrf.mxu1  ;;  %15516 = vmatprep.subr.mxu0 %v21975_v20  ;;  %15607 = vmatprep.subr.mxu1 %v21975_v20 }
 0x6f7   :  { %v8261_v58 = vpop.f32.mrf.mxu0  ;;  %15383 = vmatmul.mubr.f32.gmra.mxu0 %v8987_v31  ;;  %15608 = vmatpush3.msra.mxu1 %v9638_v32  ;;  %v9225_v32 = vsel %vm1719_vm4, %v9222_v55, %v9224_v18  ;;  %v9226_v56 = vrot.slane %v20952_v6, 5  ;;  %v9656_v55 = vrot.slane %v20495_v21, 7 }
 0x6f8   :  { %v21121_v37 = vadd.f32 %v8410_v2, %v8261_v58  ;;  %v8415_v59 = vpop.f32.mrf.mxu1  ;;  %15475 = vmatmul.mubr.f32.gmra.mxu1 %v9219_v13  ;;  %15385 = vmatprep.mubr.msk.f32.mxu0 %vm16288_vm7, %v21975_v20 }
 0x6f9   :  { %v14998_v44 = vpop.f32.mrf.mxu0  ;;  %15477 = vmatprep.mubr.msk.f32.mxu1 %vm16288_vm7, %v21975_v20  ;;  %15517 = vmatpush3.msra.mxu0 %v9408_v42  ;;  %v8995_v42 = vsel %vm1385_vm3, %v8992_v8, %v8994_v27  ;;  %v9227_v13 = vsel %vm1719_vm4, %v9224_v18, %v9226_v56  ;;  %v9425_v18 = vrot.slane %v20495_v21, 6 }
 0x6fa   :  { %v15090_v38 = vpop.f32.mrf.mxu1  ;;  %15518 = vmatprep.subr.mxu0 %v21975_v20  ;;  %15609 = vmatprep.subr.mxu1 %v21975_v20 }
 0x6fb   :  { %v8266_v15 = vpop.f32.mrf.mxu0  ;;  %15386 = vmatmul.mubr.f32.gmra.mxu0 %v8989_v28  ;;  %15610 = vmatpush3.msra.mxu1 %v9637_v33  ;;  %v9653_v28 = vrot.slane %v20462_v62, 7 }
 0x6fc   :  { %v21133_v52 = vadd.f32 %v8415_v59, %v8266_v15  ;;  %v8420_v49 = vpop.f32.mrf.mxu1  ;;  %15478 = vmatmul.mubr.f32.gmra.mxu1 %v9221_v1  ;;  %15388 = vmatprep.mubr.msk.f32.mxu0 %vm16288_vm7, %v21975_v20  ;;  %v8996_v59 = vrot.slane %v20952_v6, 4  ;;  %v9654_v15 = vrot.slane %v20470_v46, 7 }
 0x6fd   :  { %v15001_v12 = vpop.f32.mrf.mxu0  ;;  %15480 = vmatprep.mubr.msk.f32.mxu1 %vm16288_vm7, %v21975_v20  ;;  %15519 = vmatpush3.msra.mxu0 %v9407_v47  ;;  %v9422_v49 = vrot.slane %v20462_v62, 6 }
 0x6fe   :  { %v15093_v24 = vpop.f32.mrf.mxu1  ;;  %15520 = vmatprep.subr.mxu0 %v21975_v20  ;;  %15611 = vmatprep.subr.mxu1 %v21975_v20  ;;  %v8997_v44 = vsel %vm1385_vm3, %v8994_v27, %v8996_v59  ;;  %v9655_v12 = vsel %vm2389_vm6, %v9653_v28, %v9654_v15  ;;  %v9657_v8 = vsel %vm2389_vm6, %v9654_v15, %v9656_v55  ;;  %v9883_v27 = vld [vmem:[#allocation7 + $0x470] sm:$0xff]  ;;  %v9662_v28 = vrot.slane %v20571_v57, 7  ;;  %v9881_v15 = vld [vmem:[#allocation7 + $0x460] sm:$0xff] }
 0x6ff   :  { %v8271_v36 = vpop.f32.mrf.mxu0  ;;  %15389 = vmatmul.mubr.f32.gmra.mxu0 %v8991_v30  ;;  %15612 = vmatpush3.msra.mxu1 %v9636_v7  ;;  %v9423_v30 = vrot.slane %v20470_v46, 6 }
 0x700   :  { %v8424_v51 = vpop.f32.mrf.mxu1  ;;  %15481 = vmatmul.mubr.f32.gmra.mxu1 %v9223_v17  ;;  %15391 = vmatprep.mubr.msk.f32.mxu0 %vm16288_vm7, %v21975_v20  ;;  %v9884_v36 = vld [vmem:[#allocation7 + $0x478] sm:$0xff] }
 0x701   :  { %v15004_v3 = vpop.f32.mrf.mxu0  ;;  %15483 = vmatprep.mubr.msk.f32.mxu1 %vm16288_vm7, %v21975_v20  ;;  %15521 = vmatpush3.msra.mxu0 %v9406_v34  ;;  %v9424_v62 = vsel %vm2054_vm5, %v9422_v49, %v9423_v30 }
 0x702   :  { %v15096_v5 = vpop.f32.mrf.mxu1  ;;  %15522 = vmatprep.subr.mxu0 %v21975_v20  ;;  %15759 = vmatprep.subr.mxu1 %v21975_v20 }
 0x703   :  { %v8275_v2 = vpop.f32.mrf.mxu0  ;;  %15392 = vmatmul.mubr.f32.gmra.mxu0 %v8993_v40  ;;  %v9658_v40 = vrot.slane %v20531_v23, 7 }
 0x704   :  { %v8428_v63 = vpop.f32.mrf.mxu1  ;;  %15484 = vmatmul.mubr.f32.gmra.mxu1 %v9225_v32  ;;  %15394 = vmatprep.mubr.msk.f32.mxu0 %vm16288_vm7, %v21975_v20  ;;  %v9426_v2 = vsel %vm2054_vm5, %v9423_v30, %v9425_v18 }
 0x705   :  { %v15007_v60 = vpop.f32.mrf.mxu0  ;;  %15486 = vmatprep.mubr.msk.f32.mxu1 %vm16288_vm7, %v21975_v20  ;;  %15523 = vmatpush3.msra.mxu0 %v9405_v10  ;;  %v9659_v63 = vsel %vm2389_vm6, %v9656_v55, %v9658_v40  ;;  %v9431_v55 = vrot.slane %v20571_v57, 6 }
 0x706   :  { %v15099_v31 = vpop.f32.mrf.mxu1  ;;  %15670 = vmatprep.subr.mxu0 %v21975_v20  ;;  %v9660_v60 = vrot.slane %v20542_v45, 7 }
 0x707   :  { %v8279_v58 = vpop.f32.mrf.mxu0  ;;  %15395 = vmatmul.mubr.f32.gmra.mxu0 %v8995_v42  ;;  %v9427_v31 = vrot.slane %v20531_v23, 6 }
 0x708   :  { %v8432_v22 = vpop.f32.mrf.mxu1  ;;  %15487 = vmatmul.mubr.f32.gmra.mxu1 %v9227_v13  ;;  %15397 = vmatprep.mubr.msk.f32.mxu0 %vm16288_vm7, %v21975_v20  ;;  %v9663_v49 = vsel %vm2389_vm6, %v9660_v60, %v9662_v28 }
 0x709   :  { %v15010_v14 = vpop.f32.mrf.mxu0  ;;  %15489 = vmatprep.mubr.msk.f32.mxu1 %vm16288_vm7, %v21975_v20  ;;  %v9428_v13 = vsel %vm2054_vm5, %v9425_v18, %v9427_v31  ;;  %v9882_v22 = vld [vmem:[#allocation7 + $0x468] sm:$0xff] }
 0x70a   :  { %v15102_v33 = vpop.f32.mrf.mxu1 }
 0x70b   :  { %v8283_v38 = vpop.f32.mrf.mxu0  ;;  %15398 = vmatmul.mubr.f32.gmra.mxu0 %v8997_v44  ;;  %v9661_v33 = vsel %vm2389_vm6, %v9658_v40, %v9660_v60  ;;  %v9435_v60 = vrot.slane %v20617_v35, 6 }
 0x70c   :  { %v8436_v11 = vpop.f32.mrf.mxu1  ;;  %15490 = vmatmul.mubr.f32.gmra.mxu1 %v9226_v56  ;;  %15400 = vmatprep.mubr.msk.f32.mxu0 %vm16288_vm7, %v21975_v20 }
 0x70d   :  { %v15013_v47 = vpop.f32.mrf.mxu0  ;;  %15613 = vmatprep.mubr.msk.f32.mxu1 %vm16288_vm7, %v21975_v20 }
 0x70e   :  { %v15105_v1 = vpop.f32.mrf.mxu1 }
 0x70f   :  { %v8287_v7 = vpop.f32.mrf.mxu0  ;;  %15401 = vmatmul.mubr.f32.gmra.mxu0 %v8996_v59  ;;  %v9429_v59 = vrot.slane %v20542_v45, 6 }
 0x710   :  { %v8440_v24 = vpop.f32.mrf.mxu1  ;;  %15614 = vmatmul.mubr.f32.vlgmr.msra.gmra.mxu1 %v9655_v12  ;;  %15524 = vmatprep.mubr.msk.f32.mxu0 %vm16288_vm7, %v21975_v20  ;;  %v9664_v7 = vrot.slane %v20584_v41, 7 }
 0x711   :  { %v15016_v34 = vpop.f32.mrf.mxu0  ;;  %15616 = vmatprep.mubr.msk.f32.mxu1 %vm16288_vm7, %v21975_v20  ;;  %v9430_v47 = vsel %vm2054_vm5, %v9427_v31, %v9429_v59 }
 0x712   :  { %v15108_v17 = vpop.f32.mrf.mxu1  ;;  %v9432_v34 = vsel %vm2054_vm5, %v9429_v59, %v9431_v55  ;;  %v9665_v18 = vsel %vm2389_vm6, %v9662_v28, %v9664_v7 }
 0x713   :  { %v8291_v51 = vpop.f32.mrf.mxu0  ;;  %15525 = vmatmul.mubr.f32.vlgmr.msra.gmra.mxu0 %v9424_v62  ;;  %v9880_v17 = vld [vmem:[#allocation7 + $0x458] sm:$0xff] }
 0x714   :  { %v8444_v3 = vpop.f32.mrf.mxu1  ;;  %15617 = vmatmul.mubr.f32.gmra.mxu1 %v9657_v8  ;;  %15671 = vmatpush3.msra.mxu0 %v9884_v36  ;;  %v9433_v36 = vrot.slane %v20584_v41, 6 }
 0x715   :  { %v15019_v5 = vpop.f32.mrf.mxu0  ;;  %15527 = vmatprep.mubr.msk.f32.mxu0 %vm16288_vm7, %v21975_v20  ;;  %15619 = vmatprep.mubr.msk.f32.mxu1 %vm16288_vm7, %v21975_v20  ;;  %v9666_v3 = vrot.slane %v20617_v35, 7 }
 0x716   :  { %v15111_v10 = vpop.f32.mrf.mxu1  ;;  %15672 = vmatprep.subr.mxu0 %v21975_v20  ;;  %v9434_v40 = vsel %vm2054_vm5, %v9431_v55, %v9433_v36  ;;  %v9672_v55 = vrot.slane %v20672_v4, 7 }
 0x717   :  { %v8295_v32 = vpop.f32.mrf.mxu0  ;;  %15528 = vmatmul.mubr.f32.gmra.mxu0 %v9426_v2  ;;  %v9667_v2 = vsel %vm2389_vm6, %v9664_v7, %v9666_v3 }
 0x718   :  { %v8448_v56 = vpop.f32.mrf.mxu1  ;;  %15620 = vmatmul.mubr.f32.gmra.mxu1 %v9659_v63  ;;  %15673 = vmatpush3.msra.mxu0 %v9883_v27  ;;  %v9879_v27 = vld [vmem:[#allocation7 + $0x450] sm:$0xff]  ;;  %v9668_v32 = vrot.slane %v20630_v61, 7 }
 0x719   :  { %v15022_v42 = vpop.f32.mrf.mxu0  ;;  %15530 = vmatprep.mubr.msk.f32.mxu0 %vm16288_vm7, %v21975_v20  ;;  %15622 = vmatprep.mubr.msk.f32.mxu1 %vm16288_vm7, %v21975_v20 }
 0x71a   :  { %v15114_v58 = vpop.f32.mrf.mxu1  ;;  %15674 = vmatprep.subr.mxu0 %v21975_v20  ;;  %v9436_v42 = vsel %vm2054_vm5, %v9433_v36, %v9435_v60  ;;  %v9669_v59 = vsel %vm2389_vm6, %v9666_v3, %v9668_v32  ;;  %v22019_v36 = vld [vmem:[#allocation75_spill] sm:$0xff] }
 0x71b   :  { %v8299_v14 = vpop.f32.mrf.mxu0  ;;  %15531 = vmatmul.mubr.f32.gmra.mxu0 %v9428_v13  ;;  %v9437_v58 = vrot.slane %v20630_v61, 6  ;;  %v9878_v13 = vld [vmem:[#allocation7 + $0x448] sm:$0xff]  ;;  %v9876_v3 = vld [vmem:[#allocation7 + $0x438] sm:$0xff] }
 0x71c   :  { %v8452_v44 = vpop.f32.mrf.mxu1  ;;  %15623 = vmatmul.mubr.f32.gmra.mxu1 %v9661_v33  ;;  %15533 = vmatprep.mubr.msk.f32.mxu0 %vm16288_vm7, %v21975_v20 }
 0x71d   :  { %v15025_v38 = vpop.f32.mrf.mxu0  ;;  %15675 = vmatpush3.msra.mxu0 %v9882_v22  ;;  %15625 = vmatprep.mubr.msk.f32.mxu1 %vm16288_vm7, %v21975_v20  ;;  %v22017_v44 = vld [vmem:[#allocation54_spill] sm:$0xff] }
 0x71e   :  { %v15117_v11 = vpop.f32.mrf.mxu1  ;;  %15676 = vmatprep.subr.mxu0 %v21975_v20  ;;  %v22018_v38 = vld [vmem:[#allocation41_spill] sm:$0xff] }
 0x71f   :  { %v8303_v1 = vpop.f32.mrf.mxu0  ;;  %15534 = vmatmul.mubr.f32.gmra.mxu0 %v9430_v47  ;;  %v6125_v28 = vadd.f32 %v22018_v38, %v22017_v44  ;;  %v9670_v47 = vrot.slane %v20663_v25, 7 }
 0x720   :  { %v8456_v12 = vpop.f32.mrf.mxu1  ;;  %15626 = vmatmul.mubr.f32.gmra.mxu1 %v9663_v49  ;;  %15536 = vmatprep.mubr.msk.f32.mxu0 %vm16288_vm7, %v21975_v20  ;;  %v9438_v1 = vsel %vm2054_vm5, %v9435_v60, %v9437_v58  ;;  %v9877_v49 = vld [vmem:[#allocation7 + $0x440] sm:$0xff]  ;;  %v9674_v60 = vrot.slane %v20696_v16, 7 }
 0x721   :  { %v15028_v24 = vpop.f32.mrf.mxu0  ;;  %15628 = vmatprep.mubr.msk.f32.mxu1 %vm16288_vm7, %v21975_v20  ;;  %15677 = vmatpush3.msra.mxu0 %v9881_v15  ;;  %v9671_v12 = vsel %vm2389_vm6, %v9668_v32, %v9670_v47 }
 0x722   :  { %v15120_v30 = vpop.f32.mrf.mxu1  ;;  %15678 = vmatprep.subr.mxu0 %v21975_v20 }
 0x723   :  { %v8307_v62 = vpop.f32.mrf.mxu0  ;;  %15537 = vmatmul.mubr.f32.gmra.mxu0 %v9432_v34  ;;  %v9439_v34 = vrot.slane %v20663_v25, 6 }
 0x724   :  { %v8460_v51 = vpop.f32.mrf.mxu1  ;;  %15629 = vmatmul.mubr.f32.gmra.mxu1 %v9665_v18  ;;  %15539 = vmatprep.mubr.msk.f32.mxu0 %vm16288_vm7, %v21975_v20 }
 0x725   :  { %v15031_v8 = vpop.f32.mrf.mxu0  ;;  %15631 = vmatprep.mubr.msk.f32.mxu1 %vm16288_vm7, %v21975_v20  ;;  %15679 = vmatpush3.msra.mxu0 %v9880_v17  ;;  %v6410_v17 = vadd.f32 %v22019_v36, %v6125_v28  ;;  %v9440_v51 = vsel %vm2054_vm5, %v9437_v58, %v9439_v34  ;;  %v22021_v58 = vld [vmem:[#allocation80_spill] sm:$0xff]  ;;  %v9443_v28 = vrot.slane %v20696_v16, 6 }
 0x726   :  { %v15123_v5 = vpop.f32.mrf.mxu1  ;;  %15680 = vmatprep.subr.mxu0 %v21975_v20  ;;  %v9441_v8 = vrot.slane %v20672_v4, 6 }
 0x727   :  { %v8311_v10 = vpop.f32.mrf.mxu0  ;;  %15540 = vmatmul.mubr.f32.gmra.mxu0 %v9434_v40  ;;  %v22020_v5 = vld [vmem:[#allocation48_spill] sm:$0xff] }
 0x728   :  { %v8464_v63 = vpop.f32.mrf.mxu1  ;;  %15632 = vmatmul.mubr.f32.gmra.mxu1 %v9667_v2  ;;  %15542 = vmatprep.mubr.msk.f32.mxu0 %vm16288_vm7, %v21975_v20  ;;  %v6690_v40 = vadd.f32 %v22020_v5, %v6410_v17  ;;  %v9673_v10 = vsel %vm2389_vm6, %v9670_v47, %v9672_v55 }
 0x729   :  { %v15034_v56 = vpop.f32.mrf.mxu0  ;;  %15634 = vmatprep.mubr.msk.f32.mxu1 %vm16288_vm7, %v21975_v20  ;;  %15681 = vmatpush3.msra.mxu0 %v9879_v27 }
 0x72a   :  { %v15126_v31 = vpop.f32.mrf.mxu1  ;;  %15682 = vmatprep.subr.mxu0 %v21975_v20 }
 0x72b   :  { %v8315_v22 = vpop.f32.mrf.mxu0  ;;  %15543 = vmatmul.mubr.f32.gmra.mxu0 %v9436_v42  ;;  %v9442_v31 = vsel %vm2054_vm5, %v9439_v34, %v9441_v8  ;;  %v9875_v42 = vld [vmem:[#allocation7 + $0x430] sm:$0xff]  ;;  %v22022_v34 = vld [vmem:[#allocation64_spill] sm:$0xff] }
 0x72c   :  { %v21240_v14 = vadd.f32 %v8464_v63, %v8315_v22  ;;  %v8469_v33 = vpop.f32.mrf.mxu1  ;;  %15635 = vmatmul.mubr.f32.gmra.mxu1 %v9669_v59  ;;  %15545 = vmatprep.mubr.msk.f32.mxu0 %vm16288_vm7, %v21975_v20  ;;  %v9675_v59 = vsel %vm2389_vm6, %v9672_v55, %v9674_v60 }
 0x72d   :  { %v15037_v11 = vpop.f32.mrf.mxu0  ;;  %15637 = vmatprep.mubr.msk.f32.mxu1 %vm16288_vm7, %v21975_v20  ;;  %15683 = vmatpush3.msra.mxu0 %v9878_v13  ;;  %v6969_v13 = vadd.f32 %v22021_v58, %v6690_v40 }
 0x72e   :  { %v15129_v15 = vpop.f32.mrf.mxu1  ;;  %15684 = vmatprep.subr.mxu0 %v21975_v20 }
 0x72f   :  { %v8320_v7 = vpop.f32.mrf.mxu0  ;;  %15546 = vmatmul.mubr.f32.gmra.mxu0 %v9438_v1  ;;  %v7248_v11 = vadd.f32 %v20405_v53, %v6969_v13  ;;  %v9444_v1 = vsel %vm2054_vm5, %v9441_v8, %v9443_v28 }
 0x730   :  { %v21253_v24 = vadd.f32 %v8469_v33, %v8320_v7  ;;  %v8474_v30 = vpop.f32.mrf.mxu1  ;;  %15638 = vmatmul.mubr.f32.gmra.mxu1 %v9671_v12  ;;  %15548 = vmatprep.mubr.msk.f32.mxu0 %vm16288_vm7, %v21975_v20  ;;  %v9676_v33 = vrot.slane %v20708_v43, 7  ;;  %v9874_v7 = vld [vmem:[#allocation7 + $0x428] sm:$0xff] }
 0x731   :  { %v15040_v62 = vpop.f32.mrf.mxu0  ;;  %15640 = vmatprep.mubr.msk.f32.mxu1 %vm16288_vm7, %v21975_v20  ;;  %15685 = vmatpush3.msra.mxu0 %v9877_v49  ;;  %v9445_v49 = vrot.slane %v20708_v43, 6  ;;  %v7528_v36 = vadd.f32 %v22022_v34, %v7248_v11 }
 0x732   :  { %v15132_v18 = vpop.f32.mrf.mxu1  ;;  %15686 = vmatprep.subr.mxu0 %v21975_v20  ;;  %v9677_v55 = vsel %vm2389_vm6, %v9674_v60, %v9676_v33  ;;  %v9678_v62 = vrot.slane %v20738_v48, 7 }
 0x733   :  { %v8325_v27 = vpop.f32.mrf.mxu0  ;;  %15549 = vmatmul.mubr.f32.gmra.mxu0 %v9440_v51  ;;  %v9446_v51 = vsel %vm2054_vm5, %v9443_v28, %v9445_v49  ;;  %v9682_v28 = vrot.slane %v20763_v19, 7 }
 0x734   :  { %v21266_v2 = vadd.f32 %v8474_v30, %v8325_v27  ;;  %v8479_v32 = vpop.f32.mrf.mxu1  ;;  %15641 = vmatmul.mubr.f32.gmra.mxu1 %v9673_v10  ;;  %15551 = vmatprep.mubr.msk.f32.mxu0 %vm16288_vm7, %v21975_v20  ;;  %v9679_v40 = vsel %vm2389_vm6, %v9676_v33, %v9678_v62  ;;  %v9680_v27 = vrot.slane %v20745_v9, 7 }
 0x735   :  { %v15043_v63 = vpop.f32.mrf.mxu0  ;;  %15643 = vmatprep.mubr.msk.f32.mxu1 %vm16288_vm7, %v21975_v20  ;;  %15687 = vmatpush3.msra.mxu0 %v9876_v3  ;;  %v7810_v3 = vadd.f32 %v21087_v54, %v7528_v36 }
 0x736   :  { %v15135_v56 = vpop.f32.mrf.mxu1  ;;  %15688 = vmatprep.subr.mxu0 %v21975_v20  ;;  %v9447_v63 = vrot.slane %v20738_v48, 6 }
 0x737   :  { %v8330_v22 = vpop.f32.mrf.mxu0  ;;  %15552 = vmatmul.mubr.f32.gmra.mxu0 %v9442_v31  ;;  %v9449_v31 = vrot.slane %v20745_v9, 6  ;;  %v8024_v58 = vadd.f32 %v21078_v39, %v7810_v3 }
 0x738   :  { %v21278_v44 = vadd.f32 %v8479_v32, %v8330_v22  ;;  %v8853_v38 = vpop.f32.mrf.mxu1  ;;  %15644 = vmatmul.mubr.f32.gmra.mxu1 %v9675_v59  ;;  %15554 = vmatprep.mubr.msk.f32.mxu0 %vm16288_vm7, %v21975_v20  ;;  %v9448_v56 = vsel %vm2054_vm5, %v9445_v49, %v9447_v63  ;;  %v9681_v22 = vsel %vm2389_vm6, %v9678_v62, %v9680_v27  ;;  %v9453_v62 = vrot.slane %v20770_v26, 6 }
 0x739   :  { %v15046_v47 = vpop.f32.mrf.mxu0  ;;  %15646 = vmatprep.mubr.msk.f32.mxu1 %vm16288_vm7, %v21975_v20  ;;  %15689 = vmatpush3.msra.mxu0 %v9875_v42  ;;  %v9450_v39 = vsel %vm2054_vm5, %v9447_v63, %v9449_v31  ;;  %v9869_v63 = vld [vmem:[#allocation7 + $0x400] sm:$0xff] }
 0x73a   :  { %v15259_v15 = vpop.f32.mrf.mxu1  ;;  %15690 = vmatprep.subr.mxu0 %v21975_v20  ;;  %v9871_v47 = vld [vmem:[#allocation7 + $0x410] sm:$0xff] }
 0x73b   :  { %v8622_v12 = vpop.f32.mrf.mxu0  ;;  %15555 = vmatmul.mubr.f32.gmra.mxu0 %v9444_v1 }
 0x73c   :  { %v8705_v30 = vadd.f32 %v8622_v12, %v21097_v50  ;;  %v8858_v53 = vpop.f32.mrf.mxu1  ;;  %15647 = vmatmul.mubr.f32.gmra.mxu1 %v9677_v55  ;;  %15557 = vmatprep.mubr.msk.f32.mxu0 %vm16288_vm7, %v21975_v20  ;;  %v9873_v50 = vld [vmem:[#allocation7 + $0x420] sm:$0xff]  ;;  %v9684_v12 = vrot.slane %v20770_v26, 7 }
 0x73d   :  { %v15170_v17 = vpop.f32.mrf.mxu0  ;;  %15649 = vmatprep.mubr.msk.f32.mxu1 %vm16288_vm7, %v21975_v20  ;;  %15691 = vmatpush3.msra.mxu0 %v9874_v7  ;;  %v9683_v7 = vsel %vm2389_vm6, %v9680_v27, %v9682_v28  ;;  %v9686_v27 = vrot.slane %v20952_v6, 7 }
 0x73e   :  { %v15262_v18 = vpop.f32.mrf.mxu1  ;;  %15692 = vmatprep.subr.mxu0 %v21975_v20  ;;  %v21299_v8 = vadd.f32 %v8853_v38, %v8705_v30  ;;  %v9685_v3 = vsel %vm2389_vm6, %v9682_v28, %v9684_v12 }
 0x73f   :  { %v8627_v5 = vpop.f32.mrf.mxu0  ;;  %15558 = vmatmul.mubr.f32.gmra.mxu0 %v9446_v51 }
 0x740   :  { %v8706_v10 = vadd.f32 %v8627_v5, %v21109_v0  ;;  %v8863_v32 = vpop.f32.mrf.mxu1  ;;  %15650 = vmatmul.mubr.f32.gmra.mxu1 %v9679_v40  ;;  %15560 = vmatprep.mubr.msk.f32.mxu0 %vm16288_vm7, %v21975_v20  ;;  %v9872_v0 = vld [vmem:[#allocation7 + $0x418] sm:$0xff] }
 0x741   :  { %v15173_v60 = vpop.f32.mrf.mxu0  ;;  %15652 = vmatprep.mubr.msk.f32.mxu1 %vm16288_vm7, %v21975_v20  ;;  %15693 = vmatpush3.msra.mxu0 %v9873_v50 }
 0x742   :  { %v15265_v54 = vpop.f32.mrf.mxu1  ;;  %15694 = vmatprep.subr.mxu0 %v21975_v20  ;;  %v21313_v42 = vadd.f32 %v8858_v53, %v8706_v10  ;;  %v9451_v53 = vrot.slane %v20763_v19, 6 }
 0x743   :  { %v8632_v13 = vpop.f32.mrf.mxu0  ;;  %15561 = vmatmul.mubr.f32.gmra.mxu0 %v9448_v56  ;;  %v9687_v54 = vsel %vm2389_vm6, %v9684_v12, %v9686_v27 }
 0x744   :  { %v8707_v59 = vadd.f32 %v8632_v13, %v21121_v37  ;;  %v8868_v33 = vpop.f32.mrf.mxu1  ;;  %15653 = vmatmul.mubr.f32.gmra.mxu1 %v9681_v22  ;;  %15563 = vmatprep.mubr.msk.f32.mxu0 %vm16288_vm7, %v21975_v20  ;;  %v16151_v37 = vld [vmem:[%s21721_s6] ss:$0 sm:$0xff]  ;;  %v9452_v17 = vsel %vm2054_vm5, %v9449_v31, %v9451_v53 }
 0x745   :  { %v15176_v38 = vpop.f32.mrf.mxu0  ;;  %15655 = vmatprep.mubr.msk.f32.mxu1 %vm16288_vm7, %v21975_v20  ;;  %15695 = vmatpush3.msra.mxu0 %v9872_v0  ;;  %v8053_v1 = vadd.f32 %v16151_v37, %v8024_v58  ;;  %v9455_v0 = vrot.slane %v20952_v6, 6  ;;  %v8076_v58 = vmax.f32 %v20656_v29, 0.0 }
 0x746   :  { %v15268_v11 = vpop.f32.mrf.mxu1  ;;  %15696 = vmatprep.subr.mxu0 %v21975_v20  ;;  %v21325_v15 = vadd.f32 %v8863_v32, %v8707_v59  ;;  %v9454_v32 = vsel %vm2054_vm5, %v9451_v53, %v9453_v62 }
 0x747   :  { %v8637_v49 = vpop.f32.mrf.mxu0  ;;  %15564 = vmatmul.mubr.f32.gmra.mxu0 %v9450_v39  ;;  %v21343_v51 = vmax.f32 %v8053_v1, 0.0  ;;  %v9456_v59 = vsel %vm2054_vm5, %v9453_v62, %v9455_v0  ;;  %v9690_v39 = vrot.slane %v8076_v58, 7 }
 0x748   :  { %v8708_v55 = vadd.f32 %v8637_v49, %v21133_v52  ;;  %v8873_v30 = vpop.f32.mrf.mxu1  ;;  %15656 = vmatmul.mubr.f32.gmra.mxu1 %v9683_v7  ;;  %15566 = vmatprep.mubr.msk.f32.mxu0 %vm16288_vm7, %v21975_v20  ;;  %v9870_v52 = vld [vmem:[#allocation7 + $0x408] sm:$0xff] }
 0x749   :  { %v15179_v34 = vpop.f32.mrf.mxu0  ;;  %15658 = vmatprep.mubr.msk.f32.mxu1 %vm16288_vm7, %v21975_v20  ;;  %15697 = vmatpush3.msra.mxu0 %v9871_v47  ;;  %v9688_v56 = vrot.slane %v21343_v51, 7 }
 0x74a   :  { %v15271_v36 = vpop.f32.mrf.mxu1  ;;  %15698 = vmatprep.subr.mxu0 %v21975_v20  ;;  %v21341_v18 = vadd.f32 %v8868_v33, %v8708_v55  ;;  %v9457_v33 = vrot.slane %v21343_v51, 6 }
 0x74b   :  { %v8642_v50 = vpop.f32.mrf.mxu0  ;;  %15567 = vmatmul.mubr.f32.gmra.mxu0 %v9452_v17  ;;  %v9689_v28 = vsel %vm2389_vm6, %v9686_v27, %v9688_v56  ;;  %v9691_v7 = vsel %vm2389_vm6, %v9688_v56, %v9690_v39 }
 0x74c   :  { %v8877_v5 = vpop.f32.mrf.mxu1  ;;  %15659 = vmatmul.mubr.f32.gmra.mxu1 %v9685_v3  ;;  %15569 = vmatprep.mubr.msk.f32.mxu0 %vm16288_vm7, %v21975_v20  ;;  %v9458_v1 = vsel %vm2054_vm5, %v9455_v0, %v9457_v33 }
 0x74d   :  { %v15182_v40 = vpop.f32.mrf.mxu0  ;;  %15661 = vmatprep.mubr.msk.f32.mxu1 %vm16288_vm7, %v21975_v20  ;;  %15699 = vmatpush3.msra.mxu0 %v9870_v52 }
 0x74e   :  { %v15274_v10 = vpop.f32.mrf.mxu1  ;;  %15700 = vmatprep.subr.mxu0 %v21975_v20 }
 0x74f   :  { %v8646_v60 = vpop.f32.mrf.mxu0  ;;  %15570 = vmatmul.mubr.f32.gmra.mxu0 %v9454_v32 }
 0x750   :  { %v8881_v31 = vpop.f32.mrf.mxu1  ;;  %15662 = vmatmul.mubr.f32.gmra.mxu1 %v9687_v54  ;;  %15572 = vmatprep.mubr.msk.f32.mxu0 %vm16288_vm7, %v21975_v20 }
 0x751   :  { %v15185_v13 = vpop.f32.mrf.mxu0  ;;  %15664 = vmatprep.mubr.msk.f32.mxu1 %vm16288_vm7, %v21975_v20  ;;  %15701 = vmatpush3.msra.mxu0 %v9869_v63 }
 0x752   :  { %v15277_v22 = vpop.f32.mrf.mxu1  ;;  %15864 = vmatprep.subr.mxu0 %v21975_v20 }
 0x753   :  { %v8650_v38 = vpop.f32.mrf.mxu0  ;;  %15573 = vmatmul.mubr.f32.gmra.mxu0 %v9456_v59 }
 0x754   :  { %v8885_v11 = vpop.f32.mrf.mxu1  ;;  %15665 = vmatmul.mubr.f32.gmra.mxu1 %v9689_v28  ;;  %15575 = vmatprep.mubr.msk.f32.mxu0 %vm16288_vm7, %v21975_v20 }
 0x755   :  { %v15188_v47 = vpop.f32.mrf.mxu0  ;;  %15667 = vmatprep.mubr.msk.f32.mxu1 %vm16288_vm7, %v21975_v20 }
 0x756   :  { %v15280_v37 = vpop.f32.mrf.mxu1 }
 0x757   :  { %v8654_v49 = vpop.f32.mrf.mxu0  ;;  %15576 = vmatmul.mubr.f32.gmra.mxu0 %v9458_v1 }
 0x758   :  { %v8889_v12 = vpop.f32.mrf.mxu1  ;;  %15668 = vmatmul.mubr.f32.gmra.mxu1 %v9691_v7  ;;  %15578 = vmatprep.mubr.msk.f32.mxu0 %vm16288_vm7, %v21975_v20 }
 0x759   :  { %v15191_v55 = vpop.f32.mrf.mxu0  ;;  %15791 = vmatprep.mubr.msk.f32.mxu1 %vm16288_vm7, %v21975_v20 }
 0x75a   :  { %v15283_v30 = vpop.f32.mrf.mxu1 }
 0x75b   :  { %v8658_v53 = vpop.f32.mrf.mxu0  ;;  %15579 = vmatmul.mubr.f32.gmra.mxu0 %v9457_v33 }
 0x75c   :  { %v8893_v34 = vpop.f32.mrf.mxu1  ;;  %15702 = vmatprep.mubr.msk.f32.mxu0 %vm16288_vm7, %v21975_v20 }
 0x75d   :  { %v15194_v36 = vpop.f32.mrf.mxu0 }
 0x75e   :  { %v15286_v17 = vpop.f32.mrf.mxu1 }
 0x75f   :  { %v8662_v62 = vpop.f32.mrf.mxu0  ;;  %15703 = vmatmul.mubr.f32.vlgmr.msra.gmra.mxu0 %v20470_v46 }
 0x760   :  { %v8897_v52 = vpop.f32.mrf.mxu1  ;;  %15705 = vmatprep.mubr.msk.f32.mxu0 %vm16288_vm7, %v21975_v20 }
 0x761   :  { %v15197_v50 = vpop.f32.mrf.mxu0 }
 0x762   :  { %v15289_v3 = vpop.f32.mrf.mxu1 }
 0x763   :  { %v8666_v5 = vpop.f32.mrf.mxu0  ;;  %15706 = vmatmul.mubr.f32.gmra.mxu0 %v20495_v21 }
 0x764   :  { %v8901_v40 = vpop.f32.mrf.mxu1  ;;  %15708 = vmatprep.mubr.msk.f32.mxu0 %vm16288_vm7, %v21975_v20 }
 0x765   :  { %v15200_v27 = vpop.f32.mrf.mxu0 }
 0x766   :  { %v15292_v10 = vpop.f32.mrf.mxu1 }
 0x767   :  { %v8670_v32 = vpop.f32.mrf.mxu0  ;;  %15709 = vmatmul.mubr.f32.gmra.mxu0 %v20531_v23 }
 0x768   :  { %v8905_v63 = vpop.f32.mrf.mxu1  ;;  %15711 = vmatprep.mubr.msk.f32.mxu0 %vm16288_vm7, %v21975_v20 }
 0x769   :  { %v15203_v46 = vpop.f32.mrf.mxu0 }
 0x76a   :  { %v15295_v60 = vpop.f32.mrf.mxu1 }
 0x76b   :  { %v8674_v54 = vpop.f32.mrf.mxu0  ;;  %15712 = vmatmul.mubr.f32.gmra.mxu0 %v20542_v45 }
 0x76c   :  { %v8909_v56 = vpop.f32.mrf.mxu1  ;;  %15714 = vmatprep.mubr.msk.f32.mxu0 %vm16288_vm7, %v21975_v20 }
 0x76d   :  { %v15206_v21 = vpop.f32.mrf.mxu0 }
 0x76e   :  { %v15298_v31 = vpop.f32.mrf.mxu1 }
 0x76f   :  { %v8678_v0 = vpop.f32.mrf.mxu0  ;;  %15715 = vmatmul.mubr.f32.gmra.mxu0 %v20571_v57 }
 0x770   :  { %v8913_v13 = vpop.f32.mrf.mxu1  ;;  %15717 = vmatprep.mubr.msk.f32.mxu0 %vm16288_vm7, %v21975_v20 }
 0x771   :  { %v15209_v23 = vpop.f32.mrf.mxu0 }
 0x772   :  { %v15301_v22 = vpop.f32.mrf.mxu1 }
 0x773   :  { %v8682_v59 = vpop.f32.mrf.mxu0  ;;  %15718 = vmatmul.mubr.f32.gmra.mxu0 %v20584_v41 }
 0x774   :  { %v8917_v33 = vpop.f32.mrf.mxu1  ;;  %15720 = vmatprep.mubr.msk.f32.mxu0 %vm16288_vm7, %v21975_v20 }
 0x775   :  { %v15212_v45 = vpop.f32.mrf.mxu0 }
 0x776   :  { %v15304_v38 = vpop.f32.mrf.mxu1 }
 0x777   :  { %v8686_v28 = vpop.f32.mrf.mxu0  ;;  %15721 = vmatmul.mubr.f32.gmra.mxu0 %v20617_v35 }
 0x778   :  { %v8709_v57 = vadd.f32 %v8686_v28, %v21240_v14  ;;  %v8922_v11 = vpop.f32.mrf.mxu1  ;;  %15723 = vmatprep.mubr.msk.f32.mxu0 %vm16288_vm7, %v21975_v20 }
 0x779   :  { %v15215_v39 = vpop.f32.mrf.mxu0 }
 0x77a   :  { %v15307_v47 = vpop.f32.mrf.mxu1  ;;  %v21401_v37 = vadd.f32 %v8917_v33, %v8709_v57 }
 0x77b   :  { %v8691_v41 = vpop.f32.mrf.mxu0  ;;  %15724 = vmatmul.mubr.f32.gmra.mxu0 %v20630_v61 }
 0x77c   :  { %v8710_v1 = vadd.f32 %v8691_v41, %v21253_v24  ;;  %v8927_v49 = vpop.f32.mrf.mxu1  ;;  %15726 = vmatprep.mubr.msk.f32.mxu0 %vm16288_vm7, %v21975_v20 }
 0x77d   :  { %v15218_v35 = vpop.f32.mrf.mxu0 }
 0x77e   :  { %v15310_v7 = vpop.f32.mrf.mxu1  ;;  %v21407_v14 = vadd.f32 %v8922_v11, %v8710_v1  ;;  %v10104_v1 = vld [vmem:[#allocation8 + $0xf0] sm:$0xff] }
 0x77f   :  { %v8696_v12 = vpop.f32.mrf.mxu0  ;;  %15727 = vmatmul.mubr.f32.gmra.mxu0 %v20663_v25  ;;  %v10103_v7 = vld [vmem:[#allocation8 + $0xe8] sm:$0xff] }
 0x780   :  { %v8711_v55 = vadd.f32 %v8696_v12, %v21266_v2  ;;  %v8932_v30 = vpop.f32.mrf.mxu1  ;;  %15729 = vmatprep.mubr.msk.f32.mxu0 %vm16288_vm7, %v21975_v20 }
 0x781   :  { %v15221_v61 = vpop.f32.mrf.mxu0 }
 0x782   :  { %v15313_v53 = vpop.f32.mrf.mxu1  ;;  %v21413_v24 = vadd.f32 %v8927_v49, %v8711_v55 }
 0x783   :  { %v8701_v34 = vpop.f32.mrf.mxu0  ;;  %15730 = vmatmul.mubr.f32.gmra.mxu0 %v20672_v4  ;;  %v10102_v53 = vld [vmem:[#allocation8 + $0xe0] sm:$0xff] }
 0x784   :  { %v8712_v36 = vadd.f32 %v8701_v34, %v21278_v44  ;;  %v9313_v17 = vpop.f32.mrf.mxu1  ;;  %15732 = vmatprep.mubr.msk.f32.mxu0 %vm16288_vm7, %v21975_v20  ;;  %v10101_v34 = vld [vmem:[#allocation8 + $0xd8] sm:$0xff] }
 0x785   :  { %v15224_v25 = vpop.f32.mrf.mxu0 }
 0x786   :  { %v15437_v62 = vpop.f32.mrf.mxu1  ;;  %v21419_v2 = vadd.f32 %v8932_v30, %v8712_v36 }
 0x787   :  { %v9083_v52 = vpop.f32.mrf.mxu0  ;;  %15733 = vmatmul.mubr.f32.gmra.mxu0 %v20696_v16 }
 0x788   :  { %v9166_v50 = vadd.f32 %v9083_v52, %v21299_v8  ;;  %v9318_v3 = vpop.f32.mrf.mxu1  ;;  %15735 = vmatprep.mubr.msk.f32.mxu0 %vm16288_vm7, %v21975_v20 }
 0x789   :  { %v15348_v4 = vpop.f32.mrf.mxu0 }
 0x78a   :  { %v15440_v5 = vpop.f32.mrf.mxu1  ;;  %v21425_v44 = vadd.f32 %v9313_v17, %v9166_v50  ;;  %v10100_v17 = vld [vmem:[#allocation8 + $0xd0] sm:$0xff] }
 0x78b   :  { %v9088_v40 = vpop.f32.mrf.mxu0  ;;  %15736 = vmatmul.mubr.f32.gmra.mxu0 %v20708_v43  ;;  %v10099_v5 = vld [vmem:[#allocation8 + $0xc8] sm:$0xff] }
 0x78c   :  { %v9167_v27 = vadd.f32 %v9088_v40, %v21313_v42  ;;  %v9323_v10 = vpop.f32.mrf.mxu1  ;;  %15738 = vmatprep.mubr.msk.f32.mxu0 %vm16288_vm7, %v21975_v20 }
 0x78d   :  { %v15351_v16 = vpop.f32.mrf.mxu0 }
 0x78e   :  { %v15443_v32 = vpop.f32.mrf.mxu1  ;;  %v21431_v8 = vadd.f32 %v9318_v3, %v9167_v27 }
 0x78f   :  { %v9093_v63 = vpop.f32.mrf.mxu0  ;;  %15739 = vmatmul.mubr.f32.gmra.mxu0 %v20738_v48  ;;  %v10098_v32 = vld [vmem:[#allocation8 + $0xc0] sm:$0xff] }
 0x790   :  { %v9168_v46 = vadd.f32 %v9093_v63, %v21325_v15  ;;  %v9328_v60 = vpop.f32.mrf.mxu1  ;;  %15741 = vmatprep.mubr.msk.f32.mxu0 %vm16288_vm7, %v21975_v20 }
 0x791   :  { %v15354_v43 = vpop.f32.mrf.mxu0 }
 0x792   :  { %v15446_v54 = vpop.f32.mrf.mxu1  ;;  %v21437_v42 = vadd.f32 %v9323_v10, %v9168_v46 }
 0x793   :  { %v9098_v56 = vpop.f32.mrf.mxu0  ;;  %15742 = vmatmul.mubr.f32.gmra.mxu0 %v20745_v9  ;;  %v10105_v9 = vld [vmem:[#allocation8 + $0xf8] sm:$0xff] }
 0x794   :  { %v9169_v21 = vadd.f32 %v9098_v56, %v21341_v18  ;;  %v9333_v31 = vpop.f32.mrf.mxu1  ;;  %15744 = vmatprep.mubr.msk.f32.mxu0 %vm16288_vm7, %v21975_v20  ;;  %15760 = vmatpush3.msra.mxu1 %v10105_v9  ;;  %v10097_v54 = vld [vmem:[#allocation8 + $0xb8] sm:$0xff] }
 0x795   :  { %v15357_v48 = vpop.f32.mrf.mxu0  ;;  %15761 = vmatprep.subr.mxu1 %v21975_v20 }
 0x796   :  { %v15449_v0 = vpop.f32.mrf.mxu1  ;;  %v21443_v15 = vadd.f32 %v9328_v60, %v9169_v21  ;;  %15762 = vmatpush3.msra.mxu1 %v10104_v1 }
 0x797   :  { %v9103_v13 = vpop.f32.mrf.mxu0  ;;  %15745 = vmatmul.mubr.f32.gmra.mxu0 %v20763_v19  ;;  %15763 = vmatprep.subr.mxu1 %v21975_v20 }
 0x798   :  { %v9337_v23 = vpop.f32.mrf.mxu1  ;;  %15747 = vmatprep.mubr.msk.f32.mxu0 %vm16288_vm7, %v21975_v20  ;;  %15764 = vmatpush3.msra.mxu1 %v10103_v7 }
 0x799   :  { %v15360_v22 = vpop.f32.mrf.mxu0  ;;  %15765 = vmatprep.subr.mxu1 %v21975_v20 }
 0x79a   :  { %v15452_v59 = vpop.f32.mrf.mxu1  ;;  %15766 = vmatpush3.msra.mxu1 %v10102_v53  ;;  %v10096_v22 = vld [vmem:[#allocation8 + $0xb0] sm:$0xff] }
 0x79b   :  { %v9107_v33 = vpop.f32.mrf.mxu0  ;;  %15748 = vmatmul.mubr.f32.gmra.mxu0 %v20770_v26  ;;  %15767 = vmatprep.subr.mxu1 %v21975_v20 }
 0x79c   :  { %v9341_v18 = vpop.f32.mrf.mxu1  ;;  %15750 = vmatprep.mubr.msk.f32.mxu0 %vm16288_vm7, %v21975_v20  ;;  %15768 = vmatpush3.msra.mxu1 %v10101_v34 }
 0x79d   :  { %v15363_v45 = vpop.f32.mrf.mxu0  ;;  %15769 = vmatprep.subr.mxu1 %v21975_v20 }
 0x79e   :  { %v15455_v38 = vpop.f32.mrf.mxu1  ;;  %15770 = vmatpush3.msra.mxu1 %v10100_v17  ;;  %v10356_v17 = vld [vmem:[#allocation8 + $0x1c8] sm:$0xff] }
 0x79f   :  { %v9111_v19 = vpop.f32.mrf.mxu0  ;;  %15751 = vmatmul.mubr.f32.gmra.mxu0 %v20952_v6  ;;  %15771 = vmatprep.subr.mxu1 %v21975_v20 }
 0x7a0   :  { %v9345_v28 = vpop.f32.mrf.mxu1  ;;  %15753 = vmatprep.mubr.msk.f32.mxu0 %vm16288_vm7, %v21975_v20  ;;  %15772 = vmatpush3.msra.mxu1 %v10099_v5  ;;  %v10362_v19 = vld [vmem:[#allocation8 + $0x1f8] sm:$0xff] }
 0x7a1   :  { %v15366_v57 = vpop.f32.mrf.mxu0  ;;  %15773 = vmatprep.subr.mxu1 %v21975_v20  ;;  %v10095_v28 = vld [vmem:[#allocation8 + $0xa8] sm:$0xff]  ;;  %15865 = vmatpush3.msra.mxu0 %v10362_v19 }
 0x7a2   :  { %v15458_v11 = vpop.f32.mrf.mxu1  ;;  %15774 = vmatpush3.msra.mxu1 %v10098_v32  ;;  %15866 = vmatprep.subr.mxu0 %v21975_v20 }
 0x7a3   :  { %v9115_v39 = vpop.f32.mrf.mxu0  ;;  %15754 = vmatmul.mubr.f32.gmra.mxu0 %v21343_v51  ;;  %15775 = vmatprep.subr.mxu1 %v21975_v20 }
 0x7a4   :  { %v9349_v26 = vpop.f32.mrf.mxu1  ;;  %15756 = vmatprep.mubr.msk.f32.mxu0 %vm16288_vm7, %v21975_v20  ;;  %15776 = vmatpush3.msra.mxu1 %v10097_v54  ;;  %v10361_v39 = vld [vmem:[#allocation8 + $0x1f0] sm:$0xff] }
 0x7a5   :  { %v15369_v47 = vpop.f32.mrf.mxu0  ;;  %15777 = vmatprep.subr.mxu1 %v21975_v20  ;;  %15867 = vmatpush3.msra.mxu0 %v10361_v39  ;;  %v10348_v39 = vld [vmem:[#allocation8 + $0x188] sm:$0xff] }
 0x7a6   :  { %v15461_v41 = vpop.f32.mrf.mxu1  ;;  %15778 = vmatpush3.msra.mxu1 %v10096_v22  ;;  %15868 = vmatprep.subr.mxu0 %v21975_v20 }
 0x7a7   :  { %v9119_v49 = vpop.f32.mrf.mxu0  ;;  %15757 = vmatmul.mubr.f32.gmra.mxu0 %v8076_v58  ;;  %15779 = vmatprep.subr.mxu1 %v21975_v20  ;;  %v10360_v41 = vld [vmem:[#allocation8 + $0x1e8] sm:$0xff] }
 0x7a8   :  { %v9353_v6 = vpop.f32.mrf.mxu1  ;;  %15896 = vmatprep.mubr.msk.f32.mxu0 %vm16288_vm7, %v21975_v20  ;;  %15780 = vmatpush3.msra.mxu1 %v10095_v28 }
 0x7a9   :  { %v15372_v35 = vpop.f32.mrf.mxu0  ;;  %15781 = vmatprep.subr.mxu1 %v21975_v20  ;;  %15869 = vmatpush3.msra.mxu0 %v10360_v41 }
 0x7aa   :  { %v15464_v51 = vpop.f32.mrf.mxu1  ;;  %15870 = vmatprep.subr.mxu0 %v21975_v20  ;;  %v10094_v35 = vld [vmem:[#allocation8 + $0xa0] sm:$0xff] }
 0x7ab   :  { %v9123_v12 = vpop.f32.mrf.mxu0  ;;  %v10359_v51 = vld [vmem:[#allocation8 + $0x1e0] sm:$0xff]  ;;  %15782 = vmatpush3.msra.mxu1 %v10094_v35 }
 0x7ac   :  { %v9357_v55 = vpop.f32.mrf.mxu1  ;;  %15871 = vmatpush3.msra.mxu0 %v10359_v51  ;;  %15783 = vmatprep.subr.mxu1 %v21975_v20 }
 0x7ad   :  { %v15375_v30 = vpop.f32.mrf.mxu0  ;;  %15872 = vmatprep.subr.mxu0 %v21975_v20  ;;  %v10358_v55 = vld [vmem:[#allocation8 + $0x1d8] sm:$0xff] }
 0x7ae   :  { %v15467_v61 = vpop.f32.mrf.mxu1  ;;  %15873 = vmatpush3.msra.mxu0 %v10358_v55 }
 0x7af   :  { %v9127_v29 = vpop.f32.mrf.mxu0  ;;  %15874 = vmatprep.subr.mxu0 %v21975_v20 }
 0x7b0   :  { %v9361_v58 = vpop.f32.mrf.mxu1  ;;  %v10093_v29 = vld [vmem:[#allocation8 + $0x98] sm:$0xff] }
 0x7b1   :  { %v15378_v36 = vpop.f32.mrf.mxu0  ;;  %v10357_v58 = vld [vmem:[#allocation8 + $0x1d0] sm:$0xff]  ;;  %15784 = vmatpush3.msra.mxu1 %v10093_v29 }
 0x7b2   :  { %v15470_v25 = vpop.f32.mrf.mxu1  ;;  %15875 = vmatpush3.msra.mxu0 %v10357_v58  ;;  %15785 = vmatprep.subr.mxu1 %v21975_v20 }
 0x7b3   :  { %v9131_v62 = vpop.f32.mrf.mxu0  ;;  %15876 = vmatprep.subr.mxu0 %v21975_v20 }
 0x7b4   :  { %v9365_v52 = vpop.f32.mrf.mxu1  ;;  %15877 = vmatpush3.msra.mxu0 %v10356_v17 }
 0x7b5   :  { %v15381_v50 = vpop.f32.mrf.mxu0  ;;  %15878 = vmatprep.subr.mxu0 %v21975_v20 }
 0x7b6   :  { %v15473_v3 = vpop.f32.mrf.mxu1  ;;  %v10355_v50 = vld [vmem:[#allocation8 + $0x1c0] sm:$0xff] }
 0x7b7   :  { %v9135_v4 = vpop.f32.mrf.mxu0  ;;  %v10092_v3 = vld [vmem:[#allocation8 + $0x90] sm:$0xff]  ;;  %15879 = vmatpush3.msra.mxu0 %v10355_v50 }
 0x7b8   :  { %v9369_v40 = vpop.f32.mrf.mxu1  ;;  %15786 = vmatpush3.msra.mxu1 %v10092_v3  ;;  %15880 = vmatprep.subr.mxu0 %v21975_v20 }
 0x7b9   :  { %v15384_v27 = vpop.f32.mrf.mxu0  ;;  %v10354_v40 = vld [vmem:[#allocation8 + $0x1b8] sm:$0xff]  ;;  %15787 = vmatprep.subr.mxu1 %v21975_v20 }
 0x7ba   :  { %v15476_v10 = vpop.f32.mrf.mxu1  ;;  %15881 = vmatpush3.msra.mxu0 %v10354_v40 }
 0x7bb   :  { %v9139_v16 = vpop.f32.mrf.mxu0  ;;  %15882 = vmatprep.subr.mxu0 %v21975_v20 }
 0x7bc   :  { %v9373_v63 = vpop.f32.mrf.mxu1 }
 0x7bd   :  { %v15387_v46 = vpop.f32.mrf.mxu0 }
 0x7be   :  { %v15479_v60 = vpop.f32.mrf.mxu1 }
 0x7bf   :  { %v9143_v43 = vpop.f32.mrf.mxu0 }
 0x7c0   :  { %v9377_v56 = vpop.f32.mrf.mxu1 }
 0x7c1   :  { %v15390_v21 = vpop.f32.mrf.mxu0 }
 0x7c2   :  { %v15482_v31 = vpop.f32.mrf.mxu1 }
 0x7c3   :  { %v9147_v48 = vpop.f32.mrf.mxu0 }
 0x7c4   :  { %v9170_v0 = vadd.f32 %v9147_v48, %v21401_v37  ;;  %v9382_v13 = vpop.f32.mrf.mxu1 }
 0x7c5   :  { %v15393_v23 = vpop.f32.mrf.mxu0 }
 0x7c6   :  { %v15485_v59 = vpop.f32.mrf.mxu1  ;;  %v21471_v9 = vadd.f32 %v9377_v56, %v9170_v0  ;;  %v10353_v0 = vld [vmem:[#allocation8 + $0x1b0] sm:$0xff]  ;;  %v10352_v23 = vld [vmem:[#allocation8 + $0x1a8] sm:$0xff] }
 0x7c7   :  { %v9152_v33 = vpop.f32.mrf.mxu0  ;;  %15883 = vmatpush3.msra.mxu0 %v10353_v0 }
 0x7c8   :  { %v9171_v18 = vadd.f32 %v9152_v33, %v21407_v14  ;;  %v9387_v45 = vpop.f32.mrf.mxu1  ;;  %15884 = vmatprep.subr.mxu0 %v21975_v20 }
 0x7c9   :  { %v15396_v38 = vpop.f32.mrf.mxu0  ;;  %15885 = vmatpush3.msra.mxu0 %v10352_v23 }
 0x7ca   :  { %v15488_v57 = vpop.f32.mrf.mxu1  ;;  %v21475_v11 = vadd.f32 %v9382_v13, %v9171_v18  ;;  %v10091_v13 = vld [vmem:[#allocation8 + $0x88] sm:$0xff]  ;;  %15886 = vmatprep.subr.mxu0 %v21975_v20  ;;  %v10350_v18 = vld [vmem:[#allocation8 + $0x198] sm:$0xff] }
 0x7cb   :  { %v9157_v37 = vpop.f32.mrf.mxu0  ;;  %15788 = vmatpush3.msra.mxu1 %v10091_v13 }
 0x7cc   :  { %v9172_v26 = vadd.f32 %v9157_v37, %v21413_v24  ;;  %v9392_v47 = vpop.f32.mrf.mxu1  ;;  %15789 = vmatprep.subr.mxu1 %v21975_v20  ;;  %v10349_v37 = vld [vmem:[#allocation8 + $0x190] sm:$0xff] }
 0x7cd   :  { %v15399_v14 = vpop.f32.mrf.mxu0 }
 0x7ce   :  { %v15491_v1 = vpop.f32.mrf.mxu1  ;;  %v21481_v49 = vadd.f32 %v9387_v45, %v9172_v26  ;;  %v10090_v45 = vld [vmem:[#allocation8 + $0x80] sm:$0xff] }
 0x7cf   :  { %v9162_v6 = vpop.f32.mrf.mxu0  ;;  %15790 = vmatpush3.msra.mxu1 %v10090_v45  ;;  %v10347_v1 = vld [vmem:[#allocation8 + $0x180] sm:$0xff] }
 0x7d0   :  { %v9173_v7 = vadd.f32 %v9162_v6, %v21419_v2  ;;  %v9777_v12 = vpop.f32.mrf.mxu1  ;;  %15794 = vmatprep.subr.mxu1 %v21975_v20 }
 0x7d1   :  { %v15402_v24 = vpop.f32.mrf.mxu0 }
 0x7d2   :  { %v15615_v30 = vpop.f32.mrf.mxu1  ;;  %v21487_v61 = vadd.f32 %v9392_v47, %v9173_v7 }
 0x7d3   :  { %v9544_v53 = vpop.f32.mrf.mxu0 }
 0x7d4   :  { %v9627_v2 = vadd.f32 %v9544_v53, %v21425_v44  ;;  %v9782_v34 = vpop.f32.mrf.mxu1 }
 0x7d5   :  { %v15526_v36 = vpop.f32.mrf.mxu0 }
 0x7d6   :  { %v15618_v25 = vpop.f32.mrf.mxu1  ;;  %v21493_v62 = vadd.f32 %v9777_v12, %v9627_v2 }
 0x7d7   :  { %v9549_v52 = vpop.f32.mrf.mxu0 }
 0x7d8   :  { %v9628_v44 = vadd.f32 %v9549_v52, %v21431_v8  ;;  %v9787_v4 = vpop.f32.mrf.mxu1 }
 0x7d9   :  { %v15529_v5 = vpop.f32.mrf.mxu0 }
 0x7da   :  { %v15621_v27 = vpop.f32.mrf.mxu1  ;;  %v21499_v10 = vadd.f32 %v9782_v34, %v9628_v44 }
 0x7db   :  { %v9554_v16 = vpop.f32.mrf.mxu0 }
 0x7dc   :  { %v9629_v32 = vadd.f32 %v9554_v16, %v21437_v42  ;;  %v9792_v63 = vpop.f32.mrf.mxu1 }
 0x7dd   :  { %v15532_v8 = vpop.f32.mrf.mxu0 }
 0x7de   :  { %v15624_v46 = vpop.f32.mrf.mxu1  ;;  %v21503_v60 = vadd.f32 %v9787_v4, %v9629_v32 }
 0x7df   :  { %v9559_v43 = vpop.f32.mrf.mxu0 }
 0x7e0   :  { %v9630_v54 = vadd.f32 %v9559_v43, %v21443_v15  ;;  %v9797_v56 = vpop.f32.mrf.mxu1  ;;  %v10351_v15 = vld [vmem:[#allocation8 + $0x1a0] sm:$0xff] }
 0x7e1   :  { %v15535_v21 = vpop.f32.mrf.mxu0  ;;  %15887 = vmatpush3.msra.mxu0 %v10351_v15 }
 0x7e2   :  { %v15627_v31 = vpop.f32.mrf.mxu1  ;;  %v21506_v48 = vadd.f32 %v9792_v63, %v9630_v54  ;;  %15888 = vmatprep.subr.mxu0 %v21975_v20 }
 0x7e3   :  { %v9564_v22 = vpop.f32.mrf.mxu0  ;;  %15889 = vmatpush3.msra.mxu0 %v10350_v18 }
 0x7e4   :  { %v9801_v42 = vpop.f32.mrf.mxu1  ;;  %15890 = vmatprep.subr.mxu0 %v21975_v20 }
 0x7e5   :  { %v15538_v59 = vpop.f32.mrf.mxu0  ;;  %15891 = vmatpush3.msra.mxu0 %v10349_v37 }
 0x7e6   :  { %v15630_v33 = vpop.f32.mrf.mxu1  ;;  %15892 = vmatprep.subr.mxu0 %v21975_v20 }
 0x7e7   :  { %v9568_v38 = vpop.f32.mrf.mxu0  ;;  %15893 = vmatpush3.msra.mxu0 %v10348_v39 }
 0x7e8   :  { %v9805_v19 = vpop.f32.mrf.mxu1  ;;  %15894 = vmatprep.subr.mxu0 %v21975_v20 }
 0x7e9   :  { %v15541_v28 = vpop.f32.mrf.mxu0  ;;  %15895 = vmatpush3.msra.mxu0 %v10347_v1 }
 0x7ea   :  { %v15633_v57 = vpop.f32.mrf.mxu1  ;;  %15934 = vmatprep.subr.mxu0 %v21975_v20 }
 0x7eb   :  { %v9572_v26 = vpop.f32.mrf.mxu0 }
 0x7ec   :  { %v9809_v47 = vpop.f32.mrf.mxu1 }
 0x7ed   :  { %v15544_v14 = vpop.f32.mrf.mxu0 }
 0x7ee   :  { %v15636_v41 = vpop.f32.mrf.mxu1 }
 0x7ef   :  { %v9576_v6 = vpop.f32.mrf.mxu0 }
 0x7f0   :  { %v9813_v35 = vpop.f32.mrf.mxu1 }
 0x7f1   :  { %v15547_v51 = vpop.f32.mrf.mxu0 }
 0x7f2   :  { %v15639_v7 = vpop.f32.mrf.mxu1 }
 0x7f3   :  { %v9580_v12 = vpop.f32.mrf.mxu0 }
 0x7f4   :  { %v9817_v24 = vpop.f32.mrf.mxu1 }
 0x7f5   :  { %v15550_v55 = vpop.f32.mrf.mxu0 }
 0x7f6   :  { %v15642_v30 = vpop.f32.mrf.mxu1 }
 0x7f7   :  { %v9584_v53 = vpop.f32.mrf.mxu0 }
 0x7f8   :  { %v9821_v29 = vpop.f32.mrf.mxu1 }
 0x7f9   :  { %v15553_v58 = vpop.f32.mrf.mxu0 }
 0x7fa   :  { %v15645_v2 = vpop.f32.mrf.mxu1 }
 0x7fb   :  { %v9588_v34 = vpop.f32.mrf.mxu0 }
 0x7fc   :  { %v9825_v36 = vpop.f32.mrf.mxu1 }
 0x7fd   :  { %v15556_v17 = vpop.f32.mrf.mxu0 }
 0x7fe   :  { %v15648_v25 = vpop.f32.mrf.mxu1 }
 0x7ff   :  { %v9592_v52 = vpop.f32.mrf.mxu0 }
 0x800   :  { %v9829_v50 = vpop.f32.mrf.mxu1 }
 0x801   :  { %v15559_v3 = vpop.f32.mrf.mxu0 }
 0x802   :  { %v15651_v44 = vpop.f32.mrf.mxu1 }
 0x803   :  { %v9596_v4 = vpop.f32.mrf.mxu0 }
 0x804   :  { %v9833_v5 = vpop.f32.mrf.mxu1 }
 0x805   :  { %v15562_v40 = vpop.f32.mrf.mxu0 }
 0x806   :  { %v15654_v27 = vpop.f32.mrf.mxu1 }
 0x807   :  { %v9600_v16 = vpop.f32.mrf.mxu0 }
 0x808   :  { %v9837_v32 = vpop.f32.mrf.mxu1  ;;  %v11149_v16 = vld [vmem:[%s21723_s8] ss:$0 sm:$0xff] }
 0x809   :  { %v15565_v63 = vpop.f32.mrf.mxu0 }
 0x80a   :  { %v15657_v8 = vpop.f32.mrf.mxu1 }
 0x80b   :  { %v9604_v46 = vpop.f32.mrf.mxu0 }
 0x80c   :  { %v9841_v43 = vpop.f32.mrf.mxu1 }
 0x80d   :  { %v15568_v54 = vpop.f32.mrf.mxu0 }
 0x80e   :  { %v15660_v56 = vpop.f32.mrf.mxu1 }
 0x80f   :  { %v9608_v21 = vpop.f32.mrf.mxu0 }
 0x810   :  { %v9631_v31 = vadd.f32 %v9608_v21, %v21471_v9  ;;  %v9846_v0 = vpop.f32.mrf.mxu1 }
 0x811   :  { %v15571_v13 = vpop.f32.mrf.mxu0 }
 0x812   :  { %v15663_v23 = vpop.f32.mrf.mxu1  ;;  %v9864_v22 = vadd.f32 %v9841_v43, %v9631_v31 }
 0x813   :  { %v9613_v42 = vpop.f32.mrf.mxu0 }
 0x814   :  { %v9632_v59 = vadd.f32 %v9613_v42, %v21475_v11  ;;  %v9851_v33 = vpop.f32.mrf.mxu1 }
 0x815   :  { %v15574_v15 = vpop.f32.mrf.mxu0 }
 0x816   :  { %v15666_v18 = vpop.f32.mrf.mxu1  ;;  %v9865_v45 = vadd.f32 %v9846_v0, %v9632_v59 }
 0x817   :  { %v9618_v38 = vpop.f32.mrf.mxu0 }
 0x818   :  { %v9633_v19 = vadd.f32 %v9618_v38, %v21481_v49  ;;  %v9856_v28 = vpop.f32.mrf.mxu1 }
 0x819   :  { %v15577_v57 = vpop.f32.mrf.mxu0 }
 0x81a   :  { %v15669_v37 = vpop.f32.mrf.mxu1  ;;  %v9866_v39 = vadd.f32 %v9851_v33, %v9633_v19 }
 0x81b   :  { %v9623_v26 = vpop.f32.mrf.mxu0 }
 0x81c   :  { %v9634_v9 = vadd.f32 %v9623_v26, %v21487_v61 }
 0x81d   :  { %v15580_v47 = vpop.f32.mrf.mxu0 }
 0x81e   :  { %v21521_v14 = vadd.f32 %v9856_v28, %v9634_v9 }
 0x81f   :  { %v9951_v41 = vpop.f32.mrf.mxu0 }
 0x820   :  { %v10034_v40 = vadd.f32 %v9951_v41, %v21493_v62 }
 0x821   :  { %v15704_v1 = vpop.f32.mrf.mxu0 }
 0x822   :  { %v10049_v63 = vadd.f32 %v11149_v16, %v10034_v40 }
 0x823   :  { %v9956_v11 = vpop.f32.mrf.mxu0 }
 0x824   :  { %v10035_v8 = vadd.f32 %v9956_v11, %v21499_v10  ;;  %v10057_v56 = vmax.f32 %v10049_v63, 0.0  ;;  %v10544_v63 = vld [vmem:[#allocation8 + $0x2d8] sm:$0xff] }
 0x825   :  { %v15707_v6 = vpop.f32.mrf.mxu0 }
 0x826   :  { %v10050_v21 = vadd.f32 %v11149_v16, %v10035_v8  ;;  %v10083_v62 = vrot.slane %v10057_v56, 1  ;;  %v10246_v59 = vrot.slane %v10057_v56, 2  ;;  %v10080_v6 = vld [vmem:[#allocation8 + $0x70] sm:$0xff] }
 0x827   :  { %v9961_v35 = vpop.f32.mrf.mxu0 }
 0x828   :  { %v10036_v51 = vadd.f32 %v9961_v35, %v21503_v60  ;;  %v10058_v33 = vmax.f32 %v10050_v21, 0.0  ;;  %v10072_v21 = vld [vmem:[#allocation8 + $0x30] sm:$0xff] }
 0x829   :  { %v15710_v7 = vpop.f32.mrf.mxu0 }
 0x82a   :  { %v10051_v15 = vadd.f32 %v11149_v16, %v10036_v51  ;;  %v10527_v41 = vrot.slane %v10058_v33, 5 }
 0x82b   :  { %v9966_v12 = vpop.f32.mrf.mxu0 }
 0x82c   :  { %v21525_v49 = vadd.f32 %v9966_v12, %v21506_v48  ;;  %v10059_v1 = vmax.f32 %v10051_v15, 0.0  ;;  %v10537_v15 = vld [vmem:[#allocation8 + $0x2a0] sm:$0xff] }
 0x82d   :  { %v15713_v24 = vpop.f32.mrf.mxu0 }
 0x82e   :  { %v10052_v24 = vadd.f32 %v11149_v16, %v21525_v49  ;;  %v10547_v49 = vld [vmem:[#allocation8 + $0x2f0] sm:$0xff]  ;;  %v10715_v40 = vrot.slane %v10059_v1, 7 }
 0x82f   :  { %v9971_v55 = vpop.f32.mrf.mxu0 }
 0x831   :  { %v15716_v30 = vpop.f32.mrf.mxu0 }
 0x832   :  { %v10079_v30 = vld [vmem:[#allocation8 + $0x68] sm:$0xff] }
 0x833   :  { %v9975_v53 = vpop.f32.mrf.mxu0 }
 0x834   :  { %v10548_v53 = vld [vmem:[#allocation8 + $0x2f8] sm:$0xff] }
 0x835   :  { %v15719_v61 = vpop.f32.mrf.mxu0 }
 0x837   :  { %v9979_v29 = vpop.f32.mrf.mxu0 }
 0x839   :  { %v15722_v58 = vpop.f32.mrf.mxu0 }
 0x83b   :  { %v9983_v2 = vpop.f32.mrf.mxu0 }
 0x83d   :  { %v15725_v34 = vpop.f32.mrf.mxu0 }
 0x83f   :  { %v9987_v36 = vpop.f32.mrf.mxu0 }
 0x840   :  { %v10078_v36 = vld [vmem:[#allocation8 + $0x60] sm:$0xff] }
 0x841   :  { %v15728_v17 = vpop.f32.mrf.mxu0 }
 0x843   :  { %v9991_v25 = vpop.f32.mrf.mxu0 }
 0x844   :  { %v10621_v25 = vrot.slane %v10059_v1, 6  ;;  %v10263_v1 = vld [vmem:[#allocation8 + $0x158] sm:$0xff] }
 0x845   :  { %v15731_v52 = vpop.f32.mrf.mxu0 }
 0x847   :  { %v9995_v50 = vpop.f32.mrf.mxu0 }
 0x849   :  { %v15734_v60 = vpop.f32.mrf.mxu0 }
 0x84a   :  { %v10546_v60 = vld [vmem:[#allocation8 + $0x2e8] sm:$0xff] }
 0x84b   :  { %v9999_v3 = vpop.f32.mrf.mxu0 }
 0x84c   :  { %v10060_v3 = vmax.f32 %v10052_v24, 0.0  ;;  %v10259_v24 = vld [vmem:[#allocation8 + $0x138] sm:$0xff] }
 0x84d   :  { %v15737_v44 = vpop.f32.mrf.mxu0 }
 0x84f   :  { %v10003_v4 = vpop.f32.mrf.mxu0 }
 0x851   :  { %v15740_v48 = vpop.f32.mrf.mxu0 }
 0x852   :  { %v10076_v48 = vld [vmem:[#allocation8 + $0x50] sm:$0xff] }
 0x853   :  { %v10007_v5 = vpop.f32.mrf.mxu0 }
 0x854   :  { %v10545_v5 = vld [vmem:[#allocation8 + $0x2e0] sm:$0xff] }
 0x855   :  { %v15743_v27 = vpop.f32.mrf.mxu0 }
 0x857   :  { %v10011_v32 = vpop.f32.mrf.mxu0 }
 0x858   :  { %v10075_v32 = vld [vmem:[#allocation8 + $0x48] sm:$0xff] }
 0x859   :  { %v15746_v46 = vpop.f32.mrf.mxu0 }
 0x85a   :  { %v10074_v46 = vld [vmem:[#allocation8 + $0x40] sm:$0xff] }
 0x85b   :  { %v10015_v43 = vpop.f32.mrf.mxu0 }
 0x85c   :  { %v10038_v54 = vadd.f32 %v10015_v43, %v9864_v22  ;;  %v10081_v22 = vld [vmem:[#allocation8 + $0x78] sm:$0xff]  ;;  %v10543_v43 = vld [vmem:[#allocation8 + $0x2d0] sm:$0xff] }
 0x85d   :  { %v15749_v31 = vpop.f32.mrf.mxu0 }
 0x85e   :  { %v10053_v0 = vadd.f32 %v11149_v16, %v10038_v54  ;;  %v10073_v54 = vld [vmem:[#allocation8 + $0x38] sm:$0xff]  ;;  %v10541_v31 = vld [vmem:[#allocation8 + $0x2c0] sm:$0xff] }
 0x85f   :  { %v10020_v13 = vpop.f32.mrf.mxu0 }
 0x860   :  { %v10061_v23 = vmax.f32 %v10053_v0, 0.0  ;;  %v10039_v42 = vadd.f32 %v10020_v13, %v9865_v45  ;;  %v10340_v45 = vrot.slane %v10058_v33, 3  ;;  %v10071_v0 = vld [vmem:[#allocation8 + $0x28] sm:$0xff]  ;;  %v10540_v13 = vld [vmem:[#allocation8 + $0x2b8] sm:$0xff] }
 0x861   :  { %v15752_v18 = vpop.f32.mrf.mxu0 }
 0x862   :  { %v10086_v38 = vrot.slane %v10061_v23, 1  ;;  %v10248_v19 = vrot.slane %v10061_v23, 2  ;;  %v10054_v28 = vadd.f32 %v11149_v16, %v10039_v42  ;;  %v21533_v10 = vsel %vm2389_vm6, %v10057_v56, %v10061_v23  ;;  %v10542_v56 = vld [vmem:[#allocation8 + $0x2c8] sm:$0xff]  ;;  %v10070_v23 = vld [vmem:[#allocation8 + $0x20] sm:$0xff]  ;;  %v10539_v42 = vld [vmem:[#allocation8 + $0x2b0] sm:$0xff] }
 0x863   :  { %v10025_v57 = vpop.f32.mrf.mxu0  ;;  %v10067_v18 = vld [vmem:[#allocation8 + $0x8] sm:$0xff] }
 0x864   :  { %v10062_v37 = vmax.f32 %v10054_v28, 0.0  ;;  %v10040_v26 = vadd.f32 %v10025_v57, %v9866_v39  ;;  %v10088_v9 = vsel %vm2389_vm6, %v10083_v62, %v10086_v38  ;;  %v21537_v47 = vsel %vm2389_vm6, %v10246_v59, %v10248_v19  ;;  %v10069_v62 = vld [vmem:[#allocation8 + $0x18] sm:$0xff]  ;;  %v10538_v59 = vld [vmem:[#allocation8 + $0x2a8] sm:$0xff]  ;;  %v10066_v19 = vld [vmem:[#allocation8] sm:$0xff] }
 0x865   :  { %v15755_v11 = vpop.f32.mrf.mxu0  ;;  %15792 = vmatmul.mubr.f32.vlgmr.msra.gmra.mxu1 %v10088_v9  ;;  %v10434_v39 = vrot.slane %v10058_v33, 4  ;;  %v10068_v33 = vld [vmem:[#allocation8 + $0x10] sm:$0xff]  ;;  %v10536_v38 = vld [vmem:[#allocation8 + $0x298] sm:$0xff]  ;;  %v10265_v9 = vld [vmem:[#allocation8 + $0x168] sm:$0xff] }
 0x866   :  { %v10343_v35 = vrot.slane %v10062_v37, 3  ;;  %v10436_v51 = vrot.slane %v10062_v37, 4  ;;  %v10529_v7 = vrot.slane %v10062_v37, 5  ;;  %v10055_v12 = vadd.f32 %v11149_v16, %v10040_v26  ;;  %15795 = vmatpush3.msra.mxu1 %v10081_v22  ;;  %15826 = vmatprep.mubr.msk.f32.mxu1 %vm16288_vm7, %v21975_v20  ;;  %v10535_v28 = vld [vmem:[#allocation8 + $0x290] sm:$0xff]  ;;  %v10267_v57 = vld [vmem:[#allocation8 + $0x178] sm:$0xff]  ;;  %v10534_v22 = vld [vmem:[#allocation8 + $0x288] sm:$0xff] }
 0x867   :  { %15796 = vmatprep.subr.mxu1 %v21975_v20  ;;  %v10030_v55 = vpop.f32.mrf.mxu0  ;;  %v10266_v37 = vld [vmem:[#allocation8 + $0x170] sm:$0xff]  ;;  %v10533_v26 = vld [vmem:[#allocation8 + $0x280] sm:$0xff]  ;;  %v10735_v11 = vld [vmem:[#allocation8 + $0x3e8] sm:$0xff] }
 0x868   :  { %v10063_v61 = vmax.f32 %v10055_v12, 0.0  ;;  %v10041_v29 = vadd.f32 %v10030_v55, %v21521_v14  ;;  %15797 = vmatpush3.msra.mxu1 %v10080_v6  ;;  %v10345_v58 = vsel %vm2389_vm6, %v10340_v45, %v10343_v35  ;;  %v21546_v2 = vsel %vm2389_vm6, %v10527_v41, %v10529_v7  ;;  %v10077_v14 = vld [vmem:[#allocation8 + $0x58] sm:$0xff]  ;;  %v10736_v41 = vld [vmem:[#allocation8 + $0x3f0] sm:$0xff]  ;;  %v10734_v35 = vld [vmem:[#allocation8 + $0x3e0] sm:$0xff] }
 0x869   :  { %15798 = vmatprep.subr.mxu1 %v21975_v20  ;;  %v15758_v34 = vpop.f32.mrf.mxu0  ;;  %15897 = vmatmul.mubr.f32.vlgmr.msra.gmra.mxu0 %v10345_v58  ;;  %v21550_v17 = vsel %vm2389_vm6, %v10434_v39, %v10436_v51  ;;  %v10737_v45 = vld [vmem:[#allocation8 + $0x3f8] sm:$0xff]  ;;  %v10262_v6 = vld [vmem:[#allocation8 + $0x150] sm:$0xff]  ;;  %v10261_v51 = vld [vmem:[#allocation8 + $0x148] sm:$0xff] }
 0x86a   :  { %v10624_v52 = vrot.slane %v10063_v61, 6  ;;  %v10056_v50 = vadd.f32 %v11149_v16, %v10041_v29  ;;  %15799 = vmatpush3.msra.mxu1 %v10079_v30  ;;  %15935 = vmatpush3.msra.mxu0 %v10548_v53  ;;  %v10733_v7 = vld [vmem:[#allocation8 + $0x3d8] sm:$0xff]  ;;  %v10260_v12 = vld [vmem:[#allocation8 + $0x140] sm:$0xff]  ;;  %v10732_v39 = vld [vmem:[#allocation8 + $0x3d0] sm:$0xff] }
 0x86b   :  { %15800 = vmatprep.subr.mxu1 %v21975_v20  ;;  %15936 = vmatprep.subr.mxu0 %v21975_v20  ;;  %v10731_v55 = vld [vmem:[#allocation8 + $0x3c8] sm:$0xff]  ;;  %v10258_v30 = vld [vmem:[#allocation8 + $0x130] sm:$0xff]  ;;  %v10730_v53 = vld [vmem:[#allocation8 + $0x3c0] sm:$0xff] }
 0x86c   :  { %v10064_v44 = vmax.f32 %v10056_v50, 0.0  ;;  %15801 = vmatpush3.msra.mxu1 %v10078_v36  ;;  %15937 = vmatpush3.msra.mxu0 %v10547_v49  ;;  %v21555_v4 = vsel %vm2389_vm6, %v10621_v25, %v10624_v52  ;;  %v10257_v61 = vld [vmem:[#allocation8 + $0x128] sm:$0xff]  ;;  %v10729_v29 = vld [vmem:[#allocation8 + $0x3b8] sm:$0xff]  ;;  %v10256_v58 = vld [vmem:[#allocation8 + $0x120] sm:$0xff] }
 0x86d   :  { %15802 = vmatprep.subr.mxu1 %v21975_v20  ;;  %15938 = vmatprep.subr.mxu0 %v21975_v20  ;;  %v10255_v34 = vld [vmem:[#allocation8 + $0x118] sm:$0xff]  ;;  %v10727_v36 = vld [vmem:[#allocation8 + $0x3a8] sm:$0xff]  ;;  %v10254_v49 = vld [vmem:[#allocation8 + $0x110] sm:$0xff] }
 0x86e   :  { %v10718_v27 = vrot.slane %v10064_v44, 7  ;;  %15803 = vmatpush3.msra.mxu1 %v10077_v14  ;;  %15939 = vmatpush3.msra.mxu0 %v10546_v60  ;;  %v21560_v16 = vsel %vm2389_vm6, %v10060_v3, %v10064_v44  ;;  %v10726_v25 = vld [vmem:[#allocation8 + $0x3a0] sm:$0xff]  ;;  %v10253_v52 = vld [vmem:[#allocation8 + $0x108] sm:$0xff]  ;;  %v10725_v50 = vld [vmem:[#allocation8 + $0x398] sm:$0xff] }
 0x86f   :  { %15804 = vmatprep.subr.mxu1 %v21975_v20  ;;  %15940 = vmatprep.subr.mxu0 %v21975_v20  ;;  %v10252_v14 = vld [vmem:[#allocation8 + $0x100] sm:$0xff]  ;;  %v10724_v60 = vld [vmem:[#allocation8 + $0x390] sm:$0xff]  ;;  %v10455_v3 = vld [vmem:[#allocation8 + $0x278] sm:$0xff] }
 0x870   :  { %15805 = vmatpush3.msra.mxu1 %v10076_v48  ;;  %15941 = vmatpush3.msra.mxu0 %v10545_v5  ;;  %v21565_v8 = vsel %vm2389_vm6, %v10715_v40, %v10718_v27  ;;  %v10723_v44 = vld [vmem:[#allocation8 + $0x388] sm:$0xff]  ;;  %v10454_v48 = vld [vmem:[#allocation8 + $0x270] sm:$0xff]  ;;  %v10722_v5 = vld [vmem:[#allocation8 + $0x380] sm:$0xff] }
 0x871   :  { %15806 = vmatprep.subr.mxu1 %v21975_v20  ;;  %15942 = vmatprep.subr.mxu0 %v21975_v20  ;;  %v10453_v40 = vld [vmem:[#allocation8 + $0x268] sm:$0xff]  ;;  %v10451_v27 = vld [vmem:[#allocation8 + $0x258] sm:$0xff] }
 0x872   :  { %15807 = vmatpush3.msra.mxu1 %v10075_v32  ;;  %15943 = vmatpush3.msra.mxu0 %v10544_v63  ;;  %v10450_v32 = vld [vmem:[#allocation8 + $0x250] sm:$0xff]  ;;  %v10449_v63 = vld [vmem:[#allocation8 + $0x248] sm:$0xff] }
 0x873   :  { %15808 = vmatprep.subr.mxu1 %v21975_v20  ;;  %15944 = vmatprep.subr.mxu0 %v21975_v20 }
 0x874   :  { %15809 = vmatpush3.msra.mxu1 %v10074_v46  ;;  %15945 = vmatpush3.msra.mxu0 %v10543_v43  ;;  %v10447_v46 = vld [vmem:[#allocation8 + $0x238] sm:$0xff]  ;;  %v10446_v43 = vld [vmem:[#allocation8 + $0x230] sm:$0xff] }
 0x875   :  { %15810 = vmatprep.subr.mxu1 %v21975_v20  ;;  %15946 = vmatprep.subr.mxu0 %v21975_v20 }
 0x876   :  { %15811 = vmatpush3.msra.mxu1 %v10073_v54  ;;  %15947 = vmatpush3.msra.mxu0 %v10542_v56  ;;  %v10445_v54 = vld [vmem:[#allocation8 + $0x228] sm:$0xff]  ;;  %v10444_v56 = vld [vmem:[#allocation8 + $0x220] sm:$0xff] }
 0x877   :  { %15812 = vmatprep.subr.mxu1 %v21975_v20  ;;  %15948 = vmatprep.subr.mxu0 %v21975_v20 }
 0x878   :  { %15813 = vmatpush3.msra.mxu1 %v10072_v21  ;;  %15949 = vmatpush3.msra.mxu0 %v10541_v31  ;;  %v10443_v21 = vld [vmem:[#allocation8 + $0x218] sm:$0xff]  ;;  %v10442_v31 = vld [vmem:[#allocation8 + $0x210] sm:$0xff] }
 0x879   :  { %15814 = vmatprep.subr.mxu1 %v21975_v20  ;;  %15950 = vmatprep.subr.mxu0 %v21975_v20 }
 0x87a   :  { %15815 = vmatpush3.msra.mxu1 %v10071_v0  ;;  %15951 = vmatpush3.msra.mxu0 %v10540_v13  ;;  %v10441_v0 = vld [vmem:[#allocation8 + $0x208] sm:$0xff]  ;;  %v10440_v13 = vld [vmem:[#allocation8 + $0x200] sm:$0xff] }
 0x87b   :  { %15816 = vmatprep.subr.mxu1 %v21975_v20  ;;  %15952 = vmatprep.subr.mxu0 %v21975_v20 }
 0x87c   :  { %15817 = vmatpush3.msra.mxu1 %v10070_v23  ;;  %15953 = vmatpush3.msra.mxu0 %v10539_v42  ;;  %v10643_v23 = vld [vmem:[#allocation8 + $0x378] sm:$0xff]  ;;  %v10642_v42 = vld [vmem:[#allocation8 + $0x370] sm:$0xff] }
 0x87d   :  { %15818 = vmatprep.subr.mxu1 %v21975_v20  ;;  %15954 = vmatprep.subr.mxu0 %v21975_v20 }
 0x87e   :  { %15819 = vmatpush3.msra.mxu1 %v10069_v62  ;;  %15955 = vmatpush3.msra.mxu0 %v10538_v59  ;;  %v10641_v62 = vld [vmem:[#allocation8 + $0x368] sm:$0xff]  ;;  %v10640_v59 = vld [vmem:[#allocation8 + $0x360] sm:$0xff] }
 0x87f   :  { %15820 = vmatprep.subr.mxu1 %v21975_v20  ;;  %15956 = vmatprep.subr.mxu0 %v21975_v20 }
 0x880   :  { %15821 = vmatpush3.msra.mxu1 %v10068_v33  ;;  %15957 = vmatpush3.msra.mxu0 %v10537_v15  ;;  %v10639_v33 = vld [vmem:[#allocation8 + $0x358] sm:$0xff]  ;;  %v10637_v15 = vld [vmem:[#allocation8 + $0x348] sm:$0xff] }
 0x881   :  { %15822 = vmatprep.subr.mxu1 %v21975_v20  ;;  %15958 = vmatprep.subr.mxu0 %v21975_v20 }
 0x882   :  { %15823 = vmatpush3.msra.mxu1 %v10067_v18  ;;  %15959 = vmatpush3.msra.mxu0 %v10536_v38  ;;  %v10636_v18 = vld [vmem:[#allocation8 + $0x340] sm:$0xff]  ;;  %v10635_v38 = vld [vmem:[#allocation8 + $0x338] sm:$0xff] }
 0x883   :  { %15824 = vmatprep.subr.mxu1 %v21975_v20  ;;  %15960 = vmatprep.subr.mxu0 %v21975_v20 }
 0x884   :  { %15825 = vmatpush3.msra.mxu1 %v10066_v19  ;;  %15961 = vmatpush3.msra.mxu0 %v10535_v28  ;;  %v10634_v19 = vld [vmem:[#allocation8 + $0x330] sm:$0xff]  ;;  %v10633_v28 = vld [vmem:[#allocation8 + $0x328] sm:$0xff] }
 0x885   :  { %15827 = vmatmul.mubr.f32.vlgmr.msra.gmra.mxu1 %v21533_v10  ;;  %15829 = vmatprep.subr.mxu1 %v21975_v20  ;;  %v10264_v10 = vld [vmem:[#allocation8 + $0x160] sm:$0xff] }
 0x886   :  { %15962 = vmatprep.subr.mxu0 %v21975_v20  ;;  %15830 = vmatpush3.msra.mxu1 %v10267_v57  ;;  %v10632_v57 = vld [vmem:[#allocation8 + $0x320] sm:$0xff] }
 0x887   :  { %15963 = vmatpush3.msra.mxu0 %v10534_v22  ;;  %15831 = vmatprep.subr.mxu1 %v21975_v20  ;;  %v10631_v22 = vld [vmem:[#allocation8 + $0x318] sm:$0xff] }
 0x888   :  { %15964 = vmatprep.subr.mxu0 %v21975_v20  ;;  %15832 = vmatpush3.msra.mxu1 %v10266_v37  ;;  %v10630_v37 = vld [vmem:[#allocation8 + $0x310] sm:$0xff] }
 0x889   :  { %15965 = vmatpush3.msra.mxu0 %v10533_v26  ;;  %15966 = vmatprep.mubr.msk.f32.mxu0 %vm16288_vm7, %v21975_v20  ;;  %v10629_v26 = vld [vmem:[#allocation8 + $0x308] sm:$0xff] }
 0x88a   :  { %15833 = vmatprep.subr.mxu1 %v21975_v20  ;;  %15967 = vmatmul.mubr.f32.vlgmr.msra.gmra.mxu0 %v21546_v2  ;;  %v10728_v2 = vld [vmem:[#allocation8 + $0x3b0] sm:$0xff] }
 0x88b   :  { %16004 = vmatprep.subr.mxu0 %v21975_v20  ;;  %15834 = vmatpush3.msra.mxu1 %v10265_v9  ;;  %v10628_v9 = vld [vmem:[#allocation8 + $0x300] sm:$0xff] }
 0x88c   :  { %16005 = vmatpush3.msra.mxu0 %v10737_v45  ;;  %15835 = vmatprep.subr.mxu1 %v21975_v20  ;;  %v10826_v45 = vld [vmem:[#allocation8 + $0x478] sm:$0xff] }
 0x88d   :  { %16006 = vmatprep.subr.mxu0 %v21975_v20  ;;  %15836 = vmatpush3.msra.mxu1 %v10264_v10  ;;  %v10825_v10 = vld [vmem:[#allocation8 + $0x470] sm:$0xff] }
 0x88e   :  { %16007 = vmatpush3.msra.mxu0 %v10736_v41  ;;  %15837 = vmatprep.subr.mxu1 %v21975_v20  ;;  %v10824_v41 = vld [vmem:[#allocation8 + $0x468] sm:$0xff] }
 0x88f   :  { %16008 = vmatprep.subr.mxu0 %v21975_v20  ;;  %15838 = vmatpush3.msra.mxu1 %v10263_v1  ;;  %v10823_v1 = vld [vmem:[#allocation8 + $0x460] sm:$0xff] }
 0x890   :  { %16009 = vmatpush3.msra.mxu0 %v10735_v11  ;;  %15839 = vmatprep.subr.mxu1 %v21975_v20  ;;  %v10822_v11 = vld [vmem:[#allocation8 + $0x458] sm:$0xff] }
 0x891   :  { %16010 = vmatprep.subr.mxu0 %v21975_v20  ;;  %15840 = vmatpush3.msra.mxu1 %v10262_v6  ;;  %v10820_v6 = vld [vmem:[#allocation8 + $0x448] sm:$0xff] }
 0x892   :  { %16011 = vmatpush3.msra.mxu0 %v10734_v35  ;;  %15841 = vmatprep.subr.mxu1 %v21975_v20  ;;  %v10819_v35 = vld [vmem:[#allocation8 + $0x440] sm:$0xff] }
 0x893   :  { %16012 = vmatprep.subr.mxu0 %v21975_v20  ;;  %15842 = vmatpush3.msra.mxu1 %v10261_v51  ;;  %v10818_v51 = vld [vmem:[#allocation8 + $0x438] sm:$0xff] }
 0x894   :  { %16013 = vmatpush3.msra.mxu0 %v10733_v7  ;;  %15843 = vmatprep.subr.mxu1 %v21975_v20  ;;  %v10817_v7 = vld [vmem:[#allocation8 + $0x430] sm:$0xff] }
 0x895   :  { %16014 = vmatprep.subr.mxu0 %v21975_v20  ;;  %15844 = vmatpush3.msra.mxu1 %v10260_v12  ;;  %v10816_v12 = vld [vmem:[#allocation8 + $0x428] sm:$0xff] }
 0x896   :  { %16015 = vmatpush3.msra.mxu0 %v10732_v39  ;;  %15845 = vmatprep.subr.mxu1 %v21975_v20  ;;  %v10815_v39 = vld [vmem:[#allocation8 + $0x420] sm:$0xff] }
 0x897   :  { %16016 = vmatprep.subr.mxu0 %v21975_v20  ;;  %15846 = vmatpush3.msra.mxu1 %v10259_v24  ;;  %v10814_v24 = vld [vmem:[#allocation8 + $0x418] sm:$0xff] }
 0x898   :  { %16017 = vmatpush3.msra.mxu0 %v10731_v55  ;;  %15847 = vmatprep.subr.mxu1 %v21975_v20  ;;  %v10813_v55 = vld [vmem:[#allocation8 + $0x410] sm:$0xff] }
 0x899   :  { %16018 = vmatprep.subr.mxu0 %v21975_v20  ;;  %15848 = vmatpush3.msra.mxu1 %v10258_v30  ;;  %v10812_v30 = vld [vmem:[#allocation8 + $0x408] sm:$0xff] }
 0x89a   :  { %16019 = vmatpush3.msra.mxu0 %v10730_v53  ;;  %15849 = vmatprep.subr.mxu1 %v21975_v20  ;;  %v10811_v53 = vld [vmem:[#allocation8 + $0x400] sm:$0xff] }
 0x89b   :  { %16020 = vmatprep.subr.mxu0 %v21975_v20  ;;  %15850 = vmatpush3.msra.mxu1 %v10257_v61 }
 0x89c   :  { %16021 = vmatpush3.msra.mxu0 %v10729_v29  ;;  %15851 = vmatprep.subr.mxu1 %v21975_v20 }
 0x89d   :  { %16022 = vmatprep.subr.mxu0 %v21975_v20  ;;  %15852 = vmatpush3.msra.mxu1 %v10256_v58 }
 0x89e   :  { %16023 = vmatpush3.msra.mxu0 %v10728_v2  ;;  %15853 = vmatprep.subr.mxu1 %v21975_v20  ;;  %v10922_v2 = vld [vmem:[#allocation10 + $0x78] sm:$0xff] }
 0x89f   :  { %16024 = vmatprep.subr.mxu0 %v21975_v20  ;;  %15854 = vmatpush3.msra.mxu1 %v10255_v34  ;;  %v10921_v34 = vld [vmem:[#allocation10 + $0x70] sm:$0xff] }
 0x8a0   :  { %16025 = vmatpush3.msra.mxu0 %v10727_v36  ;;  %15855 = vmatprep.subr.mxu1 %v21975_v20 }
 0x8a1   :  { %16026 = vmatprep.subr.mxu0 %v21975_v20  ;;  %15856 = vmatpush3.msra.mxu1 %v10254_v49  ;;  %v10920_v49 = vld [vmem:[#allocation10 + $0x68] sm:$0xff] }
 0x8a2   :  { %16027 = vmatpush3.msra.mxu0 %v10726_v25  ;;  %15857 = vmatprep.subr.mxu1 %v21975_v20  ;;  %v10919_v25 = vld [vmem:[#allocation10 + $0x60] sm:$0xff] }
 0x8a3   :  { %16028 = vmatprep.subr.mxu0 %v21975_v20  ;;  %15858 = vmatpush3.msra.mxu1 %v10253_v52  ;;  %v10918_v52 = vld [vmem:[#allocation10 + $0x58] sm:$0xff] }
 0x8a4   :  { %16029 = vmatpush3.msra.mxu0 %v10725_v50  ;;  %15859 = vmatprep.subr.mxu1 %v21975_v20  ;;  %v10916_v50 = vld [vmem:[#allocation10 + $0x48] sm:$0xff] }
 0x8a5   :  { %16030 = vmatprep.subr.mxu0 %v21975_v20  ;;  %15860 = vmatpush3.msra.mxu1 %v10252_v14  ;;  %v10915_v14 = vld [vmem:[#allocation10 + $0x40] sm:$0xff] }
 0x8a6   :  { %15861 = vmatprep.mubr.msk.f32.mxu1 %vm16288_vm7, %v21975_v20  ;;  %16031 = vmatpush3.msra.mxu0 %v10724_v60  ;;  %v10914_v60 = vld [vmem:[#allocation10 + $0x38] sm:$0xff] }
 0x8a7   :  { %15862 = vmatmul.mubr.f32.vlgmr.msra.gmra.mxu1 %v21537_v47  ;;  %15899 = vmatprep.subr.mxu1 %v21975_v20  ;;  %v10452_v47 = vld [vmem:[#allocation8 + $0x260] sm:$0xff] }
 0x8a8   :  { %16032 = vmatprep.subr.mxu0 %v21975_v20  ;;  %15900 = vmatpush3.msra.mxu1 %v10455_v3  ;;  %v10913_v3 = vld [vmem:[#allocation10 + $0x30] sm:$0xff] }
 0x8a9   :  { %16033 = vmatpush3.msra.mxu0 %v10723_v44  ;;  %15901 = vmatprep.subr.mxu1 %v21975_v20  ;;  %v10912_v44 = vld [vmem:[#allocation10 + $0x28] sm:$0xff] }
 0x8aa   :  { %16034 = vmatprep.subr.mxu0 %v21975_v20  ;;  %15902 = vmatpush3.msra.mxu1 %v10454_v48  ;;  %v10911_v48 = vld [vmem:[#allocation10 + $0x20] sm:$0xff] }
 0x8ab   :  { %16035 = vmatpush3.msra.mxu0 %v10722_v5  ;;  %16036 = vmatprep.mubr.msk.f32.mxu0 %vm16288_vm7, %v21975_v20 }
 0x8ac   :  { %15903 = vmatprep.subr.mxu1 %v21975_v20  ;;  %16037 = vmatmul.mubr.f32.vlgmr.msra.gmra.mxu0 %v21565_v8  ;;  %v10448_v8 = vld [vmem:[#allocation8 + $0x240] sm:$0xff] }
 0x8ad   :  { %15904 = vmatpush3.msra.mxu1 %v10453_v40  ;;  %15931 = vmatprep.mubr.msk.f32.mxu1 %vm16288_vm7, %v21975_v20 }
 0x8ae   :  { %15905 = vmatprep.subr.mxu1 %v21975_v20  ;;  %16074 = vmatprep.subr.mxu0 %v21975_v20 }
 0x8af   :  { %15906 = vmatpush3.msra.mxu1 %v10452_v47  ;;  %16106 = vmatprep.mubr.msk.f32.mxu0 %vm16288_vm7, %v21975_v20 }
 0x8b0   :  { %15907 = vmatprep.subr.mxu1 %v21975_v20  ;;  %16075 = vmatpush3.msra.mxu0 %v10922_v2 }
 0x8b1   :  { %15908 = vmatpush3.msra.mxu1 %v10451_v27  ;;  %16076 = vmatprep.subr.mxu0 %v21975_v20 }
 0x8b2   :  { %15909 = vmatprep.subr.mxu1 %v21975_v20  ;;  %16077 = vmatpush3.msra.mxu0 %v10921_v34 }
 0x8b3   :  { %15910 = vmatpush3.msra.mxu1 %v10450_v32  ;;  %16078 = vmatprep.subr.mxu0 %v21975_v20 }
 0x8b4   :  { %15911 = vmatprep.subr.mxu1 %v21975_v20  ;;  %16079 = vmatpush3.msra.mxu0 %v10920_v49 }
 0x8b5   :  { %15912 = vmatpush3.msra.mxu1 %v10449_v63  ;;  %16080 = vmatprep.subr.mxu0 %v21975_v20  ;;  %v10910_v63 = vld [vmem:[#allocation10 + $0x18] sm:$0xff] }
 0x8b6   :  { %15913 = vmatprep.subr.mxu1 %v21975_v20  ;;  %16081 = vmatpush3.msra.mxu0 %v10919_v25 }
 0x8b7   :  { %15914 = vmatpush3.msra.mxu1 %v10448_v8  ;;  %16082 = vmatprep.subr.mxu0 %v21975_v20  ;;  %v10909_v8 = vld [vmem:[#allocation10 + $0x10] sm:$0xff] }
 0x8b8   :  { %15915 = vmatprep.subr.mxu1 %v21975_v20  ;;  %16083 = vmatpush3.msra.mxu0 %v10918_v52 }
 0x8b9   :  { %15916 = vmatpush3.msra.mxu1 %v10447_v46  ;;  %16084 = vmatprep.subr.mxu0 %v21975_v20  ;;  %v10908_v46 = vld [vmem:[#allocation10 + $0x8] sm:$0xff] }
 0x8ba   :  { %15917 = vmatprep.subr.mxu1 %v21975_v20 }
 0x8bb   :  { %15918 = vmatpush3.msra.mxu1 %v10446_v43  ;;  %v10907_v43 = vld [vmem:[#allocation10] sm:$0xff] }
 0x8bc   :  { %15919 = vmatprep.subr.mxu1 %v21975_v20 }
 0x8bd   :  { %15920 = vmatpush3.msra.mxu1 %v10445_v54 }
 0x8be   :  { %15921 = vmatprep.subr.mxu1 %v21975_v20 }
 0x8bf   :  { %15922 = vmatpush3.msra.mxu1 %v10444_v56 }
 0x8c0   :  { %15923 = vmatprep.subr.mxu1 %v21975_v20 }
 0x8c1   :  { %15924 = vmatpush3.msra.mxu1 %v10443_v21 }
 0x8c2   :  { %15925 = vmatprep.subr.mxu1 %v21975_v20 }
 0x8c3   :  { %15926 = vmatpush3.msra.mxu1 %v10442_v31 }
 0x8c4   :  { %15927 = vmatprep.subr.mxu1 %v21975_v20 }
 0x8c5   :  { %15928 = vmatpush3.msra.mxu1 %v10441_v0 }
 0x8c6   :  { %15929 = vmatprep.subr.mxu1 %v21975_v20 }
 0x8c7   :  { %15930 = vmatpush3.msra.mxu1 %v10440_v13 }
 0x8c8   :  { %15932 = vmatmul.mubr.f32.vlgmr.msra.gmra.mxu1 %v21550_v17  ;;  %15969 = vmatprep.subr.mxu1 %v21975_v20  ;;  %v10638_v17 = vld [vmem:[#allocation8 + $0x350] sm:$0xff] }
 0x8c9   :  { %15970 = vmatpush3.msra.mxu1 %v10643_v23  ;;  %16001 = vmatprep.mubr.msk.f32.mxu1 %vm16288_vm7, %v21975_v20 }
 0x8ca   :  { %15971 = vmatprep.subr.mxu1 %v21975_v20 }
 0x8cb   :  { %15972 = vmatpush3.msra.mxu1 %v10642_v42 }
 0x8cc   :  { %15973 = vmatprep.subr.mxu1 %v21975_v20 }
 0x8cd   :  { %15974 = vmatpush3.msra.mxu1 %v10641_v62 }
 0x8ce   :  { %15975 = vmatprep.subr.mxu1 %v21975_v20 }
 0x8cf   :  { %15976 = vmatpush3.msra.mxu1 %v10640_v59 }
 0x8d0   :  { %15977 = vmatprep.subr.mxu1 %v21975_v20 }
 0x8d1   :  { %15978 = vmatpush3.msra.mxu1 %v10639_v33 }
 0x8d2   :  { %15979 = vmatprep.subr.mxu1 %v21975_v20 }
 0x8d3   :  { %15980 = vmatpush3.msra.mxu1 %v10638_v17 }
 0x8d4   :  { %15981 = vmatprep.subr.mxu1 %v21975_v20 }
 0x8d5   :  { %15982 = vmatpush3.msra.mxu1 %v10637_v15 }
 0x8d6   :  { %15983 = vmatprep.subr.mxu1 %v21975_v20 }
 0x8d7   :  { %15984 = vmatpush3.msra.mxu1 %v10636_v18 }
 0x8d8   :  { %15985 = vmatprep.subr.mxu1 %v21975_v20 }
 0x8d9   :  { %15986 = vmatpush3.msra.mxu1 %v10635_v38 }
 0x8da   :  { %15987 = vmatprep.subr.mxu1 %v21975_v20 }
 0x8db   :  { %15988 = vmatpush3.msra.mxu1 %v10634_v19 }
 0x8dc   :  { %15989 = vmatprep.subr.mxu1 %v21975_v20 }
 0x8dd   :  { %15990 = vmatpush3.msra.mxu1 %v10633_v28 }
 0x8de   :  { %15991 = vmatprep.subr.mxu1 %v21975_v20 }
 0x8df   :  { %15992 = vmatpush3.msra.mxu1 %v10632_v57 }
 0x8e0   :  { %15993 = vmatprep.subr.mxu1 %v21975_v20 }
 0x8e1   :  { %15994 = vmatpush3.msra.mxu1 %v10631_v22 }
 0x8e2   :  { %15995 = vmatprep.subr.mxu1 %v21975_v20 }
 0x8e3   :  { %15996 = vmatpush3.msra.mxu1 %v10630_v37  ;;  %v11151_v37 = vld [vmem:[%s21727_s12] ss:$0 sm:$0xff] }
 0x8e4   :  { %15997 = vmatprep.subr.mxu1 %v21975_v20 }
 0x8e5   :  { %15998 = vmatpush3.msra.mxu1 %v10629_v26 }
 0x8e6   :  { %15999 = vmatprep.subr.mxu1 %v21975_v20 }
 0x8e7   :  { %16000 = vmatpush3.msra.mxu1 %v10628_v9 }
 0x8e8   :  { %16002 = vmatmul.mubr.f32.vlgmr.msra.gmra.mxu1 %v21555_v4  ;;  %16039 = vmatprep.subr.mxu1 %v21975_v20  ;;  %v10821_v4 = vld [vmem:[#allocation8 + $0x450] sm:$0xff] }
 0x8e9   :  { %16040 = vmatpush3.msra.mxu1 %v10826_v45  ;;  %16071 = vmatprep.mubr.msk.f32.mxu1 %vm16288_vm7, %v21975_v20 }
 0x8ea   :  { %16041 = vmatprep.subr.mxu1 %v21975_v20 }
 0x8eb   :  { %16042 = vmatpush3.msra.mxu1 %v10825_v10 }
 0x8ec   :  { %16043 = vmatprep.subr.mxu1 %v21975_v20 }
 0x8ed   :  { %16044 = vmatpush3.msra.mxu1 %v10824_v41 }
 0x8ee   :  { %16045 = vmatprep.subr.mxu1 %v21975_v20 }
 0x8ef   :  { %16046 = vmatpush3.msra.mxu1 %v10823_v1 }
 0x8f0   :  { %16047 = vmatprep.subr.mxu1 %v21975_v20 }
 0x8f1   :  { %16048 = vmatpush3.msra.mxu1 %v10822_v11 }
 0x8f2   :  { %16049 = vmatprep.subr.mxu1 %v21975_v20 }
 0x8f3   :  { %16050 = vmatpush3.msra.mxu1 %v10821_v4 }
 0x8f4   :  { %16051 = vmatprep.subr.mxu1 %v21975_v20 }
 0x8f5   :  { %16052 = vmatpush3.msra.mxu1 %v10820_v6 }
 0x8f6   :  { %16053 = vmatprep.subr.mxu1 %v21975_v20 }
 0x8f7   :  { %16054 = vmatpush3.msra.mxu1 %v10819_v35 }
 0x8f8   :  { %16055 = vmatprep.subr.mxu1 %v21975_v20 }
 0x8f9   :  { %16056 = vmatpush3.msra.mxu1 %v10818_v51 }
 0x8fa   :  { %16057 = vmatprep.subr.mxu1 %v21975_v20 }
 0x8fb   :  { %16058 = vmatpush3.msra.mxu1 %v10817_v7 }
 0x8fc   :  { %16059 = vmatprep.subr.mxu1 %v21975_v20 }
 0x8fd   :  { %16060 = vmatpush3.msra.mxu1 %v10816_v12 }
 0x8fe   :  { %16061 = vmatprep.subr.mxu1 %v21975_v20 }
 0x8ff   :  { %16062 = vmatpush3.msra.mxu1 %v10815_v39 }
 0x900   :  { %16063 = vmatprep.subr.mxu1 %v21975_v20 }
 0x901   :  { %16064 = vmatpush3.msra.mxu1 %v10814_v24 }
 0x902   :  { %16065 = vmatprep.subr.mxu1 %v21975_v20 }
 0x903   :  { %16066 = vmatpush3.msra.mxu1 %v10813_v55 }
 0x904   :  { %16067 = vmatprep.subr.mxu1 %v21975_v20 }
 0x905   :  { %16068 = vmatpush3.msra.mxu1 %v10812_v30 }
 0x906   :  { %16069 = vmatprep.subr.mxu1 %v21975_v20 }
 0x907   :  { %16070 = vmatpush3.msra.mxu1 %v10811_v53 }
 0x908   :  { %16072 = vmatmul.mubr.f32.vlgmr.msra.gmra.mxu1 %v21560_v16  ;;  %v10917_v16 = vld [vmem:[#allocation10 + $0x50] sm:$0xff] }
 0x909   :  { %16085 = vmatpush3.msra.mxu0 %v10917_v16 }
 0x90a   :  { %16086 = vmatprep.subr.mxu0 %v21975_v20 }
 0x90b   :  { %16087 = vmatpush3.msra.mxu0 %v10916_v50 }
 0x90c   :  { %16088 = vmatprep.subr.mxu0 %v21975_v20 }
 0x90d   :  { %16089 = vmatpush3.msra.mxu0 %v10915_v14 }
 0x90e   :  { %16090 = vmatprep.subr.mxu0 %v21975_v20 }
 0x90f   :  { %16091 = vmatpush3.msra.mxu0 %v10914_v60 }
 0x910   :  { %16092 = vmatprep.subr.mxu0 %v21975_v20 }
 0x911   :  { %16093 = vmatpush3.msra.mxu0 %v10913_v3 }
 0x912   :  { %16094 = vmatprep.subr.mxu0 %v21975_v20 }
 0x913   :  { %16095 = vmatpush3.msra.mxu0 %v10912_v44 }
 0x914   :  { %16096 = vmatprep.subr.mxu0 %v21975_v20 }
 0x915   :  { %16097 = vmatpush3.msra.mxu0 %v10911_v48 }
 0x916   :  { %16098 = vmatprep.subr.mxu0 %v21975_v20 }
 0x917   :  { %16099 = vmatpush3.msra.mxu0 %v10910_v63 }
 0x918   :  { %16100 = vmatprep.subr.mxu0 %v21975_v20 }
 0x919   :  { %16101 = vmatpush3.msra.mxu0 %v10909_v8 }
 0x91a   :  { %16102 = vmatprep.subr.mxu0 %v21975_v20 }
 0x91b   :  { %16103 = vmatpush3.msra.mxu0 %v10908_v46 }
 0x91c   :  { %16104 = vmatprep.subr.mxu0 %v21975_v20  ;;  %v11150_v20 = vld [vmem:[%s21725_s10] ss:$0 sm:$0xff] }
 0x91d   :  { %16105 = vmatpush3.msra.mxu0 %v10907_v43 }
 0x925   :  { %v10172_v61 = vpop.f32.mrf.mxu1 }
 0x927   :  { %v15793_v29 = vpop.f32.mrf.mxu1 }
 0x929   :  { %v10429_v58 = vpop.f32.mrf.mxu0 }
 0x92b   :  { %v15898_v36 = vpop.f32.mrf.mxu0 }
 0x945   :  { %v10242_v5 = vpop.f32.mrf.mxu1 }
 0x946   :  { %v10243_v40 = vadd.f32 %v10242_v5, %v10172_v61 }
 0x947   :  { %v15828_v47 = vpop.f32.mrf.mxu1 }
 0x94a   :  { %v10615_v27 = vpop.f32.mrf.mxu0 }
 0x94c   :  { %v15968_v32 = vpop.f32.mrf.mxu0 }
 0x967   :  { %v10334_v54 = vpop.f32.mrf.mxu1 }
 0x968   :  { %v10338_v56 = vadd.f32 %v10334_v54, %v10243_v40 }
 0x969   :  { %v15863_v21 = vpop.f32.mrf.mxu1 }
 0x96a   :  { %v10433_v31 = vadd.f32 %v10429_v58, %v10338_v56 }
 0x96c   :  { %v10804_v0 = vpop.f32.mrf.mxu0 }
 0x96e   :  { %v16038_v13 = vpop.f32.mrf.mxu0 }
 0x988   :  { %v10522_v23 = vpop.f32.mrf.mxu1 }
 0x989   :  { %v10526_v42 = vadd.f32 %v10522_v23, %v10433_v31 }
 0x98a   :  { %v15933_v62 = vpop.f32.mrf.mxu1 }
 0x98b   :  { %v10619_v59 = vadd.f32 %v10615_v27, %v10526_v42 }
 0x9a8   :  { %v10710_v33 = vpop.f32.mrf.mxu1 }
 0x9a9   :  { %v10714_v17 = vadd.f32 %v10710_v33, %v10619_v59 }
 0x9aa   :  { %v16003_v15 = vpop.f32.mrf.mxu1 }
 0x9ab   :  { %v10808_v18 = vadd.f32 %v10804_v0, %v10714_v17 }
 0x9c8   :  { %v10893_v38 = vpop.f32.mrf.mxu1 }
 0x9c9   :  { %v10897_v19 = vadd.f32 %v10893_v38, %v10808_v18 }
 0x9ca   :  { %v16073_v28 = vpop.f32.mrf.mxu1 }
 0x9cb   :  { %v10905_v57 = vadd.f32 %v11150_v20, %v10897_v19 }
 0x9cd   :  { %v10906_v22 = vmax.f32 %v10905_v57, 0.0 }
 0x9cf   :  { %16107 = vmatmul.mubr.f32.vlgmr.msra.gmra.mxu0 %v10906_v22 }
 0xa8f   :  { %v10996_v26 = vpop.f32.mrf.mxu0 }
 0xa90   :  { %v10997_v9 = vadd.f32 %v11151_v37, %v10996_v26 }
 0xa91   :  { %v16108_v45 = vpop.f32.mrf.mxu0 }
 0xa92   :  { %11000 = vst [vmem:[#allocation11] sm:$0x3] %v10997_v9 }
 0xa93   :  { %16263 = shalt.err (!%p16260_p1)
}
 0xa94   :  { %11010 = dma.vmem_to_hbm [thread:$0]  %s11008_s20, 32, %s21728_s13, [#allocation4]  }
 0xa95   :  { %16278 = dma.done.wait [#allocation4], 32  }
 0xa96   :  { %16279 = vsyncadd [#allocation4], 4294967264 }
 0xa97   :  { %11014 = vsyncpa [#allocation3], 1 }
 0xa98   :  { %11015 = vsyncpa [#allocation6], 1 }
 0xa99   :  { %11016 = vsyncpa [#allocation9], 1 }
 0xa9a   :  { %11017 = vsyncpa [#allocation4], 1 }

</bundles_post_ra>
